<compile_context>
chip_gen: v5e
topology: v5e:2x2
jax: 0.10.0
libtpu: 0.0.40
codegen_flags: <defaults>
</compile_context>

<pallas_src>
import functools

import numpy as np
import jax
import jax.numpy as jnp
from jax.experimental import pallas as pl
from jax.experimental.pallas import tpu as pltpu

NUM_CLASSES = 10
BN_EPS = 1e-5

# <= 64 MiB so the same tiling also fits a v7x TensorCore (64 MiB VMEM).
VMEM_LIMIT_BYTES = 48 * 1024 * 1024

_VMEM = functools.partial(pl.BlockSpec, memory_space=pltpu.MemorySpace.VMEM)


def _round_up(x, m):
    return ((x + m - 1) // m) * m


def _pad_k(k_raw):
    # Pad contraction dim to a lane multiple (e.g. conv1's 7*7*3 = 147 -> 256).
    return _round_up(k_raw, 128)


def _choose_tk(k_pad):
    # K tile: multiple of 128, divides the (padded) K, capped at 512.
    if k_pad <= 512:
        return k_pad
    for cand in (512, 384, 256, 128):
        if k_pad % cand == 0:
            return cand
    return 128


# ----------------------------- Pallas kernels --------------------------------

def _conv_bn_kernel(p_ref, w_ref, s_ref, b_ref, o_ref, acc_ref, *, relu):
    # Tiled matmul with f32 accumulator; fused BN affine + optional ReLU.
    @pl.when(pl.program_id(2) == 0)
    def _init():
        acc_ref[...] = jnp.zeros_like(acc_ref)

    acc_ref[...] += jnp.dot(p_ref[...], w_ref[...],
                            preferred_element_type=jnp.float32)

    @pl.when(pl.program_id(2) == pl.num_programs(2) - 1)
    def _store():
        out = acc_ref[...] * s_ref[...] + b_ref[...]
        if relu:
            out = jnp.maximum(out, 0.0)
        o_ref[...] = out.astype(o_ref.dtype)


def _conv_bn_res_kernel(p_ref, w_ref, s_ref, b_ref, r_ref, o_ref, acc_ref, *, relu):
    # Same as above plus fused residual add.
    @pl.when(pl.program_id(2) == 0)
    def _init():
        acc_ref[...] = jnp.zeros_like(acc_ref)

    acc_ref[...] += jnp.dot(p_ref[...], w_ref[...],
                            preferred_element_type=jnp.float32)

    @pl.when(pl.program_id(2) == pl.num_programs(2) - 1)
    def _store():
        out = (acc_ref[...] * s_ref[...] + b_ref[...]
               + r_ref[...].astype(jnp.float32))
        if relu:
            out = jnp.maximum(out, 0.0)
        o_ref[...] = out.astype(o_ref.dtype)


def _avgpool_fc_kernel(x_ref, w_ref, b_ref, o_ref):
    # Global average pool + FC (lane-dense, Cout padded to 128).
    pooled = jnp.mean(x_ref[...].astype(jnp.float32), axis=1)
    o_ref[...] = jnp.dot(pooled, w_ref[...],
                         preferred_element_type=jnp.float32) + b_ref[...]


# ----------------------------- JAX glue ---------------------------------------

def _extract_patches(x, kh, kw, stride, pad, k_pad):
    """im2col in bf16: NHWC -> [N*Ho*Wo, k_pad] (zero-padded contraction dim)."""
    n, h, w, c = x.shape
    ho = (h + 2 * pad - kh) // stride + 1
    wo = (w + 2 * pad - kw) // stride + 1
    xp = jnp.pad(x, ((0, 0), (pad, pad), (pad, pad), (0, 0))) if pad else x
    cols = []
    for i in range(kh):
        for j in range(kw):
            sl = xp[:, i:i + (ho - 1) * stride + 1:stride,
                       j:j + (wo - 1) * stride + 1:stride, :]
            cols.append(sl.reshape(n * ho * wo, c))
    k_raw = kh * kw * c
    if k_pad > k_raw:
        cols.append(jnp.zeros((n * ho * wo, k_pad - k_raw), x.dtype))
    return jnp.concatenate(cols, axis=1), ho, wo


def _pallas_conv(patches, w2d, scale, bias, residual=None, relu=True):
    m, k_pad = patches.shape
    cout = w2d.shape[1]

    tm = min(512, _round_up(m, 16))
    tn = cout if cout < 128 else min(256, cout)
    tk = _choose_tk(k_pad)

    m_pad = _round_up(m, tm)
    if m_pad != m:
        patches = jnp.pad(patches, ((0, m_pad - m), (0, 0)))
        if residual is not None:
            residual = jnp.pad(residual, ((0, m_pad - m), (0, 0)))

    grid = (m_pad // tm, cout // tn, k_pad // tk)

    in_specs = [
        pl.BlockSpec((tm, tk), lambda i, j, k: (i, k)),   # patches
        pl.BlockSpec((tk, tn), lambda i, j, k: (k, j)),   # weights (M-invariant)
        pl.BlockSpec((1, tn), lambda i, j, k: (0, j)),    # bn scale
        pl.BlockSpec((1, tn), lambda i, j, k: (0, j)),    # bn bias
    ]
    args = [patches, w2d, scale, bias]
    if residual is None:
        kern = functools.partial(_conv_bn_kernel, relu=relu)
    else:
        kern = functools.partial(_conv_bn_res_kernel, relu=relu)
        in_specs.append(pl.BlockSpec((tm, tn), lambda i, j, k: (i, j)))
        args.append(residual)

    out = pl.pallas_call(
        kern,
        out_shape=jax.ShapeDtypeStruct((m_pad, cout), jnp.bfloat16),
        grid_spec=pltpu.PrefetchScalarGridSpec(
            num_scalar_prefetch=0,
            grid=grid,
            in_specs=in_specs,
            out_specs=pl.BlockSpec((tm, tn), lambda i, j, k: (i, j)),
            scratch_shapes=[pltpu.VMEM((tm, tn), jnp.float32)],
        ),
        compiler_params=pltpu.CompilerParams(
            dimension_semantics=("parallel", "parallel", "arbitrary"),
            vmem_limit_bytes=VMEM_LIMIT_BYTES,
        ),
    )(*args)
    return out[:m] if m_pad != m else out


def conv_bn(x, p, *, stride, relu, residual=None):
    """Conv2d(+bias) + folded BatchNorm2d + optional residual/ReLU."""
    k_pad = p["w"].shape[0]
    patches, ho, wo = _extract_patches(x, p["k"], p["k"], stride, p["pad"], k_pad)
    n = x.shape[0]
    cout = p["w"].shape[1]
    res2d = None if residual is None else residual.reshape(n * ho * wo, cout)
    out = _pallas_conv(patches, p["w"], p["scale"], p["bias"],
                       residual=res2d, relu=relu)
    return out.reshape(n, ho, wo, cout)


def maxpool_3x3_s2_p1(x):
    # Running pairwise max over the 9 taps (pure XLA, fused): avoids
    # materializing a [9, M, C] tensor in HBM (per perf review).
    n, h, w, c = x.shape
    k, stride, pad = 3, 2, 1
    ho = (h + 2 * pad - k) // stride + 1
    wo = (w + 2 * pad - k) // stride + 1
    xp = jnp.pad(x, ((0, 0), (pad, pad), (pad, pad), (0, 0)),
                 constant_values=-jnp.inf)
    out = None
    for i in range(k):
        for j in range(k):
            sl = xp[:, i:i + (ho - 1) * stride + 1:stride,
                       j:j + (wo - 1) * stride + 1:stride, :]
            out = sl if out is None else jnp.maximum(out, sl)
    return out


def avgpool_fc(x, fc_w, fc_b, num_classes=NUM_CLASSES):
    n, h, w, c = x.shape
    x3 = x.reshape(n, h * w, c)
    out = pl.pallas_call(
        _avgpool_fc_kernel,
        out_shape=jax.ShapeDtypeStruct((n, fc_w.shape[1]), jnp.float32),
        in_specs=[_VMEM()] * 3,
        out_specs=_VMEM(),
        compiler_params=pltpu.CompilerParams(vmem_limit_bytes=VMEM_LIMIT_BYTES),
    )(x3, fc_w, fc_b)
    return out[:, :num_classes]


# ----------------------------- Parameters -------------------------------------

def _conv_bn_params(key, cin, cout, k, pad):
    ks = jax.random.split(key, 6)
    k_raw = k * k * cin
    k_pad = _pad_k(k_raw)
    fan_in = k_raw
    w = jax.random.normal(ks[0], (k_raw, cout), jnp.float32) * np.sqrt(2.0 / fan_in)
    w = jnp.pad(w, ((0, k_pad - k_raw), (0, 0))).astype(jnp.bfloat16)
    conv_b = 0.01 * jax.random.normal(ks[1], (cout,), jnp.float32)
    gamma = 1.0 + 0.1 * jax.random.normal(ks[2], (cout,), jnp.float32)
    beta = 0.1 * jax.random.normal(ks[3], (cout,), jnp.float32)
    rmean = 0.1 * jax.random.normal(ks[4], (cout,), jnp.float32)
    rvar = 1.0 + 0.1 * jax.random.uniform(ks[5], (cout,), jnp.float32)
    scale = gamma / jnp.sqrt(rvar + BN_EPS)
    bias = (conv_b - rmean) * scale + beta
    return {"w": w,
            "scale": scale.reshape(1, cout).astype(jnp.float32),
            "bias": bias.reshape(1, cout).astype(jnp.float32),
            "k": k, "pad": pad}


def init_resnet_params(key, layers, num_classes=NUM_CLASSES):
    params = {}
    key, sub = jax.random.split(key)
    params["conv1"] = _conv_bn_params(sub, 3, 64, 7, 3)
    in_channels = 64
    stage_cfg = [(64, layers[0], 1), (128, layers[1], 2),
                 (256, layers[2], 2), (512, layers[3], 2)]
    stages = []
    for channels, blocks, stride in stage_cfg:
        blocks_p = []
        for b in range(blocks):
            s = stride if b == 0 else 1
            key, k1, k2, k3 = jax.random.split(key, 4)
            blk = {
                "conv1": _conv_bn_params(k1, in_channels, channels, 3, 1),
                "conv2": _conv_bn_params(k2, channels, channels, 3, 1),
                "stride": s,
                "downsample": None,
            }
            if b == 0 and (stride != 1 or in_channels != channels):
                blk["downsample"] = _conv_bn_params(k3, in_channels, channels, 1, 0)
            blocks_p.append(blk)
            in_channels = channels
        stages.append(blocks_p)
    params["stages"] = stages

    # Lane-dense FC: pad 10 output classes to 128 columns; sliced after kernel.
    key, kfw, kfb = jax.random.split(key, 3)
    fc_cols = max(128, _round_up(num_classes, 128))
    fc_w = jnp.zeros((512, fc_cols), jnp.float32)
    fc_w = fc_w.at[:, :num_classes].set(
        jax.random.normal(kfw, (512, num_classes), jnp.float32) * np.sqrt(1.0 / 512))
    fc_b = jnp.zeros((1, fc_cols), jnp.float32)
    fc_b = fc_b.at[:, :num_classes].set(
        0.01 * jax.random.normal(kfb, (1, num_classes), jnp.float32))
    params["fc_w"] = fc_w
    params["fc_b"] = fc_b
    return params


# ----------------------------- Forward ----------------------------------------

def residual_block(x, blk):
    out = conv_bn(x, blk["conv1"], stride=blk["stride"], relu=True)
    if blk["downsample"] is not None:
        residual = conv_bn(x, blk["downsample"], stride=blk["stride"], relu=False)
    else:
        residual = x
    # conv2 + BN + residual add + final ReLU fused in one Pallas kernel.
    out = conv_bn(out, blk["conv2"], stride=1, relu=True, residual=residual)
    return out


def resnet_forward(params, x_nchw):
    x = jnp.transpose(x_nchw, (0, 2, 3, 1)).astype(jnp.bfloat16)  # NCHW -> NHWC
    x = conv_bn(x, params["conv1"], stride=2, relu=True)
    x = maxpool_3x3_s2_p1(x)
    for stage in params["stages"]:
        for blk in stage:
            x = residual_block(x, blk)
    return avgpool_fc(x, params["fc_w"], params["fc_b"])


# ----------------------------- Main --------------------------------------------

if __name__ == "__main__":
    key = jax.random.PRNGKey(0)
    kp, kx = jax.random.split(key)

    # Small layer counts for a fast demo; supports any `layers`
    # (ResNet-34 would be [3, 4, 6, 3]).
    layers = [1, 1, 1, 1]
    params = init_resnet_params(kp, layers, NUM_CLASSES)

    # PyTorch-style NCHW input, 3 channels as required by conv1.
    x = jax.random.normal(kx, (2, 3, 32, 32), jnp.float32)

    fwd = jax.jit(lambda xx: resnet_forward(params, xx))
    logits = fwd(x)
    jax.block_until_ready(logits)

    assert logits.shape == (2, NUM_CLASSES), logits.shape
    assert bool(jnp.all(jnp.isfinite(logits)))
    print("KERNEL_OK")
</pallas_src>

<mosaic_0001>
module attributes {stable_mosaic.version = 11 : i64} {
  func.func @_conv_bn_kernel(%arg0: i32, %arg1: i32, %arg2: i32, %arg3: memref<512x256xbf16, #tpu.memory_space<vmem>>, %arg4: memref<256x64xbf16, #tpu.memory_space<vmem>>, %arg5: memref<1x64xf32, #tpu.memory_space<vmem>>, %arg6: memref<1x64xf32, #tpu.memory_space<vmem>>, %arg7: memref<512x64xbf16, #tpu.memory_space<vmem>>, %arg8: memref<512x64xf32, #tpu.memory_space<vmem>>) attributes {dimension_semantics = [#tpu.dimension_semantics<parallel>, #tpu.dimension_semantics<parallel>, #tpu.dimension_semantics<arbitrary>], iteration_bounds = array<i64: 1, 1, 1>, scalar_prefetch = 0 : i64, scratch_operands = 1 : i64, tpu.core_type = #tpu.core_type<tc>, window_params = [{transform_indices = @transform_0, window_bounds = array<i64: 512, 256>}, {transform_indices = @transform_1, window_bounds = array<i64: 256, 64>}, {transform_indices = @transform_2, window_bounds = array<i64: 1, 64>}, {transform_indices = @transform_3, window_bounds = array<i64: 1, 64>}, {transform_indices = @transform_4, window_bounds = array<i64: 512, 64>}]} {
    %c0_i32 = arith.constant 0 : i32
    %0 = arith.cmpi eq, %arg2, %c0_i32 : i32
    %1 = arith.extui %0 : i1 to i32
    %c0_i32_0 = arith.constant 0 : i32
    %2 = arith.cmpi ne, %1, %c0_i32_0 : i32
    scf.if %2 {
      %cst_10 = arith.constant 0.000000e+00 : f32
      %12 = vector.broadcast %cst_10 : f32 to vector<512x64xf32>
      %c0_11 = arith.constant 0 : index
      %c0_12 = arith.constant 0 : index
      %13 = vector.load %arg8[%c0_11, %c0_12] : memref<512x64xf32, #tpu.memory_space<vmem>>, vector<512x64xf32>
      tpu.vector_store %arg8[%c0_11, %c0_12], %12 {strides = array<i32>} : memref<512x64xf32, #tpu.memory_space<vmem>>, vector<512x64xf32>,
    } else {
    }
    %c0 = arith.constant 0 : index
    %c0_1 = arith.constant 0 : index
    %3 = vector.load %arg8[%c0, %c0_1] : memref<512x64xf32, #tpu.memory_space<vmem>>, vector<512x64xf32>
    %c0_2 = arith.constant 0 : index
    %c0_3 = arith.constant 0 : index
    %4 = vector.load %arg3[%c0_2, %c0_3] : memref<512x256xbf16, #tpu.memory_space<vmem>>, vector<512x256xbf16>
    %c0_4 = arith.constant 0 : index
    %c0_5 = arith.constant 0 : index
    %5 = vector.load %arg4[%c0_4, %c0_5] : memref<256x64xbf16, #tpu.memory_space<vmem>>, vector<256x64xbf16>
    %cst = arith.constant dense<0.000000e+00> : vector<512x64xf32>
    %6 = tpu.matmul %4, %5, %cst {dimension_numbers = #tpu.dot_dimension_numbers<[1], [0], [0], [1], [0, 0, 1, 1], [], []>} : vector<512x256xbf16>, vector<256x64xbf16>, vector<512x64xf32> -> vector<512x64xf32>
    %7 = arith.addf %3, %6 : vector<512x64xf32>
    %c0_6 = arith.constant 0 : index
    %c0_7 = arith.constant 0 : index
    %8 = vector.load %arg8[%c0_6, %c0_7] : memref<512x64xf32, #tpu.memory_space<vmem>>, vector<512x64xf32>
    tpu.vector_store %arg8[%c0_6, %c0_7], %7 {strides = array<i32>} : memref<512x64xf32, #tpu.memory_space<vmem>>, vector<512x64xf32>,
    %c0_i32_8 = arith.constant 0 : i32
    %9 = arith.cmpi eq, %arg2, %c0_i32_8 : i32
    %10 = arith.extui %9 : i1 to i32
    %c0_i32_9 = arith.constant 0 : i32
    %11 = arith.cmpi ne, %10, %c0_i32_9 : i32
    scf.if %11 {
      %c0_10 = arith.constant 0 : index
      %c0_11 = arith.constant 0 : index
      %12 = vector.load %arg8[%c0_10, %c0_11] : memref<512x64xf32, #tpu.memory_space<vmem>>, vector<512x64xf32>
      %c0_12 = arith.constant 0 : index
      %c0_13 = arith.constant 0 : index
      %13 = vector.load %arg5[%c0_12, %c0_13] : memref<1x64xf32, #tpu.memory_space<vmem>>, vector<1x64xf32>
      %14 = vector.broadcast %13 : vector<1x64xf32> to vector<512x64xf32>
      %15 = arith.mulf %12, %14 : vector<512x64xf32>
      %c0_14 = arith.constant 0 : index
      %c0_15 = arith.constant 0 : index
      %16 = vector.load %arg6[%c0_14, %c0_15] : memref<1x64xf32, #tpu.memory_space<vmem>>, vector<1x64xf32>
      %17 = vector.broadcast %16 : vector<1x64xf32> to vector<512x64xf32>
      %18 = arith.addf %15, %17 : vector<512x64xf32>
      %cst_16 = arith.constant 0.000000e+00 : f32
      %19 = vector.broadcast %cst_16 : f32 to vector<512x64xf32>
      %20 = arith.maximumf %18, %19 : vector<512x64xf32>
      %21 = arith.truncf %20 : vector<512x64xf32> to vector<512x64xbf16>
      %c0_17 = arith.constant 0 : index
      %c0_18 = arith.constant 0 : index
      %22 = vector.load %arg7[%c0_17, %c0_18] : memref<512x64xbf16, #tpu.memory_space<vmem>>, vector<512x64xbf16>
      tpu.vector_store %arg7[%c0_17, %c0_18], %21 {strides = array<i32>} : memref<512x64xbf16, #tpu.memory_space<vmem>>, vector<512x64xbf16>,
    } else {
    }
    return
  }
  func.func @transform_0(%arg0: i32, %arg1: i32, %arg2: i32) -> (i32, i32) {
    %c0_i32 = arith.constant 0 : i32
    return %arg0, %arg2 : i32, i32
  }
  func.func @transform_1(%arg0: i32, %arg1: i32, %arg2: i32) -> (i32, i32) {
    %c0_i32 = arith.constant 0 : i32
    return %arg2, %arg1 : i32, i32
  }
  func.func @transform_2(%arg0: i32, %arg1: i32, %arg2: i32) -> (i32, i32) {
    %c0_i32 = arith.constant 0 : i32
    %c0_i32_0 = arith.constant 0 : i32
    return %c0_i32, %arg1 : i32, i32
  }
  func.func @transform_3(%arg0: i32, %arg1: i32, %arg2: i32) -> (i32, i32) {
    %c0_i32 = arith.constant 0 : i32
    %c0_i32_0 = arith.constant 0 : i32
    return %c0_i32, %arg1 : i32, i32
  }
  func.func @transform_4(%arg0: i32, %arg1: i32, %arg2: i32) -> (i32, i32) {
    %c0_i32 = arith.constant 0 : i32
    return %arg0, %arg1 : i32, i32
  }
}

module attributes {stable_mosaic.version = 11 : i64} {
  func.func @_conv_bn_kernel(%arg0: i32, %arg1: i32, %arg2: i32, %arg3: memref<128x128xbf16, #tpu.memory_space<vmem>>, %arg4: memref<128x64xbf16, #tpu.memory_space<vmem>>, %arg5: memref<1x64xf32, #tpu.memory_space<vmem>>, %arg6: memref<1x64xf32, #tpu.memory_space<vmem>>, %arg7: memref<128x64xbf16, #tpu.memory_space<vmem>>, %arg8: memref<128x64xf32, #tpu.memory_space<vmem>>) attributes {dimension_semantics = [#tpu.dimension_semantics<parallel>, #tpu.dimension_semantics<parallel>, #tpu.dimension_semantics<arbitrary>], iteration_bounds = array<i64: 1, 1, 5>, scalar_prefetch = 0 : i64, scratch_operands = 1 : i64, tpu.core_type = #tpu.core_type<tc>, window_params = [{transform_indices = @transform_0, window_bounds = array<i64: 128, 128>}, {transform_indices = @transform_1, window_bounds = array<i64: 128, 64>}, {transform_indices = @transform_2, window_bounds = array<i64: 1, 64>}, {transform_indices = @transform_3, window_bounds = array<i64: 1, 64>}, {transform_indices = @transform_4, window_bounds = array<i64: 128, 64>}]} {
    %c0_i32 = arith.constant 0 : i32
    %0 = arith.cmpi eq, %arg2, %c0_i32 : i32
    %1 = arith.extui %0 : i1 to i32
    %c0_i32_0 = arith.constant 0 : i32
    %2 = arith.cmpi ne, %1, %c0_i32_0 : i32
    scf.if %2 {
      %cst_9 = arith.constant 0.000000e+00 : f32
      %12 = vector.broadcast %cst_9 : f32 to vector<128x64xf32>
      %c0_10 = arith.constant 0 : index
      %c0_11 = arith.constant 0 : index
      %13 = vector.load %arg8[%c0_10, %c0_11] : memref<128x64xf32, #tpu.memory_space<vmem>>, vector<128x64xf32>
      tpu.vector_store %arg8[%c0_10, %c0_11], %12 {strides = array<i32>} : memref<128x64xf32, #tpu.memory_space<vmem>>, vector<128x64xf32>,
    } else {
    }
    %c0 = arith.constant 0 : index
    %c0_1 = arith.constant 0 : index
    %3 = vector.load %arg8[%c0, %c0_1] : memref<128x64xf32, #tpu.memory_space<vmem>>, vector<128x64xf32>
    %c0_2 = arith.constant 0 : index
    %c0_3 = arith.constant 0 : index
    %4 = vector.load %arg3[%c0_2, %c0_3] : memref<128x128xbf16, #tpu.memory_space<vmem>>, vector<128x128xbf16>
    %c0_4 = arith.constant 0 : index
    %c0_5 = arith.constant 0 : index
    %5 = vector.load %arg4[%c0_4, %c0_5] : memref<128x64xbf16, #tpu.memory_space<vmem>>, vector<128x64xbf16>
    %cst = arith.constant dense<0.000000e+00> : vector<128x64xf32>
    %6 = tpu.matmul %4, %5, %cst {dimension_numbers = #tpu.dot_dimension_numbers<[1], [0], [0], [1], [0, 0, 1, 1], [], []>} : vector<128x128xbf16>, vector<128x64xbf16>, vector<128x64xf32> -> vector<128x64xf32>
    %7 = arith.addf %3, %6 : vector<128x64xf32>
    %c0_6 = arith.constant 0 : index
    %c0_7 = arith.constant 0 : index
    %8 = vector.load %arg8[%c0_6, %c0_7] : memref<128x64xf32, #tpu.memory_space<vmem>>, vector<128x64xf32>
    tpu.vector_store %arg8[%c0_6, %c0_7], %7 {strides = array<i32>} : memref<128x64xf32, #tpu.memory_space<vmem>>, vector<128x64xf32>,
    %c4_i32 = arith.constant 4 : i32
    %9 = arith.cmpi eq, %arg2, %c4_i32 : i32
    %10 = arith.extui %9 : i1 to i32
    %c0_i32_8 = arith.constant 0 : i32
    %11 = arith.cmpi ne, %10, %c0_i32_8 : i32
    scf.if %11 {
      %c0_9 = arith.constant 0 : index
      %c0_10 = arith.constant 0 : index
      %12 = vector.load %arg8[%c0_9, %c0_10] : memref<128x64xf32, #tpu.memory_space<vmem>>, vector<128x64xf32>
      %c0_11 = arith.constant 0 : index
      %c0_12 = arith.constant 0 : index
      %13 = vector.load %arg5[%c0_11, %c0_12] : memref<1x64xf32, #tpu.memory_space<vmem>>, vector<1x64xf32>
      %14 = vector.broadcast %13 : vector<1x64xf32> to vector<128x64xf32>
      %15 = arith.mulf %12, %14 : vector<128x64xf32>
      %c0_13 = arith.constant 0 : index
      %c0_14 = arith.constant 0 : index
      %16 = vector.load %arg6[%c0_13, %c0_14] : memref<1x64xf32, #tpu.memory_space<vmem>>, vector<1x64xf32>
      %17 = vector.broadcast %16 : vector<1x64xf32> to vector<128x64xf32>
      %18 = arith.addf %15, %17 : vector<128x64xf32>
      %cst_15 = arith.constant 0.000000e+00 : f32
      %19 = vector.broadcast %cst_15 : f32 to vector<128x64xf32>
      %20 = arith.maximumf %18, %19 : vector<128x64xf32>
      %21 = arith.truncf %20 : vector<128x64xf32> to vector<128x64xbf16>
      %c0_16 = arith.constant 0 : index
      %c0_17 = arith.constant 0 : index
      %22 = vector.load %arg7[%c0_16, %c0_17] : memref<128x64xbf16, #tpu.memory_space<vmem>>, vector<128x64xbf16>
      tpu.vector_store %arg7[%c0_16, %c0_17], %21 {strides = array<i32>} : memref<128x64xbf16, #tpu.memory_space<vmem>>, vector<128x64xbf16>,
    } else {
    }
    return
  }
  func.func @transform_0(%arg0: i32, %arg1: i32, %arg2: i32) -> (i32, i32) {
    %c0_i32 = arith.constant 0 : i32
    return %arg0, %arg2 : i32, i32
  }
  func.func @transform_1(%arg0: i32, %arg1: i32, %arg2: i32) -> (i32, i32) {
    %c0_i32 = arith.constant 0 : i32
    return %arg2, %arg1 : i32, i32
  }
  func.func @transform_2(%arg0: i32, %arg1: i32, %arg2: i32) -> (i32, i32) {
    %c0_i32 = arith.constant 0 : i32
    %c0_i32_0 = arith.constant 0 : i32
    return %c0_i32, %arg1 : i32, i32
  }
  func.func @transform_3(%arg0: i32, %arg1: i32, %arg2: i32) -> (i32, i32) {
    %c0_i32 = arith.constant 0 : i32
    %c0_i32_0 = arith.constant 0 : i32
    return %c0_i32, %arg1 : i32, i32
  }
  func.func @transform_4(%arg0: i32, %arg1: i32, %arg2: i32) -> (i32, i32) {
    %c0_i32 = arith.constant 0 : i32
    return %arg0, %arg1 : i32, i32
  }
}

module attributes {stable_mosaic.version = 11 : i64} {
  func.func @_conv_bn_res_kernel(%arg0: i32, %arg1: i32, %arg2: i32, %arg3: memref<128x128xbf16, #tpu.memory_space<vmem>>, %arg4: memref<128x64xbf16, #tpu.memory_space<vmem>>, %arg5: memref<1x64xf32, #tpu.memory_space<vmem>>, %arg6: memref<1x64xf32, #tpu.memory_space<vmem>>, %arg7: memref<128x64xbf16, #tpu.memory_space<vmem>>, %arg8: memref<128x64xbf16, #tpu.memory_space<vmem>>, %arg9: memref<128x64xf32, #tpu.memory_space<vmem>>) attributes {dimension_semantics = [#tpu.dimension_semantics<parallel>, #tpu.dimension_semantics<parallel>, #tpu.dimension_semantics<arbitrary>], iteration_bounds = array<i64: 1, 1, 5>, scalar_prefetch = 0 : i64, scratch_operands = 1 : i64, tpu.core_type = #tpu.core_type<tc>, window_params = [{transform_indices = @transform_0, window_bounds = array<i64: 128, 128>}, {transform_indices = @transform_1, window_bounds = array<i64: 128, 64>}, {transform_indices = @transform_2, window_bounds = array<i64: 1, 64>}, {transform_indices = @transform_3, window_bounds = array<i64: 1, 64>}, {transform_indices = @transform_4, window_bounds = array<i64: 128, 64>}, {transform_indices = @transform_5, window_bounds = array<i64: 128, 64>}]} {
    %c0_i32 = arith.constant 0 : i32
    %0 = arith.cmpi eq, %arg2, %c0_i32 : i32
    %1 = arith.extui %0 : i1 to i32
    %c0_i32_0 = arith.constant 0 : i32
    %2 = arith.cmpi ne, %1, %c0_i32_0 : i32
    scf.if %2 {
      %cst_9 = arith.constant 0.000000e+00 : f32
      %12 = vector.broadcast %cst_9 : f32 to vector<128x64xf32>
      %c0_10 = arith.constant 0 : index
      %c0_11 = arith.constant 0 : index
      %13 = vector.load %arg9[%c0_10, %c0_11] : memref<128x64xf32, #tpu.memory_space<vmem>>, vector<128x64xf32>
      tpu.vector_store %arg9[%c0_10, %c0_11], %12 {strides = array<i32>} : memref<128x64xf32, #tpu.memory_space<vmem>>, vector<128x64xf32>,
    } else {
    }
    %c0 = arith.constant 0 : index
    %c0_1 = arith.constant 0 : index
    %3 = vector.load %arg9[%c0, %c0_1] : memref<128x64xf32, #tpu.memory_space<vmem>>, vector<128x64xf32>
    %c0_2 = arith.constant 0 : index
    %c0_3 = arith.constant 0 : index
    %4 = vector.load %arg3[%c0_2, %c0_3] : memref<128x128xbf16, #tpu.memory_space<vmem>>, vector<128x128xbf16>
    %c0_4 = arith.constant 0 : index
    %c0_5 = arith.constant 0 : index
    %5 = vector.load %arg4[%c0_4, %c0_5] : memref<128x64xbf16, #tpu.memory_space<vmem>>, vector<128x64xbf16>
    %cst = arith.constant dense<0.000000e+00> : vector<128x64xf32>
    %6 = tpu.matmul %4, %5, %cst {dimension_numbers = #tpu.dot_dimension_numbers<[1], [0], [0], [1], [0, 0, 1, 1], [], []>} : vector<128x128xbf16>, vector<128x64xbf16>, vector<128x64xf32> -> vector<128x64xf32>
    %7 = arith.addf %3, %6 : vector<128x64xf32>
    %c0_6 = arith.constant 0 : index
    %c0_7 = arith.constant 0 : index
    %8 = vector.load %arg9[%c0_6, %c0_7] : memref<128x64xf32, #tpu.memory_space<vmem>>, vector<128x64xf32>
    tpu.vector_store %arg9[%c0_6, %c0_7], %7 {strides = array<i32>} : memref<128x64xf32, #tpu.memory_space<vmem>>, vector<128x64xf32>,
    %c4_i32 = arith.constant 4 : i32
    %9 = arith.cmpi eq, %arg2, %c4_i32 : i32
    %10 = arith.extui %9 : i1 to i32
    %c0_i32_8 = arith.constant 0 : i32
    %11 = arith.cmpi ne, %10, %c0_i32_8 : i32
    scf.if %11 {
      %c0_9 = arith.constant 0 : index
      %c0_10 = arith.constant 0 : index
      %12 = vector.load %arg9[%c0_9, %c0_10] : memref<128x64xf32, #tpu.memory_space<vmem>>, vector<128x64xf32>
      %c0_11 = arith.constant 0 : index
      %c0_12 = arith.constant 0 : index
      %13 = vector.load %arg5[%c0_11, %c0_12] : memref<1x64xf32, #tpu.memory_space<vmem>>, vector<1x64xf32>
      %14 = vector.broadcast %13 : vector<1x64xf32> to vector<128x64xf32>
      %15 = arith.mulf %12, %14 : vector<128x64xf32>
      %c0_13 = arith.constant 0 : index
      %c0_14 = arith.constant 0 : index
      %16 = vector.load %arg6[%c0_13, %c0_14] : memref<1x64xf32, #tpu.memory_space<vmem>>, vector<1x64xf32>
      %17 = vector.broadcast %16 : vector<1x64xf32> to vector<128x64xf32>
      %18 = arith.addf %15, %17 : vector<128x64xf32>
      %c0_15 = arith.constant 0 : index
      %c0_16 = arith.constant 0 : index
      %19 = vector.load %arg7[%c0_15, %c0_16] : memref<128x64xbf16, #tpu.memory_space<vmem>>, vector<128x64xbf16>
      %20 = arith.extf %19 : vector<128x64xbf16> to vector<128x64xf32>
      %21 = arith.addf %18, %20 : vector<128x64xf32>
      %cst_17 = arith.constant 0.000000e+00 : f32
      %22 = vector.broadcast %cst_17 : f32 to vector<128x64xf32>
      %23 = arith.maximumf %21, %22 : vector<128x64xf32>
      %24 = arith.truncf %23 : vector<128x64xf32> to vector<128x64xbf16>
      %c0_18 = arith.constant 0 : index
      %c0_19 = arith.constant 0 : index
      %25 = vector.load %arg8[%c0_18, %c0_19] : memref<128x64xbf16, #tpu.memory_space<vmem>>, vector<128x64xbf16>
      tpu.vector_store %arg8[%c0_18, %c0_19], %24 {strides = array<i32>} : memref<128x64xbf16, #tpu.memory_space<vmem>>, vector<128x64xbf16>,
    } else {
    }
    return
  }
  func.func @transform_0(%arg0: i32, %arg1: i32, %arg2: i32) -> (i32, i32) {
    %c0_i32 = arith.constant 0 : i32
    return %arg0, %arg2 : i32, i32
  }
  func.func @transform_1(%arg0: i32, %arg1: i32, %arg2: i32) -> (i32, i32) {
    %c0_i32 = arith.constant 0 : i32
    return %arg2, %arg1 : i32, i32
  }
  func.func @transform_2(%arg0: i32, %arg1: i32, %arg2: i32) -> (i32, i32) {
    %c0_i32 = arith.constant 0 : i32
    %c0_i32_0 = arith.constant 0 : i32
    return %c0_i32, %arg1 : i32, i32
  }
  func.func @transform_3(%arg0: i32, %arg1: i32, %arg2: i32) -> (i32, i32) {
    %c0_i32 = arith.constant 0 : i32
    %c0_i32_0 = arith.constant 0 : i32
    return %c0_i32, %arg1 : i32, i32
  }
  func.func @transform_4(%arg0: i32, %arg1: i32, %arg2: i32) -> (i32, i32) {
    %c0_i32 = arith.constant 0 : i32
    return %arg0, %arg1 : i32, i32
  }
  func.func @transform_5(%arg0: i32, %arg1: i32, %arg2: i32) -> (i32, i32) {
    %c0_i32 = arith.constant 0 : i32
    return %arg0, %arg1 : i32, i32
  }
}

module attributes {stable_mosaic.version = 11 : i64} {
  func.func @_conv_bn_kernel(%arg0: i32, %arg1: i32, %arg2: i32, %arg3: memref<32x128xbf16, #tpu.memory_space<vmem>>, %arg4: memref<128x128xbf16, #tpu.memory_space<vmem>>, %arg5: memref<1x128xf32, #tpu.memory_space<vmem>>, %arg6: memref<1x128xf32, #tpu.memory_space<vmem>>, %arg7: memref<32x128xbf16, #tpu.memory_space<vmem>>, %arg8: memref<32x128xf32, #tpu.memory_space<vmem>>) attributes {dimension_semantics = [#tpu.dimension_semantics<parallel>, #tpu.dimension_semantics<parallel>, #tpu.dimension_semantics<arbitrary>], iteration_bounds = array<i64: 1, 1, 5>, scalar_prefetch = 0 : i64, scratch_operands = 1 : i64, tpu.core_type = #tpu.core_type<tc>, window_params = [{transform_indices = @transform_0, window_bounds = array<i64: 32, 128>}, {transform_indices = @transform_1, window_bounds = array<i64: 128, 128>}, {transform_indices = @transform_2, window_bounds = array<i64: 1, 128>}, {transform_indices = @transform_3, window_bounds = array<i64: 1, 128>}, {transform_indices = @transform_4, window_bounds = array<i64: 32, 128>}]} {
    %c0_i32 = arith.constant 0 : i32
    %0 = arith.cmpi eq, %arg2, %c0_i32 : i32
    %1 = arith.extui %0 : i1 to i32
    %c0_i32_0 = arith.constant 0 : i32
    %2 = arith.cmpi ne, %1, %c0_i32_0 : i32
    scf.if %2 {
      %cst_9 = arith.constant 0.000000e+00 : f32
      %12 = vector.broadcast %cst_9 : f32 to vector<32x128xf32>
      %c0_10 = arith.constant 0 : index
      %c0_11 = arith.constant 0 : index
      %13 = vector.load %arg8[%c0_10, %c0_11] : memref<32x128xf32, #tpu.memory_space<vmem>>, vector<32x128xf32>
      tpu.vector_store %arg8[%c0_10, %c0_11], %12 {strides = array<i32>} : memref<32x128xf32, #tpu.memory_space<vmem>>, vector<32x128xf32>,
    } else {
    }
    %c0 = arith.constant 0 : index
    %c0_1 = arith.constant 0 : index
    %3 = vector.load %arg8[%c0, %c0_1] : memref<32x128xf32, #tpu.memory_space<vmem>>, vector<32x128xf32>
    %c0_2 = arith.constant 0 : index
    %c0_3 = arith.constant 0 : index
    %4 = vector.load %arg3[%c0_2, %c0_3] : memref<32x128xbf16, #tpu.memory_space<vmem>>, vector<32x128xbf16>
    %c0_4 = arith.constant 0 : index
    %c0_5 = arith.constant 0 : index
    %5 = vector.load %arg4[%c0_4, %c0_5] : memref<128x128xbf16, #tpu.memory_space<vmem>>, vector<128x128xbf16>
    %cst = arith.constant dense<0.000000e+00> : vector<32x128xf32>
    %6 = tpu.matmul %4, %5, %cst {dimension_numbers = #tpu.dot_dimension_numbers<[1], [0], [0], [1], [0, 0, 1, 1], [], []>} : vector<32x128xbf16>, vector<128x128xbf16>, vector<32x128xf32> -> vector<32x128xf32>
    %7 = arith.addf %3, %6 : vector<32x128xf32>
    %c0_6 = arith.constant 0 : index
    %c0_7 = arith.constant 0 : index
    %8 = vector.load %arg8[%c0_6, %c0_7] : memref<32x128xf32, #tpu.memory_space<vmem>>, vector<32x128xf32>
    tpu.vector_store %arg8[%c0_6, %c0_7], %7 {strides = array<i32>} : memref<32x128xf32, #tpu.memory_space<vmem>>, vector<32x128xf32>,
    %c4_i32 = arith.constant 4 : i32
    %9 = arith.cmpi eq, %arg2, %c4_i32 : i32
    %10 = arith.extui %9 : i1 to i32
    %c0_i32_8 = arith.constant 0 : i32
    %11 = arith.cmpi ne, %10, %c0_i32_8 : i32
    scf.if %11 {
      %c0_9 = arith.constant 0 : index
      %c0_10 = arith.constant 0 : index
      %12 = vector.load %arg8[%c0_9, %c0_10] : memref<32x128xf32, #tpu.memory_space<vmem>>, vector<32x128xf32>
      %c0_11 = arith.constant 0 : index
      %c0_12 = arith.constant 0 : index
      %13 = vector.load %arg5[%c0_11, %c0_12] : memref<1x128xf32, #tpu.memory_space<vmem>>, vector<1x128xf32>
      %14 = vector.broadcast %13 : vector<1x128xf32> to vector<32x128xf32>
      %15 = arith.mulf %12, %14 : vector<32x128xf32>
      %c0_13 = arith.constant 0 : index
      %c0_14 = arith.constant 0 : index
      %16 = vector.load %arg6[%c0_13, %c0_14] : memref<1x128xf32, #tpu.memory_space<vmem>>, vector<1x128xf32>
      %17 = vector.broadcast %16 : vector<1x128xf32> to vector<32x128xf32>
      %18 = arith.addf %15, %17 : vector<32x128xf32>
      %cst_15 = arith.constant 0.000000e+00 : f32
      %19 = vector.broadcast %cst_15 : f32 to vector<32x128xf32>
      %20 = arith.maximumf %18, %19 : vector<32x128xf32>
      %21 = arith.truncf %20 : vector<32x128xf32> to vector<32x128xbf16>
      %c0_16 = arith.constant 0 : index
      %c0_17 = arith.constant 0 : index
      %22 = vector.load %arg7[%c0_16, %c0_17] : memref<32x128xbf16, #tpu.memory_space<vmem>>, vector<32x128xbf16>
      tpu.vector_store %arg7[%c0_16, %c0_17], %21 {strides = array<i32>} : memref<32x128xbf16, #tpu.memory_space<vmem>>, vector<32x128xbf16>,
    } else {
    }
    return
  }
  func.func @transform_0(%arg0: i32, %arg1: i32, %arg2: i32) -> (i32, i32) {
    %c0_i32 = arith.constant 0 : i32
    return %arg0, %arg2 : i32, i32
  }
  func.func @transform_1(%arg0: i32, %arg1: i32, %arg2: i32) -> (i32, i32) {
    %c0_i32 = arith.constant 0 : i32
    return %arg2, %arg1 : i32, i32
  }
  func.func @transform_2(%arg0: i32, %arg1: i32, %arg2: i32) -> (i32, i32) {
    %c0_i32 = arith.constant 0 : i32
    %c0_i32_0 = arith.constant 0 : i32
    return %c0_i32, %arg1 : i32, i32
  }
  func.func @transform_3(%arg0: i32, %arg1: i32, %arg2: i32) -> (i32, i32) {
    %c0_i32 = arith.constant 0 : i32
    %c0_i32_0 = arith.constant 0 : i32
    return %c0_i32, %arg1 : i32, i32
  }
  func.func @transform_4(%arg0: i32, %arg1: i32, %arg2: i32) -> (i32, i32) {
    %c0_i32 = arith.constant 0 : i32
    return %arg0, %arg1 : i32, i32
  }
}

module attributes {stable_mosaic.version = 11 : i64} {
  func.func @_conv_bn_res_kernel(%arg0: i32, %arg1: i32, %arg2: i32, %arg3: memref<32x384xbf16, #tpu.memory_space<vmem>>, %arg4: memref<384x128xbf16, #tpu.memory_space<vmem>>, %arg5: memref<1x128xf32, #tpu.memory_space<vmem>>, %arg6: memref<1x128xf32, #tpu.memory_space<vmem>>, %arg7: memref<32x128xbf16, #tpu.memory_space<vmem>>, %arg8: memref<32x128xbf16, #tpu.memory_space<vmem>>, %arg9: memref<32x128xf32, #tpu.memory_space<vmem>>) attributes {dimension_semantics = [#tpu.dimension_semantics<parallel>, #tpu.dimension_semantics<parallel>, #tpu.dimension_semantics<arbitrary>], iteration_bounds = array<i64: 1, 1, 3>, scalar_prefetch = 0 : i64, scratch_operands = 1 : i64, tpu.core_type = #tpu.core_type<tc>, window_params = [{transform_indices = @transform_0, window_bounds = array<i64: 32, 384>}, {transform_indices = @transform_1, window_bounds = array<i64: 384, 128>}, {transform_indices = @transform_2, window_bounds = array<i64: 1, 128>}, {transform_indices = @transform_3, window_bounds = array<i64: 1, 128>}, {transform_indices = @transform_4, window_bounds = array<i64: 32, 128>}, {transform_indices = @transform_5, window_bounds = array<i64: 32, 128>}]} {
    %c0_i32 = arith.constant 0 : i32
    %0 = arith.cmpi eq, %arg2, %c0_i32 : i32
    %1 = arith.extui %0 : i1 to i32
    %c0_i32_0 = arith.constant 0 : i32
    %2 = arith.cmpi ne, %1, %c0_i32_0 : i32
    scf.if %2 {
      %cst_9 = arith.constant 0.000000e+00 : f32
      %12 = vector.broadcast %cst_9 : f32 to vector<32x128xf32>
      %c0_10 = arith.constant 0 : index
      %c0_11 = arith.constant 0 : index
      %13 = vector.load %arg9[%c0_10, %c0_11] : memref<32x128xf32, #tpu.memory_space<vmem>>, vector<32x128xf32>
      tpu.vector_store %arg9[%c0_10, %c0_11], %12 {strides = array<i32>} : memref<32x128xf32, #tpu.memory_space<vmem>>, vector<32x128xf32>,
    } else {
    }
    %c0 = arith.constant 0 : index
    %c0_1 = arith.constant 0 : index
    %3 = vector.load %arg9[%c0, %c0_1] : memref<32x128xf32, #tpu.memory_space<vmem>>, vector<32x128xf32>
    %c0_2 = arith.constant 0 : index
    %c0_3 = arith.constant 0 : index
    %4 = vector.load %arg3[%c0_2, %c0_3] : memref<32x384xbf16, #tpu.memory_space<vmem>>, vector<32x384xbf16>
    %c0_4 = arith.constant 0 : index
    %c0_5 = arith.constant 0 : index
    %5 = vector.load %arg4[%c0_4, %c0_5] : memref<384x128xbf16, #tpu.memory_space<vmem>>, vector<384x128xbf16>
    %cst = arith.constant dense<0.000000e+00> : vector<32x128xf32>
    %6 = tpu.matmul %4, %5, %cst {dimension_numbers = #tpu.dot_dimension_numbers<[1], [0], [0], [1], [0, 0, 1, 1], [], []>} : vector<32x384xbf16>, vector<384x128xbf16>, vector<32x128xf32> -> vector<32x128xf32>
    %7 = arith.addf %3, %6 : vector<32x128xf32>
    %c0_6 = arith.constant 0 : index
    %c0_7 = arith.constant 0 : index
    %8 = vector.load %arg9[%c0_6, %c0_7] : memref<32x128xf32, #tpu.memory_space<vmem>>, vector<32x128xf32>
    tpu.vector_store %arg9[%c0_6, %c0_7], %7 {strides = array<i32>} : memref<32x128xf32, #tpu.memory_space<vmem>>, vector<32x128xf32>,
    %c2_i32 = arith.constant 2 : i32
    %9 = arith.cmpi eq, %arg2, %c2_i32 : i32
    %10 = arith.extui %9 : i1 to i32
    %c0_i32_8 = arith.constant 0 : i32
    %11 = arith.cmpi ne, %10, %c0_i32_8 : i32
    scf.if %11 {
      %c0_9 = arith.constant 0 : index
      %c0_10 = arith.constant 0 : index
      %12 = vector.load %arg9[%c0_9, %c0_10] : memref<32x128xf32, #tpu.memory_space<vmem>>, vector<32x128xf32>
      %c0_11 = arith.constant 0 : index
      %c0_12 = arith.constant 0 : index
      %13 = vector.load %arg5[%c0_11, %c0_12] : memref<1x128xf32, #tpu.memory_space<vmem>>, vector<1x128xf32>
      %14 = vector.broadcast %13 : vector<1x128xf32> to vector<32x128xf32>
      %15 = arith.mulf %12, %14 : vector<32x128xf32>
      %c0_13 = arith.constant 0 : index
      %c0_14 = arith.constant 0 : index
      %16 = vector.load %arg6[%c0_13, %c0_14] : memref<1x128xf32, #tpu.memory_space<vmem>>, vector<1x128xf32>
      %17 = vector.broadcast %16 : vector<1x128xf32> to vector<32x128xf32>
      %18 = arith.addf %15, %17 : vector<32x128xf32>
      %c0_15 = arith.constant 0 : index
      %c0_16 = arith.constant 0 : index
      %19 = vector.load %arg7[%c0_15, %c0_16] : memref<32x128xbf16, #tpu.memory_space<vmem>>, vector<32x128xbf16>
      %20 = arith.extf %19 : vector<32x128xbf16> to vector<32x128xf32>
      %21 = arith.addf %18, %20 : vector<32x128xf32>
      %cst_17 = arith.constant 0.000000e+00 : f32
      %22 = vector.broadcast %cst_17 : f32 to vector<32x128xf32>
      %23 = arith.maximumf %21, %22 : vector<32x128xf32>
      %24 = arith.truncf %23 : vector<32x128xf32> to vector<32x128xbf16>
      %c0_18 = arith.constant 0 : index
      %c0_19 = arith.constant 0 : index
      %25 = vector.load %arg8[%c0_18, %c0_19] : memref<32x128xbf16, #tpu.memory_space<vmem>>, vector<32x128xbf16>
      tpu.vector_store %arg8[%c0_18, %c0_19], %24 {strides = array<i32>} : memref<32x128xbf16, #tpu.memory_space<vmem>>, vector<32x128xbf16>,
    } else {
    }
    return
  }
  func.func @transform_0(%arg0: i32, %arg1: i32, %arg2: i32) -> (i32, i32) {
    %c0_i32 = arith.constant 0 : i32
    return %arg0, %arg2 : i32, i32
  }
  func.func @transform_1(%arg0: i32, %arg1: i32, %arg2: i32) -> (i32, i32) {
    %c0_i32 = arith.constant 0 : i32
    return %arg2, %arg1 : i32, i32
  }
  func.func @transform_2(%arg0: i32, %arg1: i32, %arg2: i32) -> (i32, i32) {
    %c0_i32 = arith.constant 0 : i32
    %c0_i32_0 = arith.constant 0 : i32
    return %c0_i32, %arg1 : i32, i32
  }
  func.func @transform_3(%arg0: i32, %arg1: i32, %arg2: i32) -> (i32, i32) {
    %c0_i32 = arith.constant 0 : i32
    %c0_i32_0 = arith.constant 0 : i32
    return %c0_i32, %arg1 : i32, i32
  }
  func.func @transform_4(%arg0: i32, %arg1: i32, %arg2: i32) -> (i32, i32) {
    %c0_i32 = arith.constant 0 : i32
    return %arg0, %arg1 : i32, i32
  }
  func.func @transform_5(%arg0: i32, %arg1: i32, %arg2: i32) -> (i32, i32) {
    %c0_i32 = arith.constant 0 : i32
    return %arg0, %arg1 : i32, i32
  }
}

module attributes {stable_mosaic.version = 11 : i64} {
  func.func @_conv_bn_kernel(%arg0: i32, %arg1: i32, %arg2: i32, %arg3: memref<32x128xbf16, #tpu.memory_space<vmem>>, %arg4: memref<128x128xbf16, #tpu.memory_space<vmem>>, %arg5: memref<1x128xf32, #tpu.memory_space<vmem>>, %arg6: memref<1x128xf32, #tpu.memory_space<vmem>>, %arg7: memref<32x128xbf16, #tpu.memory_space<vmem>>, %arg8: memref<32x128xf32, #tpu.memory_space<vmem>>) attributes {dimension_semantics = [#tpu.dimension_semantics<parallel>, #tpu.dimension_semantics<parallel>, #tpu.dimension_semantics<arbitrary>], iteration_bounds = array<i64: 1, 1, 1>, scalar_prefetch = 0 : i64, scratch_operands = 1 : i64, tpu.core_type = #tpu.core_type<tc>, window_params = [{transform_indices = @transform_0, window_bounds = array<i64: 32, 128>}, {transform_indices = @transform_1, window_bounds = array<i64: 128, 128>}, {transform_indices = @transform_2, window_bounds = array<i64: 1, 128>}, {transform_indices = @transform_3, window_bounds = array<i64: 1, 128>}, {transform_indices = @transform_4, window_bounds = array<i64: 32, 128>}]} {
    %c0_i32 = arith.constant 0 : i32
    %0 = arith.cmpi eq, %arg2, %c0_i32 : i32
    %1 = arith.extui %0 : i1 to i32
    %c0_i32_0 = arith.constant 0 : i32
    %2 = arith.cmpi ne, %1, %c0_i32_0 : i32
    scf.if %2 {
      %cst_10 = arith.constant 0.000000e+00 : f32
      %12 = vector.broadcast %cst_10 : f32 to vector<32x128xf32>
      %c0_11 = arith.constant 0 : index
      %c0_12 = arith.constant 0 : index
      %13 = vector.load %arg8[%c0_11, %c0_12] : memref<32x128xf32, #tpu.memory_space<vmem>>, vector<32x128xf32>
      tpu.vector_store %arg8[%c0_11, %c0_12], %12 {strides = array<i32>} : memref<32x128xf32, #tpu.memory_space<vmem>>, vector<32x128xf32>,
    } else {
    }
    %c0 = arith.constant 0 : index
    %c0_1 = arith.constant 0 : index
    %3 = vector.load %arg8[%c0, %c0_1] : memref<32x128xf32, #tpu.memory_space<vmem>>, vector<32x128xf32>
    %c0_2 = arith.constant 0 : index
    %c0_3 = arith.constant 0 : index
    %4 = vector.load %arg3[%c0_2, %c0_3] : memref<32x128xbf16, #tpu.memory_space<vmem>>, vector<32x128xbf16>
    %c0_4 = arith.constant 0 : index
    %c0_5 = arith.constant 0 : index
    %5 = vector.load %arg4[%c0_4, %c0_5] : memref<128x128xbf16, #tpu.memory_space<vmem>>, vector<128x128xbf16>
    %cst = arith.constant dense<0.000000e+00> : vector<32x128xf32>
    %6 = tpu.matmul %4, %5, %cst {dimension_numbers = #tpu.dot_dimension_numbers<[1], [0], [0], [1], [0, 0, 1, 1], [], []>} : vector<32x128xbf16>, vector<128x128xbf16>, vector<32x128xf32> -> vector<32x128xf32>
    %7 = arith.addf %3, %6 : vector<32x128xf32>
    %c0_6 = arith.constant 0 : index
    %c0_7 = arith.constant 0 : index
    %8 = vector.load %arg8[%c0_6, %c0_7] : memref<32x128xf32, #tpu.memory_space<vmem>>, vector<32x128xf32>
    tpu.vector_store %arg8[%c0_6, %c0_7], %7 {strides = array<i32>} : memref<32x128xf32, #tpu.memory_space<vmem>>, vector<32x128xf32>,
    %c0_i32_8 = arith.constant 0 : i32
    %9 = arith.cmpi eq, %arg2, %c0_i32_8 : i32
    %10 = arith.extui %9 : i1 to i32
    %c0_i32_9 = arith.constant 0 : i32
    %11 = arith.cmpi ne, %10, %c0_i32_9 : i32
    scf.if %11 {
      %c0_10 = arith.constant 0 : index
      %c0_11 = arith.constant 0 : index
      %12 = vector.load %arg8[%c0_10, %c0_11] : memref<32x128xf32, #tpu.memory_space<vmem>>, vector<32x128xf32>
      %c0_12 = arith.constant 0 : index
      %c0_13 = arith.constant 0 : index
      %13 = vector.load %arg5[%c0_12, %c0_13] : memref<1x128xf32, #tpu.memory_space<vmem>>, vector<1x128xf32>
      %14 = vector.broadcast %13 : vector<1x128xf32> to vector<32x128xf32>
      %15 = arith.mulf %12, %14 : vector<32x128xf32>
      %c0_14 = arith.constant 0 : index
      %c0_15 = arith.constant 0 : index
      %16 = vector.load %arg6[%c0_14, %c0_15] : memref<1x128xf32, #tpu.memory_space<vmem>>, vector<1x128xf32>
      %17 = vector.broadcast %16 : vector<1x128xf32> to vector<32x128xf32>
      %18 = arith.addf %15, %17 : vector<32x128xf32>
      %19 = arith.truncf %18 : vector<32x128xf32> to vector<32x128xbf16>
      %c0_16 = arith.constant 0 : index
      %c0_17 = arith.constant 0 : index
      %20 = vector.load %arg7[%c0_16, %c0_17] : memref<32x128xbf16, #tpu.memory_space<vmem>>, vector<32x128xbf16>
      tpu.vector_store %arg7[%c0_16, %c0_17], %19 {strides = array<i32>} : memref<32x128xbf16, #tpu.memory_space<vmem>>, vector<32x128xbf16>,
    } else {
    }
    return
  }
  func.func @transform_0(%arg0: i32, %arg1: i32, %arg2: i32) -> (i32, i32) {
    %c0_i32 = arith.constant 0 : i32
    return %arg0, %arg2 : i32, i32
  }
  func.func @transform_1(%arg0: i32, %arg1: i32, %arg2: i32) -> (i32, i32) {
    %c0_i32 = arith.constant 0 : i32
    return %arg2, %arg1 : i32, i32
  }
  func.func @transform_2(%arg0: i32, %arg1: i32, %arg2: i32) -> (i32, i32) {
    %c0_i32 = arith.constant 0 : i32
    %c0_i32_0 = arith.constant 0 : i32
    return %c0_i32, %arg1 : i32, i32
  }
  func.func @transform_3(%arg0: i32, %arg1: i32, %arg2: i32) -> (i32, i32) {
    %c0_i32 = arith.constant 0 : i32
    %c0_i32_0 = arith.constant 0 : i32
    return %c0_i32, %arg1 : i32, i32
  }
  func.func @transform_4(%arg0: i32, %arg1: i32, %arg2: i32) -> (i32, i32) {
    %c0_i32 = arith.constant 0 : i32
    return %arg0, %arg1 : i32, i32
  }
}

module attributes {stable_mosaic.version = 11 : i64} {
  func.func @_conv_bn_kernel(%arg0: i32, %arg1: i32, %arg2: i32, %arg3: memref<16x384xbf16, #tpu.memory_space<vmem>>, %arg4: memref<384x256xbf16, #tpu.memory_space<vmem>>, %arg5: memref<1x256xf32, #tpu.memory_space<vmem>>, %arg6: memref<1x256xf32, #tpu.memory_space<vmem>>, %arg7: memref<16x256xbf16, #tpu.memory_space<vmem>>, %arg8: memref<16x256xf32, #tpu.memory_space<vmem>>) attributes {dimension_semantics = [#tpu.dimension_semantics<parallel>, #tpu.dimension_semantics<parallel>, #tpu.dimension_semantics<arbitrary>], iteration_bounds = array<i64: 1, 1, 3>, scalar_prefetch = 0 : i64, scratch_operands = 1 : i64, tpu.core_type = #tpu.core_type<tc>, window_params = [{transform_indices = @transform_0, window_bounds = array<i64: 16, 384>}, {transform_indices = @transform_1, window_bounds = array<i64: 384, 256>}, {transform_indices = @transform_2, window_bounds = array<i64: 1, 256>}, {transform_indices = @transform_3, window_bounds = array<i64: 1, 256>}, {transform_indices = @transform_4, window_bounds = array<i64: 16, 256>}]} {
    %c0_i32 = arith.constant 0 : i32
    %0 = arith.cmpi eq, %arg2, %c0_i32 : i32
    %1 = arith.extui %0 : i1 to i32
    %c0_i32_0 = arith.constant 0 : i32
    %2 = arith.cmpi ne, %1, %c0_i32_0 : i32
    scf.if %2 {
      %cst_9 = arith.constant 0.000000e+00 : f32
      %12 = vector.broadcast %cst_9 : f32 to vector<16x256xf32>
      %c0_10 = arith.constant 0 : index
      %c0_11 = arith.constant 0 : index
      %13 = vector.load %arg8[%c0_10, %c0_11] : memref<16x256xf32, #tpu.memory_space<vmem>>, vector<16x256xf32>
      tpu.vector_store %arg8[%c0_10, %c0_11], %12 {strides = array<i32>} : memref<16x256xf32, #tpu.memory_space<vmem>>, vector<16x256xf32>,
    } else {
    }
    %c0 = arith.constant 0 : index
    %c0_1 = arith.constant 0 : index
    %3 = vector.load %arg8[%c0, %c0_1] : memref<16x256xf32, #tpu.memory_space<vmem>>, vector<16x256xf32>
    %c0_2 = arith.constant 0 : index
    %c0_3 = arith.constant 0 : index
    %4 = vector.load %arg3[%c0_2, %c0_3] : memref<16x384xbf16, #tpu.memory_space<vmem>>, vector<16x384xbf16>
    %c0_4 = arith.constant 0 : index
    %c0_5 = arith.constant 0 : index
    %5 = vector.load %arg4[%c0_4, %c0_5] : memref<384x256xbf16, #tpu.memory_space<vmem>>, vector<384x256xbf16>
    %cst = arith.constant dense<0.000000e+00> : vector<16x256xf32>
    %6 = tpu.matmul %4, %5, %cst {dimension_numbers = #tpu.dot_dimension_numbers<[1], [0], [0], [1], [0, 0, 1, 1], [], []>} : vector<16x384xbf16>, vector<384x256xbf16>, vector<16x256xf32> -> vector<16x256xf32>
    %7 = arith.addf %3, %6 : vector<16x256xf32>
    %c0_6 = arith.constant 0 : index
    %c0_7 = arith.constant 0 : index
    %8 = vector.load %arg8[%c0_6, %c0_7] : memref<16x256xf32, #tpu.memory_space<vmem>>, vector<16x256xf32>
    tpu.vector_store %arg8[%c0_6, %c0_7], %7 {strides = array<i32>} : memref<16x256xf32, #tpu.memory_space<vmem>>, vector<16x256xf32>,
    %c2_i32 = arith.constant 2 : i32
    %9 = arith.cmpi eq, %arg2, %c2_i32 : i32
    %10 = arith.extui %9 : i1 to i32
    %c0_i32_8 = arith.constant 0 : i32
    %11 = arith.cmpi ne, %10, %c0_i32_8 : i32
    scf.if %11 {
      %c0_9 = arith.constant 0 : index
      %c0_10 = arith.constant 0 : index
      %12 = vector.load %arg8[%c0_9, %c0_10] : memref<16x256xf32, #tpu.memory_space<vmem>>, vector<16x256xf32>
      %c0_11 = arith.constant 0 : index
      %c0_12 = arith.constant 0 : index
      %13 = vector.load %arg5[%c0_11, %c0_12] : memref<1x256xf32, #tpu.memory_space<vmem>>, vector<1x256xf32>
      %14 = vector.broadcast %13 : vector<1x256xf32> to vector<16x256xf32>
      %15 = arith.mulf %12, %14 : vector<16x256xf32>
      %c0_13 = arith.constant 0 : index
      %c0_14 = arith.constant 0 : index
      %16 = vector.load %arg6[%c0_13, %c0_14] : memref<1x256xf32, #tpu.memory_space<vmem>>, vector<1x256xf32>
      %17 = vector.broadcast %16 : vector<1x256xf32> to vector<16x256xf32>
      %18 = arith.addf %15, %17 : vector<16x256xf32>
      %cst_15 = arith.constant 0.000000e+00 : f32
      %19 = vector.broadcast %cst_15 : f32 to vector<16x256xf32>
      %20 = arith.maximumf %18, %19 : vector<16x256xf32>
      %21 = arith.truncf %20 : vector<16x256xf32> to vector<16x256xbf16>
      %c0_16 = arith.constant 0 : index
      %c0_17 = arith.constant 0 : index
      %22 = vector.load %arg7[%c0_16, %c0_17] : memref<16x256xbf16, #tpu.memory_space<vmem>>, vector<16x256xbf16>
      tpu.vector_store %arg7[%c0_16, %c0_17], %21 {strides = array<i32>} : memref<16x256xbf16, #tpu.memory_space<vmem>>, vector<16x256xbf16>,
    } else {
    }
    return
  }
  func.func @transform_0(%arg0: i32, %arg1: i32, %arg2: i32) -> (i32, i32) {
    %c0_i32 = arith.constant 0 : i32
    return %arg0, %arg2 : i32, i32
  }
  func.func @transform_1(%arg0: i32, %arg1: i32, %arg2: i32) -> (i32, i32) {
    %c0_i32 = arith.constant 0 : i32
    return %arg2, %arg1 : i32, i32
  }
  func.func @transform_2(%arg0: i32, %arg1: i32, %arg2: i32) -> (i32, i32) {
    %c0_i32 = arith.constant 0 : i32
    %c0_i32_0 = arith.constant 0 : i32
    return %c0_i32, %arg1 : i32, i32
  }
  func.func @transform_3(%arg0: i32, %arg1: i32, %arg2: i32) -> (i32, i32) {
    %c0_i32 = arith.constant 0 : i32
    %c0_i32_0 = arith.constant 0 : i32
    return %c0_i32, %arg1 : i32, i32
  }
  func.func @transform_4(%arg0: i32, %arg1: i32, %arg2: i32) -> (i32, i32) {
    %c0_i32 = arith.constant 0 : i32
    return %arg0, %arg1 : i32, i32
  }
}

module attributes {stable_mosaic.version = 11 : i64} {
  func.func @_conv_bn_kernel(%arg0: i32, %arg1: i32, %arg2: i32, %arg3: memref<16x128xbf16, #tpu.memory_space<vmem>>, %arg4: memref<128x256xbf16, #tpu.memory_space<vmem>>, %arg5: memref<1x256xf32, #tpu.memory_space<vmem>>, %arg6: memref<1x256xf32, #tpu.memory_space<vmem>>, %arg7: memref<16x256xbf16, #tpu.memory_space<vmem>>, %arg8: memref<16x256xf32, #tpu.memory_space<vmem>>) attributes {dimension_semantics = [#tpu.dimension_semantics<parallel>, #tpu.dimension_semantics<parallel>, #tpu.dimension_semantics<arbitrary>], iteration_bounds = array<i64: 1, 1, 1>, scalar_prefetch = 0 : i64, scratch_operands = 1 : i64, tpu.core_type = #tpu.core_type<tc>, window_params = [{transform_indices = @transform_0, window_bounds = array<i64: 16, 128>}, {transform_indices = @transform_1, window_bounds = array<i64: 128, 256>}, {transform_indices = @transform_2, window_bounds = array<i64: 1, 256>}, {transform_indices = @transform_3, window_bounds = array<i64: 1, 256>}, {transform_indices = @transform_4, window_bounds = array<i64: 16, 256>}]} {
    %c0_i32 = arith.constant 0 : i32
    %0 = arith.cmpi eq, %arg2, %c0_i32 : i32
    %1 = arith.extui %0 : i1 to i32
    %c0_i32_0 = arith.constant 0 : i32
    %2 = arith.cmpi ne, %1, %c0_i32_0 : i32
    scf.if %2 {
      %cst_10 = arith.constant 0.000000e+00 : f32
      %12 = vector.broadcast %cst_10 : f32 to vector<16x256xf32>
      %c0_11 = arith.constant 0 : index
      %c0_12 = arith.constant 0 : index
      %13 = vector.load %arg8[%c0_11, %c0_12] : memref<16x256xf32, #tpu.memory_space<vmem>>, vector<16x256xf32>
      tpu.vector_store %arg8[%c0_11, %c0_12], %12 {strides = array<i32>} : memref<16x256xf32, #tpu.memory_space<vmem>>, vector<16x256xf32>,
    } else {
    }
    %c0 = arith.constant 0 : index
    %c0_1 = arith.constant 0 : index
    %3 = vector.load %arg8[%c0, %c0_1] : memref<16x256xf32, #tpu.memory_space<vmem>>, vector<16x256xf32>
    %c0_2 = arith.constant 0 : index
    %c0_3 = arith.constant 0 : index
    %4 = vector.load %arg3[%c0_2, %c0_3] : memref<16x128xbf16, #tpu.memory_space<vmem>>, vector<16x128xbf16>
    %c0_4 = arith.constant 0 : index
    %c0_5 = arith.constant 0 : index
    %5 = vector.load %arg4[%c0_4, %c0_5] : memref<128x256xbf16, #tpu.memory_space<vmem>>, vector<128x256xbf16>
    %cst = arith.constant dense<0.000000e+00> : vector<16x256xf32>
    %6 = tpu.matmul %4, %5, %cst {dimension_numbers = #tpu.dot_dimension_numbers<[1], [0], [0], [1], [0, 0, 1, 1], [], []>} : vector<16x128xbf16>, vector<128x256xbf16>, vector<16x256xf32> -> vector<16x256xf32>
    %7 = arith.addf %3, %6 : vector<16x256xf32>
    %c0_6 = arith.constant 0 : index
    %c0_7 = arith.constant 0 : index
    %8 = vector.load %arg8[%c0_6, %c0_7] : memref<16x256xf32, #tpu.memory_space<vmem>>, vector<16x256xf32>
    tpu.vector_store %arg8[%c0_6, %c0_7], %7 {strides = array<i32>} : memref<16x256xf32, #tpu.memory_space<vmem>>, vector<16x256xf32>,
    %c0_i32_8 = arith.constant 0 : i32
    %9 = arith.cmpi eq, %arg2, %c0_i32_8 : i32
    %10 = arith.extui %9 : i1 to i32
    %c0_i32_9 = arith.constant 0 : i32
    %11 = arith.cmpi ne, %10, %c0_i32_9 : i32
    scf.if %11 {
      %c0_10 = arith.constant 0 : index
      %c0_11 = arith.constant 0 : index
      %12 = vector.load %arg8[%c0_10, %c0_11] : memref<16x256xf32, #tpu.memory_space<vmem>>, vector<16x256xf32>
      %c0_12 = arith.constant 0 : index
      %c0_13 = arith.constant 0 : index
      %13 = vector.load %arg5[%c0_12, %c0_13] : memref<1x256xf32, #tpu.memory_space<vmem>>, vector<1x256xf32>
      %14 = vector.broadcast %13 : vector<1x256xf32> to vector<16x256xf32>
      %15 = arith.mulf %12, %14 : vector<16x256xf32>
      %c0_14 = arith.constant 0 : index
      %c0_15 = arith.constant 0 : index
      %16 = vector.load %arg6[%c0_14, %c0_15] : memref<1x256xf32, #tpu.memory_space<vmem>>, vector<1x256xf32>
      %17 = vector.broadcast %16 : vector<1x256xf32> to vector<16x256xf32>
      %18 = arith.addf %15, %17 : vector<16x256xf32>
      %19 = arith.truncf %18 : vector<16x256xf32> to vector<16x256xbf16>
      %c0_16 = arith.constant 0 : index
      %c0_17 = arith.constant 0 : index
      %20 = vector.load %arg7[%c0_16, %c0_17] : memref<16x256xbf16, #tpu.memory_space<vmem>>, vector<16x256xbf16>
      tpu.vector_store %arg7[%c0_16, %c0_17], %19 {strides = array<i32>} : memref<16x256xbf16, #tpu.memory_space<vmem>>, vector<16x256xbf16>,
    } else {
    }
    return
  }
  func.func @transform_0(%arg0: i32, %arg1: i32, %arg2: i32) -> (i32, i32) {
    %c0_i32 = arith.constant 0 : i32
    return %arg0, %arg2 : i32, i32
  }
  func.func @transform_1(%arg0: i32, %arg1: i32, %arg2: i32) -> (i32, i32) {
    %c0_i32 = arith.constant 0 : i32
    return %arg2, %arg1 : i32, i32
  }
  func.func @transform_2(%arg0: i32, %arg1: i32, %arg2: i32) -> (i32, i32) {
    %c0_i32 = arith.constant 0 : i32
    %c0_i32_0 = arith.constant 0 : i32
    return %c0_i32, %arg1 : i32, i32
  }
  func.func @transform_3(%arg0: i32, %arg1: i32, %arg2: i32) -> (i32, i32) {
    %c0_i32 = arith.constant 0 : i32
    %c0_i32_0 = arith.constant 0 : i32
    return %c0_i32, %arg1 : i32, i32
  }
  func.func @transform_4(%arg0: i32, %arg1: i32, %arg2: i32) -> (i32, i32) {
    %c0_i32 = arith.constant 0 : i32
    return %arg0, %arg1 : i32, i32
  }
}

module attributes {stable_mosaic.version = 11 : i64} {
  func.func @_conv_bn_res_kernel(%arg0: i32, %arg1: i32, %arg2: i32, %arg3: memref<16x384xbf16, #tpu.memory_space<vmem>>, %arg4: memref<384x256xbf16, #tpu.memory_space<vmem>>, %arg5: memref<1x256xf32, #tpu.memory_space<vmem>>, %arg6: memref<1x256xf32, #tpu.memory_space<vmem>>, %arg7: memref<16x256xbf16, #tpu.memory_space<vmem>>, %arg8: memref<16x256xbf16, #tpu.memory_space<vmem>>, %arg9: memref<16x256xf32, #tpu.memory_space<vmem>>) attributes {dimension_semantics = [#tpu.dimension_semantics<parallel>, #tpu.dimension_semantics<parallel>, #tpu.dimension_semantics<arbitrary>], iteration_bounds = array<i64: 1, 1, 6>, scalar_prefetch = 0 : i64, scratch_operands = 1 : i64, tpu.core_type = #tpu.core_type<tc>, window_params = [{transform_indices = @transform_0, window_bounds = array<i64: 16, 384>}, {transform_indices = @transform_1, window_bounds = array<i64: 384, 256>}, {transform_indices = @transform_2, window_bounds = array<i64: 1, 256>}, {transform_indices = @transform_3, window_bounds = array<i64: 1, 256>}, {transform_indices = @transform_4, window_bounds = array<i64: 16, 256>}, {transform_indices = @transform_5, window_bounds = array<i64: 16, 256>}]} {
    %c0_i32 = arith.constant 0 : i32
    %0 = arith.cmpi eq, %arg2, %c0_i32 : i32
    %1 = arith.extui %0 : i1 to i32
    %c0_i32_0 = arith.constant 0 : i32
    %2 = arith.cmpi ne, %1, %c0_i32_0 : i32
    scf.if %2 {
      %cst_9 = arith.constant 0.000000e+00 : f32
      %12 = vector.broadcast %cst_9 : f32 to vector<16x256xf32>
      %c0_10 = arith.constant 0 : index
      %c0_11 = arith.constant 0 : index
      %13 = vector.load %arg9[%c0_10, %c0_11] : memref<16x256xf32, #tpu.memory_space<vmem>>, vector<16x256xf32>
      tpu.vector_store %arg9[%c0_10, %c0_11], %12 {strides = array<i32>} : memref<16x256xf32, #tpu.memory_space<vmem>>, vector<16x256xf32>,
    } else {
    }
    %c0 = arith.constant 0 : index
    %c0_1 = arith.constant 0 : index
    %3 = vector.load %arg9[%c0, %c0_1] : memref<16x256xf32, #tpu.memory_space<vmem>>, vector<16x256xf32>
    %c0_2 = arith.constant 0 : index
    %c0_3 = arith.constant 0 : index
    %4 = vector.load %arg3[%c0_2, %c0_3] : memref<16x384xbf16, #tpu.memory_space<vmem>>, vector<16x384xbf16>
    %c0_4 = arith.constant 0 : index
    %c0_5 = arith.constant 0 : index
    %5 = vector.load %arg4[%c0_4, %c0_5] : memref<384x256xbf16, #tpu.memory_space<vmem>>, vector<384x256xbf16>
    %cst = arith.constant dense<0.000000e+00> : vector<16x256xf32>
    %6 = tpu.matmul %4, %5, %cst {dimension_numbers = #tpu.dot_dimension_numbers<[1], [0], [0], [1], [0, 0, 1, 1], [], []>} : vector<16x384xbf16>, vector<384x256xbf16>, vector<16x256xf32> -> vector<16x256xf32>
    %7 = arith.addf %3, %6 : vector<16x256xf32>
    %c0_6 = arith.constant 0 : index
    %c0_7 = arith.constant 0 : index
    %8 = vector.load %arg9[%c0_6, %c0_7] : memref<16x256xf32, #tpu.memory_space<vmem>>, vector<16x256xf32>
    tpu.vector_store %arg9[%c0_6, %c0_7], %7 {strides = array<i32>} : memref<16x256xf32, #tpu.memory_space<vmem>>, vector<16x256xf32>,
    %c5_i32 = arith.constant 5 : i32
    %9 = arith.cmpi eq, %arg2, %c5_i32 : i32
    %10 = arith.extui %9 : i1 to i32
    %c0_i32_8 = arith.constant 0 : i32
    %11 = arith.cmpi ne, %10, %c0_i32_8 : i32
    scf.if %11 {
      %c0_9 = arith.constant 0 : index
      %c0_10 = arith.constant 0 : index
      %12 = vector.load %arg9[%c0_9, %c0_10] : memref<16x256xf32, #tpu.memory_space<vmem>>, vector<16x256xf32>
      %c0_11 = arith.constant 0 : index
      %c0_12 = arith.constant 0 : index
      %13 = vector.load %arg5[%c0_11, %c0_12] : memref<1x256xf32, #tpu.memory_space<vmem>>, vector<1x256xf32>
      %14 = vector.broadcast %13 : vector<1x256xf32> to vector<16x256xf32>
      %15 = arith.mulf %12, %14 : vector<16x256xf32>
      %c0_13 = arith.constant 0 : index
      %c0_14 = arith.constant 0 : index
      %16 = vector.load %arg6[%c0_13, %c0_14] : memref<1x256xf32, #tpu.memory_space<vmem>>, vector<1x256xf32>
      %17 = vector.broadcast %16 : vector<1x256xf32> to vector<16x256xf32>
      %18 = arith.addf %15, %17 : vector<16x256xf32>
      %c0_15 = arith.constant 0 : index
      %c0_16 = arith.constant 0 : index
      %19 = vector.load %arg7[%c0_15, %c0_16] : memref<16x256xbf16, #tpu.memory_space<vmem>>, vector<16x256xbf16>
      %20 = arith.extf %19 : vector<16x256xbf16> to vector<16x256xf32>
      %21 = arith.addf %18, %20 : vector<16x256xf32>
      %cst_17 = arith.constant 0.000000e+00 : f32
      %22 = vector.broadcast %cst_17 : f32 to vector<16x256xf32>
      %23 = arith.maximumf %21, %22 : vector<16x256xf32>
      %24 = arith.truncf %23 : vector<16x256xf32> to vector<16x256xbf16>
      %c0_18 = arith.constant 0 : index
      %c0_19 = arith.constant 0 : index
      %25 = vector.load %arg8[%c0_18, %c0_19] : memref<16x256xbf16, #tpu.memory_space<vmem>>, vector<16x256xbf16>
      tpu.vector_store %arg8[%c0_18, %c0_19], %24 {strides = array<i32>} : memref<16x256xbf16, #tpu.memory_space<vmem>>, vector<16x256xbf16>,
    } else {
    }
    return
  }
  func.func @transform_0(%arg0: i32, %arg1: i32, %arg2: i32) -> (i32, i32) {
    %c0_i32 = arith.constant 0 : i32
    return %arg0, %arg2 : i32, i32
  }
  func.func @transform_1(%arg0: i32, %arg1: i32, %arg2: i32) -> (i32, i32) {
    %c0_i32 = arith.constant 0 : i32
    return %arg2, %arg1 : i32, i32
  }
  func.func @transform_2(%arg0: i32, %arg1: i32, %arg2: i32) -> (i32, i32) {
    %c0_i32 = arith.constant 0 : i32
    %c0_i32_0 = arith.constant 0 : i32
    return %c0_i32, %arg1 : i32, i32
  }
  func.func @transform_3(%arg0: i32, %arg1: i32, %arg2: i32) -> (i32, i32) {
    %c0_i32 = arith.constant 0 : i32
    %c0_i32_0 = arith.constant 0 : i32
    return %c0_i32, %arg1 : i32, i32
  }
  func.func @transform_4(%arg0: i32, %arg1: i32, %arg2: i32) -> (i32, i32) {
    %c0_i32 = arith.constant 0 : i32
    return %arg0, %arg1 : i32, i32
  }
  func.func @transform_5(%arg0: i32, %arg1: i32, %arg2: i32) -> (i32, i32) {
    %c0_i32 = arith.constant 0 : i32
    return %arg0, %arg1 : i32, i32
  }
}

module attributes {stable_mosaic.version = 11 : i64} {
  func.func @_conv_bn_kernel(%arg0: i32, %arg1: i32, %arg2: i32, %arg3: memref<16x384xbf16, #tpu.memory_space<vmem>>, %arg4: memref<384x256xbf16, #tpu.memory_space<vmem>>, %arg5: memref<1x256xf32, #tpu.memory_space<vmem>>, %arg6: memref<1x256xf32, #tpu.memory_space<vmem>>, %arg7: memref<16x256xbf16, #tpu.memory_space<vmem>>, %arg8: memref<16x256xf32, #tpu.memory_space<vmem>>) attributes {dimension_semantics = [#tpu.dimension_semantics<parallel>, #tpu.dimension_semantics<parallel>, #tpu.dimension_semantics<arbitrary>], iteration_bounds = array<i64: 1, 2, 6>, scalar_prefetch = 0 : i64, scratch_operands = 1 : i64, tpu.core_type = #tpu.core_type<tc>, window_params = [{transform_indices = @transform_0, window_bounds = array<i64: 16, 384>}, {transform_indices = @transform_1, window_bounds = array<i64: 384, 256>}, {transform_indices = @transform_2, window_bounds = array<i64: 1, 256>}, {transform_indices = @transform_3, window_bounds = array<i64: 1, 256>}, {transform_indices = @transform_4, window_bounds = array<i64: 16, 256>}]} {
    %c0_i32 = arith.constant 0 : i32
    %0 = arith.cmpi eq, %arg2, %c0_i32 : i32
    %1 = arith.extui %0 : i1 to i32
    %c0_i32_0 = arith.constant 0 : i32
    %2 = arith.cmpi ne, %1, %c0_i32_0 : i32
    scf.if %2 {
      %cst_9 = arith.constant 0.000000e+00 : f32
      %12 = vector.broadcast %cst_9 : f32 to vector<16x256xf32>
      %c0_10 = arith.constant 0 : index
      %c0_11 = arith.constant 0 : index
      %13 = vector.load %arg8[%c0_10, %c0_11] : memref<16x256xf32, #tpu.memory_space<vmem>>, vector<16x256xf32>
      tpu.vector_store %arg8[%c0_10, %c0_11], %12 {strides = array<i32>} : memref<16x256xf32, #tpu.memory_space<vmem>>, vector<16x256xf32>,
    } else {
    }
    %c0 = arith.constant 0 : index
    %c0_1 = arith.constant 0 : index
    %3 = vector.load %arg8[%c0, %c0_1] : memref<16x256xf32, #tpu.memory_space<vmem>>, vector<16x256xf32>
    %c0_2 = arith.constant 0 : index
    %c0_3 = arith.constant 0 : index
    %4 = vector.load %arg3[%c0_2, %c0_3] : memref<16x384xbf16, #tpu.memory_space<vmem>>, vector<16x384xbf16>
    %c0_4 = arith.constant 0 : index
    %c0_5 = arith.constant 0 : index
    %5 = vector.load %arg4[%c0_4, %c0_5] : memref<384x256xbf16, #tpu.memory_space<vmem>>, vector<384x256xbf16>
    %cst = arith.constant dense<0.000000e+00> : vector<16x256xf32>
    %6 = tpu.matmul %4, %5, %cst {dimension_numbers = #tpu.dot_dimension_numbers<[1], [0], [0], [1], [0, 0, 1, 1], [], []>} : vector<16x384xbf16>, vector<384x256xbf16>, vector<16x256xf32> -> vector<16x256xf32>
    %7 = arith.addf %3, %6 : vector<16x256xf32>
    %c0_6 = arith.constant 0 : index
    %c0_7 = arith.constant 0 : index
    %8 = vector.load %arg8[%c0_6, %c0_7] : memref<16x256xf32, #tpu.memory_space<vmem>>, vector<16x256xf32>
    tpu.vector_store %arg8[%c0_6, %c0_7], %7 {strides = array<i32>} : memref<16x256xf32, #tpu.memory_space<vmem>>, vector<16x256xf32>,
    %c5_i32 = arith.constant 5 : i32
    %9 = arith.cmpi eq, %arg2, %c5_i32 : i32
    %10 = arith.extui %9 : i1 to i32
    %c0_i32_8 = arith.constant 0 : i32
    %11 = arith.cmpi ne, %10, %c0_i32_8 : i32
    scf.if %11 {
      %c0_9 = arith.constant 0 : index
      %c0_10 = arith.constant 0 : index
      %12 = vector.load %arg8[%c0_9, %c0_10] : memref<16x256xf32, #tpu.memory_space<vmem>>, vector<16x256xf32>
      %c0_11 = arith.constant 0 : index
      %c0_12 = arith.constant 0 : index
      %13 = vector.load %arg5[%c0_11, %c0_12] : memref<1x256xf32, #tpu.memory_space<vmem>>, vector<1x256xf32>
      %14 = vector.broadcast %13 : vector<1x256xf32> to vector<16x256xf32>
      %15 = arith.mulf %12, %14 : vector<16x256xf32>
      %c0_13 = arith.constant 0 : index
      %c0_14 = arith.constant 0 : index
      %16 = vector.load %arg6[%c0_13, %c0_14] : memref<1x256xf32, #tpu.memory_space<vmem>>, vector<1x256xf32>
      %17 = vector.broadcast %16 : vector<1x256xf32> to vector<16x256xf32>
      %18 = arith.addf %15, %17 : vector<16x256xf32>
      %cst_15 = arith.constant 0.000000e+00 : f32
      %19 = vector.broadcast %cst_15 : f32 to vector<16x256xf32>
      %20 = arith.maximumf %18, %19 : vector<16x256xf32>
      %21 = arith.truncf %20 : vector<16x256xf32> to vector<16x256xbf16>
      %c0_16 = arith.constant 0 : index
      %c0_17 = arith.constant 0 : index
      %22 = vector.load %arg7[%c0_16, %c0_17] : memref<16x256xbf16, #tpu.memory_space<vmem>>, vector<16x256xbf16>
      tpu.vector_store %arg7[%c0_16, %c0_17], %21 {strides = array<i32>} : memref<16x256xbf16, #tpu.memory_space<vmem>>, vector<16x256xbf16>,
    } else {
    }
    return
  }
  func.func @transform_0(%arg0: i32, %arg1: i32, %arg2: i32) -> (i32, i32) {
    %c0_i32 = arith.constant 0 : i32
    return %arg0, %arg2 : i32, i32
  }
  func.func @transform_1(%arg0: i32, %arg1: i32, %arg2: i32) -> (i32, i32) {
    %c0_i32 = arith.constant 0 : i32
    return %arg2, %arg1 : i32, i32
  }
  func.func @transform_2(%arg0: i32, %arg1: i32, %arg2: i32) -> (i32, i32) {
    %c0_i32 = arith.constant 0 : i32
    %c0_i32_0 = arith.constant 0 : i32
    return %c0_i32, %arg1 : i32, i32
  }
  func.func @transform_3(%arg0: i32, %arg1: i32, %arg2: i32) -> (i32, i32) {
    %c0_i32 = arith.constant 0 : i32
    %c0_i32_0 = arith.constant 0 : i32
    return %c0_i32, %arg1 : i32, i32
  }
  func.func @transform_4(%arg0: i32, %arg1: i32, %arg2: i32) -> (i32, i32) {
    %c0_i32 = arith.constant 0 : i32
    return %arg0, %arg1 : i32, i32
  }
}

module attributes {stable_mosaic.version = 11 : i64} {
  func.func @_conv_bn_kernel(%arg0: i32, %arg1: i32, %arg2: i32, %arg3: memref<16x256xbf16, #tpu.memory_space<vmem>>, %arg4: memref<256x256xbf16, #tpu.memory_space<vmem>>, %arg5: memref<1x256xf32, #tpu.memory_space<vmem>>, %arg6: memref<1x256xf32, #tpu.memory_space<vmem>>, %arg7: memref<16x256xbf16, #tpu.memory_space<vmem>>, %arg8: memref<16x256xf32, #tpu.memory_space<vmem>>) attributes {dimension_semantics = [#tpu.dimension_semantics<parallel>, #tpu.dimension_semantics<parallel>, #tpu.dimension_semantics<arbitrary>], iteration_bounds = array<i64: 1, 2, 1>, scalar_prefetch = 0 : i64, scratch_operands = 1 : i64, tpu.core_type = #tpu.core_type<tc>, window_params = [{transform_indices = @transform_0, window_bounds = array<i64: 16, 256>}, {transform_indices = @transform_1, window_bounds = array<i64: 256, 256>}, {transform_indices = @transform_2, window_bounds = array<i64: 1, 256>}, {transform_indices = @transform_3, window_bounds = array<i64: 1, 256>}, {transform_indices = @transform_4, window_bounds = array<i64: 16, 256>}]} {
    %c0_i32 = arith.constant 0 : i32
    %0 = arith.cmpi eq, %arg2, %c0_i32 : i32
    %1 = arith.extui %0 : i1 to i32
    %c0_i32_0 = arith.constant 0 : i32
    %2 = arith.cmpi ne, %1, %c0_i32_0 : i32
    scf.if %2 {
      %cst_10 = arith.constant 0.000000e+00 : f32
      %12 = vector.broadcast %cst_10 : f32 to vector<16x256xf32>
      %c0_11 = arith.constant 0 : index
      %c0_12 = arith.constant 0 : index
      %13 = vector.load %arg8[%c0_11, %c0_12] : memref<16x256xf32, #tpu.memory_space<vmem>>, vector<16x256xf32>
      tpu.vector_store %arg8[%c0_11, %c0_12], %12 {strides = array<i32>} : memref<16x256xf32, #tpu.memory_space<vmem>>, vector<16x256xf32>,
    } else {
    }
    %c0 = arith.constant 0 : index
    %c0_1 = arith.constant 0 : index
    %3 = vector.load %arg8[%c0, %c0_1] : memref<16x256xf32, #tpu.memory_space<vmem>>, vector<16x256xf32>
    %c0_2 = arith.constant 0 : index
    %c0_3 = arith.constant 0 : index
    %4 = vector.load %arg3[%c0_2, %c0_3] : memref<16x256xbf16, #tpu.memory_space<vmem>>, vector<16x256xbf16>
    %c0_4 = arith.constant 0 : index
    %c0_5 = arith.constant 0 : index
    %5 = vector.load %arg4[%c0_4, %c0_5] : memref<256x256xbf16, #tpu.memory_space<vmem>>, vector<256x256xbf16>
    %cst = arith.constant dense<0.000000e+00> : vector<16x256xf32>
    %6 = tpu.matmul %4, %5, %cst {dimension_numbers = #tpu.dot_dimension_numbers<[1], [0], [0], [1], [0, 0, 1, 1], [], []>} : vector<16x256xbf16>, vector<256x256xbf16>, vector<16x256xf32> -> vector<16x256xf32>
    %7 = arith.addf %3, %6 : vector<16x256xf32>
    %c0_6 = arith.constant 0 : index
    %c0_7 = arith.constant 0 : index
    %8 = vector.load %arg8[%c0_6, %c0_7] : memref<16x256xf32, #tpu.memory_space<vmem>>, vector<16x256xf32>
    tpu.vector_store %arg8[%c0_6, %c0_7], %7 {strides = array<i32>} : memref<16x256xf32, #tpu.memory_space<vmem>>, vector<16x256xf32>,
    %c0_i32_8 = arith.constant 0 : i32
    %9 = arith.cmpi eq, %arg2, %c0_i32_8 : i32
    %10 = arith.extui %9 : i1 to i32
    %c0_i32_9 = arith.constant 0 : i32
    %11 = arith.cmpi ne, %10, %c0_i32_9 : i32
    scf.if %11 {
      %c0_10 = arith.constant 0 : index
      %c0_11 = arith.constant 0 : index
      %12 = vector.load %arg8[%c0_10, %c0_11] : memref<16x256xf32, #tpu.memory_space<vmem>>, vector<16x256xf32>
      %c0_12 = arith.constant 0 : index
      %c0_13 = arith.constant 0 : index
      %13 = vector.load %arg5[%c0_12, %c0_13] : memref<1x256xf32, #tpu.memory_space<vmem>>, vector<1x256xf32>
      %14 = vector.broadcast %13 : vector<1x256xf32> to vector<16x256xf32>
      %15 = arith.mulf %12, %14 : vector<16x256xf32>
      %c0_14 = arith.constant 0 : index
      %c0_15 = arith.constant 0 : index
      %16 = vector.load %arg6[%c0_14, %c0_15] : memref<1x256xf32, #tpu.memory_space<vmem>>, vector<1x256xf32>
      %17 = vector.broadcast %16 : vector<1x256xf32> to vector<16x256xf32>
      %18 = arith.addf %15, %17 : vector<16x256xf32>
      %19 = arith.truncf %18 : vector<16x256xf32> to vector<16x256xbf16>
      %c0_16 = arith.constant 0 : index
      %c0_17 = arith.constant 0 : index
      %20 = vector.load %arg7[%c0_16, %c0_17] : memref<16x256xbf16, #tpu.memory_space<vmem>>, vector<16x256xbf16>
      tpu.vector_store %arg7[%c0_16, %c0_17], %19 {strides = array<i32>} : memref<16x256xbf16, #tpu.memory_space<vmem>>, vector<16x256xbf16>,
    } else {
    }
    return
  }
  func.func @transform_0(%arg0: i32, %arg1: i32, %arg2: i32) -> (i32, i32) {
    %c0_i32 = arith.constant 0 : i32
    return %arg0, %arg2 : i32, i32
  }
  func.func @transform_1(%arg0: i32, %arg1: i32, %arg2: i32) -> (i32, i32) {
    %c0_i32 = arith.constant 0 : i32
    return %arg2, %arg1 : i32, i32
  }
  func.func @transform_2(%arg0: i32, %arg1: i32, %arg2: i32) -> (i32, i32) {
    %c0_i32 = arith.constant 0 : i32
    %c0_i32_0 = arith.constant 0 : i32
    return %c0_i32, %arg1 : i32, i32
  }
  func.func @transform_3(%arg0: i32, %arg1: i32, %arg2: i32) -> (i32, i32) {
    %c0_i32 = arith.constant 0 : i32
    %c0_i32_0 = arith.constant 0 : i32
    return %c0_i32, %arg1 : i32, i32
  }
  func.func @transform_4(%arg0: i32, %arg1: i32, %arg2: i32) -> (i32, i32) {
    %c0_i32 = arith.constant 0 : i32
    return %arg0, %arg1 : i32, i32
  }
}

module attributes {stable_mosaic.version = 11 : i64} {
  func.func @_conv_bn_res_kernel(%arg0: i32, %arg1: i32, %arg2: i32, %arg3: memref<16x512xbf16, #tpu.memory_space<vmem>>, %arg4: memref<512x256xbf16, #tpu.memory_space<vmem>>, %arg5: memref<1x256xf32, #tpu.memory_space<vmem>>, %arg6: memref<1x256xf32, #tpu.memory_space<vmem>>, %arg7: memref<16x256xbf16, #tpu.memory_space<vmem>>, %arg8: memref<16x256xbf16, #tpu.memory_space<vmem>>, %arg9: memref<16x256xf32, #tpu.memory_space<vmem>>) attributes {dimension_semantics = [#tpu.dimension_semantics<parallel>, #tpu.dimension_semantics<parallel>, #tpu.dimension_semantics<arbitrary>], iteration_bounds = array<i64: 1, 2, 9>, scalar_prefetch = 0 : i64, scratch_operands = 1 : i64, tpu.core_type = #tpu.core_type<tc>, window_params = [{transform_indices = @transform_0, window_bounds = array<i64: 16, 512>}, {transform_indices = @transform_1, window_bounds = array<i64: 512, 256>}, {transform_indices = @transform_2, window_bounds = array<i64: 1, 256>}, {transform_indices = @transform_3, window_bounds = array<i64: 1, 256>}, {transform_indices = @transform_4, window_bounds = array<i64: 16, 256>}, {transform_indices = @transform_5, window_bounds = array<i64: 16, 256>}]} {
    %c0_i32 = arith.constant 0 : i32
    %0 = arith.cmpi eq, %arg2, %c0_i32 : i32
    %1 = arith.extui %0 : i1 to i32
    %c0_i32_0 = arith.constant 0 : i32
    %2 = arith.cmpi ne, %1, %c0_i32_0 : i32
    scf.if %2 {
      %cst_9 = arith.constant 0.000000e+00 : f32
      %12 = vector.broadcast %cst_9 : f32 to vector<16x256xf32>
      %c0_10 = arith.constant 0 : index
      %c0_11 = arith.constant 0 : index
      %13 = vector.load %arg9[%c0_10, %c0_11] : memref<16x256xf32, #tpu.memory_space<vmem>>, vector<16x256xf32>
      tpu.vector_store %arg9[%c0_10, %c0_11], %12 {strides = array<i32>} : memref<16x256xf32, #tpu.memory_space<vmem>>, vector<16x256xf32>,
    } else {
    }
    %c0 = arith.constant 0 : index
    %c0_1 = arith.constant 0 : index
    %3 = vector.load %arg9[%c0, %c0_1] : memref<16x256xf32, #tpu.memory_space<vmem>>, vector<16x256xf32>
    %c0_2 = arith.constant 0 : index
    %c0_3 = arith.constant 0 : index
    %4 = vector.load %arg3[%c0_2, %c0_3] : memref<16x512xbf16, #tpu.memory_space<vmem>>, vector<16x512xbf16>
    %c0_4 = arith.constant 0 : index
    %c0_5 = arith.constant 0 : index
    %5 = vector.load %arg4[%c0_4, %c0_5] : memref<512x256xbf16, #tpu.memory_space<vmem>>, vector<512x256xbf16>
    %cst = arith.constant dense<0.000000e+00> : vector<16x256xf32>
    %6 = tpu.matmul %4, %5, %cst {dimension_numbers = #tpu.dot_dimension_numbers<[1], [0], [0], [1], [0, 0, 1, 1], [], []>} : vector<16x512xbf16>, vector<512x256xbf16>, vector<16x256xf32> -> vector<16x256xf32>
    %7 = arith.addf %3, %6 : vector<16x256xf32>
    %c0_6 = arith.constant 0 : index
    %c0_7 = arith.constant 0 : index
    %8 = vector.load %arg9[%c0_6, %c0_7] : memref<16x256xf32, #tpu.memory_space<vmem>>, vector<16x256xf32>
    tpu.vector_store %arg9[%c0_6, %c0_7], %7 {strides = array<i32>} : memref<16x256xf32, #tpu.memory_space<vmem>>, vector<16x256xf32>,
    %c8_i32 = arith.constant 8 : i32
    %9 = arith.cmpi eq, %arg2, %c8_i32 : i32
    %10 = arith.extui %9 : i1 to i32
    %c0_i32_8 = arith.constant 0 : i32
    %11 = arith.cmpi ne, %10, %c0_i32_8 : i32
    scf.if %11 {
      %c0_9 = arith.constant 0 : index
      %c0_10 = arith.constant 0 : index
      %12 = vector.load %arg9[%c0_9, %c0_10] : memref<16x256xf32, #tpu.memory_space<vmem>>, vector<16x256xf32>
      %c0_11 = arith.constant 0 : index
      %c0_12 = arith.constant 0 : index
      %13 = vector.load %arg5[%c0_11, %c0_12] : memref<1x256xf32, #tpu.memory_space<vmem>>, vector<1x256xf32>
      %14 = vector.broadcast %13 : vector<1x256xf32> to vector<16x256xf32>
      %15 = arith.mulf %12, %14 : vector<16x256xf32>
      %c0_13 = arith.constant 0 : index
      %c0_14 = arith.constant 0 : index
      %16 = vector.load %arg6[%c0_13, %c0_14] : memref<1x256xf32, #tpu.memory_space<vmem>>, vector<1x256xf32>
      %17 = vector.broadcast %16 : vector<1x256xf32> to vector<16x256xf32>
      %18 = arith.addf %15, %17 : vector<16x256xf32>
      %c0_15 = arith.constant 0 : index
      %c0_16 = arith.constant 0 : index
      %19 = vector.load %arg7[%c0_15, %c0_16] : memref<16x256xbf16, #tpu.memory_space<vmem>>, vector<16x256xbf16>
      %20 = arith.extf %19 : vector<16x256xbf16> to vector<16x256xf32>
      %21 = arith.addf %18, %20 : vector<16x256xf32>
      %cst_17 = arith.constant 0.000000e+00 : f32
      %22 = vector.broadcast %cst_17 : f32 to vector<16x256xf32>
      %23 = arith.maximumf %21, %22 : vector<16x256xf32>
      %24 = arith.truncf %23 : vector<16x256xf32> to vector<16x256xbf16>
      %c0_18 = arith.constant 0 : index
      %c0_19 = arith.constant 0 : index
      %25 = vector.load %arg8[%c0_18, %c0_19] : memref<16x256xbf16, #tpu.memory_space<vmem>>, vector<16x256xbf16>
      tpu.vector_store %arg8[%c0_18, %c0_19], %24 {strides = array<i32>} : memref<16x256xbf16, #tpu.memory_space<vmem>>, vector<16x256xbf16>,
    } else {
    }
    return
  }
  func.func @transform_0(%arg0: i32, %arg1: i32, %arg2: i32) -> (i32, i32) {
    %c0_i32 = arith.constant 0 : i32
    return %arg0, %arg2 : i32, i32
  }
  func.func @transform_1(%arg0: i32, %arg1: i32, %arg2: i32) -> (i32, i32) {
    %c0_i32 = arith.constant 0 : i32
    return %arg2, %arg1 : i32, i32
  }
  func.func @transform_2(%arg0: i32, %arg1: i32, %arg2: i32) -> (i32, i32) {
    %c0_i32 = arith.constant 0 : i32
    %c0_i32_0 = arith.constant 0 : i32
    return %c0_i32, %arg1 : i32, i32
  }
  func.func @transform_3(%arg0: i32, %arg1: i32, %arg2: i32) -> (i32, i32) {
    %c0_i32 = arith.constant 0 : i32
    %c0_i32_0 = arith.constant 0 : i32
    return %c0_i32, %arg1 : i32, i32
  }
  func.func @transform_4(%arg0: i32, %arg1: i32, %arg2: i32) -> (i32, i32) {
    %c0_i32 = arith.constant 0 : i32
    return %arg0, %arg1 : i32, i32
  }
  func.func @transform_5(%arg0: i32, %arg1: i32, %arg2: i32) -> (i32, i32) {
    %c0_i32 = arith.constant 0 : i32
    return %arg0, %arg1 : i32, i32
  }
}

module attributes {stable_mosaic.version = 11 : i64} {
  func.func @_avgpool_fc_kernel(%arg0: memref<2x1x512xbf16, #tpu.memory_space<vmem>>, %arg1: memref<512x128xf32, #tpu.memory_space<vmem>>, %arg2: memref<1x128xf32, #tpu.memory_space<vmem>>, %arg3: memref<2x128xf32, #tpu.memory_space<vmem>>) attributes {dimension_semantics = [], scalar_prefetch = 0 : i64, scratch_operands = 0 : i64, tpu.core_type = #tpu.core_type<tc>} {
    %c0 = arith.constant 0 : index
    %c0_0 = arith.constant 0 : index
    %c0_1 = arith.constant 0 : index
    %0 = vector.load %arg0[%c0, %c0_0, %c0_1] : memref<2x1x512xbf16, #tpu.memory_space<vmem>>, vector<2x1x512xbf16>
    %1 = arith.extf %0 : vector<2x1x512xbf16> to vector<2x1x512xf32>
    %cst = arith.constant dense<0.000000e+00> : vector<2x512xf32>
    %2 = vector.multi_reduction <add>, %1, %cst [1] : vector<2x1x512xf32> to vector<2x512xf32>
    %cst_2 = arith.constant 1.000000e+00 : f32
    %3 = vector.broadcast %cst_2 : f32 to vector<2x512xf32>
    %4 = arith.divf %2, %3 : vector<2x512xf32>
    %c0_3 = arith.constant 0 : index
    %c0_4 = arith.constant 0 : index
    %5 = vector.load %arg1[%c0_3, %c0_4] : memref<512x128xf32, #tpu.memory_space<vmem>>, vector<512x128xf32>
    %cst_5 = arith.constant dense<0.000000e+00> : vector<2x128xf32>
    %6 = tpu.matmul %4, %5, %cst_5 {dimension_numbers = #tpu.dot_dimension_numbers<[1], [0], [0], [1], [0, 0, 1, 1], [], []>} : vector<2x512xf32>, vector<512x128xf32>, vector<2x128xf32> -> vector<2x128xf32>
    %c0_6 = arith.constant 0 : index
    %c0_7 = arith.constant 0 : index
    %7 = vector.load %arg2[%c0_6, %c0_7] : memref<1x128xf32, #tpu.memory_space<vmem>>, vector<1x128xf32>
    %8 = vector.broadcast %7 : vector<1x128xf32> to vector<2x128xf32>
    %9 = arith.addf %6, %8 : vector<2x128xf32>
    %c0_8 = arith.constant 0 : index
    %c0_9 = arith.constant 0 : index
    %10 = vector.load %arg3[%c0_8, %c0_9] : memref<2x128xf32, #tpu.memory_space<vmem>>, vector<2x128xf32>
    tpu.vector_store %arg3[%c0_8, %c0_9], %9 {strides = array<i32>} : memref<2x128xf32, #tpu.memory_space<vmem>>, vector<2x128xf32>,
    return
  }
}

</mosaic_0001>

<bundles_post_ra>
// kernel: _lambda_.14
= control target key start
LH: loop header
LB: loop body
LE: loop exit
PB: predicated region body
PF: predicated region fallthrough
CT: control target
= control target key end

     0   :  { %9 = vsyncpa [#allocation5], 0  ;;  %s1483_s0 = inlined_call_operand.vmem [shape: bf16[128,640], index: 0, kind: input, shape index: {}]   ;;  %s1484_s1 = inlined_call_operand.vmem [shape: bf16[640,64], index: 1, kind: input, shape index: {}]   ;;  %s1485_s2 = inlined_call_operand.hbm [shape: f32[1,64], index: 2, kind: input, shape index: {}]   ;;  %s1486_s3 = inlined_call_operand.hbm [shape: f32[1,64], index: 3, kind: input, shape index: {}]   ;;  %s1487_s4 = inlined_call_operand.vmem [shape: bf16[128,64], index: 4, kind: output, shape index: {}]  }
   0x1   :  { %10 = vsyncpa [#allocation7], 0  ;;  %s1211_s15 = smov 0   ;;  %s1213_s16 = smov 0  }
   0x2   :  { %s1215_s17 = smov 0   ;;  %s1217_s18 = smov 0  }
   0x3   :  { %s1219_s19 = smov 0  }
   0x4 LB: > { %s888_s20 = sadd.s32 4294967295, %s1181_s19   ;;  %s28_s21 = sadd.s32 1, %s1177_s18  ;;  %s1181_s19 = sphi %s1219_s19, %s16_s19   ;;  %s1177_s18 = sphi %s1217_s18, %s1494_s18   ;;  %s1173_s17 = sphi %s1215_s17, %s1493_s17   ;;  %s1169_s16 = sphi %s1213_s16, %s1492_s16   ;;  %s1165_s15 = sphi %s1211_s15, %s1491_s15  }
   0x5   : > { %p29_p0 = scmp.ge.s32.totalorder %s28_s21, 5  ;;  %s44_s22 = sadd.s32 1, %s1169_s16 }
   0x6   : > { %p51_p1 = scmp.ne.s32.totalorder %s1169_s16, %s1165_s15  ;;  %p52_p2 = scmp.eq.s32.totalorder %s1181_s19, 0 }
   0x7   : > { %s1496_s21 = smov (%p29_p0, %s28_s21), 0  ;;  %p889_p4 = scmp.ge.s32.totalorder %s1181_s19, 1 }
   0x8   : > { %p1244_p3 = por %p52_p2, %p51_p1  ;;  %s40_s24 = ssub.s32 %s1177_s18, %s1496_s21 }
   0x9   : > { %p176_p5 = scmp.lt.s32.totalorder %s1181_s19, 6  ;;  %p42_p6 = scmp.eq.s32.totalorder %s40_s24, 0 }
   0xa   : > { %p1256_p8 = scmp.eq.s32.totalorder %s888_s20, 0  ;;  %s189_s30 = sshll.u32 %s1485_s2, 4  ;;  %s190_s30 = int_to_ptr.hbm [resolvable:$true] %s189_s30 }
   0xb   : > { %p1252_p7 = pnand %p889_p4, %p176_p5  ;;  %s1183_s5 = smov [#allocation4]  }
   0xc   : > { %s1261_s27 = scalar_select %p42_p6, %s1169_s16, %s44_s22  }
   0xd   : > { %p1019_p9 = pneg %p1252_p7  ;;  %s191_s6 = sshll.u32 %s1183_s5, 4  ;;  %s192_s6 = int_to_ptr.vmem [resolvable:$true] %s191_s6 }
   0xe   : > { %s202_s9 = sshll.u32 %s1486_s3, 4  ;;  %s1184_s10 = smov [#allocation6]   ;;  %s203_s9 = int_to_ptr.hbm [resolvable:$true] %s202_s9 }
   0xf   : > { %p1020_p10 = pnand %p1256_p8, %p1019_p9  ;;  %s204_s11 = sshll.u32 %s1184_s10, 4  ;;  %s205_s11 = int_to_ptr.vmem [resolvable:$true] %s204_s11 }
  0x10   : > { %p892_p11 = scmp.ge.s32.totalorder %s1181_s19, 5 }
  0x11   : > { %1022 = dma.hbm_to_vmem [thread:$0]  (!%p1020_p10), %s190_s30, 16, %s192_s6, [#allocation5]  }
  0x12   : > { %1025 = dma.hbm_to_vmem [thread:$0]  (!%p1020_p10), %s203_s9, 16, %s205_s11, [#allocation7]  }
  0x13   : > { %211 = sbr.rel (%p892_p11) target bundleno = 44 (0x2c), region = 24 }
  0x18   : > { %214 = sbr.rel (!%p1244_p3) target bundleno = 44 (0x2c), region = 28  ;;  %s216_s12 = sand.u32 (%p1244_p3), 1, %s1169_s16  }
  0x19   : > { %s894_s13 = sshll.u32 (%p1244_p3), %s1177_s18, 2  ;;  %s893_s14 = sshll.u32 (%p1244_p3), %s216_s12, 6 }
  0x1a   : > { %s1281_s24 = scalar_lea.vmem (%p1244_p3), %s1483_s0, %s894_s13  ;;  %s218_s23 = scalar_lea.vmem (%p1244_p3), [#allocation3], %s893_s14 }
  0x1b   : > { %v240_v0 = vld [vmem:[%s1281_s24] sm:$0xf] (%p1244_p3)  ;;  %v242_v1 = vld [vmem:[%s1281_s24 + $0x14] sm:$0xf] (%p1244_p3)  ;;  %v244_v2 = vld [vmem:[%s1281_s24 + $0x28] sm:$0xf] (%p1244_p3) }
  0x1c   : > { %241 = vst [vmem:[%s218_s23] sm:$0xf] (%p1244_p3), %v240_v0  ;;  %v246_v3 = vld [vmem:[%s1281_s24 + $0x3c] sm:$0xf] (%p1244_p3)  ;;  %v248_v4 = vld [vmem:[%s1281_s24 + $0x50] sm:$0xf] (%p1244_p3) }
  0x1d   : > { %243 = vst [vmem:[%s218_s23 + $0x4] sm:$0xf] %v242_v1  ;;  %v250_v5 = vld [vmem:[%s1281_s24 + $0x64] sm:$0xf]  ;;  %v252_v6 = vld [vmem:[%s1281_s24 + $0x78] sm:$0xf] }
  0x1e   : > { %245 = vst [vmem:[%s218_s23 + $0x8] sm:$0xf] %v244_v2  ;;  %v254_v7 = vld [vmem:[%s1281_s24 + $0x8c] sm:$0xf]  ;;  %v256_v8 = vld [vmem:[%s1281_s24 + $0xa0] sm:$0xf] }
  0x1f   : > { %247 = vst [vmem:[%s218_s23 + $0xc] sm:$0xf] %v246_v3  ;;  %v258_v9 = vld [vmem:[%s1281_s24 + $0xb4] sm:$0xf]  ;;  %v260_v10 = vld [vmem:[%s1281_s24 + $0xc8] sm:$0xf] }
  0x20   : > { %249 = vst [vmem:[%s218_s23 + $0x10] sm:$0xf] %v248_v4  ;;  %v262_v11 = vld [vmem:[%s1281_s24 + $0xdc] sm:$0xf]  ;;  %v264_v12 = vld [vmem:[%s1281_s24 + $0xf0] sm:$0xf] }
  0x21   : > { %251 = vst [vmem:[%s218_s23 + $0x14] sm:$0xf] %v250_v5  ;;  %v266_v13 = vld [vmem:[%s1281_s24 + $0x104] sm:$0xf]  ;;  %v268_v14 = vld [vmem:[%s1281_s24 + $0x118] sm:$0xf] }
  0x22   : > { %253 = vst [vmem:[%s218_s23 + $0x18] sm:$0xf] %v252_v6  ;;  %v270_v15 = vld [vmem:[%s1281_s24 + $0x12c] sm:$0xf] }
  0x23   : > { %255 = vst [vmem:[%s218_s23 + $0x1c] sm:$0xf] %v254_v7 }
  0x24   : > { %257 = vst [vmem:[%s218_s23 + $0x20] sm:$0xf] %v256_v8 }
  0x25   : > { %259 = vst [vmem:[%s218_s23 + $0x24] sm:$0xf] %v258_v9 }
  0x26   : > { %261 = vst [vmem:[%s218_s23 + $0x28] sm:$0xf] %v260_v10 }
  0x27   : > { %263 = vst [vmem:[%s218_s23 + $0x2c] sm:$0xf] %v262_v11 }
  0x28   : > { %265 = vst [vmem:[%s218_s23 + $0x30] sm:$0xf] %v264_v12 }
  0x29   : > { %267 = vst [vmem:[%s218_s23 + $0x34] sm:$0xf] %v266_v13 }
  0x2a   : > { %269 = vst [vmem:[%s218_s23 + $0x38] sm:$0xf] %v268_v14 }
  0x2b   : > { %271 = vst [vmem:[%s218_s23 + $0x3c] sm:$0xf] %v270_v15 }
  0x2c PF: > { %342 = sbr.rel (%p1252_p7) target bundleno = 295 (0x127), region = 73  ;;  %s345_s28 = sand.u32 (!%p1252_p7), 1, %s1165_s15  }
  0x2d   : > { %s896_s29 = sshll.u32 (!%p1252_p7), %s345_s28, 6 }
  0x2e   : > { %s1302_s30 = scalar_lea.vmem (!%p1252_p7), [#allocation3], %s896_s29 }
  0x31   : > { %1156 = dma.done.wait (%p1256_p8), [#allocation5], 16  }
  0x32   : > { %1158 = vsyncadd (%p1256_p8), [#allocation5], 4294967280 }
  0x33   : > { %1160 = dma.done.wait (%p1256_p8), [#allocation7], 16  }
  0x34   : > { %1162 = vsyncadd (%p1256_p8), [#allocation7], 4294967280  ;;  %s899_s25 = sshll.u32 %s1173_s17, 4  ;;  %p901_p13 = scmp.ne.s32.totalorder %s1173_s17, 0 }
  0x35   : > { %p393_p12 = scmp.lt.s32.totalorder %s899_s25, 79 }
  0x36   : > { %413 = sbr.rel (%p901_p13) target bundleno = 76 (0x4c), region = 89 }
  0x37   : > { %s1498_s25 = smov (!%p393_p12, %s899_s25), 79 }
  0x38   : > { %s900_s5 = sshll.u32 %s1498_s25, 2 }
  0x39   : > { %s1316_s7 = scalar_lea.vmem %s1484_s1, %s900_s5 }
  0x3b   : > { %vm414_vm0 = vcmask 523264   ;;  %v1185_v16 = vmov 0.0  }
  0x3c   : > { %415 = vst.msk [vmem:[#allocation2] sm:$0xff] %vm414_vm0, %v1185_v16 }
  0x3d   : > { %416 = vst.msk [vmem:[#allocation2 + $0x8] sm:$0xff] %vm414_vm0, %v1185_v16 }
  0x3e   : > { %417 = vst.msk [vmem:[#allocation2 + $0x10] sm:$0xff] %vm414_vm0, %v1185_v16 }
  0x3f   : > { %418 = vst.msk [vmem:[#allocation2 + $0x18] sm:$0xff] %vm414_vm0, %v1185_v16 }
  0x40   : > { %419 = vst.msk [vmem:[#allocation2 + $0x20] sm:$0xff] %vm414_vm0, %v1185_v16 }
  0x41   : > { %420 = vst.msk [vmem:[#allocation2 + $0x28] sm:$0xff] %vm414_vm0, %v1185_v16 }
  0x42   : > { %421 = vst.msk [vmem:[#allocation2 + $0x30] sm:$0xff] %vm414_vm0, %v1185_v16 }
  0x43   : > { %422 = vst.msk [vmem:[#allocation2 + $0x38] sm:$0xff] %vm414_vm0, %v1185_v16 }
  0x44   : > { %423 = vst.msk [vmem:[#allocation2 + $0x40] sm:$0xff] %vm414_vm0, %v1185_v16 }
  0x45   : > { %424 = vst.msk [vmem:[#allocation2 + $0x48] sm:$0xff] %vm414_vm0, %v1185_v16 }
  0x46   : > { %425 = vst.msk [vmem:[#allocation2 + $0x50] sm:$0xff] %vm414_vm0, %v1185_v16 }
  0x47   : > { %426 = vst.msk [vmem:[#allocation2 + $0x58] sm:$0xff] %vm414_vm0, %v1185_v16 }
  0x48   : > { %427 = vst.msk [vmem:[#allocation2 + $0x60] sm:$0xff] %vm414_vm0, %v1185_v16 }
  0x49   : > { %428 = vst.msk [vmem:[#allocation2 + $0x68] sm:$0xff] %vm414_vm0, %v1185_v16 }
  0x4a   : > { %429 = vst.msk [vmem:[#allocation2 + $0x70] sm:$0xff] %vm414_vm0, %v1185_v16 }
  0x4b   : > { %430 = vst.msk [vmem:[#allocation2 + $0x78] sm:$0xff] %vm414_vm0, %v1185_v16 }
  0x4c PF: > { %v986_v17 = vld [vmem:[%s1316_s7 + $0x38] sm:$0xff]  ;;  %v985_v18 = vld [vmem:[%s1316_s7 + $0x30] sm:$0xff]  ;;  %v984_v19 = vld [vmem:[%s1316_s7 + $0x28] sm:$0xff]  ;;  %vm640_vm1 = vcmask 523264   ;;  %p966_p0 = scmp.ne.s32.totalorder %s1173_s17, 4 }
  0x4d   : > { %575 = vmatpush.bf16.msra.mxu0 %v986_v17  ;;  %987 = vmatpush.bf16.msra.mxu1 %v986_v17  ;;  %v983_v20 = vld [vmem:[%s1316_s7 + $0x20] sm:$0xff]  ;;  %v982_v21 = vld [vmem:[%s1316_s7 + $0x18] sm:$0xff]  ;;  %v981_v22 = vld [vmem:[%s1316_s7 + $0x10] sm:$0xff] }
  0x4e   : > { %988 = vmatpush.bf16.msra.mxu2 %v986_v17  ;;  %989 = vmatpush.bf16.msra.mxu3 %v986_v17  ;;  %v980_v23 = vld [vmem:[%s1316_s7 + $0x8] sm:$0xff]  ;;  %v979_v24 = vld [vmem:[%s1316_s7] sm:$0xff]  ;;  %v973_v26 = vld [vmem:[%s1302_s30 + $0x10] sm:$0xff] }
  0x4f   : > { %v971_v25 = vld [vmem:[%s1302_s30] sm:$0xff]  ;;  %v977_v28 = vld [vmem:[%s1302_s30 + $0x30] sm:$0xff]  ;;  %v972_v29 = vld [vmem:[%s1302_s30 + $0x8] sm:$0xff] }
  0x50   : > { %v975_v27 = vld [vmem:[%s1302_s30 + $0x20] sm:$0xff]  ;;  %v974_v30 = vld [vmem:[%s1302_s30 + $0x18] sm:$0xff]  ;;  %v976_v31 = vld [vmem:[%s1302_s30 + $0x28] sm:$0xff] }
  0x51   : > { %576 = vmatpush.bf16.msra.mxu0 %v985_v18  ;;  %990 = vmatpush.bf16.msra.mxu1 %v985_v18  ;;  %v978_v32 = vld [vmem:[%s1302_s30 + $0x38] sm:$0xff]  ;;  %v431_v33 = vld [vmem:[#allocation2] sm:$0xff]  ;;  %v432_v41 = vld [vmem:[#allocation2 + $0x8] sm:$0xff] }
  0x52   : > { %991 = vmatpush.bf16.msra.mxu2 %v985_v18  ;;  %992 = vmatpush.bf16.msra.mxu3 %v985_v18  ;;  %v435_v34 = vld [vmem:[#allocation2 + $0x20] sm:$0xff]  ;;  %v436_v42 = vld [vmem:[#allocation2 + $0x28] sm:$0xff]  ;;  %v433_v53 = vld [vmem:[#allocation2 + $0x10] sm:$0xff] }
  0x53   : > { %v439_v39 = vld [vmem:[#allocation2 + $0x40] sm:$0xff]  ;;  %v440_v51 = vld [vmem:[#allocation2 + $0x48] sm:$0xff]  ;;  %v437_v54 = vld [vmem:[#allocation2 + $0x30] sm:$0xff] }
  0x54   : > { %v443_v40 = vld [vmem:[#allocation2 + $0x60] sm:$0xff]  ;;  %v444_v52 = vld [vmem:[#allocation2 + $0x68] sm:$0xff]  ;;  %v441_v63 = vld [vmem:[#allocation2 + $0x50] sm:$0xff] }
  0x55   : > { %577 = vmatpush.bf16.msra.mxu0 %v984_v19  ;;  %993 = vmatpush.bf16.msra.mxu1 %v984_v19  ;;  %v445_v0 = vld [vmem:[#allocation2 + $0x70] sm:$0xff]  ;;  %v434_v1 = vld [vmem:[#allocation2 + $0x18] sm:$0xff] }
  0x56   : > { %994 = vmatpush.bf16.msra.mxu2 %v984_v19  ;;  %995 = vmatpush.bf16.msra.mxu3 %v984_v19  ;;  %v438_v2 = vld [vmem:[#allocation2 + $0x38] sm:$0xff] }
  0x57   : > { %v442_v11 = vld [vmem:[#allocation2 + $0x58] sm:$0xff] }
  0x58   : > { %v446_v12 = vld [vmem:[#allocation2 + $0x78] sm:$0xff] }
  0x59   : > { %578 = vmatpush.bf16.msra.mxu0 %v983_v20  ;;  %996 = vmatpush.bf16.msra.mxu1 %v983_v20 }
  0x5a   : > { %997 = vmatpush.bf16.msra.mxu2 %v983_v20  ;;  %998 = vmatpush.bf16.msra.mxu3 %v983_v20 }
  0x5d   : > { %579 = vmatpush.bf16.msra.mxu0 %v982_v21  ;;  %999 = vmatpush.bf16.msra.mxu1 %v982_v21 }
  0x5e   : > { %1000 = vmatpush.bf16.msra.mxu2 %v982_v21  ;;  %1001 = vmatpush.bf16.msra.mxu3 %v982_v21 }
  0x61   : > { %580 = vmatpush.bf16.msra.mxu0 %v981_v22  ;;  %1002 = vmatpush.bf16.msra.mxu1 %v981_v22 }
  0x62   : > { %1003 = vmatpush.bf16.msra.mxu2 %v981_v22  ;;  %1004 = vmatpush.bf16.msra.mxu3 %v981_v22 }
  0x65   : > { %581 = vmatpush.bf16.msra.mxu0 %v980_v23  ;;  %1005 = vmatpush.bf16.msra.mxu1 %v980_v23 }
  0x66   : > { %1006 = vmatpush.bf16.msra.mxu2 %v980_v23  ;;  %1007 = vmatpush.bf16.msra.mxu3 %v980_v23 }
  0x69   : > { %582 = vmatpush.bf16.msra.mxu0 %v979_v24  ;;  %1008 = vmatpush.bf16.msra.mxu1 %v979_v24 }
  0x6a   : > { %1009 = vmatpush.bf16.msra.mxu2 %v979_v24  ;;  %1010 = vmatpush.bf16.msra.mxu3 %v979_v24 }
  0x6c   : > { %583 = vmatmul.bf16.vlgmr.msra.gmra.mxu0 %v971_v25  ;;  %593 = vmatmul.bf16.vlgmr.msra.gmra.mxu1 %v973_v26 }
  0x6d   : > { %603 = vmatmul.bf16.vlgmr.msra.gmra.mxu2 %v975_v27  ;;  %613 = vmatmul.bf16.vlgmr.msra.gmra.mxu3 %v977_v28 }
  0x7c   : > { %588 = vmatmul.bf16.gmra.mxu0 %v972_v29  ;;  %598 = vmatmul.bf16.gmra.mxu1 %v974_v30 }
  0x7d   : > { %608 = vmatmul.bf16.gmra.mxu2 %v976_v31  ;;  %618 = vmatmul.bf16.gmra.mxu3 %v978_v32 }
  0xe9   : > { %v584_v35 = vpop.f32.mrf.mxu0  ;;  %v594_v36 = vpop.f32.mrf.mxu1 }
  0xea   : > { %v624_v37 = vadd.f32 %v584_v35, %v431_v33  ;;  %v628_v38 = vadd.f32 %v594_v36, %v435_v34 }
  0xec   : > { %641 = vst.msk [vmem:[#allocation2] sm:$0xff] %vm640_vm1, %v624_v37 }
  0xed   : > { %645 = vst.msk [vmem:[#allocation2 + $0x20] sm:$0xff] %vm640_vm1, %v628_v38 }
  0xf0   : > { %v604_v43 = vpop.f32.mrf.mxu2  ;;  %v614_v44 = vpop.f32.mrf.mxu3 }
  0xf1   : > { %v632_v45 = vadd.f32 %v604_v43, %v439_v39  ;;  %v636_v46 = vadd.f32 %v614_v44, %v443_v40  ;;  %v586_v47 = vpop.f32.mrf.mxu0  ;;  %v596_v48 = vpop.f32.mrf.mxu1 }
  0xf2   : > { %v625_v49 = vadd.f32 %v586_v47, %v432_v41  ;;  %v629_v50 = vadd.f32 %v596_v48, %v436_v42 }
  0xf3   : > { %649 = vst.msk [vmem:[#allocation2 + $0x40] sm:$0xff] %vm640_vm1, %v632_v45 }
  0xf4   : > { %653 = vst.msk [vmem:[#allocation2 + $0x60] sm:$0xff] %vm640_vm1, %v636_v46 }
  0xf5   : > { %642 = vst.msk [vmem:[#allocation2 + $0x8] sm:$0xff] %vm640_vm1, %v625_v49 }
  0xf6   : > { %646 = vst.msk [vmem:[#allocation2 + $0x28] sm:$0xff] %vm640_vm1, %v629_v50 }
  0xf8   : > { %v606_v55 = vpop.f32.mrf.mxu2  ;;  %v616_v56 = vpop.f32.mrf.mxu3 }
  0xf9   : > { %v633_v57 = vadd.f32 %v606_v55, %v440_v51  ;;  %v637_v58 = vadd.f32 %v616_v56, %v444_v52  ;;  %v589_v59 = vpop.f32.mrf.mxu0  ;;  %v599_v60 = vpop.f32.mrf.mxu1 }
  0xfa   : > { %v626_v61 = vadd.f32 %v589_v59, %v433_v53  ;;  %v630_v62 = vadd.f32 %v599_v60, %v437_v54 }
  0xfb   : > { %650 = vst.msk [vmem:[#allocation2 + $0x48] sm:$0xff] %vm640_vm1, %v633_v57 }
  0xfc   : > { %654 = vst.msk [vmem:[#allocation2 + $0x68] sm:$0xff] %vm640_vm1, %v637_v58 }
  0xfd   : > { %643 = vst.msk [vmem:[#allocation2 + $0x10] sm:$0xff] %vm640_vm1, %v626_v61 }
  0xfe   : > { %647 = vst.msk [vmem:[#allocation2 + $0x30] sm:$0xff] %vm640_vm1, %v630_v62 }
 0x100   : > { %v609_v3 = vpop.f32.mrf.mxu2  ;;  %v619_v4 = vpop.f32.mrf.mxu3 }
 0x101   : > { %v634_v5 = vadd.f32 %v609_v3, %v441_v63  ;;  %v638_v6 = vadd.f32 %v619_v4, %v445_v0  ;;  %v591_v7 = vpop.f32.mrf.mxu0  ;;  %v601_v8 = vpop.f32.mrf.mxu1 }
 0x102   : > { %v627_v9 = vadd.f32 %v591_v7, %v434_v1  ;;  %v631_v10 = vadd.f32 %v601_v8, %v438_v2 }
 0x103   : > { %651 = vst.msk [vmem:[#allocation2 + $0x50] sm:$0xff] %vm640_vm1, %v634_v5 }
 0x104   : > { %655 = vst.msk [vmem:[#allocation2 + $0x70] sm:$0xff] %vm640_vm1, %v638_v6 }
 0x105   : > { %644 = vst.msk [vmem:[#allocation2 + $0x18] sm:$0xff] %vm640_vm1, %v627_v9 }
 0x106   : > { %648 = vst.msk [vmem:[#allocation2 + $0x38] sm:$0xff] %vm640_vm1, %v631_v10 }
 0x108   : > { %v611_v13 = vpop.f32.mrf.mxu2  ;;  %v621_v14 = vpop.f32.mrf.mxu3  ;;  %660 = sbr.rel (%p966_p0) target bundleno = 295 (0x127), region = 93 }
 0x109   : > { %v635_v15 = vadd.f32 %v611_v13, %v442_v11  ;;  %v639_v16 = vadd.f32 %v621_v14, %v446_v12 }
 0x10b   : > { %652 = vst.msk [vmem:[#allocation2 + $0x58] sm:$0xff] %vm640_vm1, %v635_v15 }
 0x10c   : > { %656 = vst.msk [vmem:[#allocation2 + $0x78] sm:$0xff] %vm640_vm1, %v639_v16 }
 0x10d   : > { %v661_v17 = vld [vmem:[#allocation2] sm:$0xff]  ;;  %v662_v20 = vld [vmem:[#allocation2 + $0x8] sm:$0xff]  ;;  %v663_v23 = vld [vmem:[#allocation2 + $0x10] sm:$0xff]  ;;  %vm749_vm2 = vcmask 519168  }
 0x10e   : > { %v1368_v18 = vld [vmem:[#allocation4] ss:$0 sm:$0xff]  ;;  %v1370_v19 = vld [vmem:[#allocation6] ss:$0 sm:$0xff]  ;;  %v664_v24 = vld [vmem:[#allocation2 + $0x18] sm:$0xff] }
 0x10f   : > { %v681_v21 = vmul.f32 %v1368_v18, %v661_v17  ;;  %v682_v22 = vmul.f32 %v1368_v18, %v662_v20  ;;  %v665_v25 = vld [vmem:[#allocation2 + $0x20] sm:$0xff]  ;;  %v683_v26 = vmul.f32 %v1368_v18, %v663_v23  ;;  %v684_v27 = vmul.f32 %v1368_v18, %v664_v24  ;;  %v666_v29 = vld [vmem:[#allocation2 + $0x28] sm:$0xff]  ;;  %v667_v30 = vld [vmem:[#allocation2 + $0x30] sm:$0xff] }
 0x110   : > { %v685_v28 = vmul.f32 %v1368_v18, %v665_v25  ;;  %v668_v31 = vld [vmem:[#allocation2 + $0x38] sm:$0xff]  ;;  %v686_v34 = vmul.f32 %v1368_v18, %v666_v29  ;;  %v687_v35 = vmul.f32 %v1368_v18, %v667_v30  ;;  %v669_v48 = vld [vmem:[#allocation2 + $0x40] sm:$0xff]  ;;  %v670_v49 = vld [vmem:[#allocation2 + $0x48] sm:$0xff] }
 0x111   : > { %v701_v32 = vadd.f32 %v1370_v19, %v681_v21  ;;  %v702_v33 = vadd.f32 %v1370_v19, %v682_v22  ;;  %v703_v36 = vadd.f32 %v1370_v19, %v683_v26  ;;  %v704_v37 = vadd.f32 %v1370_v19, %v684_v27  ;;  %v671_v54 = vld [vmem:[#allocation2 + $0x50] sm:$0xff]  ;;  %v673_v56 = vld [vmem:[#allocation2 + $0x60] sm:$0xff]  ;;  %v674_v61 = vld [vmem:[#allocation2 + $0x68] sm:$0xff] }
 0x112   : > { %v705_v38 = vadd.f32 %v1370_v19, %v685_v28  ;;  %v688_v39 = vmul.f32 %v1368_v18, %v668_v31  ;;  %v706_v42 = vadd.f32 %v1370_v19, %v686_v34  ;;  %v707_v43 = vadd.f32 %v1370_v19, %v687_v35  ;;  %v672_v55 = vld [vmem:[#allocation2 + $0x58] sm:$0xff]  ;;  %v675_v62 = vld [vmem:[#allocation2 + $0x70] sm:$0xff] }
 0x113   : > { %v717_v40 = vmax.f32 %v701_v32, 0.0  ;;  %v718_v41 = vmax.f32 %v702_v33, 0.0  ;;  %v719_v44 = vmax.f32 %v703_v36, 0.0  ;;  %v720_v45 = vmax.f32 %v704_v37, 0.0  ;;  %v676_v3 = vld [vmem:[#allocation2 + $0x78] sm:$0xff] }
 0x114   : > { %v721_v46 = vmax.f32 %v705_v38, 0.0  ;;  %v708_v47 = vadd.f32 %v1370_v19, %v688_v39  ;;  %v722_v52 = vmax.f32 %v706_v42, 0.0  ;;  %v723_v53 = vmax.f32 %v707_v43, 0.0 }
 0x115   : > { %v733_v50 = vpack.c.bf16 %v717_v40, %v717_v40  ;;  %v734_v51 = vpack.c.bf16 %v718_v41, %v718_v41  ;;  %v735_v57 = vpack.c.bf16 %v719_v44, %v719_v44  ;;  %v736_v58 = vpack.c.bf16 %v720_v45, %v720_v45 }
 0x116   : > { %v737_v59 = vpack.c.bf16 %v721_v46, %v721_v46  ;;  %v724_v60 = vmax.f32 %v708_v47, 0.0  ;;  %v738_v63 = vpack.c.bf16 %v722_v52, %v722_v52  ;;  %v739_v0 = vpack.c.bf16 %v723_v53, %v723_v53 }
 0x117   : > { %750 = vst.msk [vmem:[%s1487_s4] sm:$0xf] %vm749_vm2, %v733_v50  ;;  %v689_v1 = vmul.f32 %v1368_v18, %v669_v48  ;;  %v690_v2 = vmul.f32 %v1368_v18, %v670_v49  ;;  %v691_v5 = vmul.f32 %v1368_v18, %v671_v54  ;;  %v692_v6 = vmul.f32 %v1368_v18, %v672_v55 }
 0x118   : > { %751 = vst.msk [vmem:[%s1487_s4 + $0x4] sm:$0xf] %vm749_vm2, %v734_v51  ;;  %v740_v4 = vpack.c.bf16 %v724_v60, %v724_v60  ;;  %v693_v7 = vmul.f32 %v1368_v18, %v673_v56  ;;  %v694_v10 = vmul.f32 %v1368_v18, %v674_v61  ;;  %v695_v11 = vmul.f32 %v1368_v18, %v675_v62 }
 0x119   : > { %752 = vst.msk [vmem:[%s1487_s4 + $0x8] sm:$0xf] %vm749_vm2, %v735_v57  ;;  %v709_v8 = vadd.f32 %v1370_v19, %v689_v1  ;;  %v710_v9 = vadd.f32 %v1370_v19, %v690_v2  ;;  %v711_v12 = vadd.f32 %v1370_v19, %v691_v5  ;;  %v712_v13 = vadd.f32 %v1370_v19, %v692_v6 }
 0x11a   : > { %753 = vst.msk [vmem:[%s1487_s4 + $0xc] sm:$0xf] %vm749_vm2, %v736_v58  ;;  %v713_v14 = vadd.f32 %v1370_v19, %v693_v7  ;;  %v696_v15 = vmul.f32 %v1368_v18, %v676_v3  ;;  %v714_v20 = vadd.f32 %v1370_v19, %v694_v10  ;;  %v715_v21 = vadd.f32 %v1370_v19, %v695_v11 }
 0x11b   : > { %754 = vst.msk [vmem:[%s1487_s4 + $0x10] sm:$0xf] %vm749_vm2, %v737_v59  ;;  %v725_v16 = vmax.f32 %v709_v8, 0.0  ;;  %v726_v17 = vmax.f32 %v710_v9, 0.0  ;;  %v727_v22 = vmax.f32 %v711_v12, 0.0  ;;  %v728_v23 = vmax.f32 %v712_v13, 0.0 }
 0x11c   : > { %755 = vst.msk [vmem:[%s1487_s4 + $0x14] sm:$0xf] %vm749_vm2, %v738_v63  ;;  %v729_v24 = vmax.f32 %v713_v14, 0.0  ;;  %v716_v18 = vadd.f32 %v1370_v19, %v696_v15  ;;  %v730_v27 = vmax.f32 %v714_v20, 0.0  ;;  %v731_v28 = vmax.f32 %v715_v21, 0.0 }
 0x11d   : > { %756 = vst.msk [vmem:[%s1487_s4 + $0x18] sm:$0xf] %vm749_vm2, %v739_v0  ;;  %v741_v25 = vpack.c.bf16 %v725_v16, %v725_v16  ;;  %v742_v26 = vpack.c.bf16 %v726_v17, %v726_v17  ;;  %v743_v29 = vpack.c.bf16 %v727_v22, %v727_v22  ;;  %v744_v30 = vpack.c.bf16 %v728_v23, %v728_v23 }
 0x11e   : > { %757 = vst.msk [vmem:[%s1487_s4 + $0x1c] sm:$0xf] %vm749_vm2, %v740_v4  ;;  %v732_v31 = vmax.f32 %v716_v18, 0.0  ;;  %v745_v19 = vpack.c.bf16 %v729_v24, %v729_v24  ;;  %v746_v32 = vpack.c.bf16 %v730_v27, %v730_v27  ;;  %v747_v33 = vpack.c.bf16 %v731_v28, %v731_v28 }
 0x11f   : > { %758 = vst.msk [vmem:[%s1487_s4 + $0x20] sm:$0xf] %vm749_vm2, %v741_v25 }
 0x120   : > { %759 = vst.msk [vmem:[%s1487_s4 + $0x24] sm:$0xf] %vm749_vm2, %v742_v26  ;;  %v748_v34 = vpack.c.bf16 %v732_v31, %v732_v31 }
 0x121   : > { %760 = vst.msk [vmem:[%s1487_s4 + $0x28] sm:$0xf] %vm749_vm2, %v743_v29 }
 0x122   : > { %761 = vst.msk [vmem:[%s1487_s4 + $0x2c] sm:$0xf] %vm749_vm2, %v744_v30 }
 0x123   : > { %762 = vst.msk [vmem:[%s1487_s4 + $0x30] sm:$0xf] %vm749_vm2, %v745_v19 }
 0x124   : > { %763 = vst.msk [vmem:[%s1487_s4 + $0x34] sm:$0xf] %vm749_vm2, %v746_v32 }
 0x125   : > { %764 = vst.msk [vmem:[%s1487_s4 + $0x38] sm:$0xf] %vm749_vm2, %v747_v33 }
 0x126   : > { %765 = vst.msk [vmem:[%s1487_s4 + $0x3c] sm:$0xf] %vm749_vm2, %v748_v34 }
 0x127 PF: > { %s16_s19 = sadd.s32 1, %s1181_s19   ;;  %s1491_s15 = smov %s1169_s16 }
 0x128   : > { %p13_p1 = scmp.ge.s32.totalorder %s16_s19, 7   ;;  %s1492_s16 = smov %s1261_s27 }
 0x129   : > { %s1493_s17 = smov %s1177_s18  ;;  %s1494_s18 = smov %s1496_s21 }
 0x12a   :  { %15 = sbr.rel (!%p13_p1) target bundleno = 4 (0x4), region = 134 }
 0x12f   :  { %794 = vsyncpa [#allocation5], 1 }
 0x130   :  { %796 = vsyncpa [#allocation5 + $0x1], 1 }
 0x131   :  { %797 = vsyncpa [#allocation7], 1 }

// kernel: _lambda_.13
= control target key start
LH: loop header
LB: loop body
LE: loop exit
PB: predicated region body
PF: predicated region fallthrough
CT: control target
= control target key end

     0   :  { %vm21_vm0 = vcmask 523264   ;;  %vm1460_vm1 = vcmask 519168   ;;  %s3004_s1 = inlined_call_operand.vmem [shape: bf16[256,64], index: 1, kind: input, shape index: {}]   ;;  %s3005_s0 = inlined_call_operand.vmem [shape: bf16[512,256], index: 0, kind: input, shape index: {}]   ;;  %s3006_s2 = inlined_call_operand.vmem [shape: f32[1,64], index: 2, kind: input, shape index: {}]   ;;  %s3007_s3 = inlined_call_operand.vmem [shape: f32[1,64], index: 3, kind: input, shape index: {}]   ;;  %s3008_s4 = inlined_call_operand.vmem [shape: bf16[512,64], index: 4, kind: output, shape index: {}]  }
   0x1   :  { %v1920_v0 = vld [vmem:[%s3004_s1 + $0x38] sm:$0xff]  ;;  %v1919_v2 = vld [vmem:[%s3004_s1 + $0x30] sm:$0xff]  ;;  %v1918_v4 = vld [vmem:[%s3004_s1 + $0x28] sm:$0xff] }
   0x2   :  { %v1928_v1 = vld [vmem:[%s3004_s1 + $0x78] sm:$0xff]  ;;  %662 = vmatpush.bf16.msra.mxu0 %v1920_v0  ;;  %1929 = vmatpush.bf16.msra.mxu2 %v1920_v0  ;;  %v1927_v3 = vld [vmem:[%s3004_s1 + $0x70] sm:$0xff]  ;;  %v1926_v5 = vld [vmem:[%s3004_s1 + $0x68] sm:$0xff] }
   0x3   :  { %831 = vmatpush.bf16.msra.mxu1 %v1928_v1  ;;  %1937 = vmatpush.bf16.msra.mxu3 %v1928_v1  ;;  %v1917_v6 = vld [vmem:[%s3004_s1 + $0x20] sm:$0xff]  ;;  %v1916_v8 = vld [vmem:[%s3004_s1 + $0x18] sm:$0xff]  ;;  %v1915_v10 = vld [vmem:[%s3004_s1 + $0x10] sm:$0xff] }
   0x4   :  { %v1925_v7 = vld [vmem:[%s3004_s1 + $0x60] sm:$0xff]  ;;  %v1924_v9 = vld [vmem:[%s3004_s1 + $0x58] sm:$0xff]  ;;  %v1923_v11 = vld [vmem:[%s3004_s1 + $0x50] sm:$0xff] }
   0x5   :  { %v1914_v12 = vld [vmem:[%s3004_s1 + $0x8] sm:$0xff]  ;;  %v1913_v14 = vld [vmem:[%s3004_s1] sm:$0xff]  ;;  %v1539_v28 = vld [vmem:[%s3005_s0 + $0x10] sm:$0xf] }
   0x6   :  { %663 = vmatpush.bf16.msra.mxu0 %v1919_v2  ;;  %1930 = vmatpush.bf16.msra.mxu2 %v1919_v2  ;;  %v1922_v13 = vld [vmem:[%s3004_s1 + $0x48] sm:$0xff]  ;;  %v1921_v15 = vld [vmem:[%s3004_s1 + $0x40] sm:$0xff]  ;;  %v1852_v29 = vld [vmem:[%s3005_s0 + $0x14] sm:$0xf0] }
   0x7   :  { %832 = vmatpush.bf16.msra.mxu1 %v1927_v3  ;;  %1938 = vmatpush.bf16.msra.mxu3 %v1927_v3  ;;  %v1531_v16 = vld [vmem:[%s3005_s0] sm:$0xf]  ;;  %v1850_v17 = vld [vmem:[%s3005_s0 + $0x4] sm:$0xf0]  ;;  %v1849_v20 = vld [vmem:[%s3005_s0 + $0x4] sm:$0xf]  ;;  %v1540_v36 = vor.u32 %v1852_v29, %v1539_v28 }
   0x8   :  { %v1659_v18 = vld [vmem:[%s3005_s0 + $0x100] sm:$0xf]  ;;  %v1882_v19 = vld [vmem:[%s3005_s0 + $0x104] sm:$0xf0]  ;;  %v1533_v21 = vld [vmem:[%s3005_s0 + $0x8] sm:$0xf0]  ;;  %v1532_v24 = vor.u32 %v1850_v17, %v1531_v16 }
   0x9   :  { %v1881_v22 = vld [vmem:[%s3005_s0 + $0x104] sm:$0xf]  ;;  %v1661_v23 = vld [vmem:[%s3005_s0 + $0x108] sm:$0xf0]  ;;  %v1660_v25 = vor.u32 %v1882_v19, %v1659_v18  ;;  %v1536_v26 = vor.u32 %v1849_v20, %v1533_v21  ;;  %v1667_v30 = vld [vmem:[%s3005_s0 + $0x110] sm:$0xf] }
   0xa   :  { %664 = vmatpush.bf16.msra.mxu0 %v1918_v4  ;;  %1931 = vmatpush.bf16.msra.mxu2 %v1918_v4  ;;  %v1664_v27 = vor.u32 %v1881_v22, %v1661_v23  ;;  %v1884_v31 = vld [vmem:[%s3005_s0 + $0x114] sm:$0xf0]  ;;  %v1851_v32 = vld [vmem:[%s3005_s0 + $0x14] sm:$0xf]  ;;  %v1541_v33 = vld [vmem:[%s3005_s0 + $0x18] sm:$0xf0] }
   0xb   :  { %833 = vmatpush.bf16.msra.mxu1 %v1926_v5  ;;  %1939 = vmatpush.bf16.msra.mxu3 %v1926_v5  ;;  %v1883_v34 = vld [vmem:[%s3005_s0 + $0x114] sm:$0xf]  ;;  %v1669_v35 = vld [vmem:[%s3005_s0 + $0x118] sm:$0xf0]  ;;  %v1668_v37 = vor.u32 %v1884_v31, %v1667_v30  ;;  %v1544_v38 = vor.u32 %v1851_v32, %v1541_v33  ;;  %v1547_v40 = vld [vmem:[%s3005_s0 + $0x20] sm:$0xf] }
   0xc   :  { %v1672_v39 = vor.u32 %v1883_v34, %v1669_v35  ;;  %v1854_v41 = vld [vmem:[%s3005_s0 + $0x24] sm:$0xf0]  ;;  %v1675_v42 = vld [vmem:[%s3005_s0 + $0x120] sm:$0xf]  ;;  %v1853_v44 = vld [vmem:[%s3005_s0 + $0x24] sm:$0xf] }
   0xd   :  { %v1886_v43 = vld [vmem:[%s3005_s0 + $0x124] sm:$0xf0]  ;;  %v1549_v45 = vld [vmem:[%s3005_s0 + $0x28] sm:$0xf0]  ;;  %v1885_v46 = vld [vmem:[%s3005_s0 + $0x124] sm:$0xf]  ;;  %v1548_v48 = vor.u32 %v1854_v41, %v1547_v40 }
   0xe   :  { %665 = vmatpush.bf16.msra.mxu0 %v1917_v6  ;;  %1932 = vmatpush.bf16.msra.mxu2 %v1917_v6  ;;  %v1677_v47 = vld [vmem:[%s3005_s0 + $0x128] sm:$0xf0]  ;;  %v1676_v49 = vor.u32 %v1886_v43, %v1675_v42  ;;  %v1552_v50 = vor.u32 %v1853_v44, %v1549_v45  ;;  %v1555_v52 = vld [vmem:[%s3005_s0 + $0x30] sm:$0xf]  ;;  %v1856_v53 = vld [vmem:[%s3005_s0 + $0x34] sm:$0xf0] }
   0xf   :  { %834 = vmatpush.bf16.msra.mxu1 %v1925_v7  ;;  %1940 = vmatpush.bf16.msra.mxu3 %v1925_v7  ;;  %v1680_v51 = vor.u32 %v1885_v46, %v1677_v47  ;;  %v1683_v54 = vld [vmem:[%s3005_s0 + $0x130] sm:$0xf]  ;;  %v1888_v55 = vld [vmem:[%s3005_s0 + $0x134] sm:$0xf0]  ;;  %v1855_v56 = vld [vmem:[%s3005_s0 + $0x34] sm:$0xf]  ;;  %v1556_v60 = vor.u32 %v1856_v53, %v1555_v52 }
  0x10   :  { %v1557_v57 = vld [vmem:[%s3005_s0 + $0x38] sm:$0xf0]  ;;  %v1887_v58 = vld [vmem:[%s3005_s0 + $0x134] sm:$0xf]  ;;  %v1684_v61 = vor.u32 %v1888_v55, %v1683_v54  ;;  %v1563_v0 = vld [vmem:[%s3005_s0 + $0x40] sm:$0xf] }
  0x11   :  { %v1685_v59 = vld [vmem:[%s3005_s0 + $0x138] sm:$0xf0]  ;;  %v1560_v62 = vor.u32 %v1855_v56, %v1557_v57  ;;  %v1858_v1 = vld [vmem:[%s3005_s0 + $0x44] sm:$0xf0]  ;;  %v1691_v2 = vld [vmem:[%s3005_s0 + $0x140] sm:$0xf] }
  0x12   :  { %666 = vmatpush.bf16.msra.mxu0 %v1916_v8  ;;  %1933 = vmatpush.bf16.msra.mxu2 %v1916_v8  ;;  %v1688_v63 = vor.u32 %v1887_v58, %v1685_v59  ;;  %v1890_v3 = vld [vmem:[%s3005_s0 + $0x144] sm:$0xf0]  ;;  %v1857_v4 = vld [vmem:[%s3005_s0 + $0x44] sm:$0xf]  ;;  %v1565_v5 = vld [vmem:[%s3005_s0 + $0x48] sm:$0xf0]  ;;  %v1564_v8 = vor.u32 %v1858_v1, %v1563_v0 }
  0x13   :  { %835 = vmatpush.bf16.msra.mxu1 %v1924_v9  ;;  %1941 = vmatpush.bf16.msra.mxu3 %v1924_v9  ;;  %v1889_v6 = vld [vmem:[%s3005_s0 + $0x144] sm:$0xf]  ;;  %v1693_v7 = vld [vmem:[%s3005_s0 + $0x148] sm:$0xf0]  ;;  %v1692_v9 = vor.u32 %v1890_v3, %v1691_v2  ;;  %v1859_v16 = vld [vmem:[%s3005_s0 + $0x54] sm:$0xf] }
  0x14   :  { %v1573_v17 = vld [vmem:[%s3005_s0 + $0x58] sm:$0xf0]  ;;  %v1891_v18 = vld [vmem:[%s3005_s0 + $0x154] sm:$0xf]  ;;  %v1861_v28 = vld [vmem:[%s3005_s0 + $0x64] sm:$0xf] }
  0x15   :  { %v1701_v19 = vld [vmem:[%s3005_s0 + $0x158] sm:$0xf0]  ;;  %v1576_v22 = vor.u32 %v1859_v16, %v1573_v17  ;;  %v1581_v29 = vld [vmem:[%s3005_s0 + $0x68] sm:$0xf0]  ;;  %v1893_v30 = vld [vmem:[%s3005_s0 + $0x164] sm:$0xf] }
  0x16   :  { %667 = vmatpush.bf16.msra.mxu0 %v1915_v10  ;;  %1934 = vmatpush.bf16.msra.mxu2 %v1915_v10  ;;  %v1568_v10 = vor.u32 %v1857_v4, %v1565_v5  ;;  %v1704_v23 = vor.u32 %v1891_v18, %v1701_v19  ;;  %v1709_v31 = vld [vmem:[%s3005_s0 + $0x168] sm:$0xf0]  ;;  %v1584_v34 = vor.u32 %v1861_v28, %v1581_v29  ;;  %v1896_v40 = vld [vmem:[%s3005_s0 + $0x174] sm:$0xf0]  ;;  %v1863_v41 = vld [vmem:[%s3005_s0 + $0x74] sm:$0xf] }
  0x17   :  { %836 = vmatpush.bf16.msra.mxu1 %v1923_v11  ;;  %1942 = vmatpush.bf16.msra.mxu3 %v1923_v11  ;;  %v1696_v11 = vor.u32 %v1889_v6, %v1693_v7  ;;  %v1712_v35 = vor.u32 %v1893_v30, %v1709_v31  ;;  %v1589_v42 = vld [vmem:[%s3005_s0 + $0x78] sm:$0xf0]  ;;  %v1895_v43 = vld [vmem:[%s3005_s0 + $0x174] sm:$0xf]  ;;  %v1898_v52 = vld [vmem:[%s3005_s0 + $0x184] sm:$0xf0] }
  0x18   :  { %v1717_v44 = vld [vmem:[%s3005_s0 + $0x178] sm:$0xf0]  ;;  %v1592_v47 = vor.u32 %v1863_v41, %v1589_v42  ;;  %v1865_v53 = vld [vmem:[%s3005_s0 + $0x84] sm:$0xf]  ;;  %v1597_v54 = vld [vmem:[%s3005_s0 + $0x88] sm:$0xf0] }
  0x19   :  { %v1897_v55 = vld [vmem:[%s3005_s0 + $0x184] sm:$0xf]  ;;  %v1725_v56 = vld [vmem:[%s3005_s0 + $0x188] sm:$0xf0]  ;;  %v2322_v5 = vld [vmem:[%s3006_s2] ss:$0 sm:$0xff] }
  0x1a   :  { %668 = vmatpush.bf16.msra.mxu0 %v1914_v12  ;;  %1935 = vmatpush.bf16.msra.mxu2 %v1914_v12  ;;  %v1571_v12 = vld [vmem:[%s3005_s0 + $0x50] sm:$0xf]  ;;  %v2329_v7 = vld [vmem:[%s3007_s3] ss:$0 sm:$0xff]  ;;  %v1733_v16 = vld [vmem:[%s3005_s0 + $0x198] sm:$0xf0] }
  0x1b   :  { %837 = vmatpush.bf16.msra.mxu1 %v1922_v13  ;;  %1943 = vmatpush.bf16.msra.mxu3 %v1922_v13  ;;  %v1860_v13 = vld [vmem:[%s3005_s0 + $0x54] sm:$0xf0]  ;;  %v1869_v41 = vld [vmem:[%s3005_s0 + $0xa4] sm:$0xf]  ;;  %v1613_v42 = vld [vmem:[%s3005_s0 + $0xa8] sm:$0xf0] }
  0x1c   :  { %v1572_v20 = vor.u32 %v1860_v13, %v1571_v12  ;;  %v1867_v12 = vld [vmem:[%s3005_s0 + $0x94] sm:$0xf]  ;;  %v1605_v13 = vld [vmem:[%s3005_s0 + $0x98] sm:$0xf0] }
  0x1e   :  { %669 = vmatpush.bf16.msra.mxu0 %v1913_v14  ;;  %1936 = vmatpush.bf16.msra.mxu2 %v1913_v14  ;;  %v1699_v14 = vld [vmem:[%s3005_s0 + $0x150] sm:$0xf] }
  0x1f   :  { %838 = vmatpush.bf16.msra.mxu1 %v1921_v15  ;;  %1944 = vmatpush.bf16.msra.mxu3 %v1921_v15  ;;  %v1892_v15 = vld [vmem:[%s3005_s0 + $0x154] sm:$0xf0] }
  0x20   :  { %v1700_v21 = vor.u32 %v1892_v15, %v1699_v14  ;;  %v1899_v15 = vld [vmem:[%s3005_s0 + $0x194] sm:$0xf] }
  0x21   :  { %670 = vmatmul.bf16.vlgmr.msra.gmra.mxu0 %v1532_v24  ;;  %750 = vmatmul.bf16.vlgmr.msra.gmra.mxu2 %v1660_v25  ;;  %v1579_v24 = vld [vmem:[%s3005_s0 + $0x60] sm:$0xf]  ;;  %v1862_v25 = vld [vmem:[%s3005_s0 + $0x64] sm:$0xf0] }
  0x22   :  { %839 = vmatmul.bf16.vlgmr.msra.gmra.mxu1 %v1536_v26  ;;  %919 = vmatmul.bf16.vlgmr.msra.gmra.mxu3 %v1664_v27  ;;  %v1707_v26 = vld [vmem:[%s3005_s0 + $0x160] sm:$0xf]  ;;  %v1894_v27 = vld [vmem:[%s3005_s0 + $0x164] sm:$0xf0]  ;;  %v1580_v32 = vor.u32 %v1862_v25, %v1579_v24  ;;  %v1608_v24 = vor.u32 %v1867_v12, %v1605_v13  ;;  %v1736_v25 = vor.u32 %v1899_v15, %v1733_v16 }
  0x23   :  { %v1708_v33 = vor.u32 %v1894_v27, %v1707_v26 }
  0x31   :  { %675 = vmatmul.bf16.gmra.mxu0 %v1540_v36  ;;  %755 = vmatmul.bf16.gmra.mxu2 %v1668_v37  ;;  %v1950_v36 = vmov 0.0   ;;  %v1587_v37 = vld [vmem:[%s3005_s0 + $0x70] sm:$0xf] }
  0x32   :  { %844 = vmatmul.bf16.gmra.mxu1 %v1544_v38  ;;  %924 = vmatmul.bf16.gmra.mxu3 %v1672_v39  ;;  %22 = vst.msk [vmem:[#allocation2] sm:$0xff] %vm21_vm0, %v1950_v36  ;;  %v1864_v38 = vld [vmem:[%s3005_s0 + $0x74] sm:$0xf0]  ;;  %v1715_v39 = vld [vmem:[%s3005_s0 + $0x170] sm:$0xf] }
  0x33   :  { %23 = vst.msk [vmem:[#allocation2 + $0x8] sm:$0xff] %vm21_vm0, %v1950_v36  ;;  %v1588_v45 = vor.u32 %v1864_v38, %v1587_v37  ;;  %v1716_v46 = vor.u32 %v1896_v40, %v1715_v39  ;;  %v1739_v37 = vld [vmem:[%s3005_s0 + $0x1a0] sm:$0xf]  ;;  %v1902_v38 = vld [vmem:[%s3005_s0 + $0x1a4] sm:$0xf0] }
  0x34   :  { %24 = vst.msk [vmem:[#allocation2 + $0x10] sm:$0xff] %vm21_vm0, %v1950_v36 }
  0x35   :  { %25 = vst.msk [vmem:[#allocation2 + $0x18] sm:$0xff] %vm21_vm0, %v1950_v36 }
  0x36   :  { %26 = vst.msk [vmem:[#allocation2 + $0x20] sm:$0xff] %vm21_vm0, %v1950_v36 }
  0x37   :  { %27 = vst.msk [vmem:[#allocation2 + $0x28] sm:$0xff] %vm21_vm0, %v1950_v36 }
  0x38   :  { %28 = vst.msk [vmem:[#allocation2 + $0x30] sm:$0xff] %vm21_vm0, %v1950_v36 }
  0x39   :  { %29 = vst.msk [vmem:[#allocation2 + $0x38] sm:$0xff] %vm21_vm0, %v1950_v36 }
  0x3a   :  { %30 = vst.msk [vmem:[#allocation2 + $0x40] sm:$0xff] %vm21_vm0, %v1950_v36 }
  0x3b   :  { %31 = vst.msk [vmem:[#allocation2 + $0x48] sm:$0xff] %vm21_vm0, %v1950_v36 }
  0x3c   :  { %32 = vst.msk [vmem:[#allocation2 + $0x50] sm:$0xff] %vm21_vm0, %v1950_v36 }
  0x3d   :  { %33 = vst.msk [vmem:[#allocation2 + $0x58] sm:$0xff] %vm21_vm0, %v1950_v36 }
  0x3e   :  { %34 = vst.msk [vmem:[#allocation2 + $0x60] sm:$0xff] %vm21_vm0, %v1950_v36  ;;  %v91_v16 = vld [vmem:[#allocation2 + $0x28] sm:$0xff] }
  0x3f   :  { %35 = vst.msk [vmem:[#allocation2 + $0x68] sm:$0xff] %vm21_vm0, %v1950_v36 }
  0x40   :  { %36 = vst.msk [vmem:[#allocation2 + $0x70] sm:$0xff] %vm21_vm0, %v1950_v36 }
  0x41   :  { %680 = vmatmul.bf16.gmra.mxu0 %v1548_v48  ;;  %760 = vmatmul.bf16.gmra.mxu2 %v1676_v49  ;;  %v1720_v48 = vor.u32 %v1895_v43, %v1717_v44  ;;  %37 = vst.msk [vmem:[#allocation2 + $0x78] sm:$0xff] %vm21_vm0, %v1950_v36  ;;  %v1595_v49 = vld [vmem:[%s3005_s0 + $0x80] sm:$0xf]  ;;  %v87_v43 = vld [vmem:[#allocation2 + $0x8] sm:$0xff] }
  0x42   :  { %849 = vmatmul.bf16.gmra.mxu1 %v1552_v50  ;;  %929 = vmatmul.bf16.gmra.mxu3 %v1680_v51  ;;  %38 = vst.msk [vmem:[#allocation2 + $0x80] sm:$0xff] %vm21_vm0, %v1950_v36  ;;  %v1866_v50 = vld [vmem:[%s3005_s0 + $0x84] sm:$0xf0]  ;;  %v1723_v51 = vld [vmem:[%s3005_s0 + $0x180] sm:$0xf] }
  0x43   :  { %39 = vst.msk [vmem:[#allocation2 + $0x88] sm:$0xff] %vm21_vm0, %v1950_v36  ;;  %v1596_v57 = vor.u32 %v1866_v50, %v1595_v49  ;;  %v1724_v58 = vor.u32 %v1898_v52, %v1723_v51  ;;  %v88_v51 = vld [vmem:[#allocation2 + $0x10] sm:$0xff] }
  0x44   :  { %40 = vst.msk [vmem:[#allocation2 + $0x90] sm:$0xff] %vm21_vm0, %v1950_v36 }
  0x45   :  { %41 = vst.msk [vmem:[#allocation2 + $0x98] sm:$0xff] %vm21_vm0, %v1950_v36 }
  0x46   :  { %42 = vst.msk [vmem:[#allocation2 + $0xa0] sm:$0xff] %vm21_vm0, %v1950_v36 }
  0x47   :  { %43 = vst.msk [vmem:[#allocation2 + $0xa8] sm:$0xff] %vm21_vm0, %v1950_v36 }
  0x48   :  { %44 = vst.msk [vmem:[#allocation2 + $0xb0] sm:$0xff] %vm21_vm0, %v1950_v36 }
  0x49   :  { %45 = vst.msk [vmem:[#allocation2 + $0xb8] sm:$0xff] %vm21_vm0, %v1950_v36 }
  0x4a   :  { %46 = vst.msk [vmem:[#allocation2 + $0xc0] sm:$0xff] %vm21_vm0, %v1950_v36 }
  0x4b   :  { %47 = vst.msk [vmem:[#allocation2 + $0xc8] sm:$0xff] %vm21_vm0, %v1950_v36 }
  0x4c   :  { %48 = vst.msk [vmem:[#allocation2 + $0xd0] sm:$0xff] %vm21_vm0, %v1950_v36 }
  0x4d   :  { %49 = vst.msk [vmem:[#allocation2 + $0xd8] sm:$0xff] %vm21_vm0, %v1950_v36 }
  0x4e   :  { %50 = vst.msk [vmem:[#allocation2 + $0xe0] sm:$0xff] %vm21_vm0, %v1950_v36 }
  0x4f   :  { %51 = vst.msk [vmem:[#allocation2 + $0xe8] sm:$0xff] %vm21_vm0, %v1950_v36 }
  0x50   :  { %52 = vst.msk [vmem:[#allocation2 + $0xf0] sm:$0xff] %vm21_vm0, %v1950_v36 }
  0x51   :  { %685 = vmatmul.bf16.gmra.mxu0 %v1556_v60  ;;  %765 = vmatmul.bf16.gmra.mxu2 %v1684_v61  ;;  %53 = vst.msk [vmem:[#allocation2 + $0xf8] sm:$0xff] %vm21_vm0, %v1950_v36  ;;  %v1600_v60 = vor.u32 %v1865_v53, %v1597_v54  ;;  %v1728_v61 = vor.u32 %v1897_v55, %v1725_v56 }
  0x52   :  { %854 = vmatmul.bf16.gmra.mxu1 %v1560_v62  ;;  %934 = vmatmul.bf16.gmra.mxu3 %v1688_v63  ;;  %v86_v62 = vld [vmem:[#allocation2] sm:$0xff]  ;;  %54 = vst.msk [vmem:[#allocation2 + $0x100] sm:$0xff] %vm21_vm0, %v1950_v36  ;;  %v1740_v55 = vor.u32 %v1902_v38, %v1739_v37  ;;  %v1749_v37 = vld [vmem:[%s3005_s0 + $0x1b8] sm:$0xf0] }
  0x53   :  { %55 = vst.msk [vmem:[#allocation2 + $0x108] sm:$0xff] %vm21_vm0, %v1950_v36 }
  0x54   :  { %56 = vst.msk [vmem:[#allocation2 + $0x110] sm:$0xff] %vm21_vm0, %v1950_v36 }
  0x55   :  { %57 = vst.msk [vmem:[#allocation2 + $0x118] sm:$0xff] %vm21_vm0, %v1950_v36 }
  0x56   :  { %58 = vst.msk [vmem:[#allocation2 + $0x120] sm:$0xff] %vm21_vm0, %v1950_v36 }
  0x57   :  { %59 = vst.msk [vmem:[#allocation2 + $0x128] sm:$0xff] %vm21_vm0, %v1950_v36 }
  0x58   :  { %60 = vst.msk [vmem:[#allocation2 + $0x130] sm:$0xff] %vm21_vm0, %v1950_v36 }
  0x59   :  { %61 = vst.msk [vmem:[#allocation2 + $0x138] sm:$0xff] %vm21_vm0, %v1950_v36  ;;  %v118_v39 = vld [vmem:[#allocation2 + $0x100] sm:$0xff] }
  0x5a   :  { %62 = vst.msk [vmem:[#allocation2 + $0x140] sm:$0xff] %vm21_vm0, %v1950_v36 }
  0x5b   :  { %63 = vst.msk [vmem:[#allocation2 + $0x148] sm:$0xff] %vm21_vm0, %v1950_v36 }
  0x5c   :  { %64 = vst.msk [vmem:[#allocation2 + $0x150] sm:$0xff] %vm21_vm0, %v1950_v36 }
  0x5d   :  { %65 = vst.msk [vmem:[#allocation2 + $0x158] sm:$0xff] %vm21_vm0, %v1950_v36  ;;  %v122_v12 = vld [vmem:[#allocation2 + $0x120] sm:$0xff] }
  0x5e   :  { %66 = vst.msk [vmem:[#allocation2 + $0x160] sm:$0xff] %vm21_vm0, %v1950_v36 }
  0x5f   :  { %67 = vst.msk [vmem:[#allocation2 + $0x168] sm:$0xff] %vm21_vm0, %v1950_v36 }
  0x60   :  { %68 = vst.msk [vmem:[#allocation2 + $0x170] sm:$0xff] %vm21_vm0, %v1950_v36 }
  0x61   :  { %690 = vmatmul.bf16.gmra.mxu0 %v1564_v8  ;;  %770 = vmatmul.bf16.gmra.mxu2 %v1692_v9  ;;  %v1603_v8 = vld [vmem:[%s3005_s0 + $0x90] sm:$0xf]  ;;  %v1868_v9 = vld [vmem:[%s3005_s0 + $0x94] sm:$0xf0]  ;;  %69 = vst.msk [vmem:[#allocation2 + $0x178] sm:$0xff] %vm21_vm0, %v1950_v36 }
  0x62   :  { %859 = vmatmul.bf16.gmra.mxu1 %v1568_v10  ;;  %939 = vmatmul.bf16.gmra.mxu3 %v1696_v11  ;;  %v1731_v10 = vld [vmem:[%s3005_s0 + $0x190] sm:$0xf]  ;;  %v1900_v11 = vld [vmem:[%s3005_s0 + $0x194] sm:$0xf0]  ;;  %70 = vst.msk [vmem:[#allocation2 + $0x180] sm:$0xff] %vm21_vm0, %v1950_v36 }
  0x63   :  { %71 = vst.msk [vmem:[#allocation2 + $0x188] sm:$0xff] %vm21_vm0, %v1950_v36 }
  0x64   :  { %72 = vst.msk [vmem:[#allocation2 + $0x190] sm:$0xff] %vm21_vm0, %v1950_v36 }
  0x65   :  { %73 = vst.msk [vmem:[#allocation2 + $0x198] sm:$0xff] %vm21_vm0, %v1950_v36 }
  0x66   :  { %74 = vst.msk [vmem:[#allocation2 + $0x1a0] sm:$0xff] %vm21_vm0, %v1950_v36 }
  0x67   :  { %75 = vst.msk [vmem:[#allocation2 + $0x1a8] sm:$0xff] %vm21_vm0, %v1950_v36 }
  0x68   :  { %76 = vst.msk [vmem:[#allocation2 + $0x1b0] sm:$0xff] %vm21_vm0, %v1950_v36 }
  0x69   :  { %77 = vst.msk [vmem:[#allocation2 + $0x1b8] sm:$0xff] %vm21_vm0, %v1950_v36 }
  0x6a   :  { %78 = vst.msk [vmem:[#allocation2 + $0x1c0] sm:$0xff] %vm21_vm0, %v1950_v36 }
  0x6b   :  { %79 = vst.msk [vmem:[#allocation2 + $0x1c8] sm:$0xff] %vm21_vm0, %v1950_v36 }
  0x6c   :  { %80 = vst.msk [vmem:[#allocation2 + $0x1d0] sm:$0xff] %vm21_vm0, %v1950_v36 }
  0x6d   :  { %81 = vst.msk [vmem:[#allocation2 + $0x1d8] sm:$0xff] %vm21_vm0, %v1950_v36 }
  0x6e   :  { %82 = vst.msk [vmem:[#allocation2 + $0x1e0] sm:$0xff] %vm21_vm0, %v1950_v36 }
  0x6f   :  { %83 = vst.msk [vmem:[#allocation2 + $0x1e8] sm:$0xff] %vm21_vm0, %v1950_v36 }
  0x70   :  { %84 = vst.msk [vmem:[#allocation2 + $0x1f0] sm:$0xff] %vm21_vm0, %v1950_v36 }
  0x71   :  { %695 = vmatmul.bf16.gmra.mxu0 %v1572_v20  ;;  %775 = vmatmul.bf16.gmra.mxu2 %v1700_v21  ;;  %v1604_v20 = vor.u32 %v1868_v9, %v1603_v8  ;;  %v1732_v21 = vor.u32 %v1900_v11, %v1731_v10  ;;  %85 = vst.msk [vmem:[#allocation2 + $0x1f8] sm:$0xff] %vm21_vm0, %v1950_v36  ;;  %v90_v8 = vld [vmem:[#allocation2 + $0x20] sm:$0xff] }
  0x72   :  { %864 = vmatmul.bf16.gmra.mxu1 %v1576_v22  ;;  %944 = vmatmul.bf16.gmra.mxu3 %v1704_v23 }
  0x81   :  { %700 = vmatmul.bf16.gmra.mxu0 %v1580_v32  ;;  %780 = vmatmul.bf16.gmra.mxu2 %v1708_v33  ;;  %v1611_v33 = vld [vmem:[%s3005_s0 + $0xa0] sm:$0xf] }
  0x82   :  { %869 = vmatmul.bf16.gmra.mxu1 %v1584_v34  ;;  %949 = vmatmul.bf16.gmra.mxu3 %v1712_v35  ;;  %v1870_v34 = vld [vmem:[%s3005_s0 + $0xa4] sm:$0xf0] }
  0x83   :  { %v1612_v54 = vor.u32 %v1870_v34, %v1611_v33 }
  0x91   :  { %705 = vmatmul.bf16.gmra.mxu0 %v1588_v45  ;;  %785 = vmatmul.bf16.gmra.mxu2 %v1716_v46  ;;  %v1901_v45 = vld [vmem:[%s3005_s0 + $0x1a4] sm:$0xf]  ;;  %v1741_v46 = vld [vmem:[%s3005_s0 + $0x1a8] sm:$0xf0] }
  0x92   :  { %874 = vmatmul.bf16.gmra.mxu1 %v1592_v47  ;;  %954 = vmatmul.bf16.gmra.mxu3 %v1720_v48  ;;  %v119_v47 = vld [vmem:[#allocation2 + $0x108] sm:$0xff] }
  0x9e   :  { %v671_v59 = vpop.f32.mrf.mxu0 }
  0x9f   :  { %v840_v63 = vpop.f32.mrf.mxu1 }
  0xa0   :  { %v841_v0 = vadd.f32 %v840_v63, %v671_v59  ;;  %v89_v63 = vld [vmem:[#allocation2 + $0x18] sm:$0xff] }
  0xa1   :  { %710 = vmatmul.bf16.gmra.mxu0 %v1596_v57  ;;  %790 = vmatmul.bf16.gmra.mxu2 %v1724_v58  ;;  %v120_v57 = vld [vmem:[#allocation2 + $0x110] sm:$0xff] }
  0xa2   :  { %v1000_v1 = vadd.f32 %v841_v0, %v86_v62  ;;  %879 = vmatmul.bf16.gmra.mxu1 %v1600_v60  ;;  %959 = vmatmul.bf16.gmra.mxu3 %v1728_v61  ;;  %v1616_v60 = vor.u32 %v1869_v41, %v1613_v42  ;;  %v1744_v61 = vor.u32 %v1901_v45, %v1741_v46 }
  0xa4   :  { %1065 = vst.msk [vmem:[#allocation2] sm:$0xff] %vm21_vm0, %v1000_v1  ;;  %v751_v2 = vpop.f32.mrf.mxu2 }
  0xa5   :  { %v920_v3 = vpop.f32.mrf.mxu3 }
  0xa6   :  { %v673_v4 = vpop.f32.mrf.mxu0  ;;  %v921_v35 = vadd.f32 %v920_v3, %v751_v2  ;;  %v121_v3 = vld [vmem:[#allocation2 + $0x118] sm:$0xff] }
  0xa7   :  { %v842_v6 = vpop.f32.mrf.mxu1 }
  0xa8   :  { %v843_v40 = vadd.f32 %v842_v6, %v673_v4  ;;  %v1032_v50 = vadd.f32 %v921_v35, %v118_v39  ;;  %v1903_v35 = vld [vmem:[%s3005_s0 + $0x1b4] sm:$0xf] }
  0xaa   :  { %v1001_v56 = vadd.f32 %v843_v40, %v87_v43  ;;  %1097 = vst.msk [vmem:[#allocation2 + $0x100] sm:$0xff] %vm21_vm0, %v1032_v50 }
  0xab   :  { %v1132_v14 = vld [vmem:[#allocation2] sm:$0xff] }
  0xac   :  { %v1200_v17 = vmul.f32 %v2322_v5, %v1132_v14  ;;  %v753_v18 = vpop.f32.mrf.mxu2  ;;  %1066 = vst.msk [vmem:[#allocation2 + $0x8] sm:$0xff] %vm21_vm0, %v1001_v56 }
  0xad   :  { %v922_v19 = vpop.f32.mrf.mxu3 }
  0xae   :  { %v1268_v22 = vadd.f32 %v2329_v7, %v1200_v17  ;;  %v676_v23 = vpop.f32.mrf.mxu0  ;;  %v923_v44 = vadd.f32 %v922_v19, %v753_v18 }
  0xaf   :  { %v845_v26 = vpop.f32.mrf.mxu1 }
  0xb0   :  { %v1332_v27 = vmax.f32 %v1268_v22, 0.0  ;;  %v846_v48 = vadd.f32 %v845_v26, %v676_v23  ;;  %v1033_v62 = vadd.f32 %v923_v44, %v119_v47  ;;  %v1872_v22 = vld [vmem:[%s3005_s0 + $0xb4] sm:$0xf0] }
  0xb1   :  { %715 = vmatmul.bf16.gmra.mxu0 %v1604_v20  ;;  %795 = vmatmul.bf16.gmra.mxu2 %v1732_v21  ;;  %v1164_v18 = vld [vmem:[#allocation2 + $0x100] sm:$0xff]  ;;  %v1619_v21 = vld [vmem:[%s3005_s0 + $0xb0] sm:$0xf]  ;;  %v1904_v26 = vld [vmem:[%s3005_s0 + $0x1b4] sm:$0xf0] }
  0xb2   :  { %v1396_v28 = vpack.c.bf16 %v1332_v27, %v1332_v27  ;;  %884 = vmatmul.bf16.gmra.mxu1 %v1608_v24  ;;  %964 = vmatmul.bf16.gmra.mxu3 %v1736_v25  ;;  %v1002_v2 = vadd.f32 %v846_v48, %v88_v51  ;;  %1098 = vst.msk [vmem:[#allocation2 + $0x108] sm:$0xff] %vm21_vm0, %v1033_v62  ;;  %v1747_v25 = vld [vmem:[%s3005_s0 + $0x1b0] sm:$0xf] }
  0xb3   :  { %v1232_v23 = vmul.f32 %v2322_v5, %v1164_v18  ;;  %v1133_v24 = vld [vmem:[#allocation2 + $0x8] sm:$0xff]  ;;  %v1620_v42 = vor.u32 %v1872_v22, %v1619_v21  ;;  %v1748_v43 = vor.u32 %v1904_v26, %v1747_v25  ;;  %v92_v21 = vld [vmem:[#allocation2 + $0x30] sm:$0xff] }
  0xb4   :  { %1461 = vst.msk [vmem:[%s3008_s4] sm:$0xf] %vm1460_vm1, %v1396_v28  ;;  %v756_v29 = vpop.f32.mrf.mxu2  ;;  %v1201_v27 = vmul.f32 %v2322_v5, %v1133_v24 }
  0xb5   :  { %v925_v30 = vpop.f32.mrf.mxu3  ;;  %1067 = vst.msk [vmem:[#allocation2 + $0x10] sm:$0xff] %vm21_vm0, %v1002_v2 }
  0xb6   :  { %v678_v31 = vpop.f32.mrf.mxu0  ;;  %v926_v52 = vadd.f32 %v925_v30, %v756_v29  ;;  %v1871_v30 = vld [vmem:[%s3005_s0 + $0xb4] sm:$0xf]  ;;  %v1269_v38 = vadd.f32 %v2329_v7, %v1201_v27 }
  0xb7   :  { %v847_v32 = vpop.f32.mrf.mxu1 }
  0xb8   :  { %v848_v58 = vadd.f32 %v847_v32, %v678_v31  ;;  %v1034_v6 = vadd.f32 %v926_v52, %v120_v57  ;;  %v1621_v31 = vld [vmem:[%s3005_s0 + $0xb8] sm:$0xf0]  ;;  %v1300_v32 = vadd.f32 %v2329_v7, %v1232_v23  ;;  %v1333_v50 = vmax.f32 %v1269_v38, 0.0 }
  0xb9   :  { %v1165_v28 = vld [vmem:[#allocation2 + $0x108] sm:$0xff] }
  0xba   :  { %v1003_v9 = vadd.f32 %v848_v58, %v89_v63  ;;  %1099 = vst.msk [vmem:[#allocation2 + $0x110] sm:$0xff] %vm21_vm0, %v1034_v6  ;;  %v1233_v33 = vmul.f32 %v2322_v5, %v1165_v28  ;;  %v1364_v44 = vmax.f32 %v1300_v32, 0.0  ;;  %v1397_v62 = vpack.c.bf16 %v1333_v50, %v1333_v50  ;;  %v1757_v50 = vld [vmem:[%s3005_s0 + $0x1c8] sm:$0xf0] }
  0xbc   :  { %v758_v49 = vpop.f32.mrf.mxu2  ;;  %1068 = vst.msk [vmem:[#allocation2 + $0x18] sm:$0xff] %vm21_vm0, %v1003_v9  ;;  %v1134_v34 = vld [vmem:[#allocation2 + $0x10] sm:$0xff]  ;;  %v1301_v45 = vadd.f32 %v2329_v7, %v1233_v33  ;;  %v1428_v56 = vpack.c.bf16 %v1364_v44, %v1364_v44  ;;  %v93_v33 = vld [vmem:[#allocation2 + $0x38] sm:$0xff]  ;;  %v1755_v44 = vld [vmem:[%s3005_s0 + $0x1c0] sm:$0xf] }
  0xbd   :  { %v927_v53 = vpop.f32.mrf.mxu3  ;;  %v1202_v39 = vmul.f32 %v2322_v5, %v1134_v34  ;;  %1462 = vst.msk [vmem:[%s3008_s4 + $0x4] sm:$0xf] %vm1460_vm1, %v1397_v62 }
  0xbe   :  { %v681_v59 = vpop.f32.mrf.mxu0  ;;  %v928_v0 = vadd.f32 %v927_v53, %v758_v49  ;;  %v1624_v49 = vor.u32 %v1871_v30, %v1621_v31  ;;  %v1365_v57 = vmax.f32 %v1301_v45, 0.0  ;;  %1493 = vst.msk [vmem:[%s3008_s4 + $0x80] sm:$0xf] %vm1460_vm1, %v1428_v56  ;;  %v1906_v45 = vld [vmem:[%s3005_s0 + $0x1c4] sm:$0xf0] }
  0xbf   :  { %v850_v1 = vpop.f32.mrf.mxu1  ;;  %v1270_v51 = vadd.f32 %v2329_v7, %v1202_v39  ;;  %v1756_v56 = vor.u32 %v1906_v45, %v1755_v44  ;;  %v1907_v44 = vld [vmem:[%s3005_s0 + $0x1d4] sm:$0xf]  ;;  %v1765_v45 = vld [vmem:[%s3005_s0 + $0x1d8] sm:$0xf0] }
  0xc0   :  { %v851_v4 = vadd.f32 %v850_v1, %v681_v59  ;;  %v1035_v10 = vadd.f32 %v928_v0, %v121_v3  ;;  %v1429_v2 = vpack.c.bf16 %v1365_v57, %v1365_v57  ;;  %v94_v57 = vld [vmem:[#allocation2 + $0x40] sm:$0xff] }
  0xc1   :  { %720 = vmatmul.bf16.gmra.mxu0 %v1612_v54  ;;  %800 = vmatmul.bf16.gmra.mxu2 %v1740_v55  ;;  %v1166_v40 = vld [vmem:[#allocation2 + $0x110] sm:$0xff]  ;;  %v1752_v55 = vor.u32 %v1903_v35, %v1749_v37  ;;  %v1334_v63 = vmax.f32 %v1270_v51, 0.0  ;;  %v125_v51 = vld [vmem:[#allocation2 + $0x138] sm:$0xff] }
  0xc2   :  { %889 = vmatmul.bf16.gmra.mxu1 %v1616_v60  ;;  %969 = vmatmul.bf16.gmra.mxu3 %v1744_v61  ;;  %v1004_v36 = vadd.f32 %v851_v4, %v90_v8  ;;  %1100 = vst.msk [vmem:[#allocation2 + $0x118] sm:$0xff] %vm21_vm0, %v1035_v10  ;;  %v1234_v46 = vmul.f32 %v2322_v5, %v1166_v40  ;;  %v1627_v40 = vld [vmem:[%s3005_s0 + $0xc0] sm:$0xf] }
  0xc3   :  { %v1135_v47 = vld [vmem:[#allocation2 + $0x18] sm:$0xff]  ;;  %v1398_v9 = vpack.c.bf16 %v1334_v63, %v1334_v63  ;;  %1494 = vst.msk [vmem:[%s3008_s4 + $0x84] sm:$0xf] %vm1460_vm1, %v1429_v2 }
  0xc4   :  { %v761_v11 = vpop.f32.mrf.mxu2  ;;  %1069 = vst.msk [vmem:[#allocation2 + $0x20] sm:$0xff] %vm21_vm0, %v1004_v36  ;;  %v1203_v52 = vmul.f32 %v2322_v5, %v1135_v47  ;;  %v1302_v58 = vadd.f32 %v2329_v7, %v1234_v46  ;;  %v1873_v46 = vld [vmem:[%s3005_s0 + $0xc4] sm:$0xf]  ;;  %v1629_v47 = vld [vmem:[%s3005_s0 + $0xc8] sm:$0xf0] }
  0xc5   :  { %v930_v13 = vpop.f32.mrf.mxu3  ;;  %1463 = vst.msk [vmem:[%s3008_s4 + $0x8] sm:$0xf] %vm1460_vm1, %v1398_v9 }
  0xc6   :  { %v931_v14 = vadd.f32 %v930_v13, %v761_v11  ;;  %v683_v15 = vpop.f32.mrf.mxu0  ;;  %v1271_v0 = vadd.f32 %v2329_v7, %v1203_v52  ;;  %v1366_v3 = vmax.f32 %v1302_v58, 0.0 }
  0xc7   :  { %v852_v17 = vpop.f32.mrf.mxu1 }
  0xc8   :  { %v1036_v19 = vadd.f32 %v931_v14, %v122_v12  ;;  %v853_v20 = vadd.f32 %v852_v17, %v683_v15  ;;  %v1335_v10 = vmax.f32 %v1271_v0, 0.0  ;;  %v123_v12 = vld [vmem:[#allocation2 + $0x128] sm:$0xff]  ;;  %v1430_v13 = vpack.c.bf16 %v1366_v3, %v1366_v3 }
  0xc9   :  { %v1167_v53 = vld [vmem:[#allocation2 + $0x118] sm:$0xff] }
  0xca   :  { %1101 = vst.msk [vmem:[#allocation2 + $0x120] sm:$0xff] %vm21_vm0, %v1036_v19  ;;  %v1005_v29 = vadd.f32 %v853_v20, %v91_v16  ;;  %v1235_v59 = vmul.f32 %v2322_v5, %v1167_v53  ;;  %v1399_v17 = vpack.c.bf16 %v1335_v10, %v1335_v10 }
  0xcb   :  { %v1136_v60 = vld [vmem:[#allocation2 + $0x20] sm:$0xff]  ;;  %1495 = vst.msk [vmem:[%s3008_s4 + $0x88] sm:$0xf] %vm1460_vm1, %v1430_v13 }
  0xcc   :  { %1070 = vst.msk [vmem:[#allocation2 + $0x28] sm:$0xff] %vm21_vm0, %v1005_v29  ;;  %v763_v41 = vpop.f32.mrf.mxu2  ;;  %v1204_v1 = vmul.f32 %v2322_v5, %v1136_v60  ;;  %v1303_v4 = vadd.f32 %v2329_v7, %v1235_v59  ;;  %v124_v29 = vld [vmem:[#allocation2 + $0x130] sm:$0xff]  ;;  %v1632_v59 = vor.u32 %v1873_v46, %v1629_v47  ;;  %v127_v46 = vld [vmem:[#allocation2 + $0x148] sm:$0xff] }
  0xcd   :  { %v932_v48 = vpop.f32.mrf.mxu3  ;;  %1464 = vst.msk [vmem:[%s3008_s4 + $0xc] sm:$0xf] %vm1460_vm1, %v1399_v17 }
  0xce   :  { %v686_v54 = vpop.f32.mrf.mxu0  ;;  %v933_v8 = vadd.f32 %v932_v48, %v763_v41  ;;  %v1272_v36 = vadd.f32 %v2329_v7, %v1204_v1  ;;  %v1367_v14 = vmax.f32 %v1303_v4, 0.0  ;;  %v1874_v41 = vld [vmem:[%s3005_s0 + $0xc4] sm:$0xf0] }
  0xcf   :  { %v855_v61 = vpop.f32.mrf.mxu1  ;;  %v1628_v53 = vor.u32 %v1874_v41, %v1627_v40 }
  0xd0   :  { %v856_v16 = vadd.f32 %v855_v61, %v686_v54  ;;  %v1336_v18 = vmax.f32 %v1272_v36, 0.0  ;;  %v1431_v23 = vpack.c.bf16 %v1367_v14, %v1367_v14  ;;  %v1037_v24 = vadd.f32 %v933_v8, %v123_v12  ;;  %v126_v12 = vld [vmem:[#allocation2 + $0x140] sm:$0xff] }
  0xd1   :  { %v1168_v6 = vld [vmem:[#allocation2 + $0x120] sm:$0xff]  ;;  %725 = vmatmul.bf16.gmra.mxu0 %v1620_v42  ;;  %805 = vmatmul.bf16.gmra.mxu2 %v1748_v43 }
  0xd2   :  { %v1236_v11 = vmul.f32 %v2322_v5, %v1168_v6  ;;  %894 = vmatmul.bf16.gmra.mxu1 %v1624_v49  ;;  %974 = vmatmul.bf16.gmra.mxu3 %v1752_v55  ;;  %v1400_v26 = vpack.c.bf16 %v1336_v18, %v1336_v18  ;;  %1496 = vst.msk [vmem:[%s3008_s4 + $0x8c] sm:$0xf] %vm1460_vm1, %v1431_v23  ;;  %v1905_v49 = vld [vmem:[%s3005_s0 + $0x1c4] sm:$0xf] }
  0xd3   :  { %v1137_v15 = vld [vmem:[#allocation2 + $0x28] sm:$0xff]  ;;  %v1006_v32 = vadd.f32 %v856_v16, %v92_v21  ;;  %1102 = vst.msk [vmem:[#allocation2 + $0x128] sm:$0xff] %vm21_vm0, %v1037_v24  ;;  %v1760_v60 = vor.u32 %v1905_v49, %v1757_v50 }
  0xd4   :  { %v1304_v19 = vadd.f32 %v2329_v7, %v1236_v11  ;;  %v1205_v20 = vmul.f32 %v2322_v5, %v1137_v15  ;;  %v766_v22 = vpop.f32.mrf.mxu2  ;;  %1465 = vst.msk [vmem:[%s3008_s4 + $0x10] sm:$0xf] %vm1460_vm1, %v1400_v26  ;;  %v1876_v26 = vld [vmem:[%s3005_s0 + $0xd4] sm:$0xf0] }
  0xd5   :  { %v935_v25 = vpop.f32.mrf.mxu3  ;;  %1071 = vst.msk [vmem:[#allocation2 + $0x30] sm:$0xff] %vm21_vm0, %v1006_v32 }
  0xd6   :  { %v1368_v27 = vmax.f32 %v1304_v19, 0.0  ;;  %v1273_v28 = vadd.f32 %v2329_v7, %v1205_v20  ;;  %v936_v30 = vadd.f32 %v935_v25, %v766_v22  ;;  %v688_v31 = vpop.f32.mrf.mxu0  ;;  %v95_v20 = vld [vmem:[#allocation2 + $0x48] sm:$0xff]  ;;  %v1635_v25 = vld [vmem:[%s3005_s0 + $0xd0] sm:$0xf] }
  0xd7   :  { %v857_v34 = vpop.f32.mrf.mxu1 }
  0xd8   :  { %v1432_v35 = vpack.c.bf16 %v1368_v27, %v1368_v27  ;;  %v1337_v37 = vmax.f32 %v1273_v28, 0.0  ;;  %v858_v38 = vadd.f32 %v857_v34, %v688_v31  ;;  %v1038_v39 = vadd.f32 %v936_v30, %v124_v29  ;;  %v1763_v30 = vld [vmem:[%s3005_s0 + $0x1d0] sm:$0xf]  ;;  %v1908_v34 = vld [vmem:[%s3005_s0 + $0x1d4] sm:$0xf0] }
  0xda   :  { %1497 = vst.msk [vmem:[%s3008_s4 + $0x90] sm:$0xf] %vm1460_vm1, %v1432_v35  ;;  %v1401_v42 = vpack.c.bf16 %v1337_v37, %v1337_v37  ;;  %v1007_v43 = vadd.f32 %v858_v38, %v93_v33  ;;  %v1169_v61 = vld [vmem:[#allocation2 + $0x128] sm:$0xff]  ;;  %v1875_v35 = vld [vmem:[%s3005_s0 + $0xd4] sm:$0xf] }
  0xdb   :  { %1103 = vst.msk [vmem:[#allocation2 + $0x130] sm:$0xff] %vm21_vm0, %v1038_v39  ;;  %v1237_v0 = vmul.f32 %v2322_v5, %v1169_v61  ;;  %v1637_v39 = vld [vmem:[%s3005_s0 + $0xd8] sm:$0xf0] }
  0xdc   :  { %1466 = vst.msk [vmem:[%s3008_s4 + $0x14] sm:$0xf] %vm1460_vm1, %v1401_v42  ;;  %v768_v48 = vpop.f32.mrf.mxu2  ;;  %v1138_v1 = vld [vmem:[#allocation2 + $0x30] sm:$0xff] }
  0xdd   :  { %v937_v52 = vpop.f32.mrf.mxu3  ;;  %1072 = vst.msk [vmem:[#allocation2 + $0x38] sm:$0xff] %vm21_vm0, %v1007_v43  ;;  %v1305_v3 = vadd.f32 %v2329_v7, %v1237_v0  ;;  %v1206_v4 = vmul.f32 %v2322_v5, %v1138_v1 }
  0xde   :  { %v938_v54 = vadd.f32 %v937_v52, %v768_v48  ;;  %v691_v55 = vpop.f32.mrf.mxu0  ;;  %v1636_v48 = vor.u32 %v1876_v26, %v1635_v25  ;;  %v1877_v26 = vld [vmem:[%s3005_s0 + $0xe4] sm:$0xf] }
  0xdf   :  { %v860_v58 = vpop.f32.mrf.mxu1  ;;  %v1369_v9 = vmax.f32 %v1305_v3, 0.0  ;;  %v1274_v10 = vadd.f32 %v2329_v7, %v1206_v4 }
  0xe0   :  { %v1039_v62 = vadd.f32 %v938_v54, %v125_v51  ;;  %v861_v63 = vadd.f32 %v860_v58, %v691_v55  ;;  %v96_v54 = vld [vmem:[#allocation2 + $0x50] sm:$0xff] }
  0xe1   :  { %730 = vmatmul.bf16.gmra.mxu0 %v1628_v53  ;;  %810 = vmatmul.bf16.gmra.mxu2 %v1756_v56  ;;  %v1433_v17 = vpack.c.bf16 %v1369_v9, %v1369_v9  ;;  %v1338_v18 = vmax.f32 %v1274_v10, 0.0  ;;  %v1764_v53 = vor.u32 %v1908_v34, %v1763_v30  ;;  %v1640_v56 = vor.u32 %v1875_v35, %v1637_v39  ;;  %v129_v35 = vld [vmem:[#allocation2 + $0x158] sm:$0xff] }
  0xe2   :  { %1104 = vst.msk [vmem:[#allocation2 + $0x138] sm:$0xff] %vm21_vm0, %v1039_v62  ;;  %v1008_v2 = vadd.f32 %v861_v63, %v94_v57  ;;  %899 = vmatmul.bf16.gmra.mxu1 %v1632_v59  ;;  %979 = vmatmul.bf16.gmra.mxu3 %v1760_v60  ;;  %v1170_v6 = vld [vmem:[#allocation2 + $0x130] sm:$0xff]  ;;  %v1768_v57 = vor.u32 %v1907_v44, %v1765_v45  ;;  %v98_v44 = vld [vmem:[#allocation2 + $0x60] sm:$0xff] }
  0xe3   :  { %v1238_v36 = vmul.f32 %v2322_v5, %v1170_v6  ;;  %1498 = vst.msk [vmem:[%s3008_s4 + $0x94] sm:$0xf] %vm1460_vm1, %v1433_v17  ;;  %v1402_v27 = vpack.c.bf16 %v1338_v18, %v1338_v18 }
  0xe4   :  { %1073 = vst.msk [vmem:[#allocation2 + $0x40] sm:$0xff] %vm21_vm0, %v1008_v2  ;;  %v771_v8 = vpop.f32.mrf.mxu2  ;;  %v1139_v11 = vld [vmem:[#allocation2 + $0x38] sm:$0xff] }
  0xe5   :  { %v940_v13 = vpop.f32.mrf.mxu3  ;;  %v1207_v14 = vmul.f32 %v2322_v5, %v1139_v11  ;;  %v1306_v19 = vadd.f32 %v2329_v7, %v1238_v36  ;;  %1467 = vst.msk [vmem:[%s3008_s4 + $0x18] sm:$0xf] %vm1460_vm1, %v1402_v27 }
  0xe6   :  { %v941_v15 = vadd.f32 %v940_v13, %v771_v8  ;;  %v693_v16 = vpop.f32.mrf.mxu0  ;;  %v128_v8 = vld [vmem:[#allocation2 + $0x150] sm:$0xff]  ;;  %v97_v13 = vld [vmem:[#allocation2 + $0x58] sm:$0xff] }
  0xe7   :  { %v862_v21 = vpop.f32.mrf.mxu1  ;;  %v1275_v22 = vadd.f32 %v2329_v7, %v1207_v14  ;;  %v1370_v28 = vmax.f32 %v1306_v19, 0.0  ;;  %v1643_v19 = vld [vmem:[%s3005_s0 + $0xe0] sm:$0xf] }
  0xe8   :  { %v1040_v23 = vadd.f32 %v941_v15, %v126_v12  ;;  %v863_v24 = vadd.f32 %v862_v21, %v693_v16  ;;  %v1771_v21 = vld [vmem:[%s3005_s0 + $0x1e0] sm:$0xf] }
  0xe9   :  { %v1171_v29 = vld [vmem:[#allocation2 + $0x138] sm:$0xff]  ;;  %v1339_v31 = vmax.f32 %v1275_v22, 0.0  ;;  %v1434_v37 = vpack.c.bf16 %v1370_v28, %v1370_v28  ;;  %v1910_v22 = vld [vmem:[%s3005_s0 + $0x1e4] sm:$0xf0]  ;;  %v1645_v28 = vld [vmem:[%s3005_s0 + $0xe8] sm:$0xf0] }
  0xea   :  { %v1239_v32 = vmul.f32 %v2322_v5, %v1171_v29  ;;  %1105 = vst.msk [vmem:[#allocation2 + $0x140] sm:$0xff] %vm21_vm0, %v1040_v23  ;;  %v1009_v33 = vadd.f32 %v863_v24, %v95_v20  ;;  %v1878_v20 = vld [vmem:[%s3005_s0 + $0xe4] sm:$0xf0]  ;;  %v1909_v29 = vld [vmem:[%s3005_s0 + $0x1e4] sm:$0xf] }
  0xeb   :  { %v1140_v38 = vld [vmem:[#allocation2 + $0x40] sm:$0xff]  ;;  %v1403_v40 = vpack.c.bf16 %v1339_v31, %v1339_v31  ;;  %1499 = vst.msk [vmem:[%s3008_s4 + $0x98] sm:$0xf] %vm1460_vm1, %v1434_v37 }
  0xec   :  { %v1307_v41 = vadd.f32 %v2329_v7, %v1239_v32  ;;  %v1208_v42 = vmul.f32 %v2322_v5, %v1140_v38  ;;  %1074 = vst.msk [vmem:[#allocation2 + $0x48] sm:$0xff] %vm21_vm0, %v1009_v33  ;;  %v773_v43 = vpop.f32.mrf.mxu2  ;;  %v1773_v32 = vld [vmem:[%s3005_s0 + $0x1e8] sm:$0xf0]  ;;  %v1644_v38 = vor.u32 %v1878_v20, %v1643_v19  ;;  %v1653_v19 = vld [vmem:[%s3005_s0 + $0xf8] sm:$0xf0] }
  0xed   :  { %v942_v47 = vpop.f32.mrf.mxu3  ;;  %1468 = vst.msk [vmem:[%s3008_s4 + $0x1c] sm:$0xf] %vm1460_vm1, %v1403_v40 }
  0xee   :  { %v1371_v49 = vmax.f32 %v1307_v41, 0.0  ;;  %v1276_v50 = vadd.f32 %v2329_v7, %v1208_v42  ;;  %v943_v51 = vadd.f32 %v942_v47, %v773_v43  ;;  %v696_v52 = vpop.f32.mrf.mxu0  ;;  %v1772_v41 = vor.u32 %v1910_v22, %v1771_v21 }
  0xef   :  { %v865_v55 = vpop.f32.mrf.mxu1  ;;  %v1776_v47 = vor.u32 %v1909_v29, %v1773_v32 }
  0xf0   :  { %v1435_v58 = vpack.c.bf16 %v1371_v49, %v1371_v49  ;;  %v1340_v59 = vmax.f32 %v1276_v50, 0.0  ;;  %v1041_v60 = vadd.f32 %v943_v51, %v127_v46  ;;  %v866_v61 = vadd.f32 %v865_v55, %v696_v52 }
  0xf1   :  { %v1172_v62 = vld [vmem:[#allocation2 + $0x140] sm:$0xff]  ;;  %735 = vmatmul.bf16.gmra.mxu0 %v1636_v48  ;;  %815 = vmatmul.bf16.gmra.mxu2 %v1764_v53  ;;  %v1648_v46 = vor.u32 %v1877_v26, %v1645_v28 }
  0xf2   :  { %1500 = vst.msk [vmem:[%s3008_s4 + $0x9c] sm:$0xf] %vm1460_vm1, %v1435_v58  ;;  %v1404_v63 = vpack.c.bf16 %v1340_v59, %v1340_v59  ;;  %v1240_v0 = vmul.f32 %v2322_v5, %v1172_v62  ;;  %v1010_v1 = vadd.f32 %v866_v61, %v96_v54  ;;  %904 = vmatmul.bf16.gmra.mxu1 %v1640_v56 }
  0xf3   :  { %v1141_v2 = vld [vmem:[#allocation2 + $0x48] sm:$0xff]  ;;  %1106 = vst.msk [vmem:[#allocation2 + $0x148] sm:$0xff] %vm21_vm0, %v1041_v60  ;;  %984 = vmatmul.bf16.gmra.mxu3 %v1768_v57  ;;  %v130_v60 = vld [vmem:[#allocation2 + $0x160] sm:$0xff] }
  0xf4   :  { %1469 = vst.msk [vmem:[%s3008_s4 + $0x20] sm:$0xf] %vm1460_vm1, %v1404_v63  ;;  %v1308_v3 = vadd.f32 %v2329_v7, %v1240_v0  ;;  %v1209_v4 = vmul.f32 %v2322_v5, %v1141_v2  ;;  %v776_v6 = vpop.f32.mrf.mxu2  ;;  %v99_v2 = vld [vmem:[#allocation2 + $0x68] sm:$0xff] }
  0xf5   :  { %1075 = vst.msk [vmem:[#allocation2 + $0x50] sm:$0xff] %vm21_vm0, %v1010_v1  ;;  %v945_v9 = vpop.f32.mrf.mxu3 }
  0xf6   :  { %v1372_v10 = vmax.f32 %v1308_v3, 0.0  ;;  %v1277_v36 = vadd.f32 %v2329_v7, %v1209_v4  ;;  %v946_v11 = vadd.f32 %v945_v9, %v776_v6  ;;  %v698_v12 = vpop.f32.mrf.mxu0 }
  0xf7   :  { %v867_v14 = vpop.f32.mrf.mxu1 }
  0xf8   :  { %v1436_v15 = vpack.c.bf16 %v1372_v10, %v1372_v10  ;;  %v1341_v16 = vmax.f32 %v1277_v36, 0.0  ;;  %v1042_v17 = vadd.f32 %v946_v11, %v128_v8  ;;  %v868_v18 = vadd.f32 %v867_v14, %v698_v12  ;;  %v1651_v8 = vld [vmem:[%s3005_s0 + $0xf0] sm:$0xf]  ;;  %v1880_v11 = vld [vmem:[%s3005_s0 + $0xf4] sm:$0xf0] }
  0xf9   :  { %v1779_v12 = vld [vmem:[%s3005_s0 + $0x1f0] sm:$0xf] }
  0xfa   :  { %1501 = vst.msk [vmem:[%s3008_s4 + $0xa0] sm:$0xf] %vm1460_vm1, %v1436_v15  ;;  %v1405_v23 = vpack.c.bf16 %v1341_v16, %v1341_v16  ;;  %v1173_v24 = vld [vmem:[#allocation2 + $0x148] sm:$0xff]  ;;  %v1011_v25 = vadd.f32 %v868_v18, %v97_v13  ;;  %v1912_v15 = vld [vmem:[%s3005_s0 + $0x1f4] sm:$0xf0] }
  0xfb   :  { %v1241_v27 = vmul.f32 %v2322_v5, %v1173_v24  ;;  %1107 = vst.msk [vmem:[#allocation2 + $0x150] sm:$0xff] %vm21_vm0, %v1042_v17  ;;  %v1879_v16 = vld [vmem:[%s3005_s0 + $0xf4] sm:$0xf]  ;;  %v1781_v24 = vld [vmem:[%s3005_s0 + $0x1f8] sm:$0xf0]  ;;  %v1780_v32 = vor.u32 %v1912_v15, %v1779_v12 }
  0xfc   :  { %1470 = vst.msk [vmem:[%s3008_s4 + $0x24] sm:$0xf] %vm1460_vm1, %v1405_v23  ;;  %v1142_v30 = vld [vmem:[#allocation2 + $0x50] sm:$0xff]  ;;  %v778_v31 = vpop.f32.mrf.mxu2 }
  0xfd   :  { %v1309_v33 = vadd.f32 %v2329_v7, %v1241_v27  ;;  %v1210_v34 = vmul.f32 %v2322_v5, %v1142_v30  ;;  %1076 = vst.msk [vmem:[#allocation2 + $0x58] sm:$0xff] %vm21_vm0, %v1011_v25  ;;  %v947_v37 = vpop.f32.mrf.mxu3  ;;  %v1911_v23 = vld [vmem:[%s3005_s0 + $0x1f4] sm:$0xf]  ;;  %v131_v25 = vld [vmem:[#allocation2 + $0x168] sm:$0xff]  ;;  %v1652_v27 = vor.u32 %v1880_v11, %v1651_v8  ;;  %v133_v8 = vld [vmem:[#allocation2 + $0x178] sm:$0xff] }
  0xfe   :  { %v948_v39 = vadd.f32 %v947_v37, %v778_v31  ;;  %v701_v40 = vpop.f32.mrf.mxu0  ;;  %v1784_v37 = vor.u32 %v1911_v23, %v1781_v24 }
  0xff   :  { %v1373_v42 = vmax.f32 %v1309_v33, 0.0  ;;  %v1278_v43 = vadd.f32 %v2329_v7, %v1210_v34  ;;  %v870_v45 = vpop.f32.mrf.mxu1  ;;  %v100_v33 = vld [vmem:[#allocation2 + $0x70] sm:$0xff] }
 0x100   :  { %v1043_v48 = vadd.f32 %v948_v39, %v129_v35  ;;  %v871_v49 = vadd.f32 %v870_v45, %v701_v40  ;;  %v1656_v35 = vor.u32 %v1879_v16, %v1653_v19 }
 0x101   :  { %v1437_v50 = vpack.c.bf16 %v1373_v42, %v1373_v42  ;;  %v1342_v51 = vmax.f32 %v1278_v43, 0.0  ;;  %740 = vmatmul.bf16.gmra.mxu0 %v1644_v38  ;;  %820 = vmatmul.bf16.gmra.mxu2 %v1772_v41 }
 0x102   :  { %v1174_v52 = vld [vmem:[#allocation2 + $0x150] sm:$0xff]  ;;  %1108 = vst.msk [vmem:[#allocation2 + $0x158] sm:$0xff] %vm21_vm0, %v1043_v48  ;;  %v1012_v53 = vadd.f32 %v871_v49, %v98_v44  ;;  %909 = vmatmul.bf16.gmra.mxu1 %v1648_v46 }
 0x103   :  { %1502 = vst.msk [vmem:[%s3008_s4 + $0xa4] sm:$0xf] %vm1460_vm1, %v1437_v50  ;;  %v1406_v54 = vpack.c.bf16 %v1342_v51, %v1342_v51  ;;  %v1242_v55 = vmul.f32 %v2322_v5, %v1174_v52  ;;  %989 = vmatmul.bf16.gmra.mxu3 %v1776_v47  ;;  %v132_v50 = vld [vmem:[#allocation2 + $0x170] sm:$0xff] }
 0x104   :  { %v1143_v56 = vld [vmem:[#allocation2 + $0x58] sm:$0xff]  ;;  %1077 = vst.msk [vmem:[#allocation2 + $0x60] sm:$0xff] %vm21_vm0, %v1012_v53  ;;  %v781_v57 = vpop.f32.mrf.mxu2 }
 0x105   :  { %1471 = vst.msk [vmem:[%s3008_s4 + $0x28] sm:$0xf] %vm1460_vm1, %v1406_v54  ;;  %v1310_v58 = vadd.f32 %v2329_v7, %v1242_v55  ;;  %v1211_v59 = vmul.f32 %v2322_v5, %v1143_v56  ;;  %v950_v61 = vpop.f32.mrf.mxu3  ;;  %v101_v56 = vld [vmem:[#allocation2 + $0x78] sm:$0xff] }
 0x106   :  { %v951_v62 = vadd.f32 %v950_v61, %v781_v57  ;;  %v703_v63 = vpop.f32.mrf.mxu0 }
 0x107   :  { %v1374_v0 = vmax.f32 %v1310_v58, 0.0  ;;  %v1279_v1 = vadd.f32 %v2329_v7, %v1211_v59  ;;  %v872_v3 = vpop.f32.mrf.mxu1 }
 0x108   :  { %v1044_v4 = vadd.f32 %v951_v62, %v130_v60  ;;  %v873_v6 = vadd.f32 %v872_v3, %v703_v63 }
 0x109   :  { %v1438_v9 = vpack.c.bf16 %v1374_v0, %v1374_v0  ;;  %v1343_v10 = vmax.f32 %v1279_v1, 0.0  ;;  %v1175_v36 = vld [vmem:[#allocation2 + $0x158] sm:$0xff] }
 0x10a   :  { %v1243_v13 = vmul.f32 %v2322_v5, %v1175_v36  ;;  %1109 = vst.msk [vmem:[#allocation2 + $0x160] sm:$0xff] %vm21_vm0, %v1044_v4  ;;  %v1013_v14 = vadd.f32 %v873_v6, %v99_v2 }
 0x10b   :  { %1503 = vst.msk [vmem:[%s3008_s4 + $0xa8] sm:$0xf] %vm1460_vm1, %v1438_v9  ;;  %v1407_v17 = vpack.c.bf16 %v1343_v10, %v1343_v10  ;;  %v1144_v18 = vld [vmem:[#allocation2 + $0x60] sm:$0xff] }
 0x10c   :  { %v1311_v20 = vadd.f32 %v2329_v7, %v1243_v13  ;;  %v1212_v21 = vmul.f32 %v2322_v5, %v1144_v18  ;;  %1078 = vst.msk [vmem:[#allocation2 + $0x68] sm:$0xff] %vm21_vm0, %v1013_v14  ;;  %v783_v22 = vpop.f32.mrf.mxu2  ;;  %v102_v13 = vld [vmem:[#allocation2 + $0x80] sm:$0xff] }
 0x10d   :  { %1472 = vst.msk [vmem:[%s3008_s4 + $0x2c] sm:$0xf] %vm1460_vm1, %v1407_v17  ;;  %v952_v26 = vpop.f32.mrf.mxu3 }
 0x10e   :  { %v1375_v28 = vmax.f32 %v1311_v20, 0.0  ;;  %v1280_v29 = vadd.f32 %v2329_v7, %v1212_v21  ;;  %v953_v30 = vadd.f32 %v952_v26, %v783_v22  ;;  %v706_v31 = vpop.f32.mrf.mxu0 }
 0x10f   :  { %v875_v34 = vpop.f32.mrf.mxu1 }
 0x110   :  { %v1439_v38 = vpack.c.bf16 %v1375_v28, %v1375_v28  ;;  %v1344_v39 = vmax.f32 %v1280_v29, 0.0  ;;  %v1045_v40 = vadd.f32 %v953_v30, %v131_v25  ;;  %v876_v41 = vadd.f32 %v875_v34, %v706_v31  ;;  %v103_v34 = vld [vmem:[#allocation2 + $0x88] sm:$0xff] }
 0x111   :  { %v1176_v42 = vld [vmem:[#allocation2 + $0x160] sm:$0xff]  ;;  %745 = vmatmul.bf16.gmra.mxu0 %v1652_v27  ;;  %825 = vmatmul.bf16.gmra.mxu2 %v1780_v32 }
 0x112   :  { %1504 = vst.msk [vmem:[%s3008_s4 + $0xac] sm:$0xf] %vm1460_vm1, %v1439_v38  ;;  %v1408_v43 = vpack.c.bf16 %v1344_v39, %v1344_v39  ;;  %v1244_v44 = vmul.f32 %v2322_v5, %v1176_v42  ;;  %v1014_v45 = vadd.f32 %v876_v41, %v100_v33  ;;  %914 = vmatmul.bf16.gmra.mxu1 %v1656_v35  ;;  %v134_v27 = vld [vmem:[#allocation2 + $0x180] sm:$0xff] }
 0x113   :  { %v1145_v46 = vld [vmem:[#allocation2 + $0x68] sm:$0xff]  ;;  %1110 = vst.msk [vmem:[#allocation2 + $0x168] sm:$0xff] %vm21_vm0, %v1045_v40  ;;  %994 = vmatmul.bf16.gmra.mxu3 %v1784_v37  ;;  %v2759_v32 = vld [vmem:[%s3007_s3] ss:$0 sm:$0xff] }
 0x114   :  { %1473 = vst.msk [vmem:[%s3008_s4 + $0x30] sm:$0xf] %vm1460_vm1, %v1408_v43  ;;  %v1312_v47 = vadd.f32 %v2329_v7, %v1244_v44  ;;  %v1213_v48 = vmul.f32 %v2322_v5, %v1145_v46  ;;  %v786_v49 = vpop.f32.mrf.mxu2 }
 0x115   :  { %1079 = vst.msk [vmem:[#allocation2 + $0x70] sm:$0xff] %vm21_vm0, %v1014_v45  ;;  %v955_v51 = vpop.f32.mrf.mxu3 }
 0x116   :  { %v1376_v52 = vmax.f32 %v1312_v47, 0.0  ;;  %v1281_v53 = vadd.f32 %v2329_v7, %v1213_v48  ;;  %v956_v54 = vadd.f32 %v955_v51, %v786_v49  ;;  %v708_v55 = vpop.f32.mrf.mxu0  ;;  %v135_v48 = vld [vmem:[#allocation2 + $0x188] sm:$0xff] }
 0x117   :  { %v877_v57 = vpop.f32.mrf.mxu1 }
 0x118   :  { %v1440_v58 = vpack.c.bf16 %v1376_v52, %v1376_v52  ;;  %v1345_v59 = vmax.f32 %v1281_v53, 0.0  ;;  %v1046_v60 = vadd.f32 %v956_v54, %v132_v50  ;;  %v878_v61 = vadd.f32 %v877_v57, %v708_v55  ;;  %v104_v54 = vld [vmem:[#allocation2 + $0x90] sm:$0xff] }
 0x11a   :  { %1505 = vst.msk [vmem:[%s3008_s4 + $0xb0] sm:$0xf] %vm1460_vm1, %v1440_v58  ;;  %v1409_v62 = vpack.c.bf16 %v1345_v59, %v1345_v59  ;;  %v1177_v63 = vld [vmem:[#allocation2 + $0x168] sm:$0xff]  ;;  %v1015_v0 = vadd.f32 %v878_v61, %v101_v56 }
 0x11b   :  { %v1245_v1 = vmul.f32 %v2322_v5, %v1177_v63  ;;  %1111 = vst.msk [vmem:[#allocation2 + $0x170] sm:$0xff] %vm21_vm0, %v1046_v60 }
 0x11c   :  { %1474 = vst.msk [vmem:[%s3008_s4 + $0x34] sm:$0xf] %vm1460_vm1, %v1409_v62  ;;  %v1146_v2 = vld [vmem:[#allocation2 + $0x70] sm:$0xff]  ;;  %v788_v3 = vpop.f32.mrf.mxu2 }
 0x11d   :  { %v1313_v4 = vadd.f32 %v2329_v7, %v1245_v1  ;;  %v1214_v6 = vmul.f32 %v2322_v5, %v1146_v2  ;;  %1080 = vst.msk [vmem:[#allocation2 + $0x78] sm:$0xff] %vm21_vm0, %v1015_v0  ;;  %v957_v9 = vpop.f32.mrf.mxu3 }
 0x11e   :  { %v958_v10 = vadd.f32 %v957_v9, %v788_v3  ;;  %v711_v36 = vpop.f32.mrf.mxu0 }
 0x11f   :  { %v1377_v11 = vmax.f32 %v1313_v4, 0.0  ;;  %v1282_v12 = vadd.f32 %v2329_v7, %v1214_v6  ;;  %v880_v14 = vpop.f32.mrf.mxu1  ;;  %v136_v4 = vld [vmem:[#allocation2 + $0x190] sm:$0xff] }
 0x120   :  { %v1047_v15 = vadd.f32 %v958_v10, %v133_v8  ;;  %v881_v16 = vadd.f32 %v880_v14, %v711_v36 }
 0x121   :  { %v1441_v17 = vpack.c.bf16 %v1377_v11, %v1377_v11  ;;  %v1346_v18 = vmax.f32 %v1282_v12, 0.0  ;;  %v105_v11 = vld [vmem:[#allocation2 + $0x98] sm:$0xff] }
 0x122   :  { %v1178_v19 = vld [vmem:[#allocation2 + $0x170] sm:$0xff]  ;;  %1112 = vst.msk [vmem:[#allocation2 + $0x178] sm:$0xff] %vm21_vm0, %v1047_v15  ;;  %v1016_v20 = vadd.f32 %v881_v16, %v102_v13 }
 0x123   :  { %1506 = vst.msk [vmem:[%s3008_s4 + $0xb4] sm:$0xf] %vm1460_vm1, %v1441_v17  ;;  %v1410_v21 = vpack.c.bf16 %v1346_v18, %v1346_v18  ;;  %v1246_v22 = vmul.f32 %v2322_v5, %v1178_v19 }
 0x124   :  { %v1147_v23 = vld [vmem:[#allocation2 + $0x78] sm:$0xff]  ;;  %1081 = vst.msk [vmem:[#allocation2 + $0x80] sm:$0xff] %vm21_vm0, %v1016_v20  ;;  %v791_v24 = vpop.f32.mrf.mxu2 }
 0x125   :  { %1475 = vst.msk [vmem:[%s3008_s4 + $0x38] sm:$0xf] %vm1460_vm1, %v1410_v21  ;;  %v1314_v25 = vadd.f32 %v2329_v7, %v1246_v22  ;;  %v1215_v26 = vmul.f32 %v2322_v5, %v1147_v23  ;;  %v960_v28 = vpop.f32.mrf.mxu3  ;;  %v2765_v5 = vld [vmem:[%s3006_s2] ss:$0 sm:$0xff] }
 0x126   :  { %v961_v29 = vadd.f32 %v960_v28, %v791_v24  ;;  %v713_v30 = vpop.f32.mrf.mxu0 }
 0x127   :  { %v1378_v31 = vmax.f32 %v1314_v25, 0.0  ;;  %v1283_v33 = vadd.f32 %v2759_v32, %v1215_v26  ;;  %v882_v35 = vpop.f32.mrf.mxu1  ;;  %v137_v25 = vld [vmem:[#allocation2 + $0x198] sm:$0xff] }
 0x128   :  { %v1048_v37 = vadd.f32 %v961_v29, %v134_v27  ;;  %v883_v38 = vadd.f32 %v882_v35, %v713_v30 }
 0x129   :  { %v1442_v39 = vpack.c.bf16 %v1378_v31, %v1378_v31  ;;  %v1347_v7 = vmax.f32 %v1283_v33, 0.0  ;;  %v1179_v40 = vld [vmem:[#allocation2 + $0x178] sm:$0xff]  ;;  %v106_v31 = vld [vmem:[#allocation2 + $0xa0] sm:$0xff] }
 0x12a   :  { %v1247_v41 = vmul.f32 %v2765_v5, %v1179_v40  ;;  %1113 = vst.msk [vmem:[#allocation2 + $0x180] sm:$0xff] %vm21_vm0, %v1048_v37  ;;  %v1017_v42 = vadd.f32 %v883_v38, %v103_v34 }
 0x12b   :  { %1507 = vst.msk [vmem:[%s3008_s4 + $0xb8] sm:$0xf] %vm1460_vm1, %v1442_v39  ;;  %v1411_v43 = vpack.c.bf16 %v1347_v7, %v1347_v7  ;;  %v1148_v44 = vld [vmem:[#allocation2 + $0x80] sm:$0xff] }
 0x12c   :  { %v1315_v45 = vadd.f32 %v2759_v32, %v1247_v41  ;;  %v1216_v46 = vmul.f32 %v2765_v5, %v1148_v44  ;;  %1082 = vst.msk [vmem:[#allocation2 + $0x88] sm:$0xff] %vm21_vm0, %v1017_v42  ;;  %v793_v47 = vpop.f32.mrf.mxu2 }
 0x12d   :  { %1476 = vst.msk [vmem:[%s3008_s4 + $0x3c] sm:$0xf] %vm1460_vm1, %v1411_v43  ;;  %v962_v49 = vpop.f32.mrf.mxu3 }
 0x12e   :  { %v1379_v50 = vmax.f32 %v1315_v45, 0.0  ;;  %v1284_v51 = vadd.f32 %v2759_v32, %v1216_v46  ;;  %v963_v52 = vadd.f32 %v962_v49, %v793_v47  ;;  %v716_v53 = vpop.f32.mrf.mxu0  ;;  %v138_v46 = vld [vmem:[#allocation2 + $0x1a0] sm:$0xff] }
 0x12f   :  { %v885_v55 = vpop.f32.mrf.mxu1 }
 0x130   :  { %v1443_v56 = vpack.c.bf16 %v1379_v50, %v1379_v50  ;;  %v1348_v57 = vmax.f32 %v1284_v51, 0.0  ;;  %v1049_v58 = vadd.f32 %v963_v52, %v135_v48  ;;  %v886_v59 = vadd.f32 %v885_v55, %v716_v53  ;;  %v107_v52 = vld [vmem:[#allocation2 + $0xa8] sm:$0xff] }
 0x131   :  { %v1180_v60 = vld [vmem:[#allocation2 + $0x180] sm:$0xff] }
 0x132   :  { %1508 = vst.msk [vmem:[%s3008_s4 + $0xbc] sm:$0xf] %vm1460_vm1, %v1443_v56  ;;  %v1412_v61 = vpack.c.bf16 %v1348_v57, %v1348_v57  ;;  %v1248_v62 = vmul.f32 %v2765_v5, %v1180_v60  ;;  %v1018_v63 = vadd.f32 %v886_v59, %v104_v54 }
 0x133   :  { %v1149_v0 = vld [vmem:[#allocation2 + $0x88] sm:$0xff]  ;;  %1114 = vst.msk [vmem:[#allocation2 + $0x188] sm:$0xff] %vm21_vm0, %v1049_v58 }
 0x134   :  { %1477 = vst.msk [vmem:[%s3008_s4 + $0x40] sm:$0xf] %vm1460_vm1, %v1412_v61  ;;  %v1316_v1 = vadd.f32 %v2759_v32, %v1248_v62  ;;  %v1217_v2 = vmul.f32 %v2765_v5, %v1149_v0  ;;  %v796_v3 = vpop.f32.mrf.mxu2 }
 0x135   :  { %1083 = vst.msk [vmem:[#allocation2 + $0x90] sm:$0xff] %vm21_vm0, %v1018_v63  ;;  %v965_v6 = vpop.f32.mrf.mxu3 }
 0x136   :  { %v1380_v8 = vmax.f32 %v1316_v1, 0.0  ;;  %v1285_v9 = vadd.f32 %v2759_v32, %v1217_v2  ;;  %v966_v10 = vadd.f32 %v965_v6, %v796_v3  ;;  %v718_v36 = vpop.f32.mrf.mxu0  ;;  %v139_v2 = vld [vmem:[#allocation2 + $0x1a8] sm:$0xff] }
 0x137   :  { %v887_v12 = vpop.f32.mrf.mxu1 }
 0x138   :  { %v1444_v13 = vpack.c.bf16 %v1380_v8, %v1380_v8  ;;  %v1349_v14 = vmax.f32 %v1285_v9, 0.0  ;;  %v1050_v15 = vadd.f32 %v966_v10, %v136_v4  ;;  %v888_v16 = vadd.f32 %v887_v12, %v718_v36  ;;  %v108_v12 = vld [vmem:[#allocation2 + $0xb0] sm:$0xff] }
 0x13a   :  { %1509 = vst.msk [vmem:[%s3008_s4 + $0xc0] sm:$0xf] %vm1460_vm1, %v1444_v13  ;;  %v1413_v17 = vpack.c.bf16 %v1349_v14, %v1349_v14  ;;  %v1181_v18 = vld [vmem:[#allocation2 + $0x188] sm:$0xff]  ;;  %v1019_v19 = vadd.f32 %v888_v16, %v105_v11 }
 0x13b   :  { %v1249_v20 = vmul.f32 %v2765_v5, %v1181_v18  ;;  %1115 = vst.msk [vmem:[#allocation2 + $0x190] sm:$0xff] %vm21_vm0, %v1050_v15 }
 0x13c   :  { %1478 = vst.msk [vmem:[%s3008_s4 + $0x44] sm:$0xf] %vm1460_vm1, %v1413_v17  ;;  %v1150_v21 = vld [vmem:[#allocation2 + $0x90] sm:$0xff]  ;;  %v798_v22 = vpop.f32.mrf.mxu2 }
 0x13d   :  { %v1317_v23 = vadd.f32 %v2759_v32, %v1249_v20  ;;  %v1218_v24 = vmul.f32 %v2765_v5, %v1150_v21  ;;  %1084 = vst.msk [vmem:[#allocation2 + $0x98] sm:$0xff] %vm21_vm0, %v1019_v19  ;;  %v967_v26 = vpop.f32.mrf.mxu3 }
 0x13e   :  { %v968_v27 = vadd.f32 %v967_v26, %v798_v22  ;;  %v721_v28 = vpop.f32.mrf.mxu0 }
 0x13f   :  { %v1381_v29 = vmax.f32 %v1317_v23, 0.0  ;;  %v1286_v30 = vadd.f32 %v2759_v32, %v1218_v24  ;;  %v890_v33 = vpop.f32.mrf.mxu1 }
 0x140   :  { %v1051_v34 = vadd.f32 %v968_v27, %v137_v25  ;;  %v891_v35 = vadd.f32 %v890_v33, %v721_v28  ;;  %v140_v25 = vld [vmem:[#allocation2 + $0x1b0] sm:$0xff] }
 0x141   :  { %v1445_v37 = vpack.c.bf16 %v1381_v29, %v1381_v29  ;;  %v1350_v38 = vmax.f32 %v1286_v30, 0.0 }
 0x142   :  { %v1182_v39 = vld [vmem:[#allocation2 + $0x190] sm:$0xff]  ;;  %1116 = vst.msk [vmem:[#allocation2 + $0x198] sm:$0xff] %vm21_vm0, %v1051_v34  ;;  %v1020_v7 = vadd.f32 %v891_v35, %v106_v31  ;;  %v109_v31 = vld [vmem:[#allocation2 + $0xb8] sm:$0xff] }
 0x143   :  { %1510 = vst.msk [vmem:[%s3008_s4 + $0xc4] sm:$0xf] %vm1460_vm1, %v1445_v37  ;;  %v1414_v40 = vpack.c.bf16 %v1350_v38, %v1350_v38  ;;  %v1250_v41 = vmul.f32 %v2765_v5, %v1182_v39 }
 0x144   :  { %v1151_v42 = vld [vmem:[#allocation2 + $0x98] sm:$0xff]  ;;  %1085 = vst.msk [vmem:[#allocation2 + $0xa0] sm:$0xff] %vm21_vm0, %v1020_v7  ;;  %v801_v43 = vpop.f32.mrf.mxu2 }
 0x145   :  { %1479 = vst.msk [vmem:[%s3008_s4 + $0x48] sm:$0xf] %vm1460_vm1, %v1414_v40  ;;  %v1318_v44 = vadd.f32 %v2759_v32, %v1250_v41  ;;  %v1219_v45 = vmul.f32 %v2765_v5, %v1151_v42  ;;  %v970_v47 = vpop.f32.mrf.mxu3 }
 0x146   :  { %v971_v48 = vadd.f32 %v970_v47, %v801_v43  ;;  %v723_v49 = vpop.f32.mrf.mxu0 }
 0x147   :  { %v1382_v50 = vmax.f32 %v1318_v44, 0.0  ;;  %v1287_v51 = vadd.f32 %v2759_v32, %v1219_v45  ;;  %v892_v53 = vpop.f32.mrf.mxu1  ;;  %v141_v44 = vld [vmem:[#allocation2 + $0x1b8] sm:$0xff] }
 0x148   :  { %v1052_v54 = vadd.f32 %v971_v48, %v138_v46  ;;  %v893_v55 = vadd.f32 %v892_v53, %v723_v49 }
 0x149   :  { %v1446_v56 = vpack.c.bf16 %v1382_v50, %v1382_v50  ;;  %v1351_v57 = vmax.f32 %v1287_v51, 0.0  ;;  %v1183_v58 = vld [vmem:[#allocation2 + $0x198] sm:$0xff]  ;;  %v110_v50 = vld [vmem:[#allocation2 + $0xc0] sm:$0xff] }
 0x14a   :  { %v1251_v59 = vmul.f32 %v2765_v5, %v1183_v58  ;;  %1117 = vst.msk [vmem:[#allocation2 + $0x1a0] sm:$0xff] %vm21_vm0, %v1052_v54  ;;  %v1021_v60 = vadd.f32 %v893_v55, %v107_v52 }
 0x14b   :  { %1511 = vst.msk [vmem:[%s3008_s4 + $0xc8] sm:$0xf] %vm1460_vm1, %v1446_v56  ;;  %v1415_v61 = vpack.c.bf16 %v1351_v57, %v1351_v57  ;;  %v1152_v62 = vld [vmem:[#allocation2 + $0xa0] sm:$0xff] }
 0x14c   :  { %v1319_v63 = vadd.f32 %v2759_v32, %v1251_v59  ;;  %v1220_v0 = vmul.f32 %v2765_v5, %v1152_v62  ;;  %1086 = vst.msk [vmem:[#allocation2 + $0xa8] sm:$0xff] %vm21_vm0, %v1021_v60  ;;  %v803_v1 = vpop.f32.mrf.mxu2 }
 0x14d   :  { %1480 = vst.msk [vmem:[%s3008_s4 + $0x4c] sm:$0xf] %vm1460_vm1, %v1415_v61  ;;  %v972_v3 = vpop.f32.mrf.mxu3 }
 0x14e   :  { %v1383_v4 = vmax.f32 %v1319_v63, 0.0  ;;  %v1288_v6 = vadd.f32 %v2759_v32, %v1220_v0  ;;  %v973_v8 = vadd.f32 %v972_v3, %v803_v1  ;;  %v726_v9 = vpop.f32.mrf.mxu0  ;;  %v142_v0 = vld [vmem:[#allocation2 + $0x1c0] sm:$0xff] }
 0x14f   :  { %v895_v13 = vpop.f32.mrf.mxu1 }
 0x150   :  { %v1447_v10 = vpack.c.bf16 %v1383_v4, %v1383_v4  ;;  %v1352_v36 = vmax.f32 %v1288_v6, 0.0  ;;  %v1053_v11 = vadd.f32 %v973_v8, %v139_v2  ;;  %v896_v15 = vadd.f32 %v895_v13, %v726_v9  ;;  %v111_v8 = vld [vmem:[#allocation2 + $0xc8] sm:$0xff] }
 0x151   :  { %v1184_v14 = vld [vmem:[#allocation2 + $0x1a0] sm:$0xff] }
 0x152   :  { %1512 = vst.msk [vmem:[%s3008_s4 + $0xcc] sm:$0xf] %vm1460_vm1, %v1447_v10  ;;  %v1416_v16 = vpack.c.bf16 %v1352_v36, %v1352_v36  ;;  %v1252_v17 = vmul.f32 %v2765_v5, %v1184_v14  ;;  %v1022_v19 = vadd.f32 %v896_v15, %v108_v12 }
 0x153   :  { %v1153_v18 = vld [vmem:[#allocation2 + $0xa8] sm:$0xff]  ;;  %1118 = vst.msk [vmem:[#allocation2 + $0x1a8] sm:$0xff] %vm21_vm0, %v1053_v11 }
 0x154   :  { %1481 = vst.msk [vmem:[%s3008_s4 + $0x50] sm:$0xf] %vm1460_vm1, %v1416_v16  ;;  %v1320_v20 = vadd.f32 %v2759_v32, %v1252_v17  ;;  %v1221_v21 = vmul.f32 %v2765_v5, %v1153_v18  ;;  %v806_v22 = vpop.f32.mrf.mxu2 }
 0x155   :  { %1087 = vst.msk [vmem:[#allocation2 + $0xb0] sm:$0xff] %vm21_vm0, %v1022_v19  ;;  %v975_v26 = vpop.f32.mrf.mxu3 }
 0x156   :  { %v1384_v23 = vmax.f32 %v1320_v20, 0.0  ;;  %v1289_v24 = vadd.f32 %v2759_v32, %v1221_v21  ;;  %v728_v27 = vpop.f32.mrf.mxu0  ;;  %v976_v28 = vadd.f32 %v975_v26, %v806_v22  ;;  %v143_v21 = vld [vmem:[#allocation2 + $0x1c8] sm:$0xff] }
 0x157   :  { %v897_v33 = vpop.f32.mrf.mxu1 }
 0x158   :  { %v1448_v29 = vpack.c.bf16 %v1384_v23, %v1384_v23  ;;  %v1353_v30 = vmax.f32 %v1289_v24, 0.0  ;;  %v1054_v34 = vadd.f32 %v976_v28, %v140_v25  ;;  %v898_v35 = vadd.f32 %v897_v33, %v728_v27  ;;  %v112_v27 = vld [vmem:[#allocation2 + $0xd0] sm:$0xff] }
 0x15a   :  { %1513 = vst.msk [vmem:[%s3008_s4 + $0xd0] sm:$0xf] %vm1460_vm1, %v1448_v29  ;;  %v1417_v37 = vpack.c.bf16 %v1353_v30, %v1353_v30  ;;  %v1185_v38 = vld [vmem:[#allocation2 + $0x1a8] sm:$0xff]  ;;  %v1023_v7 = vadd.f32 %v898_v35, %v109_v31 }
 0x15b   :  { %v1253_v39 = vmul.f32 %v2765_v5, %v1185_v38  ;;  %1119 = vst.msk [vmem:[#allocation2 + $0x1b0] sm:$0xff] %vm21_vm0, %v1054_v34 }
 0x15c   :  { %1482 = vst.msk [vmem:[%s3008_s4 + $0x54] sm:$0xf] %vm1460_vm1, %v1417_v37  ;;  %v1154_v40 = vld [vmem:[#allocation2 + $0xb0] sm:$0xff]  ;;  %v808_v43 = vpop.f32.mrf.mxu2 }
 0x15d   :  { %v1321_v41 = vadd.f32 %v2759_v32, %v1253_v39  ;;  %v1222_v42 = vmul.f32 %v2765_v5, %v1154_v40  ;;  %1088 = vst.msk [vmem:[#allocation2 + $0xb8] sm:$0xff] %vm21_vm0, %v1023_v7  ;;  %v977_v45 = vpop.f32.mrf.mxu3 }
 0x15e   :  { %v731_v46 = vpop.f32.mrf.mxu0  ;;  %v978_v49 = vadd.f32 %v977_v45, %v808_v43 }
 0x15f   :  { %v1385_v47 = vmax.f32 %v1321_v41, 0.0  ;;  %v1290_v48 = vadd.f32 %v2759_v32, %v1222_v42  ;;  %v900_v51 = vpop.f32.mrf.mxu1  ;;  %v144_v42 = vld [vmem:[#allocation2 + $0x1d0] sm:$0xff] }
 0x160   :  { %v1055_v54 = vadd.f32 %v978_v49, %v141_v44  ;;  %v901_v55 = vadd.f32 %v900_v51, %v731_v46 }
 0x161   :  { %v1449_v52 = vpack.c.bf16 %v1385_v47, %v1385_v47  ;;  %v1354_v53 = vmax.f32 %v1290_v48, 0.0  ;;  %v113_v48 = vld [vmem:[#allocation2 + $0xd8] sm:$0xff] }
 0x162   :  { %v1186_v56 = vld [vmem:[#allocation2 + $0x1b0] sm:$0xff]  ;;  %v1024_v59 = vadd.f32 %v901_v55, %v110_v50  ;;  %1120 = vst.msk [vmem:[#allocation2 + $0x1b8] sm:$0xff] %vm21_vm0, %v1055_v54 }
 0x163   :  { %1514 = vst.msk [vmem:[%s3008_s4 + $0xd4] sm:$0xf] %vm1460_vm1, %v1449_v52  ;;  %v1418_v57 = vpack.c.bf16 %v1354_v53, %v1354_v53  ;;  %v1254_v58 = vmul.f32 %v2765_v5, %v1186_v56 }
 0x164   :  { %v1155_v60 = vld [vmem:[#allocation2 + $0xb8] sm:$0xff]  ;;  %v811_v63 = vpop.f32.mrf.mxu2  ;;  %1089 = vst.msk [vmem:[#allocation2 + $0xc0] sm:$0xff] %vm21_vm0, %v1024_v59 }
 0x165   :  { %1483 = vst.msk [vmem:[%s3008_s4 + $0x58] sm:$0xf] %vm1460_vm1, %v1418_v57  ;;  %v1322_v61 = vadd.f32 %v2759_v32, %v1254_v58  ;;  %v1223_v62 = vmul.f32 %v2765_v5, %v1155_v60  ;;  %v980_v1 = vpop.f32.mrf.mxu3 }
 0x166   :  { %v733_v2 = vpop.f32.mrf.mxu0  ;;  %v981_v6 = vadd.f32 %v980_v1, %v811_v63 }
 0x167   :  { %v1386_v3 = vmax.f32 %v1322_v61, 0.0  ;;  %v1291_v4 = vadd.f32 %v2759_v32, %v1223_v62  ;;  %v902_v9 = vpop.f32.mrf.mxu1  ;;  %v145_v62 = vld [vmem:[#allocation2 + $0x1d8] sm:$0xff] }
 0x168   :  { %v1056_v11 = vadd.f32 %v981_v6, %v142_v0  ;;  %v903_v12 = vadd.f32 %v902_v9, %v733_v2 }
 0x169   :  { %v1450_v10 = vpack.c.bf16 %v1386_v3, %v1386_v3  ;;  %v1355_v36 = vmax.f32 %v1291_v4, 0.0  ;;  %v1187_v14 = vld [vmem:[#allocation2 + $0x1b8] sm:$0xff]  ;;  %v114_v4 = vld [vmem:[#allocation2 + $0xe0] sm:$0xff] }
 0x16a   :  { %v1025_v15 = vadd.f32 %v903_v12, %v111_v8  ;;  %v1255_v16 = vmul.f32 %v2765_v5, %v1187_v14  ;;  %1121 = vst.msk [vmem:[#allocation2 + $0x1c0] sm:$0xff] %vm21_vm0, %v1056_v11 }
 0x16b   :  { %1515 = vst.msk [vmem:[%s3008_s4 + $0xd8] sm:$0xf] %vm1460_vm1, %v1450_v10  ;;  %v1419_v13 = vpack.c.bf16 %v1355_v36, %v1355_v36  ;;  %v1156_v17 = vld [vmem:[#allocation2 + $0xc0] sm:$0xff] }
 0x16c   :  { %v813_v18 = vpop.f32.mrf.mxu2  ;;  %v1323_v19 = vadd.f32 %v2759_v32, %v1255_v16  ;;  %v1224_v20 = vmul.f32 %v2765_v5, %v1156_v17  ;;  %1090 = vst.msk [vmem:[#allocation2 + $0xc8] sm:$0xff] %vm21_vm0, %v1025_v15 }
 0x16d   :  { %1484 = vst.msk [vmem:[%s3008_s4 + $0x5c] sm:$0xf] %vm1460_vm1, %v1419_v13  ;;  %v982_v22 = vpop.f32.mrf.mxu3 }
 0x16e   :  { %v736_v23 = vpop.f32.mrf.mxu0  ;;  %v983_v24 = vadd.f32 %v982_v22, %v813_v18  ;;  %v1387_v25 = vmax.f32 %v1323_v19, 0.0  ;;  %v1292_v26 = vadd.f32 %v2759_v32, %v1224_v20  ;;  %v146_v19 = vld [vmem:[#allocation2 + $0x1e0] sm:$0xff] }
 0x16f   :  { %v905_v28 = vpop.f32.mrf.mxu1 }
 0x170   :  { %v1057_v29 = vadd.f32 %v983_v24, %v143_v21  ;;  %v906_v30 = vadd.f32 %v905_v28, %v736_v23  ;;  %v1451_v31 = vpack.c.bf16 %v1387_v25, %v1387_v25  ;;  %v1356_v33 = vmax.f32 %v1292_v26, 0.0  ;;  %v115_v25 = vld [vmem:[#allocation2 + $0xe8] sm:$0xff] }
 0x171   :  { %v1188_v34 = vld [vmem:[#allocation2 + $0x1c0] sm:$0xff] }
 0x172   :  { %1122 = vst.msk [vmem:[#allocation2 + $0x1c8] sm:$0xff] %vm21_vm0, %v1057_v29  ;;  %v1026_v35 = vadd.f32 %v906_v30, %v112_v27  ;;  %v1420_v37 = vpack.c.bf16 %v1356_v33, %v1356_v33  ;;  %v1256_v38 = vmul.f32 %v2765_v5, %v1188_v34 }
 0x173   :  { %1516 = vst.msk [vmem:[%s3008_s4 + $0xdc] sm:$0xf] %vm1460_vm1, %v1451_v31  ;;  %v1157_v39 = vld [vmem:[#allocation2 + $0xc8] sm:$0xff] }
 0x174   :  { %1091 = vst.msk [vmem:[#allocation2 + $0xd0] sm:$0xff] %vm21_vm0, %v1026_v35  ;;  %v816_v7 = vpop.f32.mrf.mxu2  ;;  %v1324_v40 = vadd.f32 %v2759_v32, %v1256_v38  ;;  %v1225_v41 = vmul.f32 %v2765_v5, %v1157_v39 }
 0x175   :  { %1485 = vst.msk [vmem:[%s3008_s4 + $0x60] sm:$0xf] %vm1460_vm1, %v1420_v37 }
 0x176   :  { %v985_v43 = vpop.f32.mrf.mxu3  ;;  %v738_v44 = vpop.f32.mrf.mxu0  ;;  %v1388_v46 = vmax.f32 %v1324_v40, 0.0  ;;  %v1293_v47 = vadd.f32 %v2759_v32, %v1225_v41  ;;  %v147_v40 = vld [vmem:[#allocation2 + $0x1e8] sm:$0xff] }
 0x177   :  { %v986_v45 = vadd.f32 %v985_v43, %v816_v7  ;;  %v907_v49 = vpop.f32.mrf.mxu1 }
 0x178   :  { %v908_v51 = vadd.f32 %v907_v49, %v738_v44  ;;  %v1452_v52 = vpack.c.bf16 %v1388_v46, %v1388_v46  ;;  %v1357_v53 = vmax.f32 %v1293_v47, 0.0  ;;  %v116_v46 = vld [vmem:[#allocation2 + $0xf0] sm:$0xff] }
 0x179   :  { %v1058_v50 = vadd.f32 %v986_v45, %v144_v42  ;;  %v1189_v54 = vld [vmem:[#allocation2 + $0x1c8] sm:$0xff] }
 0x17a   :  { %v1257_v55 = vmul.f32 %v2765_v5, %v1189_v54  ;;  %v1027_v56 = vadd.f32 %v908_v51, %v113_v48  ;;  %1517 = vst.msk [vmem:[%s3008_s4 + $0xe0] sm:$0xf] %vm1460_vm1, %v1452_v52  ;;  %v1421_v57 = vpack.c.bf16 %v1357_v53, %v1357_v53 }
 0x17b   :  { %1123 = vst.msk [vmem:[#allocation2 + $0x1d0] sm:$0xff] %vm21_vm0, %v1058_v50  ;;  %v1158_v58 = vld [vmem:[#allocation2 + $0xd0] sm:$0xff] }
 0x17c   :  { %v1325_v59 = vadd.f32 %v2759_v32, %v1257_v55  ;;  %v1226_v60 = vmul.f32 %v2765_v5, %v1158_v58  ;;  %1092 = vst.msk [vmem:[#allocation2 + $0xd8] sm:$0xff] %vm21_vm0, %v1027_v56  ;;  %v818_v61 = vpop.f32.mrf.mxu2 }
 0x17d   :  { %1486 = vst.msk [vmem:[%s3008_s4 + $0x64] sm:$0xf] %vm1460_vm1, %v1421_v57 }
 0x17e   :  { %v987_v63 = vpop.f32.mrf.mxu3  ;;  %v741_v0 = vpop.f32.mrf.mxu0  ;;  %v1389_v1 = vmax.f32 %v1325_v59, 0.0  ;;  %v1294_v2 = vadd.f32 %v2759_v32, %v1226_v60  ;;  %v148_v60 = vld [vmem:[#allocation2 + $0x1f0] sm:$0xff] }
 0x17f   :  { %v988_v3 = vadd.f32 %v987_v63, %v818_v61  ;;  %v910_v6 = vpop.f32.mrf.mxu1 }
 0x180   :  { %v1453_v8 = vpack.c.bf16 %v1389_v1, %v1389_v1  ;;  %v1358_v9 = vmax.f32 %v1294_v2, 0.0  ;;  %v911_v36 = vadd.f32 %v910_v6, %v741_v0  ;;  %v117_v2 = vld [vmem:[#allocation2 + $0xf8] sm:$0xff] }
 0x181   :  { %v1059_v10 = vadd.f32 %v988_v3, %v145_v62 }
 0x182   :  { %v1190_v11 = vld [vmem:[#allocation2 + $0x1d0] sm:$0xff]  ;;  %1518 = vst.msk [vmem:[%s3008_s4 + $0xe4] sm:$0xf] %vm1460_vm1, %v1453_v8  ;;  %v1422_v12 = vpack.c.bf16 %v1358_v9, %v1358_v9  ;;  %v1028_v14 = vadd.f32 %v911_v36, %v114_v4 }
 0x183   :  { %v1258_v13 = vmul.f32 %v2765_v5, %v1190_v11  ;;  %v1159_v15 = vld [vmem:[#allocation2 + $0xd8] sm:$0xff]  ;;  %1124 = vst.msk [vmem:[#allocation2 + $0x1d8] sm:$0xff] %vm21_vm0, %v1059_v10 }
 0x184   :  { %1487 = vst.msk [vmem:[%s3008_s4 + $0x68] sm:$0xf] %vm1460_vm1, %v1422_v12  ;;  %v1227_v17 = vmul.f32 %v2765_v5, %v1159_v15  ;;  %v821_v18 = vpop.f32.mrf.mxu2 }
 0x185   :  { %v1326_v16 = vadd.f32 %v2759_v32, %v1258_v13  ;;  %1093 = vst.msk [vmem:[#allocation2 + $0xe0] sm:$0xff] %vm21_vm0, %v1028_v14 }
 0x186   :  { %v990_v20 = vpop.f32.mrf.mxu3  ;;  %v743_v21 = vpop.f32.mrf.mxu0  ;;  %v1295_v23 = vadd.f32 %v2759_v32, %v1227_v17  ;;  %v149_v17 = vld [vmem:[#allocation2 + $0x1f8] sm:$0xff] }
 0x187   :  { %v1390_v22 = vmax.f32 %v1326_v16, 0.0  ;;  %v991_v24 = vadd.f32 %v990_v20, %v821_v18  ;;  %v912_v26 = vpop.f32.mrf.mxu1 }
 0x188   :  { %v1359_v28 = vmax.f32 %v1295_v23, 0.0  ;;  %v913_v30 = vadd.f32 %v912_v26, %v743_v21 }
 0x189   :  { %v1454_v27 = vpack.c.bf16 %v1390_v22, %v1390_v22  ;;  %v1060_v29 = vadd.f32 %v991_v24, %v146_v19 }
 0x18a   :  { %v1423_v31 = vpack.c.bf16 %v1359_v28, %v1359_v28  ;;  %v1191_v33 = vld [vmem:[#allocation2 + $0x1d8] sm:$0xff]  ;;  %v1029_v34 = vadd.f32 %v913_v30, %v115_v25 }
 0x18b   :  { %1519 = vst.msk [vmem:[%s3008_s4 + $0xe8] sm:$0xf] %vm1460_vm1, %v1454_v27  ;;  %v1259_v35 = vmul.f32 %v2765_v5, %v1191_v33 }
 0x18c   :  { %1125 = vst.msk [vmem:[#allocation2 + $0x1e0] sm:$0xff] %vm21_vm0, %v1060_v29  ;;  %v1160_v37 = vld [vmem:[#allocation2 + $0xe0] sm:$0xff]  ;;  %v823_v38 = vpop.f32.mrf.mxu2 }
 0x18d   :  { %1488 = vst.msk [vmem:[%s3008_s4 + $0x6c] sm:$0xf] %vm1460_vm1, %v1423_v31  ;;  %v1327_v39 = vadd.f32 %v2759_v32, %v1259_v35  ;;  %v1228_v7 = vmul.f32 %v2765_v5, %v1160_v37 }
 0x18e   :  { %1094 = vst.msk [vmem:[#allocation2 + $0xe8] sm:$0xff] %vm21_vm0, %v1029_v34  ;;  %v992_v41 = vpop.f32.mrf.mxu3  ;;  %v746_v42 = vpop.f32.mrf.mxu0 }
 0x18f   :  { %v993_v43 = vadd.f32 %v992_v41, %v823_v38  ;;  %v1391_v44 = vmax.f32 %v1327_v39, 0.0  ;;  %v1296_v45 = vadd.f32 %v2759_v32, %v1228_v7  ;;  %v915_v47 = vpop.f32.mrf.mxu1 }
 0x190   :  { %v916_v49 = vadd.f32 %v915_v47, %v746_v42 }
 0x191   :  { %v1061_v48 = vadd.f32 %v993_v43, %v147_v40  ;;  %v1455_v50 = vpack.c.bf16 %v1391_v44, %v1391_v44  ;;  %v1360_v51 = vmax.f32 %v1296_v45, 0.0 }
 0x192   :  { %v1030_v53 = vadd.f32 %v916_v49, %v116_v46 }
 0x193   :  { %v1192_v52 = vld [vmem:[#allocation2 + $0x1e0] sm:$0xff]  ;;  %1126 = vst.msk [vmem:[#allocation2 + $0x1e8] sm:$0xff] %vm21_vm0, %v1061_v48  ;;  %v1424_v54 = vpack.c.bf16 %v1360_v51, %v1360_v51 }
 0x194   :  { %1520 = vst.msk [vmem:[%s3008_s4 + $0xec] sm:$0xf] %vm1460_vm1, %v1455_v50  ;;  %v1260_v55 = vmul.f32 %v2765_v5, %v1192_v52  ;;  %v826_v57 = vpop.f32.mrf.mxu2 }
 0x195   :  { %v1161_v56 = vld [vmem:[#allocation2 + $0xe8] sm:$0xff]  ;;  %1095 = vst.msk [vmem:[#allocation2 + $0xf0] sm:$0xff] %vm21_vm0, %v1030_v53 }
 0x196   :  { %1489 = vst.msk [vmem:[%s3008_s4 + $0x70] sm:$0xf] %vm1460_vm1, %v1424_v54  ;;  %v1328_v58 = vadd.f32 %v2759_v32, %v1260_v55  ;;  %v1229_v59 = vmul.f32 %v2765_v5, %v1161_v56  ;;  %v995_v61 = vpop.f32.mrf.mxu3  ;;  %v748_v62 = vpop.f32.mrf.mxu0 }
 0x197   :  { %v996_v63 = vadd.f32 %v995_v61, %v826_v57  ;;  %v917_v3 = vpop.f32.mrf.mxu1 }
 0x198   :  { %v1392_v0 = vmax.f32 %v1328_v58, 0.0  ;;  %v1297_v1 = vadd.f32 %v2759_v32, %v1229_v59  ;;  %v918_v6 = vadd.f32 %v917_v3, %v748_v62 }
 0x199   :  { %v1062_v4 = vadd.f32 %v996_v63, %v148_v60 }
 0x19a   :  { %v1456_v8 = vpack.c.bf16 %v1392_v0, %v1392_v0  ;;  %v1361_v9 = vmax.f32 %v1297_v1, 0.0  ;;  %v1193_v10 = vld [vmem:[#allocation2 + $0x1e8] sm:$0xff]  ;;  %v1031_v11 = vadd.f32 %v918_v6, %v117_v2 }
 0x19b   :  { %v1261_v36 = vmul.f32 %v2765_v5, %v1193_v10  ;;  %1127 = vst.msk [vmem:[#allocation2 + $0x1f0] sm:$0xff] %vm21_vm0, %v1062_v4 }
 0x19c   :  { %1521 = vst.msk [vmem:[%s3008_s4 + $0xf0] sm:$0xf] %vm1460_vm1, %v1456_v8  ;;  %v1425_v12 = vpack.c.bf16 %v1361_v9, %v1361_v9  ;;  %v1162_v13 = vld [vmem:[#allocation2 + $0xf0] sm:$0xff]  ;;  %v828_v16 = vpop.f32.mrf.mxu2 }
 0x19d   :  { %v1329_v14 = vadd.f32 %v2759_v32, %v1261_v36  ;;  %v1230_v15 = vmul.f32 %v2765_v5, %v1162_v13  ;;  %1096 = vst.msk [vmem:[#allocation2 + $0xf8] sm:$0xff] %vm21_vm0, %v1031_v11 }
 0x19e   :  { %1490 = vst.msk [vmem:[%s3008_s4 + $0x74] sm:$0xf] %vm1460_vm1, %v1425_v12  ;;  %v997_v18 = vpop.f32.mrf.mxu3 }
 0x19f   :  { %v1393_v19 = vmax.f32 %v1329_v14, 0.0  ;;  %v1298_v20 = vadd.f32 %v2759_v32, %v1230_v15  ;;  %v998_v21 = vadd.f32 %v997_v18, %v828_v16 }
 0x1a1   :  { %v1457_v22 = vpack.c.bf16 %v1393_v19, %v1393_v19  ;;  %v1362_v23 = vmax.f32 %v1298_v20, 0.0  ;;  %v1063_v24 = vadd.f32 %v998_v21, %v149_v17 }
 0x1a2   :  { %v1194_v25 = vld [vmem:[#allocation2 + $0x1f0] sm:$0xff] }
 0x1a3   :  { %1522 = vst.msk [vmem:[%s3008_s4 + $0xf4] sm:$0xf] %vm1460_vm1, %v1457_v22  ;;  %v1426_v26 = vpack.c.bf16 %v1362_v23, %v1362_v23  ;;  %v1262_v27 = vmul.f32 %v2765_v5, %v1194_v25 }
 0x1a4   :  { %v1163_v28 = vld [vmem:[#allocation2 + $0xf8] sm:$0xff]  ;;  %1128 = vst.msk [vmem:[#allocation2 + $0x1f8] sm:$0xff] %vm21_vm0, %v1063_v24 }
 0x1a5   :  { %1491 = vst.msk [vmem:[%s3008_s4 + $0x78] sm:$0xf] %vm1460_vm1, %v1426_v26  ;;  %v1330_v29 = vadd.f32 %v2759_v32, %v1262_v27  ;;  %v1231_v30 = vmul.f32 %v2765_v5, %v1163_v28 }
 0x1a7   :  { %v1394_v31 = vmax.f32 %v1330_v29, 0.0  ;;  %v1299_v33 = vadd.f32 %v2759_v32, %v1231_v30 }
 0x1a9   :  { %v1458_v34 = vpack.c.bf16 %v1394_v31, %v1394_v31  ;;  %v1363_v35 = vmax.f32 %v1299_v33, 0.0 }
 0x1ab   :  { %1523 = vst.msk [vmem:[%s3008_s4 + $0xf8] sm:$0xf] %vm1460_vm1, %v1458_v34  ;;  %v1427_v37 = vpack.c.bf16 %v1363_v35, %v1363_v35  ;;  %v1195_v38 = vld [vmem:[#allocation2 + $0x1f8] sm:$0xff] }
 0x1ac   :  { %v1263_v39 = vmul.f32 %v2765_v5, %v1195_v38 }
 0x1ad   :  { %1492 = vst.msk [vmem:[%s3008_s4 + $0x7c] sm:$0xf] %vm1460_vm1, %v1427_v37 }
 0x1ae   :  { %v1331_v7 = vadd.f32 %v2759_v32, %v1263_v39 }
 0x1b0   :  { %v1395_v40 = vmax.f32 %v1331_v7, 0.0 }
 0x1b2   :  { %v1459_v41 = vpack.c.bf16 %v1395_v40, %v1395_v40 }
 0x1b4   :  { %1524 = vst.msk [vmem:[%s3008_s4 + $0xfc] sm:$0xf] %vm1460_vm1, %v1459_v41 }

// kernel: _lambda_.15
= control target key start
LH: loop header
LB: loop body
LE: loop exit
PB: predicated region body
PF: predicated region fallthrough
CT: control target
= control target key end

     0   :  { %10 = vsyncpa [#allocation5], 0  ;;  %s1678_s0 = inlined_call_operand.vmem [shape: bf16[128,640], index: 0, kind: input, shape index: {}]   ;;  %s1679_s1 = inlined_call_operand.vmem [shape: bf16[640,64], index: 1, kind: input, shape index: {}]   ;;  %s1680_s2 = inlined_call_operand.hbm [shape: f32[1,64], index: 2, kind: input, shape index: {}]   ;;  %s1681_s3 = inlined_call_operand.hbm [shape: f32[1,64], index: 3, kind: input, shape index: {}]   ;;  %s1682_s4 = inlined_call_operand.vmem [shape: bf16[128,64], index: 4, kind: input, shape index: {}]   ;;  %s1683_s5 = inlined_call_operand.vmem [shape: bf16[128,64], index: 5, kind: output, shape index: {}]  }
   0x1   :  { %11 = vsyncpa [#allocation7], 0  ;;  %s1382_s18 = smov 0   ;;  %s1384_s19 = smov 0  }
   0x2   :  { %s1386_s20 = smov 0   ;;  %s1388_s21 = smov 0  }
   0x3   :  { %s1390_s22 = smov 0  }
   0x4 LB: > { %s1014_s23 = sadd.s32 4294967295, %s1347_s22   ;;  %s29_s24 = sadd.s32 1, %s1343_s21  ;;  %s1347_s22 = sphi %s1390_s22, %s17_s22   ;;  %s1343_s21 = sphi %s1388_s21, %s1690_s21   ;;  %s1339_s20 = sphi %s1386_s20, %s1689_s20   ;;  %s1335_s19 = sphi %s1384_s19, %s1688_s19   ;;  %s1331_s18 = sphi %s1382_s18, %s1687_s18  }
   0x5   : > { %p30_p0 = scmp.ge.s32.totalorder %s29_s24, 5  ;;  %s45_s25 = sadd.s32 1, %s1335_s19 }
   0x6   : > { %p52_p1 = scmp.ne.s32.totalorder %s1335_s19, %s1331_s18  ;;  %p53_p2 = scmp.eq.s32.totalorder %s1347_s22, 0 }
   0x7   : > { %s1692_s24 = smov (%p30_p0, %s29_s24), 0  ;;  %p1015_p4 = scmp.ge.s32.totalorder %s1347_s22, 1 }
   0x8   : > { %p1415_p3 = por %p53_p2, %p52_p1  ;;  %s41_s27 = ssub.s32 %s1343_s21, %s1692_s24 }
   0x9   : > { %p205_p5 = scmp.lt.s32.totalorder %s1347_s22, 6  ;;  %p43_p6 = scmp.eq.s32.totalorder %s41_s27, 0 }
   0xa   : > { %p1427_p8 = scmp.eq.s32.totalorder %s1014_s23, 0  ;;  %s218_s8 = sshll.u32 %s1680_s2, 4  ;;  %s219_s8 = int_to_ptr.hbm [resolvable:$true] %s218_s8 }
   0xb   : > { %p1423_p7 = pnand %p1015_p4, %p205_p5  ;;  %s1349_s9 = smov [#allocation4]  }
   0xc   : > { %s1432_s30 = scalar_select %p43_p6, %s1335_s19, %s45_s25  }
   0xd   : > { %p1185_p9 = pneg %p1423_p7  ;;  %s220_s10 = sshll.u32 %s1349_s9, 4  ;;  %s221_s10 = int_to_ptr.vmem [resolvable:$true] %s220_s10 }
   0xe   : > { %s231_s13 = sshll.u32 %s1681_s3, 4  ;;  %s1350_s14 = smov [#allocation6]   ;;  %s232_s13 = int_to_ptr.hbm [resolvable:$true] %s231_s13 }
   0xf   : > { %p1186_p10 = pnand %p1427_p8, %p1185_p9  ;;  %s233_s15 = sshll.u32 %s1350_s14, 4  ;;  %s234_s15 = int_to_ptr.vmem [resolvable:$true] %s233_s15 }
  0x10   : > { %p1019_p11 = scmp.ge.s32.totalorder %s1347_s22, 5 }
  0x11   : > { %1188 = dma.hbm_to_vmem [thread:$0]  (!%p1186_p10), %s219_s8, 16, %s221_s10, [#allocation5]  }
  0x12   : > { %1191 = dma.hbm_to_vmem [thread:$0]  (!%p1186_p10), %s232_s13, 16, %s234_s15, [#allocation7]  }
  0x13   : > { %252 = sbr.rel (%p1019_p11) target bundleno = 44 (0x2c), region = 28 }
  0x18   : > { %255 = sbr.rel (!%p1415_p3) target bundleno = 44 (0x2c), region = 32  ;;  %s257_s16 = sand.u32 (%p1415_p3), 1, %s1335_s19  }
  0x19   : > { %s1021_s17 = sshll.u32 (%p1415_p3), %s1343_s21, 2  ;;  %s1020_s23 = sshll.u32 (%p1415_p3), %s257_s16, 6 }
  0x1a   : > { %s1452_s6 = scalar_lea.vmem (%p1415_p3), %s1678_s0, %s1021_s17  ;;  %s259_s26 = scalar_lea.vmem (%p1415_p3), [#allocation3], %s1020_s23 }
  0x1b   : > { %v281_v0 = vld [vmem:[%s1452_s6] sm:$0xf] (%p1415_p3)  ;;  %v283_v1 = vld [vmem:[%s1452_s6 + $0x14] sm:$0xf] (%p1415_p3)  ;;  %v285_v2 = vld [vmem:[%s1452_s6 + $0x28] sm:$0xf] (%p1415_p3) }
  0x1c   : > { %282 = vst [vmem:[%s259_s26] sm:$0xf] (%p1415_p3), %v281_v0  ;;  %v287_v3 = vld [vmem:[%s1452_s6 + $0x3c] sm:$0xf] (%p1415_p3)  ;;  %v289_v4 = vld [vmem:[%s1452_s6 + $0x50] sm:$0xf] (%p1415_p3) }
  0x1d   : > { %284 = vst [vmem:[%s259_s26 + $0x4] sm:$0xf] %v283_v1  ;;  %v291_v5 = vld [vmem:[%s1452_s6 + $0x64] sm:$0xf]  ;;  %v293_v6 = vld [vmem:[%s1452_s6 + $0x78] sm:$0xf] }
  0x1e   : > { %286 = vst [vmem:[%s259_s26 + $0x8] sm:$0xf] %v285_v2  ;;  %v295_v7 = vld [vmem:[%s1452_s6 + $0x8c] sm:$0xf]  ;;  %v297_v8 = vld [vmem:[%s1452_s6 + $0xa0] sm:$0xf] }
  0x1f   : > { %288 = vst [vmem:[%s259_s26 + $0xc] sm:$0xf] %v287_v3  ;;  %v299_v9 = vld [vmem:[%s1452_s6 + $0xb4] sm:$0xf]  ;;  %v301_v10 = vld [vmem:[%s1452_s6 + $0xc8] sm:$0xf] }
  0x20   : > { %290 = vst [vmem:[%s259_s26 + $0x10] sm:$0xf] %v289_v4  ;;  %v303_v11 = vld [vmem:[%s1452_s6 + $0xdc] sm:$0xf]  ;;  %v305_v12 = vld [vmem:[%s1452_s6 + $0xf0] sm:$0xf] }
  0x21   : > { %292 = vst [vmem:[%s259_s26 + $0x14] sm:$0xf] %v291_v5  ;;  %v307_v13 = vld [vmem:[%s1452_s6 + $0x104] sm:$0xf]  ;;  %v309_v14 = vld [vmem:[%s1452_s6 + $0x118] sm:$0xf] }
  0x22   : > { %294 = vst [vmem:[%s259_s26 + $0x18] sm:$0xf] %v293_v6  ;;  %v311_v15 = vld [vmem:[%s1452_s6 + $0x12c] sm:$0xf] }
  0x23   : > { %296 = vst [vmem:[%s259_s26 + $0x1c] sm:$0xf] %v295_v7 }
  0x24   : > { %298 = vst [vmem:[%s259_s26 + $0x20] sm:$0xf] %v297_v8 }
  0x25   : > { %300 = vst [vmem:[%s259_s26 + $0x24] sm:$0xf] %v299_v9 }
  0x26   : > { %302 = vst [vmem:[%s259_s26 + $0x28] sm:$0xf] %v301_v10 }
  0x27   : > { %304 = vst [vmem:[%s259_s26 + $0x2c] sm:$0xf] %v303_v11 }
  0x28   : > { %306 = vst [vmem:[%s259_s26 + $0x30] sm:$0xf] %v305_v12 }
  0x29   : > { %308 = vst [vmem:[%s259_s26 + $0x34] sm:$0xf] %v307_v13 }
  0x2a   : > { %310 = vst [vmem:[%s259_s26 + $0x38] sm:$0xf] %v309_v14 }
  0x2b   : > { %312 = vst [vmem:[%s259_s26 + $0x3c] sm:$0xf] %v311_v15 }
  0x2c PF: > { %383 = sbr.rel (%p1423_p7) target bundleno = 302 (0x12e), region = 77  ;;  %s386_s7 = sand.u32 (!%p1423_p7), 1, %s1331_s18  }
  0x2d   : > { %s1023_s8 = sshll.u32 (!%p1423_p7), %s386_s7, 6 }
  0x2e   : > { %s1473_s9 = scalar_lea.vmem (!%p1423_p7), [#allocation3], %s1023_s8 }
  0x31   : > { %1322 = dma.done.wait (%p1427_p8), [#allocation5], 16  }
  0x32   : > { %1324 = vsyncadd (%p1427_p8), [#allocation5], 4294967280 }
  0x33   : > { %1326 = dma.done.wait (%p1427_p8), [#allocation7], 16  }
  0x34   : > { %1328 = vsyncadd (%p1427_p8), [#allocation7], 4294967280  ;;  %s1026_s28 = sshll.u32 %s1339_s20, 4  ;;  %p1028_p13 = scmp.ne.s32.totalorder %s1339_s20, 0 }
  0x35   : > { %p444_p12 = scmp.lt.s32.totalorder %s1026_s28, 79 }
  0x36   : > { %473 = sbr.rel (%p1028_p13) target bundleno = 76 (0x4c), region = 93 }
  0x37   : > { %s1694_s28 = smov (!%p444_p12, %s1026_s28), 79 }
  0x38   : > { %s1027_s10 = sshll.u32 %s1694_s28, 2 }
  0x39   : > { %s1487_s12 = scalar_lea.vmem %s1679_s1, %s1027_s10 }
  0x3b   : > { %vm474_vm0 = vcmask 523264   ;;  %v1351_v16 = vmov 0.0  }
  0x3c   : > { %475 = vst.msk [vmem:[#allocation2] sm:$0xff] %vm474_vm0, %v1351_v16 }
  0x3d   : > { %476 = vst.msk [vmem:[#allocation2 + $0x8] sm:$0xff] %vm474_vm0, %v1351_v16 }
  0x3e   : > { %477 = vst.msk [vmem:[#allocation2 + $0x10] sm:$0xff] %vm474_vm0, %v1351_v16 }
  0x3f   : > { %478 = vst.msk [vmem:[#allocation2 + $0x18] sm:$0xff] %vm474_vm0, %v1351_v16 }
  0x40   : > { %479 = vst.msk [vmem:[#allocation2 + $0x20] sm:$0xff] %vm474_vm0, %v1351_v16 }
  0x41   : > { %480 = vst.msk [vmem:[#allocation2 + $0x28] sm:$0xff] %vm474_vm0, %v1351_v16 }
  0x42   : > { %481 = vst.msk [vmem:[#allocation2 + $0x30] sm:$0xff] %vm474_vm0, %v1351_v16 }
  0x43   : > { %482 = vst.msk [vmem:[#allocation2 + $0x38] sm:$0xff] %vm474_vm0, %v1351_v16 }
  0x44   : > { %483 = vst.msk [vmem:[#allocation2 + $0x40] sm:$0xff] %vm474_vm0, %v1351_v16 }
  0x45   : > { %484 = vst.msk [vmem:[#allocation2 + $0x48] sm:$0xff] %vm474_vm0, %v1351_v16 }
  0x46   : > { %485 = vst.msk [vmem:[#allocation2 + $0x50] sm:$0xff] %vm474_vm0, %v1351_v16 }
  0x47   : > { %486 = vst.msk [vmem:[#allocation2 + $0x58] sm:$0xff] %vm474_vm0, %v1351_v16 }
  0x48   : > { %487 = vst.msk [vmem:[#allocation2 + $0x60] sm:$0xff] %vm474_vm0, %v1351_v16 }
  0x49   : > { %488 = vst.msk [vmem:[#allocation2 + $0x68] sm:$0xff] %vm474_vm0, %v1351_v16 }
  0x4a   : > { %489 = vst.msk [vmem:[#allocation2 + $0x70] sm:$0xff] %vm474_vm0, %v1351_v16 }
  0x4b   : > { %490 = vst.msk [vmem:[#allocation2 + $0x78] sm:$0xff] %vm474_vm0, %v1351_v16 }
  0x4c PF: > { %v1113_v17 = vld [vmem:[%s1487_s12 + $0x38] sm:$0xff]  ;;  %v1112_v18 = vld [vmem:[%s1487_s12 + $0x30] sm:$0xff]  ;;  %v1111_v19 = vld [vmem:[%s1487_s12 + $0x28] sm:$0xff]  ;;  %vm700_vm1 = vcmask 523264   ;;  %p1093_p0 = scmp.ne.s32.totalorder %s1339_s20, 4 }
  0x4d   : > { %635 = vmatpush.bf16.msra.mxu0 %v1113_v17  ;;  %1153 = vmatpush.bf16.msra.mxu1 %v1113_v17  ;;  %v1110_v20 = vld [vmem:[%s1487_s12 + $0x20] sm:$0xff]  ;;  %v1109_v21 = vld [vmem:[%s1487_s12 + $0x18] sm:$0xff]  ;;  %v1108_v22 = vld [vmem:[%s1487_s12 + $0x10] sm:$0xff] }
  0x4e   : > { %1154 = vmatpush.bf16.msra.mxu2 %v1113_v17  ;;  %1155 = vmatpush.bf16.msra.mxu3 %v1113_v17  ;;  %v1107_v23 = vld [vmem:[%s1487_s12 + $0x8] sm:$0xff]  ;;  %v1106_v24 = vld [vmem:[%s1487_s12] sm:$0xff]  ;;  %v1100_v26 = vld [vmem:[%s1473_s9 + $0x10] sm:$0xff] }
  0x4f   : > { %v1098_v25 = vld [vmem:[%s1473_s9] sm:$0xff]  ;;  %v1104_v28 = vld [vmem:[%s1473_s9 + $0x30] sm:$0xff]  ;;  %v1099_v29 = vld [vmem:[%s1473_s9 + $0x8] sm:$0xff] }
  0x50   : > { %v1102_v27 = vld [vmem:[%s1473_s9 + $0x20] sm:$0xff]  ;;  %v1101_v30 = vld [vmem:[%s1473_s9 + $0x18] sm:$0xff]  ;;  %v1103_v31 = vld [vmem:[%s1473_s9 + $0x28] sm:$0xff] }
  0x51   : > { %636 = vmatpush.bf16.msra.mxu0 %v1112_v18  ;;  %1156 = vmatpush.bf16.msra.mxu1 %v1112_v18  ;;  %v1105_v32 = vld [vmem:[%s1473_s9 + $0x38] sm:$0xff]  ;;  %v491_v33 = vld [vmem:[#allocation2] sm:$0xff]  ;;  %v492_v41 = vld [vmem:[#allocation2 + $0x8] sm:$0xff] }
  0x52   : > { %1157 = vmatpush.bf16.msra.mxu2 %v1112_v18  ;;  %1158 = vmatpush.bf16.msra.mxu3 %v1112_v18  ;;  %v495_v34 = vld [vmem:[#allocation2 + $0x20] sm:$0xff]  ;;  %v496_v42 = vld [vmem:[#allocation2 + $0x28] sm:$0xff]  ;;  %v493_v53 = vld [vmem:[#allocation2 + $0x10] sm:$0xff] }
  0x53   : > { %v499_v39 = vld [vmem:[#allocation2 + $0x40] sm:$0xff]  ;;  %v500_v51 = vld [vmem:[#allocation2 + $0x48] sm:$0xff]  ;;  %v497_v54 = vld [vmem:[#allocation2 + $0x30] sm:$0xff] }
  0x54   : > { %v503_v40 = vld [vmem:[#allocation2 + $0x60] sm:$0xff]  ;;  %v504_v52 = vld [vmem:[#allocation2 + $0x68] sm:$0xff]  ;;  %v501_v63 = vld [vmem:[#allocation2 + $0x50] sm:$0xff] }
  0x55   : > { %637 = vmatpush.bf16.msra.mxu0 %v1111_v19  ;;  %1159 = vmatpush.bf16.msra.mxu1 %v1111_v19  ;;  %v505_v0 = vld [vmem:[#allocation2 + $0x70] sm:$0xff]  ;;  %v494_v1 = vld [vmem:[#allocation2 + $0x18] sm:$0xff] }
  0x56   : > { %1160 = vmatpush.bf16.msra.mxu2 %v1111_v19  ;;  %1161 = vmatpush.bf16.msra.mxu3 %v1111_v19  ;;  %v498_v2 = vld [vmem:[#allocation2 + $0x38] sm:$0xff] }
  0x57   : > { %v502_v11 = vld [vmem:[#allocation2 + $0x58] sm:$0xff] }
  0x58   : > { %v506_v12 = vld [vmem:[#allocation2 + $0x78] sm:$0xff] }
  0x59   : > { %638 = vmatpush.bf16.msra.mxu0 %v1110_v20  ;;  %1162 = vmatpush.bf16.msra.mxu1 %v1110_v20 }
  0x5a   : > { %1163 = vmatpush.bf16.msra.mxu2 %v1110_v20  ;;  %1164 = vmatpush.bf16.msra.mxu3 %v1110_v20 }
  0x5d   : > { %639 = vmatpush.bf16.msra.mxu0 %v1109_v21  ;;  %1165 = vmatpush.bf16.msra.mxu1 %v1109_v21 }
  0x5e   : > { %1166 = vmatpush.bf16.msra.mxu2 %v1109_v21  ;;  %1167 = vmatpush.bf16.msra.mxu3 %v1109_v21 }
  0x61   : > { %640 = vmatpush.bf16.msra.mxu0 %v1108_v22  ;;  %1168 = vmatpush.bf16.msra.mxu1 %v1108_v22 }
  0x62   : > { %1169 = vmatpush.bf16.msra.mxu2 %v1108_v22  ;;  %1170 = vmatpush.bf16.msra.mxu3 %v1108_v22 }
  0x65   : > { %641 = vmatpush.bf16.msra.mxu0 %v1107_v23  ;;  %1171 = vmatpush.bf16.msra.mxu1 %v1107_v23 }
  0x66   : > { %1172 = vmatpush.bf16.msra.mxu2 %v1107_v23  ;;  %1173 = vmatpush.bf16.msra.mxu3 %v1107_v23 }
  0x69   : > { %642 = vmatpush.bf16.msra.mxu0 %v1106_v24  ;;  %1174 = vmatpush.bf16.msra.mxu1 %v1106_v24 }
  0x6a   : > { %1175 = vmatpush.bf16.msra.mxu2 %v1106_v24  ;;  %1176 = vmatpush.bf16.msra.mxu3 %v1106_v24 }
  0x6c   : > { %643 = vmatmul.bf16.vlgmr.msra.gmra.mxu0 %v1098_v25  ;;  %653 = vmatmul.bf16.vlgmr.msra.gmra.mxu1 %v1100_v26 }
  0x6d   : > { %663 = vmatmul.bf16.vlgmr.msra.gmra.mxu2 %v1102_v27  ;;  %673 = vmatmul.bf16.vlgmr.msra.gmra.mxu3 %v1104_v28 }
  0x7c   : > { %648 = vmatmul.bf16.gmra.mxu0 %v1099_v29  ;;  %658 = vmatmul.bf16.gmra.mxu1 %v1101_v30 }
  0x7d   : > { %668 = vmatmul.bf16.gmra.mxu2 %v1103_v31  ;;  %678 = vmatmul.bf16.gmra.mxu3 %v1105_v32 }
  0xe9   : > { %v644_v35 = vpop.f32.mrf.mxu0  ;;  %v654_v36 = vpop.f32.mrf.mxu1 }
  0xea   : > { %v684_v37 = vadd.f32 %v644_v35, %v491_v33  ;;  %v688_v38 = vadd.f32 %v654_v36, %v495_v34 }
  0xec   : > { %701 = vst.msk [vmem:[#allocation2] sm:$0xff] %vm700_vm1, %v684_v37 }
  0xed   : > { %705 = vst.msk [vmem:[#allocation2 + $0x20] sm:$0xff] %vm700_vm1, %v688_v38 }
  0xf0   : > { %v664_v43 = vpop.f32.mrf.mxu2  ;;  %v674_v44 = vpop.f32.mrf.mxu3 }
  0xf1   : > { %v692_v45 = vadd.f32 %v664_v43, %v499_v39  ;;  %v696_v46 = vadd.f32 %v674_v44, %v503_v40  ;;  %v646_v47 = vpop.f32.mrf.mxu0  ;;  %v656_v48 = vpop.f32.mrf.mxu1 }
  0xf2   : > { %v685_v49 = vadd.f32 %v646_v47, %v492_v41  ;;  %v689_v50 = vadd.f32 %v656_v48, %v496_v42 }
  0xf3   : > { %709 = vst.msk [vmem:[#allocation2 + $0x40] sm:$0xff] %vm700_vm1, %v692_v45 }
  0xf4   : > { %713 = vst.msk [vmem:[#allocation2 + $0x60] sm:$0xff] %vm700_vm1, %v696_v46 }
  0xf5   : > { %702 = vst.msk [vmem:[#allocation2 + $0x8] sm:$0xff] %vm700_vm1, %v685_v49 }
  0xf6   : > { %706 = vst.msk [vmem:[#allocation2 + $0x28] sm:$0xff] %vm700_vm1, %v689_v50 }
  0xf8   : > { %v666_v55 = vpop.f32.mrf.mxu2  ;;  %v676_v56 = vpop.f32.mrf.mxu3 }
  0xf9   : > { %v693_v57 = vadd.f32 %v666_v55, %v500_v51  ;;  %v697_v58 = vadd.f32 %v676_v56, %v504_v52  ;;  %v649_v59 = vpop.f32.mrf.mxu0  ;;  %v659_v60 = vpop.f32.mrf.mxu1 }
  0xfa   : > { %v686_v61 = vadd.f32 %v649_v59, %v493_v53  ;;  %v690_v62 = vadd.f32 %v659_v60, %v497_v54 }
  0xfb   : > { %710 = vst.msk [vmem:[#allocation2 + $0x48] sm:$0xff] %vm700_vm1, %v693_v57 }
  0xfc   : > { %714 = vst.msk [vmem:[#allocation2 + $0x68] sm:$0xff] %vm700_vm1, %v697_v58 }
  0xfd   : > { %703 = vst.msk [vmem:[#allocation2 + $0x10] sm:$0xff] %vm700_vm1, %v686_v61 }
  0xfe   : > { %707 = vst.msk [vmem:[#allocation2 + $0x30] sm:$0xff] %vm700_vm1, %v690_v62 }
 0x100   : > { %v669_v3 = vpop.f32.mrf.mxu2  ;;  %v679_v4 = vpop.f32.mrf.mxu3 }
 0x101   : > { %v694_v5 = vadd.f32 %v669_v3, %v501_v63  ;;  %v698_v6 = vadd.f32 %v679_v4, %v505_v0  ;;  %v651_v7 = vpop.f32.mrf.mxu0  ;;  %v661_v8 = vpop.f32.mrf.mxu1 }
 0x102   : > { %v687_v9 = vadd.f32 %v651_v7, %v494_v1  ;;  %v691_v10 = vadd.f32 %v661_v8, %v498_v2 }
 0x103   : > { %711 = vst.msk [vmem:[#allocation2 + $0x50] sm:$0xff] %vm700_vm1, %v694_v5 }
 0x104   : > { %715 = vst.msk [vmem:[#allocation2 + $0x70] sm:$0xff] %vm700_vm1, %v698_v6 }
 0x105   : > { %704 = vst.msk [vmem:[#allocation2 + $0x18] sm:$0xff] %vm700_vm1, %v687_v9 }
 0x106   : > { %708 = vst.msk [vmem:[#allocation2 + $0x38] sm:$0xff] %vm700_vm1, %v691_v10 }
 0x108   : > { %v671_v13 = vpop.f32.mrf.mxu2  ;;  %v681_v14 = vpop.f32.mrf.mxu3  ;;  %720 = sbr.rel (%p1093_p0) target bundleno = 302 (0x12e), region = 97 }
 0x109   : > { %v695_v15 = vadd.f32 %v671_v13, %v502_v11  ;;  %v699_v16 = vadd.f32 %v681_v14, %v506_v12 }
 0x10b   : > { %712 = vst.msk [vmem:[#allocation2 + $0x58] sm:$0xff] %vm700_vm1, %v695_v15 }
 0x10c   : > { %716 = vst.msk [vmem:[#allocation2 + $0x78] sm:$0xff] %vm700_vm1, %v699_v16 }
 0x10d   : > { %v721_v17 = vld [vmem:[#allocation2] sm:$0xff]  ;;  %vm857_vm2 = vcmask 519168   ;;  %v722_v23 = vld [vmem:[#allocation2 + $0x8] sm:$0xff]  ;;  %v723_v25 = vld [vmem:[#allocation2 + $0x10] sm:$0xff] }
 0x10e   : > { %v1539_v18 = vld [vmem:[#allocation4] ss:$0 sm:$0xff]  ;;  %v1541_v19 = vld [vmem:[#allocation6] ss:$0 sm:$0xff]  ;;  %v1146_v26 = vld [vmem:[%s1682_s4 + $0x8] sm:$0xff]  }
 0x10f   : > { %v1115_v20 = vld [vmem:[%s1682_s4] sm:$0xff]   ;;  %v741_v21 = vmul.f32 %v1539_v18, %v721_v17  ;;  %v742_v27 = vmul.f32 %v1539_v18, %v722_v23  ;;  %v743_v28 = vmul.f32 %v1539_v18, %v723_v25  ;;  %v1120_v29 = vunpack.c.l.bf16 %v1146_v26  ;;  %v724_v30 = vld [vmem:[#allocation2 + $0x18] sm:$0xff]  ;;  %v1147_v33 = vld [vmem:[%s1682_s4 + $0x10] sm:$0xff]  }
 0x110   : > { %v1116_v22 = vunpack.c.l.bf16 %v1115_v20  ;;  %v1117_v24 = vunpack.c.h.bf16 %v1115_v20  ;;  %v1121_v31 = vunpack.c.h.bf16 %v1146_v26  ;;  %v725_v32 = vld [vmem:[#allocation2 + $0x20] sm:$0xff]  ;;  %v744_v35 = vmul.f32 %v1539_v18, %v724_v30  ;;  %v726_v38 = vld [vmem:[#allocation2 + $0x28] sm:$0xff]  ;;  %v727_v39 = vld [vmem:[#allocation2 + $0x30] sm:$0xff] }
 0x111   : > { %v761_v34 = vadd.f32 %v1541_v19, %v741_v21  ;;  %v745_v36 = vmul.f32 %v1539_v18, %v725_v32  ;;  %v1124_v37 = vunpack.c.l.bf16 %v1147_v33  ;;  %v1148_v40 = vld [vmem:[%s1682_s4 + $0x18] sm:$0xff]   ;;  %v762_v41 = vadd.f32 %v1541_v19, %v742_v27  ;;  %v729_v2 = vld [vmem:[#allocation2 + $0x40] sm:$0xff]  ;;  %v730_v4 = vld [vmem:[#allocation2 + $0x48] sm:$0xff] }
 0x112   : > { %v763_v42 = vadd.f32 %v1541_v19, %v743_v28  ;;  %v746_v43 = vmul.f32 %v1539_v18, %v726_v38  ;;  %v1125_v44 = vunpack.c.h.bf16 %v1147_v33  ;;  %v764_v46 = vadd.f32 %v1541_v19, %v744_v35  ;;  %v728_v49 = vld [vmem:[#allocation2 + $0x38] sm:$0xff]  ;;  %v1149_v3 = vld [vmem:[%s1682_s4 + $0x20] sm:$0xff]   ;;  %v731_v9 = vld [vmem:[#allocation2 + $0x50] sm:$0xff] }
 0x113   : > { %v809_v45 = vadd.f32 %v1116_v22, %v761_v34  ;;  %v765_v47 = vadd.f32 %v1541_v19, %v745_v36  ;;  %v747_v48 = vmul.f32 %v1539_v18, %v727_v39  ;;  %v810_v50 = vadd.f32 %v1117_v24, %v762_v41  ;;  %v1150_v14 = vld [vmem:[%s1682_s4 + $0x28] sm:$0xff]   ;;  %v732_v15 = vld [vmem:[#allocation2 + $0x58] sm:$0xff]  ;;  %v733_v22 = vld [vmem:[#allocation2 + $0x60] sm:$0xff] }
 0x114   : > { %v811_v51 = vadd.f32 %v1120_v29, %v763_v42  ;;  %v766_v52 = vadd.f32 %v1541_v19, %v746_v43  ;;  %v1128_v53 = vunpack.c.l.bf16 %v1148_v40  ;;  %v812_v55 = vadd.f32 %v1121_v31, %v764_v46  ;;  %v1151_v27 = vld [vmem:[%s1682_s4 + $0x30] sm:$0xff]   ;;  %v734_v32 = vld [vmem:[#allocation2 + $0x68] sm:$0xff]  ;;  %v1152_v46 = vld [vmem:[%s1682_s4 + $0x38] sm:$0xff]  }
 0x115   : > { %v825_v54 = vmax.f32 %v809_v45, 0.0  ;;  %v813_v56 = vadd.f32 %v1124_v37, %v765_v47  ;;  %v767_v57 = vadd.f32 %v1541_v19, %v747_v48  ;;  %v826_v58 = vmax.f32 %v810_v50, 0.0  ;;  %v735_v41 = vld [vmem:[#allocation2 + $0x70] sm:$0xff] }
 0x116   : > { %v827_v59 = vmax.f32 %v811_v51, 0.0  ;;  %v814_v60 = vadd.f32 %v1125_v44, %v766_v52  ;;  %v748_v61 = vmul.f32 %v1539_v18, %v728_v49  ;;  %v828_v63 = vmax.f32 %v812_v55, 0.0  ;;  %v736_v55 = vld [vmem:[#allocation2 + $0x78] sm:$0xff] }
 0x117   : > { %v841_v62 = vpack.c.bf16 %v825_v54, %v825_v54  ;;  %v829_v0 = vmax.f32 %v813_v56, 0.0  ;;  %v815_v1 = vadd.f32 %v1128_v53, %v767_v57  ;;  %v842_v5 = vpack.c.bf16 %v826_v58, %v826_v58 }
 0x118   : > { %v843_v6 = vpack.c.bf16 %v827_v59, %v827_v59  ;;  %v830_v7 = vmax.f32 %v814_v60, 0.0  ;;  %v768_v8 = vadd.f32 %v1541_v19, %v748_v61  ;;  %v844_v10 = vpack.c.bf16 %v828_v63, %v828_v63 }
 0x119   : > { %858 = vst.msk [vmem:[%s1683_s5] sm:$0xf] %vm857_vm2, %v841_v62  ;;  %v845_v11 = vpack.c.bf16 %v829_v0, %v829_v0  ;;  %v831_v12 = vmax.f32 %v815_v1, 0.0  ;;  %v1129_v13 = vunpack.c.h.bf16 %v1148_v40  ;;  %v749_v17 = vmul.f32 %v1539_v18, %v729_v2 }
 0x11a   : > { %859 = vst.msk [vmem:[%s1683_s5 + $0x4] sm:$0xf] %vm857_vm2, %v842_v5  ;;  %v846_v16 = vpack.c.bf16 %v830_v7, %v830_v7  ;;  %v1132_v20 = vunpack.c.l.bf16 %v1149_v3  ;;  %v750_v21 = vmul.f32 %v1539_v18, %v730_v4  ;;  %v1133_v25 = vunpack.c.h.bf16 %v1149_v3 }
 0x11b   : > { %860 = vst.msk [vmem:[%s1683_s5 + $0x8] sm:$0xf] %vm857_vm2, %v843_v6  ;;  %v847_v23 = vpack.c.bf16 %v831_v12, %v831_v12  ;;  %v816_v24 = vadd.f32 %v1129_v13, %v768_v8  ;;  %v751_v26 = vmul.f32 %v1539_v18, %v731_v9  ;;  %v769_v28 = vadd.f32 %v1541_v19, %v749_v17 }
 0x11c   : > { %861 = vst.msk [vmem:[%s1683_s5 + $0xc] sm:$0xf] %vm857_vm2, %v844_v10  ;;  %v770_v29 = vadd.f32 %v1541_v19, %v750_v21  ;;  %v1136_v30 = vunpack.c.l.bf16 %v1150_v14  ;;  %v752_v31 = vmul.f32 %v1539_v18, %v732_v15  ;;  %v1137_v35 = vunpack.c.h.bf16 %v1150_v14 }
 0x11d   : > { %862 = vst.msk [vmem:[%s1683_s5 + $0x10] sm:$0xf] %vm857_vm2, %v845_v11  ;;  %v832_v33 = vmax.f32 %v816_v24, 0.0  ;;  %v771_v34 = vadd.f32 %v1541_v19, %v751_v26  ;;  %v753_v36 = vmul.f32 %v1539_v18, %v733_v22  ;;  %v817_v37 = vadd.f32 %v1132_v20, %v769_v28 }
 0x11e   : > { %863 = vst.msk [vmem:[%s1683_s5 + $0x14] sm:$0xf] %vm857_vm2, %v846_v16  ;;  %v818_v38 = vadd.f32 %v1133_v25, %v770_v29  ;;  %v772_v39 = vadd.f32 %v1541_v19, %v752_v31  ;;  %v1140_v40 = vunpack.c.l.bf16 %v1151_v27  ;;  %v754_v45 = vmul.f32 %v1539_v18, %v734_v32 }
 0x11f   : > { %864 = vst.msk [vmem:[%s1683_s5 + $0x18] sm:$0xf] %vm857_vm2, %v847_v23  ;;  %v848_v42 = vpack.c.bf16 %v832_v33, %v832_v33  ;;  %v819_v43 = vadd.f32 %v1136_v30, %v771_v34  ;;  %v773_v44 = vadd.f32 %v1541_v19, %v753_v36  ;;  %v833_v47 = vmax.f32 %v817_v37, 0.0 }
 0x120   : > { %v834_v48 = vmax.f32 %v818_v38, 0.0  ;;  %v820_v49 = vadd.f32 %v1137_v35, %v772_v39  ;;  %v1141_v50 = vunpack.c.h.bf16 %v1151_v27  ;;  %v774_v53 = vadd.f32 %v1541_v19, %v754_v45 }
 0x121   : > { %865 = vst.msk [vmem:[%s1683_s5 + $0x1c] sm:$0xf] %vm857_vm2, %v848_v42  ;;  %v835_v51 = vmax.f32 %v819_v43, 0.0  ;;  %v821_v52 = vadd.f32 %v1140_v40, %v773_v44  ;;  %v755_v54 = vmul.f32 %v1539_v18, %v735_v41  ;;  %v849_v56 = vpack.c.bf16 %v833_v47, %v833_v47 }
 0x122   : > { %v850_v57 = vpack.c.bf16 %v834_v48, %v834_v48  ;;  %v836_v58 = vmax.f32 %v820_v49, 0.0  ;;  %v1144_v59 = vunpack.c.l.bf16 %v1152_v46  ;;  %v822_v62 = vadd.f32 %v1141_v50, %v774_v53 }
 0x123   : > { %v851_v60 = vpack.c.bf16 %v835_v51, %v835_v51  ;;  %v837_v61 = vmax.f32 %v821_v52, 0.0  ;;  %v775_v63 = vadd.f32 %v1541_v19, %v755_v54  ;;  %866 = vst.msk [vmem:[%s1683_s5 + $0x20] sm:$0xf] %vm857_vm2, %v849_v56  ;;  %v756_v1 = vmul.f32 %v1539_v18, %v736_v55 }
 0x124   : > { %v852_v0 = vpack.c.bf16 %v836_v58, %v836_v58  ;;  %v1145_v2 = vunpack.c.h.bf16 %v1152_v46  ;;  %867 = vst.msk [vmem:[%s1683_s5 + $0x24] sm:$0xf] %vm857_vm2, %v850_v57  ;;  %v838_v4 = vmax.f32 %v822_v62, 0.0 }
 0x125   : > { %v853_v3 = vpack.c.bf16 %v837_v61, %v837_v61  ;;  %v823_v5 = vadd.f32 %v1144_v59, %v775_v63  ;;  %868 = vst.msk [vmem:[%s1683_s5 + $0x28] sm:$0xf] %vm857_vm2, %v851_v60  ;;  %v776_v6 = vadd.f32 %v1541_v19, %v756_v1 }
 0x126   : > { %869 = vst.msk [vmem:[%s1683_s5 + $0x2c] sm:$0xf] %vm857_vm2, %v852_v0  ;;  %v854_v18 = vpack.c.bf16 %v838_v4, %v838_v4 }
 0x127   : > { %v839_v7 = vmax.f32 %v823_v5, 0.0  ;;  %870 = vst.msk [vmem:[%s1683_s5 + $0x30] sm:$0xf] %vm857_vm2, %v853_v3  ;;  %v824_v8 = vadd.f32 %v1145_v2, %v776_v6 }
 0x128   : > { %871 = vst.msk [vmem:[%s1683_s5 + $0x34] sm:$0xf] %vm857_vm2, %v854_v18 }
 0x129   : > { %v855_v9 = vpack.c.bf16 %v839_v7, %v839_v7  ;;  %v840_v19 = vmax.f32 %v824_v8, 0.0 }
 0x12b   : > { %872 = vst.msk [vmem:[%s1683_s5 + $0x38] sm:$0xf] %vm857_vm2, %v855_v9  ;;  %v856_v10 = vpack.c.bf16 %v840_v19, %v840_v19 }
 0x12d   : > { %873 = vst.msk [vmem:[%s1683_s5 + $0x3c] sm:$0xf] %vm857_vm2, %v856_v10 }
 0x12e PF: > { %s17_s22 = sadd.s32 1, %s1347_s22   ;;  %s1687_s18 = smov %s1335_s19 }
 0x12f   : > { %p14_p1 = scmp.ge.s32.totalorder %s17_s22, 7   ;;  %s1688_s19 = smov %s1432_s30 }
 0x130   : > { %s1689_s20 = smov %s1343_s21  ;;  %s1690_s21 = smov %s1692_s24 }
 0x131   :  { %16 = sbr.rel (!%p14_p1) target bundleno = 4 (0x4), region = 141 }
 0x136   :  { %902 = vsyncpa [#allocation5], 1 }
 0x137   :  { %904 = vsyncpa [#allocation5 + $0x1], 1 }
 0x138   :  { %905 = vsyncpa [#allocation7], 1 }

// kernel: _lambda_.16
= control target key start
LH: loop header
LB: loop body
LE: loop exit
PB: predicated region body
PF: predicated region fallthrough
CT: control target
= control target key end

     0   :  { %9 = vsyncpa [#allocation5], 0  ;;  %s1042_s0 = inlined_call_operand.vmem [shape: bf16[32,640], index: 0, kind: input, shape index: {}]   ;;  %s1043_s1 = inlined_call_operand.vmem [shape: bf16[640,128], index: 1, kind: input, shape index: {}]   ;;  %s1044_s2 = inlined_call_operand.hbm [shape: f32[1,128], index: 2, kind: input, shape index: {}]   ;;  %s1045_s3 = inlined_call_operand.hbm [shape: f32[1,128], index: 3, kind: input, shape index: {}]   ;;  %s1046_s4 = inlined_call_operand.vmem [shape: bf16[32,128], index: 4, kind: output, shape index: {}]  }
   0x1   :  { %10 = vsyncpa [#allocation7], 0  ;;  %s927_s15 = smov 0   ;;  %s929_s16 = smov 0  }
   0x2   :  { %s931_s17 = smov 0   ;;  %s933_s18 = smov 0  }
   0x3   :  { %s935_s19 = smov 0  }
   0x4 LB: > { %s639_s20 = sadd.s32 4294967295, %s897_s19   ;;  %s28_s21 = sadd.s32 1, %s893_s18  ;;  %s897_s19 = sphi %s935_s19, %s16_s19   ;;  %s893_s18 = sphi %s933_s18, %s1053_s18   ;;  %s889_s17 = sphi %s931_s17, %s1052_s17   ;;  %s885_s16 = sphi %s929_s16, %s1051_s16   ;;  %s881_s15 = sphi %s927_s15, %s1050_s15  }
   0x5   : > { %p29_p0 = scmp.ge.s32.totalorder %s28_s21, 5  ;;  %s44_s22 = sadd.s32 1, %s885_s16 }
   0x6   : > { %p51_p1 = scmp.ne.s32.totalorder %s885_s16, %s881_s15  ;;  %p52_p2 = scmp.eq.s32.totalorder %s897_s19, 0 }
   0x7   : > { %s1055_s21 = smov (%p29_p0, %s28_s21), 0  ;;  %p640_p4 = scmp.ge.s32.totalorder %s897_s19, 1 }
   0x8   : > { %p960_p3 = por %p52_p2, %p51_p1  ;;  %s40_s24 = ssub.s32 %s893_s18, %s1055_s21 }
   0x9   : > { %p176_p5 = scmp.lt.s32.totalorder %s897_s19, 6  ;;  %p42_p6 = scmp.eq.s32.totalorder %s40_s24, 0 }
   0xa   : > { %p972_p8 = scmp.eq.s32.totalorder %s639_s20, 0  ;;  %s189_s30 = sshll.u32 %s1044_s2, 4  ;;  %s190_s30 = int_to_ptr.hbm [resolvable:$true] %s189_s30 }
   0xb   : > { %p968_p7 = pnand %p640_p4, %p176_p5  ;;  %s899_s5 = smov [#allocation4]  }
   0xc   : > { %s977_s27 = scalar_select %p42_p6, %s885_s16, %s44_s22  }
   0xd   : > { %p735_p9 = pneg %p968_p7  ;;  %s191_s6 = sshll.u32 %s899_s5, 4  ;;  %s192_s6 = int_to_ptr.vmem [resolvable:$true] %s191_s6 }
   0xe   : > { %s202_s9 = sshll.u32 %s1045_s3, 4  ;;  %s900_s10 = smov [#allocation6]   ;;  %s203_s9 = int_to_ptr.hbm [resolvable:$true] %s202_s9 }
   0xf   : > { %p736_p10 = pnand %p972_p8, %p735_p9  ;;  %s204_s11 = sshll.u32 %s900_s10, 4  ;;  %s205_s11 = int_to_ptr.vmem [resolvable:$true] %s204_s11 }
  0x10   : > { %p643_p11 = scmp.ge.s32.totalorder %s897_s19, 5 }
  0x11   : > { %738 = dma.hbm_to_vmem [thread:$0]  (!%p736_p10), %s190_s30, 16, %s192_s6, [#allocation5]  }
  0x12   : > { %741 = dma.hbm_to_vmem [thread:$0]  (!%p736_p10), %s203_s9, 16, %s205_s11, [#allocation7]  }
  0x13   : > { %211 = sbr.rel (%p643_p11) target bundleno = 32 (0x20), region = 24 }
  0x18   : > { %214 = sbr.rel (!%p960_p3) target bundleno = 32 (0x20), region = 28  ;;  %s216_s12 = sand.u32 (%p960_p3), 1, %s885_s16  }
  0x19   : > { %s645_s13 = sshll.u32 (%p960_p3), %s893_s18, 2  ;;  %s644_s14 = sshll.u32 (%p960_p3), %s216_s12, 4 }
  0x1a   : > { %s223_s24 = scalar_lea.vmem (%p960_p3), %s1042_s0, %s645_s13  ;;  %s218_s28 = scalar_lea.vmem (%p960_p3), [#allocation3], %s644_s14 }
  0x1b   : > { %v240_v0 = vld [vmem:[%s223_s24] sm:$0xf] (%p960_p3)  ;;  %v242_v1 = vld [vmem:[%s223_s24 + $0x14] sm:$0xf] (%p960_p3)  ;;  %v244_v2 = vld [vmem:[%s223_s24 + $0x28] sm:$0xf] (%p960_p3) }
  0x1c   : > { %241 = vst [vmem:[%s218_s28] sm:$0xf] (%p960_p3), %v240_v0  ;;  %v246_v3 = vld [vmem:[%s223_s24 + $0x3c] sm:$0xf] (%p960_p3) }
  0x1d   : > { %243 = vst [vmem:[%s218_s28 + $0x4] sm:$0xf] %v242_v1 }
  0x1e   : > { %245 = vst [vmem:[%s218_s28 + $0x8] sm:$0xf] %v244_v2 }
  0x1f   : > { %247 = vst [vmem:[%s218_s28 + $0xc] sm:$0xf] %v246_v3 }
  0x20 PF: > { %294 = sbr.rel (%p968_p7) target bundleno = 238 (0xee), region = 73  ;;  %s297_s23 = sand.u32 (!%p968_p7), 1, %s881_s15  }
  0x21   : > { %s1000_s29 = sshll.u32 (!%p968_p7), %s297_s23, 4 }
  0x22   : > { %s299_s30 = scalar_lea.vmem (!%p968_p7), [#allocation3], %s1000_s29 }
  0x25   : > { %872 = dma.done.wait (%p972_p8), [#allocation5], 16  }
  0x26   : > { %874 = vsyncadd (%p972_p8), [#allocation5], 4294967280 }
  0x27   : > { %876 = dma.done.wait (%p972_p8), [#allocation7], 16  }
  0x28   : > { %878 = vsyncadd (%p972_p8), [#allocation7], 4294967280  ;;  %s650_s25 = sshll.u32 %s889_s17, 4  ;;  %p652_p13 = scmp.ne.s32.totalorder %s889_s17, 0 }
  0x29   : > { %p345_p12 = scmp.lt.s32.totalorder %s650_s25, 79 }
  0x2a   : > { %365 = sbr.rel (%p652_p13) target bundleno = 52 (0x34), region = 89 }
  0x2b   : > { %s1057_s25 = smov (!%p345_p12, %s650_s25), 79 }
  0x2c   : > { %s651_s15 = sshll.u32 %s1057_s25, 2 }
  0x2d   : > { %s351_s7 = scalar_lea.vmem %s1043_s1, %s651_s15 }
  0x2f   : > { %v901_v4 = vmov 0.0  }
  0x30   : > { %366 = vst [vmem:[#allocation2 + $0x10] sm:$0xff] %v901_v4 }
  0x31   : > { %367 = vst [vmem:[#allocation2] sm:$0xff] %v901_v4 }
  0x32   : > { %368 = vst [vmem:[#allocation2 + $0x18] sm:$0xff] %v901_v4 }
  0x33   : > { %369 = vst [vmem:[#allocation2 + $0x8] sm:$0xff] %v901_v4 }
  0x34 PF: > { %v707_v5 = vld [vmem:[%s351_s7 + $0x38] sm:$0xff]  ;;  %v706_v6 = vld [vmem:[%s351_s7 + $0x30] sm:$0xff]  ;;  %v705_v7 = vld [vmem:[%s351_s7 + $0x28] sm:$0xff]  ;;  %p693_p0 = scmp.ne.s32.totalorder %s889_s17, 4 }
  0x35   : > { %454 = vmatpush.bf16.msra.mxu0 %v707_v5  ;;  %719 = vmatpush.bf16.msra.mxu1 %v707_v5  ;;  %v704_v8 = vld [vmem:[%s351_s7 + $0x20] sm:$0xff]  ;;  %v703_v9 = vld [vmem:[%s351_s7 + $0x18] sm:$0xff]  ;;  %v702_v10 = vld [vmem:[%s351_s7 + $0x10] sm:$0xff] }
  0x36   : > { %v701_v11 = vld [vmem:[%s351_s7 + $0x8] sm:$0xff]  ;;  %v700_v12 = vld [vmem:[%s351_s7] sm:$0xff] }
  0x37   : > { %v698_v13 = vld [vmem:[%s299_s30] sm:$0xff]  ;;  %v699_v14 = vld [vmem:[%s299_s30 + $0x8] sm:$0xff] }
  0x38   : > { %v370_v15 = vld [vmem:[#allocation2 + $0x10] sm:$0xff]  ;;  %v371_v21 = vld [vmem:[#allocation2] sm:$0xff] }
  0x39   : > { %455 = vmatpush.bf16.msra.mxu0 %v706_v6  ;;  %720 = vmatpush.bf16.msra.mxu1 %v706_v6  ;;  %v372_v16 = vld [vmem:[#allocation2 + $0x18] sm:$0xff] }
  0x3a   : > { %v373_v22 = vld [vmem:[#allocation2 + $0x8] sm:$0xff] }
  0x3d   : > { %456 = vmatpush.bf16.msra.mxu0 %v705_v7  ;;  %721 = vmatpush.bf16.msra.mxu1 %v705_v7 }
  0x41   : > { %457 = vmatpush.bf16.msra.mxu0 %v704_v8  ;;  %722 = vmatpush.bf16.msra.mxu1 %v704_v8 }
  0x45   : > { %458 = vmatpush.bf16.msra.mxu0 %v703_v9  ;;  %723 = vmatpush.bf16.msra.mxu1 %v703_v9 }
  0x49   : > { %459 = vmatpush.bf16.msra.mxu0 %v702_v10  ;;  %724 = vmatpush.bf16.msra.mxu1 %v702_v10 }
  0x4d   : > { %460 = vmatpush.bf16.msra.mxu0 %v701_v11  ;;  %725 = vmatpush.bf16.msra.mxu1 %v701_v11 }
  0x51   : > { %461 = vmatpush.bf16.msra.mxu0 %v700_v12  ;;  %726 = vmatpush.bf16.msra.mxu1 %v700_v12 }
  0x54   : > { %462 = vmatmul.bf16.vlgmr.msra.gmra.mxu0 %v698_v13  ;;  %467 = vmatmul.bf16.vlgmr.msra.gmra.mxu1 %v699_v14 }
  0xd1   : > { %v463_v17 = vpop.f32.mrf.mxu0  ;;  %v468_v18 = vpop.f32.mrf.mxu1 }
  0xd2   : > { %v473_v19 = vadd.f32 %v463_v17, %v370_v15  ;;  %v475_v20 = vadd.f32 %v468_v18, %v372_v16 }
  0xd4   : > { %477 = vst [vmem:[#allocation2 + $0x10] sm:$0xff] %v473_v19 }
  0xd5   : > { %479 = vst [vmem:[#allocation2 + $0x18] sm:$0xff] %v475_v20 }
  0xd9   : > { %v465_v23 = vpop.f32.mrf.mxu0  ;;  %v470_v24 = vpop.f32.mrf.mxu1  ;;  %484 = sbr.rel (%p693_p0) target bundleno = 238 (0xee), region = 93 }
  0xda   : > { %v474_v25 = vadd.f32 %v465_v23, %v371_v21  ;;  %v476_v26 = vadd.f32 %v470_v24, %v373_v22 }
  0xdc   : > { %478 = vst [vmem:[#allocation2] sm:$0xff] %v474_v25 }
  0xdd   : > { %480 = vst [vmem:[#allocation2 + $0x8] sm:$0xff] %v476_v26 }
  0xde   : > { %v485_v27 = vld [vmem:[#allocation2 + $0x10] sm:$0xff]  ;;  %v789_v29 = vld [vmem:[#allocation4] ss:$0 sm:$0xff]  ;;  %v790_v30 = vld [vmem:[#allocation6] ss:$0 sm:$0xff] }
  0xdf   : > { %v487_v31 = vld [vmem:[#allocation2 + $0x18] sm:$0xff]  ;;  %v493_v33 = vmul.f32 %v789_v29, %v485_v27 }
  0xe0   : > { %v495_v35 = vmul.f32 %v789_v29, %v487_v31 }
  0xe1   : > { %v501_v37 = vadd.f32 %v790_v30, %v493_v33 }
  0xe2   : > { %v503_v39 = vadd.f32 %v790_v30, %v495_v35 }
  0xe3   : > { %v486_v28 = vld [vmem:[#allocation2] sm:$0xff]  ;;  %v505_v41 = vmax.f32 %v501_v37, 0.0 }
  0xe4   : > { %v488_v32 = vld [vmem:[#allocation2 + $0x8] sm:$0xff]  ;;  %v494_v34 = vmul.f32 %v789_v29, %v486_v28  ;;  %v507_v43 = vmax.f32 %v503_v39, 0.0 }
  0xe5   : > { %v496_v36 = vmul.f32 %v789_v29, %v488_v32 }
  0xe6   : > { %v502_v38 = vadd.f32 %v790_v30, %v494_v34 }
  0xe7   : > { %v504_v40 = vadd.f32 %v790_v30, %v496_v36 }
  0xe8   : > { %v506_v42 = vmax.f32 %v502_v38, 0.0 }
  0xe9   : > { %v508_v44 = vmax.f32 %v504_v40, 0.0 }
  0xea   : > { %v711_v45 = vpack.c.bf16 %v506_v42, %v505_v41 }
  0xeb   : > { %v716_v46 = vpack.c.bf16 %v508_v44, %v507_v43 }
  0xec   : > { %712 = vst [vmem:[%s1046_s4] sm:$0xff] %v711_v45  }
  0xed   : > { %718 = vst [vmem:[%s1046_s4 + $0x8] sm:$0xff] %v716_v46  }
  0xee PF: > { %s16_s19 = sadd.s32 1, %s897_s19   ;;  %s1050_s15 = smov %s885_s16 }
  0xef   : > { %p13_p1 = scmp.ge.s32.totalorder %s16_s19, 7   ;;  %s1051_s16 = smov %s977_s27 }
  0xf0   : > { %s1052_s17 = smov %s893_s18  ;;  %s1053_s18 = smov %s1055_s21 }
  0xf1   :  { %15 = sbr.rel (!%p13_p1) target bundleno = 4 (0x4), region = 134 }
  0xf6   :  { %545 = vsyncpa [#allocation5], 1 }
  0xf7   :  { %547 = vsyncpa [#allocation5 + $0x1], 1 }
  0xf8   :  { %548 = vsyncpa [#allocation7], 1 }

// kernel: _lambda_.17
= control target key start
LH: loop header
LB: loop body
LE: loop exit
PB: predicated region body
PF: predicated region fallthrough
CT: control target
= control target key end

     0   :  { %s309_s1 = inlined_call_operand.vmem [shape: bf16[128,128], index: 1, kind: input, shape index: {}]   ;;  %s310_s2 = inlined_call_operand.vmem [shape: f32[1,128], index: 2, kind: input, shape index: {}]   ;;  %s311_s3 = inlined_call_operand.vmem [shape: f32[1,128], index: 3, kind: input, shape index: {}]   ;;  %s312_s0 = inlined_call_operand.vmem [shape: bf16[32,128], index: 0, kind: input, shape index: {}]   ;;  %s313_s4 = inlined_call_operand.vmem [shape: bf16[32,128], index: 4, kind: output, shape index: {}]  }
   0x1   :  { %v220_v0 = vld [vmem:[%s309_s1 + $0x38] sm:$0xff]  ;;  %v219_v1 = vld [vmem:[%s309_s1 + $0x30] sm:$0xff]  ;;  %v218_v2 = vld [vmem:[%s309_s1 + $0x28] sm:$0xff] }
   0x2   :  { %109 = vmatpush.bf16.msra.mxu0 %v220_v0  ;;  %232 = vmatpush.bf16.msra.mxu1 %v220_v0  ;;  %v217_v3 = vld [vmem:[%s309_s1 + $0x20] sm:$0xff]  ;;  %v216_v4 = vld [vmem:[%s309_s1 + $0x18] sm:$0xff]  ;;  %v215_v5 = vld [vmem:[%s309_s1 + $0x10] sm:$0xff] }
   0x3   :  { %v214_v6 = vld [vmem:[%s309_s1 + $0x8] sm:$0xff]  ;;  %v213_v7 = vld [vmem:[%s309_s1] sm:$0xff] }
   0x4   :  { %v211_v8 = vld [vmem:[%s312_s0] sm:$0xff]  ;;  %v212_v9 = vld [vmem:[%s312_s0 + $0x8] sm:$0xff] }
   0x5   :  { %v240_v12 = vld [vmem:[%s310_s2] ss:$0 sm:$0xff] }
   0x6   :  { %110 = vmatpush.bf16.msra.mxu0 %v219_v1  ;;  %233 = vmatpush.bf16.msra.mxu1 %v219_v1  ;;  %v241_v14 = vld [vmem:[%s311_s3] ss:$0 sm:$0xff] }
   0xa   :  { %111 = vmatpush.bf16.msra.mxu0 %v218_v2  ;;  %234 = vmatpush.bf16.msra.mxu1 %v218_v2 }
   0xe   :  { %112 = vmatpush.bf16.msra.mxu0 %v217_v3  ;;  %235 = vmatpush.bf16.msra.mxu1 %v217_v3 }
  0x12   :  { %113 = vmatpush.bf16.msra.mxu0 %v216_v4  ;;  %236 = vmatpush.bf16.msra.mxu1 %v216_v4 }
  0x16   :  { %114 = vmatpush.bf16.msra.mxu0 %v215_v5  ;;  %237 = vmatpush.bf16.msra.mxu1 %v215_v5 }
  0x1a   :  { %115 = vmatpush.bf16.msra.mxu0 %v214_v6  ;;  %238 = vmatpush.bf16.msra.mxu1 %v214_v6 }
  0x1e   :  { %116 = vmatpush.bf16.msra.mxu0 %v213_v7  ;;  %239 = vmatpush.bf16.msra.mxu1 %v213_v7 }
  0x21   :  { %117 = vmatmul.bf16.vlgmr.msra.gmra.mxu0 %v211_v8  ;;  %122 = vmatmul.bf16.vlgmr.msra.gmra.mxu1 %v212_v9 }
  0x9e   :  { %v118_v10 = vpop.f32.mrf.mxu0  ;;  %v123_v11 = vpop.f32.mrf.mxu1 }
  0x9f   :  { %v147_v13 = vmul.f32 %v240_v12, %v118_v10  ;;  %v149_v15 = vmul.f32 %v240_v12, %v123_v11 }
  0xa1   :  { %v155_v20 = vadd.f32 %v241_v14, %v147_v13  ;;  %v157_v21 = vadd.f32 %v241_v14, %v149_v15 }
  0xa6   :  { %v120_v16 = vpop.f32.mrf.mxu0  ;;  %v125_v17 = vpop.f32.mrf.mxu1 }
  0xa7   :  { %v148_v18 = vmul.f32 %v240_v12, %v120_v16  ;;  %v150_v19 = vmul.f32 %v240_v12, %v125_v17 }
  0xa9   :  { %v156_v22 = vadd.f32 %v241_v14, %v148_v18  ;;  %v158_v23 = vadd.f32 %v241_v14, %v150_v19 }
  0xab   :  { %v224_v24 = vpack.c.bf16 %v156_v22, %v155_v20  ;;  %v229_v25 = vpack.c.bf16 %v158_v23, %v157_v21 }
  0xad   :  { %225 = vst [vmem:[%s313_s4] sm:$0xff] %v224_v24  }
  0xae   :  { %231 = vst [vmem:[%s313_s4 + $0x8] sm:$0xff] %v229_v25  }

// kernel: _lambda_.18
= control target key start
LH: loop header
LB: loop body
LE: loop exit
PB: predicated region body
PF: predicated region fallthrough
CT: control target
= control target key end

     0   :  { %s1218_s18 = smov 0   ;;  %s1220_s19 = smov 0   ;;  %s1343_s0 = inlined_call_operand.vmem [shape: bf16[32,1152], index: 0, kind: input, shape index: {}]   ;;  %s1344_s1 = inlined_call_operand.vmem [shape: bf16[1152,128], index: 1, kind: input, shape index: {}]   ;;  %s1345_s2 = inlined_call_operand.vmem [shape: f32[1,128], index: 2, kind: input, shape index: {}]   ;;  %s1346_s3 = inlined_call_operand.vmem [shape: f32[1,128], index: 3, kind: input, shape index: {}]   ;;  %s1347_s4 = inlined_call_operand.vmem [shape: bf16[32,128], index: 4, kind: input, shape index: {}]   ;;  %s1348_s5 = inlined_call_operand.vmem [shape: bf16[32,128], index: 5, kind: output, shape index: {}]  }
   0x1   :  { %s1222_s20 = smov 0   ;;  %s1224_s21 = smov 0  }
   0x2   :  { %s1226_s22 = smov 0  }
   0x3 LB: > { %s27_s23 = sadd.s32 1, %s1181_s21  ;;  %p50_p1 = scmp.ne.s32.totalorder %s1173_s19, %s1169_s18  ;;  %s1185_s22 = sphi %s1226_s22, %s15_s22   ;;  %s1181_s21 = sphi %s1224_s21, %s1352_s21   ;;  %s1177_s20 = sphi %s1222_s20, %s1351_s20   ;;  %s1173_s19 = sphi %s1220_s19, %s1350_s19   ;;  %s1169_s18 = sphi %s1218_s18, %s1349_s18  }
   0x4   : > { %p28_p0 = scmp.ge.s32.totalorder %s27_s23, 3  ;;  %p51_p2 = scmp.eq.s32.totalorder %s1185_s22, 0 }
   0x5   : > { %s43_s25 = sadd.s32 1, %s1173_s19  ;;  %p905_p5 = scmp.ge.s32.totalorder %s1185_s22, 3 }
   0x6   : > { %s1354_s23 = smov (%p28_p0, %s27_s23), 0  ;;  %p52_p3 = por %p51_p2, %p50_p1 }
   0x7   : > { %s39_s24 = ssub.s32 %s1181_s21, %s1354_s23  ;;  %236 = sbr.rel (%p905_p5) target bundleno = 25 (0x19), region = 28 }
   0x8   : > { %p41_p4 = scmp.eq.s32.totalorder %s39_s24, 0 }
   0xa   : > { %s1253_s26 = scalar_select %p41_p4, %s1173_s19, %s43_s25  }
   0xc   : > { %239 = sbr.rel (!%p52_p3) target bundleno = 25 (0x19), region = 32  ;;  %s241_s27 = sand.u32 (%p52_p3), 1, %s1173_s19  }
   0xd   : > { %s1043_s28 = smul.u32 (%p52_p3), 12, %s1181_s21 }
   0xe   : > { %s1102_s29 = smul.u32 (%p52_p3), 48, %s241_s27 }
   0xf   : > { %s249_s7 = scalar_lea.vmem (%p52_p3), %s1343_s0, %s1043_s28 }
  0x10   : > { %v264_v0 = vld [vmem:[%s249_s7] sm:$0xff] (%p52_p3)  ;;  %v268_v2 = vld [vmem:[%s249_s7 + $0x48] sm:$0xff] (%p52_p3)  ;;  %s243_s8 = scalar_lea.vmem (%p52_p3), [#allocation3], %s1102_s29  ;;  %v911_v6 = vld [vmem:[%s249_s7 + $0x50] sm:$0xf] (%p52_p3) }
  0x11   : > { %v266_v1 = vld [vmem:[%s249_s7 + $0x24] sm:$0xff]  ;;  %265 = vst [vmem:[%s243_s8] sm:$0xff] %v264_v0  ;;  %v270_v3 = vld [vmem:[%s249_s7 + $0x6c] sm:$0xff]  ;;  %v913_v7 = vld [vmem:[%s249_s7 + $0x74] sm:$0xf] }
  0x12   : > { %267 = vst [vmem:[%s243_s8 + $0xc] sm:$0xff] %v266_v1  ;;  %v907_v4 = vld [vmem:[%s249_s7 + $0x8] sm:$0xf]  ;;  %v909_v5 = vld [vmem:[%s249_s7 + $0x2c] sm:$0xf] }
  0x13   : > { %269 = vst [vmem:[%s243_s8 + $0x18] sm:$0xff] %v268_v2 }
  0x14   : > { %271 = vst [vmem:[%s243_s8 + $0x24] sm:$0xff] %v270_v3 }
  0x15   : > { %908 = vst [vmem:[%s243_s8 + $0x8] sm:$0xf] %v907_v4 }
  0x16   : > { %910 = vst [vmem:[%s243_s8 + $0x14] sm:$0xf] %v909_v5 }
  0x17   : > { %912 = vst [vmem:[%s243_s8 + $0x20] sm:$0xf] %v911_v6 }
  0x18   : > { %914 = vst [vmem:[%s243_s8 + $0x2c] sm:$0xf] %v913_v7 }
  0x19 PF: > { %p915_p6 = scmp.ge.s32.totalorder %s1185_s22, 1  ;;  %p304_p7 = scmp.lt.s32.totalorder %s1185_s22, 4 }
  0x1b   : > { %p305_p8 = pnand %p915_p6, %p304_p7 }
  0x1c   : > { %s311_s9 = sand.u32 (!%p305_p8), 1, %s1169_s18   ;;  %s365_s10 = smul.u32 (!%p305_p8), 48, %s1177_s20 }
  0x1d   : > { %308 = sbr.rel (%p305_p8) target bundleno = 257 (0x101), region = 62  ;;  %p917_p10 = scmp.ne.s32.totalorder (!%p305_p8), %s1177_s20, 0 }
  0x1e   : > { %s1103_s11 = smul.u32 (!%p305_p8), 48, %s311_s9  ;;  %p366_p9 = scmp.lt.s32.totalorder (!%p305_p8), %s365_s10, 143 }
  0x20   : > { %s1270_s16 = scalar_lea.vmem (!%p305_p8), [#allocation3], %s1103_s11 }
  0x22   : > { %s1356_s10 = smov (!%p366_p9, %s365_s10), 143  ;;  %401 = sbr.rel (%p917_p10) target bundleno = 44 (0x2c), region = 70 }
  0x23   : > { %s916_s12 = sshll.u32 %s1356_s10, 2 }
  0x24   : > { %s1268_s15 = scalar_lea.vmem %s1344_s1, %s916_s12 }
  0x27   : > { %v1187_v8 = vmov 0.0  }
  0x28   : > { %402 = vst [vmem:[#allocation2 + $0x10] sm:$0xff] %v1187_v8 }
  0x29   : > { %403 = vst [vmem:[#allocation2] sm:$0xff] %v1187_v8 }
  0x2a   : > { %404 = vst [vmem:[#allocation2 + $0x18] sm:$0xff] %v1187_v8 }
  0x2b   : > { %405 = vst [vmem:[#allocation2 + $0x8] sm:$0xff] %v1187_v8 }
  0x2c PF: > { %v1057_v9 = vld [vmem:[%s1268_s15 + $0x38] sm:$0xff]  ;;  %v1056_v12 = vld [vmem:[%s1268_s15 + $0x30] sm:$0xff]  ;;  %v1055_v15 = vld [vmem:[%s1268_s15 + $0x28] sm:$0xff]  ;;  %p1038_p11 = scmp.ne.s32.totalorder %s1177_s20, 2 }
  0x2d   : > { %v1065_v10 = vld [vmem:[%s1268_s15 + $0x78] sm:$0xff]  ;;  %642 = vmatpush.bf16.msra.mxu0 %v1057_v9  ;;  %v1064_v13 = vld [vmem:[%s1268_s15 + $0x70] sm:$0xff]  ;;  %1094 = vmatpush.bf16.msra.mxu3 %v1057_v9  ;;  %v1063_v16 = vld [vmem:[%s1268_s15 + $0x68] sm:$0xff] }
  0x2e   : > { %v1073_v11 = vld [vmem:[%s1268_s15 + $0xb8] sm:$0xff]  ;;  %661 = vmatpush.bf16.msra.mxu1 %v1065_v10  ;;  %v1072_v14 = vld [vmem:[%s1268_s15 + $0xb0] sm:$0xff]  ;;  %v1071_v17 = vld [vmem:[%s1268_s15 + $0xa8] sm:$0xff] }
  0x2f   : > { %680 = vmatpush.bf16.msra.mxu2 %v1073_v11  ;;  %v1054_v18 = vld [vmem:[%s1268_s15 + $0x20] sm:$0xff]  ;;  %v1053_v21 = vld [vmem:[%s1268_s15 + $0x18] sm:$0xff]  ;;  %v1052_v24 = vld [vmem:[%s1268_s15 + $0x10] sm:$0xff] }
  0x30   : > { %v1062_v19 = vld [vmem:[%s1268_s15 + $0x60] sm:$0xff]  ;;  %v1061_v22 = vld [vmem:[%s1268_s15 + $0x58] sm:$0xff]  ;;  %v1060_v25 = vld [vmem:[%s1268_s15 + $0x50] sm:$0xff] }
  0x31   : > { %643 = vmatpush.bf16.msra.mxu0 %v1056_v12  ;;  %1095 = vmatpush.bf16.msra.mxu3 %v1056_v12  ;;  %v1070_v20 = vld [vmem:[%s1268_s15 + $0xa0] sm:$0xff]  ;;  %v1069_v23 = vld [vmem:[%s1268_s15 + $0x98] sm:$0xff]  ;;  %v1068_v26 = vld [vmem:[%s1268_s15 + $0x90] sm:$0xff] }
  0x32   : > { %662 = vmatpush.bf16.msra.mxu1 %v1064_v13  ;;  %v1051_v27 = vld [vmem:[%s1268_s15 + $0x8] sm:$0xff]  ;;  %v1050_v30 = vld [vmem:[%s1268_s15] sm:$0xff]  ;;  %v406_v54 = vld [vmem:[#allocation2 + $0x10] sm:$0xff] }
  0x33   : > { %681 = vmatpush.bf16.msra.mxu2 %v1072_v14  ;;  %v1059_v28 = vld [vmem:[%s1268_s15 + $0x48] sm:$0xff]  ;;  %v1058_v31 = vld [vmem:[%s1268_s15 + $0x40] sm:$0xff]  ;;  %v408_v4 = vld [vmem:[#allocation2 + $0x18] sm:$0xff] }
  0x34   : > { %v1067_v29 = vld [vmem:[%s1268_s15 + $0x88] sm:$0xff]  ;;  %v1066_v32 = vld [vmem:[%s1268_s15 + $0x80] sm:$0xff] }
  0x35   : > { %644 = vmatpush.bf16.msra.mxu0 %v1055_v15  ;;  %1096 = vmatpush.bf16.msra.mxu3 %v1055_v15  ;;  %v920_v33 = vld [vmem:[%s1270_s16] sm:$0xf]  ;;  %v1045_v34 = vld [vmem:[%s1270_s16 + $0x8] sm:$0xf0]  ;;  %v1044_v35 = vld [vmem:[%s1270_s16 + $0x4] sm:$0xf] }
  0x36   : > { %663 = vmatpush.bf16.msra.mxu1 %v1063_v16  ;;  %v922_v36 = vld [vmem:[%s1270_s16 + $0xc] sm:$0xf0]  ;;  %v928_v37 = vld [vmem:[%s1270_s16 + $0x8] sm:$0xf]  ;;  %v1046_v38 = vld [vmem:[%s1270_s16 + $0x10] sm:$0xf0]  ;;  %v921_v41 = vor.u32 %v1045_v34, %v920_v33 }
  0x37   : > { %682 = vmatpush.bf16.msra.mxu2 %v1071_v17  ;;  %v932_v39 = vld [vmem:[%s1270_s16 + $0x18] sm:$0xf]  ;;  %v1048_v40 = vld [vmem:[%s1270_s16 + $0x20] sm:$0xf0]  ;;  %v925_v42 = vor.u32 %v1044_v35, %v922_v36  ;;  %v929_v43 = vor.u32 %v1046_v38, %v928_v37  ;;  %v1047_v45 = vld [vmem:[%s1270_s16 + $0x1c] sm:$0xf] }
  0x38   : > { %v933_v44 = vor.u32 %v1048_v40, %v932_v39  ;;  %v934_v46 = vld [vmem:[%s1270_s16 + $0x24] sm:$0xf0]  ;;  %v940_v47 = vld [vmem:[%s1270_s16 + $0x20] sm:$0xf]  ;;  %v1049_v48 = vld [vmem:[%s1270_s16 + $0x28] sm:$0xf0] }
  0x39   : > { %645 = vmatpush.bf16.msra.mxu0 %v1054_v18  ;;  %1097 = vmatpush.bf16.msra.mxu3 %v1054_v18  ;;  %v937_v49 = vor.u32 %v1047_v45, %v934_v46  ;;  %v941_v50 = vor.u32 %v1049_v48, %v940_v47  ;;  %v407_v61 = vld [vmem:[#allocation2] sm:$0xff]  ;;  %v409_v11 = vld [vmem:[#allocation2 + $0x8] sm:$0xff] }
  0x3a   : > { %664 = vmatpush.bf16.msra.mxu1 %v1062_v19 }
  0x3b   : > { %683 = vmatpush.bf16.msra.mxu2 %v1070_v20 }
  0x3d   : > { %646 = vmatpush.bf16.msra.mxu0 %v1053_v21  ;;  %1098 = vmatpush.bf16.msra.mxu3 %v1053_v21 }
  0x3e   : > { %665 = vmatpush.bf16.msra.mxu1 %v1061_v22 }
  0x3f   : > { %684 = vmatpush.bf16.msra.mxu2 %v1069_v23 }
  0x41   : > { %647 = vmatpush.bf16.msra.mxu0 %v1052_v24  ;;  %1099 = vmatpush.bf16.msra.mxu3 %v1052_v24 }
  0x42   : > { %666 = vmatpush.bf16.msra.mxu1 %v1060_v25 }
  0x43   : > { %685 = vmatpush.bf16.msra.mxu2 %v1068_v26 }
  0x45   : > { %648 = vmatpush.bf16.msra.mxu0 %v1051_v27  ;;  %1100 = vmatpush.bf16.msra.mxu3 %v1051_v27 }
  0x46   : > { %667 = vmatpush.bf16.msra.mxu1 %v1059_v28 }
  0x47   : > { %686 = vmatpush.bf16.msra.mxu2 %v1067_v29 }
  0x49   : > { %649 = vmatpush.bf16.msra.mxu0 %v1050_v30  ;;  %1101 = vmatpush.bf16.msra.mxu3 %v1050_v30 }
  0x4a   : > { %668 = vmatpush.bf16.msra.mxu1 %v1058_v31 }
  0x4b   : > { %687 = vmatpush.bf16.msra.mxu2 %v1066_v32 }
  0x4c   : > { %650 = vmatmul.bf16.vlgmr.msra.gmra.mxu0 %v921_v41  ;;  %655 = vmatmul.bf16.vlgmr.msra.gmra.mxu3 %v933_v44 }
  0x4d   : > { %669 = vmatmul.bf16.vlgmr.msra.gmra.mxu1 %v925_v42 }
  0x4e   : > { %688 = vmatmul.bf16.vlgmr.msra.gmra.mxu2 %v929_v43 }
  0x5d   : > { %674 = vmatmul.bf16.gmra.mxu1 %v937_v49 }
  0x5e   : > { %693 = vmatmul.bf16.gmra.mxu2 %v941_v50 }
  0xc9   : > { %v651_v52 = vpop.f32.mrf.mxu0 }
  0xca   : > { %v670_v51 = vpop.f32.mrf.mxu1 }
  0xcb   : > { %v671_v53 = vadd.f32 %v670_v51, %v651_v52 }
  0xcf   : > { %v656_v2 = vpop.f32.mrf.mxu3 }
  0xd1   : > { %v689_v55 = vpop.f32.mrf.mxu2  ;;  %v653_v59 = vpop.f32.mrf.mxu0 }
  0xd2   : > { %v690_v56 = vadd.f32 %v689_v55, %v671_v53  ;;  %v672_v57 = vpop.f32.mrf.mxu1 }
  0xd3   : > { %v673_v60 = vadd.f32 %v672_v57, %v653_v59 }
  0xd4   : > { %v699_v58 = vadd.f32 %v690_v56, %v406_v54 }
  0xd6   : > { %703 = vst [vmem:[#allocation2 + $0x10] sm:$0xff] %v699_v58 }
  0xd7   : > { %v658_v9 = vpop.f32.mrf.mxu3 }
  0xd9   : > { %v691_v62 = vpop.f32.mrf.mxu2 }
  0xda   : > { %v692_v63 = vadd.f32 %v691_v62, %v673_v60  ;;  %v675_v0 = vpop.f32.mrf.mxu1 }
  0xdb   : > { %v676_v3 = vadd.f32 %v675_v0, %v656_v2 }
  0xdc   : > { %v700_v1 = vadd.f32 %v692_v63, %v407_v61 }
  0xde   : > { %704 = vst [vmem:[#allocation2] sm:$0xff] %v700_v1 }
  0xe1   : > { %v694_v5 = vpop.f32.mrf.mxu2 }
  0xe2   : > { %v695_v6 = vadd.f32 %v694_v5, %v676_v3  ;;  %v677_v8 = vpop.f32.mrf.mxu1 }
  0xe3   : > { %v678_v10 = vadd.f32 %v677_v8, %v658_v9 }
  0xe4   : > { %v701_v7 = vadd.f32 %v695_v6, %v408_v4 }
  0xe6   : > { %705 = vst [vmem:[#allocation2 + $0x18] sm:$0xff] %v701_v7 }
  0xe9   : > { %v696_v12 = vpop.f32.mrf.mxu2 }
  0xea   : > { %v697_v13 = vadd.f32 %v696_v12, %v678_v10  ;;  %710 = sbr.rel (%p1038_p11) target bundleno = 257 (0x101), region = 74 }
  0xec   : > { %v702_v14 = vadd.f32 %v697_v13, %v409_v11 }
  0xee   : > { %706 = vst [vmem:[#allocation2 + $0x8] sm:$0xff] %v702_v14 }
  0xef   : > { %v711_v15 = vld [vmem:[#allocation2 + $0x10] sm:$0xff]  ;;  %v712_v16 = vld [vmem:[#allocation2] sm:$0xff]  ;;  %v713_v20 = vld [vmem:[#allocation2 + $0x18] sm:$0xff] }
  0xf0   : > { %v1145_v17 = vld [vmem:[%s1345_s2] ss:$0 sm:$0xff]  ;;  %v1092_v26 = vld [vmem:[%s1347_s4 + $0x8] sm:$0xff]  }
  0xf1   : > { %v1146_v18 = vld [vmem:[%s1346_s3] ss:$0 sm:$0xff]  ;;  %v719_v22 = vmul.f32 %v1145_v17, %v711_v15  ;;  %v720_v23 = vmul.f32 %v1145_v17, %v712_v16  ;;  %v721_v27 = vmul.f32 %v1145_v17, %v713_v20  ;;  %v1080_v29 = vunpack.c.l.bf16 %v1092_v26 }
  0xf2   : > { %v1075_v19 = vld [vmem:[%s1347_s4] sm:$0xff]   ;;  %v1081_v30 = vunpack.c.h.bf16 %v1092_v26 }
  0xf3   : > { %v1076_v24 = vunpack.c.l.bf16 %v1075_v19  ;;  %v1077_v25 = vunpack.c.h.bf16 %v1075_v19  ;;  %v727_v31 = vadd.f32 %v1146_v18, %v719_v22  ;;  %v728_v32 = vadd.f32 %v1146_v18, %v720_v23 }
  0xf4   : > { %v729_v33 = vadd.f32 %v1146_v18, %v721_v27 }
  0xf5   : > { %v714_v21 = vld [vmem:[#allocation2 + $0x8] sm:$0xff]  ;;  %v739_v35 = vadd.f32 %v1076_v24, %v727_v31  ;;  %v740_v36 = vadd.f32 %v1077_v25, %v728_v32 }
  0xf6   : > { %v722_v28 = vmul.f32 %v1145_v17, %v714_v21  ;;  %v741_v37 = vadd.f32 %v1080_v29, %v729_v33 }
  0xf7   : > { %v743_v39 = vmax.f32 %v739_v35, 0.0  ;;  %v744_v40 = vmax.f32 %v740_v36, 0.0 }
  0xf8   : > { %v730_v34 = vadd.f32 %v1146_v18, %v722_v28  ;;  %v745_v41 = vmax.f32 %v741_v37, 0.0 }
  0xf9   : > { %v1085_v43 = vpack.c.bf16 %v744_v40, %v743_v39 }
  0xfa   : > { %v742_v38 = vadd.f32 %v1081_v30, %v730_v34 }
  0xfb   : > { %1086 = vst [vmem:[%s1348_s5] sm:$0xff] %v1085_v43  }
  0xfc   : > { %v746_v42 = vmax.f32 %v742_v38, 0.0 }
  0xfe   : > { %v1090_v44 = vpack.c.bf16 %v746_v42, %v745_v41 }
 0x100   : > { %1093 = vst [vmem:[%s1348_s5 + $0x8] sm:$0xff] %v1090_v44  }
 0x101 PF: > { %s15_s22 = sadd.s32 1, %s1185_s22   ;;  %s1349_s18 = smov %s1173_s19 }
 0x102   : > { %p12_p12 = scmp.ge.s32.totalorder %s15_s22, 5   ;;  %s1350_s19 = smov %s1253_s26 }
 0x103   : > { %s1351_s20 = smov %s1181_s21  ;;  %s1352_s21 = smov %s1354_s23 }
 0x104   :  { %14 = sbr.rel (!%p12_p12) target bundleno = 3 (0x3), region = 127 }

// kernel: _lambda_.19
= control target key start
LH: loop header
LB: loop body
LE: loop exit
PB: predicated region body
PF: predicated region fallthrough
CT: control target
= control target key end

     0   :  { %s1325_s15 = smov 0   ;;  %s1327_s16 = smov 0   ;;  %s1518_s0 = inlined_call_operand.vmem [shape: bf16[16,1152], index: 0, kind: input, shape index: {}]   ;;  %s1519_s1 = inlined_call_operand.vmem [shape: bf16[1152,256], index: 1, kind: input, shape index: {}]   ;;  %s1520_s2 = inlined_call_operand.vmem [shape: f32[1,256], index: 2, kind: input, shape index: {}]   ;;  %s1521_s3 = inlined_call_operand.vmem [shape: f32[1,256], index: 3, kind: input, shape index: {}]   ;;  %s1522_s4 = inlined_call_operand.vmem [shape: bf16[16,256], index: 4, kind: output, shape index: {}]  }
   0x1   :  { %s1329_s17 = smov 0   ;;  %s1331_s18 = smov 0  }
   0x2   :  { %s1333_s19 = smov 0  }
   0x3 LB: > { %s26_s20 = sadd.s32 1, %s1293_s18  ;;  %p49_p1 = scmp.ne.s32.totalorder %s1285_s16, %s1281_s15  ;;  %s1297_s19 = sphi %s1333_s19, %s14_s19   ;;  %s1293_s18 = sphi %s1331_s18, %s1526_s18   ;;  %s1289_s17 = sphi %s1329_s17, %s1525_s17   ;;  %s1285_s16 = sphi %s1327_s16, %s1524_s16   ;;  %s1281_s15 = sphi %s1325_s15, %s1523_s15  }
   0x4   : > { %p27_p0 = scmp.ge.s32.totalorder %s26_s20, 3  ;;  %p50_p2 = scmp.eq.s32.totalorder %s1297_s19, 0 }
   0x5   : > { %s42_s22 = sadd.s32 1, %s1285_s16  ;;  %p944_p5 = scmp.ge.s32.totalorder %s1297_s19, 3 }
   0x6   : > { %s1528_s20 = smov (%p27_p0, %s26_s20), 0  ;;  %p51_p3 = por %p50_p2, %p49_p1 }
   0x7   : > { %s38_s21 = ssub.s32 %s1293_s18, %s1528_s20  ;;  %199 = sbr.rel (%p944_p5) target bundleno = 21 (0x15), region = 24 }
   0x8   : > { %p40_p4 = scmp.eq.s32.totalorder %s38_s21, 0 }
   0xa   : > { %s1360_s23 = scalar_select %p40_p4, %s1285_s16, %s42_s22  }
   0xc   : > { %202 = sbr.rel (!%p51_p3) target bundleno = 21 (0x15), region = 28  ;;  %s204_s24 = sand.u32 (%p51_p3), 1, %s1285_s16  }
   0xd   : > { %s1163_s25 = smul.u32 (%p51_p3), 12, %s1293_s18 }
   0xe   : > { %s1216_s26 = smul.u32 (%p51_p3), 24, %s204_s24 }
   0xf   : > { %s212_s29 = scalar_lea.vmem (%p51_p3), %s1518_s0, %s1163_s25 }
  0x10   : > { %v227_v0 = vld [vmem:[%s212_s29] sm:$0xff] (%p51_p3)  ;;  %v946_v2 = vld [vmem:[%s212_s29 + $0x8] sm:$0xf] (%p51_p3)  ;;  %s206_s30 = scalar_lea.vmem (%p51_p3), [#allocation3], %s1216_s26  ;;  %v948_v3 = vld [vmem:[%s212_s29 + $0x2c] sm:$0xf] (%p51_p3) }
  0x11   : > { %v229_v1 = vld [vmem:[%s212_s29 + $0x24] sm:$0xff]  ;;  %228 = vst [vmem:[%s206_s30] sm:$0xff] %v227_v0 }
  0x12   : > { %230 = vst [vmem:[%s206_s30 + $0xc] sm:$0xff] %v229_v1 }
  0x13   : > { %947 = vst [vmem:[%s206_s30 + $0x8] sm:$0xf] %v946_v2 }
  0x14   : > { %949 = vst [vmem:[%s206_s30 + $0x14] sm:$0xf] %v948_v3 }
  0x15 PF: > { %p950_p6 = scmp.ge.s32.totalorder %s1297_s19, 1  ;;  %p262_p7 = scmp.lt.s32.totalorder %s1297_s19, 4 }
  0x17   : > { %p263_p8 = pnand %p950_p6, %p262_p7 }
  0x18   : > { %s269_s5 = sand.u32 (!%p263_p8), 1, %s1281_s15   ;;  %s319_s6 = smul.u32 (!%p263_p8), 48, %s1289_s17 }
  0x19   : > { %266 = sbr.rel (%p263_p8) target bundleno = 263 (0x107), region = 58  ;;  %p953_p10 = scmp.ne.s32.totalorder (!%p263_p8), %s1289_s17, 0 }
  0x1a   : > { %s1217_s7 = smul.u32 (!%p263_p8), 24, %s269_s5  ;;  %p321_p9 = scmp.lt.s32.totalorder (!%p263_p8), %s319_s6, 143 }
  0x1c   : > { %s1377_s12 = scalar_lea.vmem (!%p263_p8), [#allocation3], %s1217_s7 }
  0x1e   : > { %s1530_s6 = smov (!%p321_p9, %s319_s6), 143  ;;  %356 = sbr.rel (%p953_p10) target bundleno = 40 (0x28), region = 66 }
  0x1f   : > { %s1164_s8 = sshll.u32 %s1530_s6, 3 }
  0x20   : > { %s1375_s11 = scalar_lea.vmem %s1519_s1, %s1164_s8 }
  0x23   : > { %v1299_v4 = vmov 0.0  }
  0x24   : > { %357 = vst [vmem:[#allocation2 + $0x10] sm:$0xff] %v1299_v4 }
  0x25   : > { %358 = vst [vmem:[#allocation2] sm:$0xff] %v1299_v4 }
  0x26   : > { %359 = vst [vmem:[#allocation2 + $0x18] sm:$0xff] %v1299_v4 }
  0x27   : > { %360 = vst [vmem:[#allocation2 + $0x8] sm:$0xff] %v1299_v4 }
  0x28 PF: > { %v1024_v5 = vld [vmem:[%s1375_s11 + $0x70] sm:$0xf]  ;;  %v1183_v6 = vld [vmem:[%s1375_s11 + $0x74] sm:$0xf0]  ;;  %v1016_v14 = vld [vmem:[%s1375_s11 + $0x60] sm:$0xf] }
  0x29   : > { %v1088_v7 = vld [vmem:[%s1375_s11 + $0xf0] sm:$0xf]  ;;  %v1025_v8 = vor.u32 %v1183_v6, %v1024_v5  ;;  %v1199_v9 = vld [vmem:[%s1375_s11 + $0xf4] sm:$0xf0]  ;;  %v1181_v15 = vld [vmem:[%s1375_s11 + $0x64] sm:$0xf0] }
  0x2a   : > { %v1152_v10 = vld [vmem:[%s1375_s11 + $0x170] sm:$0xf]  ;;  %v1215_v11 = vld [vmem:[%s1375_s11 + $0x174] sm:$0xf0]  ;;  %v1089_v12 = vor.u32 %v1199_v9, %v1088_v7  ;;  %v1080_v16 = vld [vmem:[%s1375_s11 + $0xe0] sm:$0xf]  ;;  %v1017_v17 = vor.u32 %v1181_v15, %v1016_v14 }
  0x2b   : > { %v1153_v13 = vor.u32 %v1215_v11, %v1152_v10  ;;  %673 = vmatpush.bf16.msra.mxu0 %v1025_v8  ;;  %v1197_v18 = vld [vmem:[%s1375_s11 + $0xe4] sm:$0xf0]  ;;  %v1144_v19 = vld [vmem:[%s1375_s11 + $0x160] sm:$0xf]  ;;  %v1008_v23 = vld [vmem:[%s1375_s11 + $0x50] sm:$0xf] }
  0x2c   : > { %v1213_v20 = vld [vmem:[%s1375_s11 + $0x164] sm:$0xf0]  ;;  %687 = vmatpush.bf16.msra.mxu1 %v1089_v12  ;;  %v1081_v21 = vor.u32 %v1197_v18, %v1080_v16  ;;  %v1179_v24 = vld [vmem:[%s1375_s11 + $0x54] sm:$0xf0]  ;;  %v1072_v25 = vld [vmem:[%s1375_s11 + $0xd0] sm:$0xf] }
  0x2d   : > { %701 = vmatpush.bf16.msra.mxu2 %v1153_v13  ;;  %v1145_v22 = vor.u32 %v1213_v20, %v1144_v19  ;;  %v1195_v26 = vld [vmem:[%s1375_s11 + $0xd4] sm:$0xf0]  ;;  %v1136_v27 = vld [vmem:[%s1375_s11 + $0x150] sm:$0xf]  ;;  %v1009_v29 = vor.u32 %v1179_v24, %v1008_v23  ;;  %v1000_v30 = vld [vmem:[%s1375_s11 + $0x40] sm:$0xf] }
  0x2e   : > { %v1211_v28 = vld [vmem:[%s1375_s11 + $0x154] sm:$0xf0]  ;;  %v1177_v31 = vld [vmem:[%s1375_s11 + $0x44] sm:$0xf0]  ;;  %v1073_v32 = vor.u32 %v1195_v26, %v1072_v25  ;;  %v1064_v34 = vld [vmem:[%s1375_s11 + $0xc0] sm:$0xf] }
  0x2f   : > { %674 = vmatpush.bf16.msra.mxu0 %v1017_v17  ;;  %v1137_v33 = vor.u32 %v1211_v28, %v1136_v27  ;;  %v1182_v35 = vld [vmem:[%s1375_s11 + $0x74] sm:$0xf]  ;;  %v1026_v36 = vld [vmem:[%s1375_s11 + $0x78] sm:$0xf0]  ;;  %v1193_v37 = vld [vmem:[%s1375_s11 + $0xc4] sm:$0xf0]  ;;  %v1001_v42 = vor.u32 %v1177_v31, %v1000_v30 }
  0x30   : > { %688 = vmatpush.bf16.msra.mxu1 %v1081_v21  ;;  %v1128_v38 = vld [vmem:[%s1375_s11 + $0x140] sm:$0xf]  ;;  %v1209_v39 = vld [vmem:[%s1375_s11 + $0x144] sm:$0xf0]  ;;  %v1029_v40 = vor.u32 %v1182_v35, %v1026_v36  ;;  %v1180_v41 = vld [vmem:[%s1375_s11 + $0x64] sm:$0xf]  ;;  %v1065_v46 = vor.u32 %v1193_v37, %v1064_v34 }
  0x31   : > { %702 = vmatpush.bf16.msra.mxu2 %v1145_v22  ;;  %v992_v43 = vld [vmem:[%s1375_s11 + $0x30] sm:$0xf]  ;;  %v1175_v44 = vld [vmem:[%s1375_s11 + $0x34] sm:$0xf0]  ;;  %v1018_v45 = vld [vmem:[%s1375_s11 + $0x68] sm:$0xf0]  ;;  %v1129_v47 = vor.u32 %v1209_v39, %v1128_v38 }
  0x32   : > { %715 = vmatpush.bf16.msra.mxu3 %v1029_v40  ;;  %v1056_v48 = vld [vmem:[%s1375_s11 + $0xb0] sm:$0xf]  ;;  %v1191_v49 = vld [vmem:[%s1375_s11 + $0xb4] sm:$0xf0]  ;;  %v1021_v51 = vor.u32 %v1180_v41, %v1018_v45  ;;  %v1178_v53 = vld [vmem:[%s1375_s11 + $0x54] sm:$0xf]  ;;  %v993_v55 = vor.u32 %v1175_v44, %v992_v43 }
  0x33   : > { %675 = vmatpush.bf16.msra.mxu0 %v1009_v29  ;;  %v1120_v50 = vld [vmem:[%s1375_s11 + $0x130] sm:$0xf]  ;;  %v1207_v52 = vld [vmem:[%s1375_s11 + $0x134] sm:$0xf0]  ;;  %v1010_v54 = vld [vmem:[%s1375_s11 + $0x58] sm:$0xf0]  ;;  %v1057_v59 = vor.u32 %v1191_v49, %v1056_v48 }
  0x34   : > { %689 = vmatpush.bf16.msra.mxu1 %v1073_v32  ;;  %v984_v56 = vld [vmem:[%s1375_s11 + $0x20] sm:$0xf]  ;;  %v1173_v57 = vld [vmem:[%s1375_s11 + $0x24] sm:$0xf0]  ;;  %v1013_v58 = vor.u32 %v1178_v53, %v1010_v54  ;;  %v1121_v60 = vor.u32 %v1207_v52, %v1120_v50  ;;  %v1176_v62 = vld [vmem:[%s1375_s11 + $0x44] sm:$0xf] }
  0x35   : > { %703 = vmatpush.bf16.msra.mxu2 %v1137_v33  ;;  %v1048_v61 = vld [vmem:[%s1375_s11 + $0xa0] sm:$0xf]  ;;  %v1002_v63 = vld [vmem:[%s1375_s11 + $0x48] sm:$0xf0]  ;;  %v1189_v0 = vld [vmem:[%s1375_s11 + $0xa4] sm:$0xf0]  ;;  %v985_v3 = vor.u32 %v1173_v57, %v984_v56 }
  0x36   : > { %716 = vmatpush.bf16.msra.mxu3 %v1021_v51  ;;  %v1112_v1 = vld [vmem:[%s1375_s11 + $0x120] sm:$0xf]  ;;  %v1205_v2 = vld [vmem:[%s1375_s11 + $0x124] sm:$0xf0]  ;;  %v976_v4 = vld [vmem:[%s1375_s11 + $0x10] sm:$0xf]  ;;  %v1005_v6 = vor.u32 %v1176_v62, %v1002_v63  ;;  %v1049_v7 = vor.u32 %v1189_v0, %v1048_v61 }
  0x37   : > { %676 = vmatpush.bf16.msra.mxu0 %v1001_v42  ;;  %v1171_v5 = vld [vmem:[%s1375_s11 + $0x14] sm:$0xf0]  ;;  %v1113_v8 = vor.u32 %v1205_v2, %v1112_v1  ;;  %v1040_v9 = vld [vmem:[%s1375_s11 + $0x90] sm:$0xf]  ;;  %v1174_v10 = vld [vmem:[%s1375_s11 + $0x34] sm:$0xf] }
  0x38   : > { %690 = vmatpush.bf16.msra.mxu1 %v1065_v46  ;;  %v994_v11 = vld [vmem:[%s1375_s11 + $0x38] sm:$0xf0]  ;;  %v1187_v12 = vld [vmem:[%s1375_s11 + $0x94] sm:$0xf0]  ;;  %v1104_v13 = vld [vmem:[%s1375_s11 + $0x110] sm:$0xf]  ;;  %v977_v15 = vor.u32 %v1171_v5, %v976_v4 }
  0x39   : > { %704 = vmatpush.bf16.msra.mxu2 %v1129_v47  ;;  %v1203_v14 = vld [vmem:[%s1375_s11 + $0x114] sm:$0xf0]  ;;  %v968_v16 = vld [vmem:[%s1375_s11] sm:$0xf]  ;;  %v1169_v17 = vld [vmem:[%s1375_s11 + $0x4] sm:$0xf0]  ;;  %v997_v19 = vor.u32 %v1174_v10, %v994_v11  ;;  %v1041_v20 = vor.u32 %v1187_v12, %v1040_v9 }
  0x3a   : > { %717 = vmatpush.bf16.msra.mxu3 %v1013_v58  ;;  %v1032_v18 = vld [vmem:[%s1375_s11 + $0x80] sm:$0xf]  ;;  %v1105_v21 = vor.u32 %v1203_v14, %v1104_v13  ;;  %v1185_v22 = vld [vmem:[%s1375_s11 + $0x84] sm:$0xf0]  ;;  %v1172_v23 = vld [vmem:[%s1375_s11 + $0x24] sm:$0xf]  ;;  %v969_v31 = vor.u32 %v1169_v17, %v968_v16 }
  0x3b   : > { %677 = vmatpush.bf16.msra.mxu0 %v993_v55  ;;  %v986_v24 = vld [vmem:[%s1375_s11 + $0x28] sm:$0xf0]  ;;  %v1096_v25 = vld [vmem:[%s1375_s11 + $0x100] sm:$0xf]  ;;  %v1201_v26 = vld [vmem:[%s1375_s11 + $0x104] sm:$0xf0]  ;;  %v1033_v36 = vor.u32 %v1185_v22, %v1032_v18 }
  0x3c   : > { %691 = vmatpush.bf16.msra.mxu1 %v1057_v59  ;;  %v1198_v27 = vld [vmem:[%s1375_s11 + $0xf4] sm:$0xf]  ;;  %v1090_v28 = vld [vmem:[%s1375_s11 + $0xf8] sm:$0xf0]  ;;  %v964_v32 = vld [vmem:[%s1377_s12 + $0x8] sm:$0xf]  ;;  %v989_v33 = vor.u32 %v1172_v23, %v986_v24  ;;  %v1097_v37 = vor.u32 %v1201_v26, %v1096_v25 }
  0x3d   : > { %705 = vmatpush.bf16.msra.mxu2 %v1121_v60  ;;  %v1214_v29 = vld [vmem:[%s1375_s11 + $0x174] sm:$0xf]  ;;  %v1154_v30 = vld [vmem:[%s1375_s11 + $0x178] sm:$0xf0]  ;;  %v956_v34 = vld [vmem:[%s1377_s12] sm:$0xf]  ;;  %v1093_v41 = vor.u32 %v1198_v27, %v1090_v28 }
  0x3e   : > { %718 = vmatpush.bf16.msra.mxu3 %v1005_v6  ;;  %v1166_v35 = vld [vmem:[%s1377_s12 + $0x8] sm:$0xf0]  ;;  %v1167_v38 = vld [vmem:[%s1377_s12 + $0x10] sm:$0xf0]  ;;  %v1165_v39 = vld [vmem:[%s1377_s12 + $0x4] sm:$0xf]  ;;  %v1157_v42 = vor.u32 %v1214_v29, %v1154_v30 }
  0x3f   : > { %678 = vmatpush.bf16.msra.mxu0 %v985_v3  ;;  %v958_v40 = vld [vmem:[%s1377_s12 + $0xc] sm:$0xf0]  ;;  %v1196_v43 = vld [vmem:[%s1375_s11 + $0xe4] sm:$0xf]  ;;  %v1170_v44 = vld [vmem:[%s1375_s11 + $0x14] sm:$0xf]  ;;  %v957_v49 = vor.u32 %v1166_v35, %v956_v34  ;;  %v1456_v50 = vor.u32 %v1167_v38, %v964_v32 }
  0x40   : > { %692 = vmatpush.bf16.msra.mxu1 %v1049_v7  ;;  %v978_v45 = vld [vmem:[%s1375_s11 + $0x18] sm:$0xf0]  ;;  %v1082_v46 = vld [vmem:[%s1375_s11 + $0xe8] sm:$0xf0]  ;;  %v1212_v47 = vld [vmem:[%s1375_s11 + $0x164] sm:$0xf]  ;;  %v1458_v51 = vor.u32 %v1165_v39, %v958_v40 }
  0x41   : > { %706 = vmatpush.bf16.msra.mxu2 %v1113_v8  ;;  %v1146_v48 = vld [vmem:[%s1375_s11 + $0x168] sm:$0xf0]  ;;  %v981_v52 = vor.u32 %v1170_v44, %v978_v45  ;;  %v1085_v53 = vor.u32 %v1196_v43, %v1082_v46  ;;  %v1194_v55 = vld [vmem:[%s1375_s11 + $0xd4] sm:$0xf]  ;;  %v1168_v56 = vld [vmem:[%s1375_s11 + $0x4] sm:$0xf] }
  0x42   : > { %719 = vmatpush.bf16.msra.mxu3 %v997_v19  ;;  %v1149_v54 = vor.u32 %v1212_v47, %v1146_v48  ;;  %v970_v57 = vld [vmem:[%s1375_s11 + $0x8] sm:$0xf0]  ;;  %v1074_v58 = vld [vmem:[%s1375_s11 + $0xd8] sm:$0xf0]  ;;  %v1210_v59 = vld [vmem:[%s1375_s11 + $0x154] sm:$0xf] }
  0x43   : > { %679 = vmatpush.bf16.msra.mxu0 %v977_v15  ;;  %v1138_v60 = vld [vmem:[%s1375_s11 + $0x158] sm:$0xf0]  ;;  %v973_v61 = vor.u32 %v1168_v56, %v970_v57  ;;  %v1077_v62 = vor.u32 %v1194_v55, %v1074_v58  ;;  %v1192_v0 = vld [vmem:[%s1375_s11 + $0xc4] sm:$0xf]  ;;  %v1066_v1 = vld [vmem:[%s1375_s11 + $0xc8] sm:$0xf0] }
  0x44   : > { %693 = vmatpush.bf16.msra.mxu1 %v1041_v20  ;;  %v1141_v63 = vor.u32 %v1210_v59, %v1138_v60  ;;  %v1208_v2 = vld [vmem:[%s1375_s11 + $0x144] sm:$0xf]  ;;  %v1130_v3 = vld [vmem:[%s1375_s11 + $0x148] sm:$0xf0]  ;;  %v1069_v4 = vor.u32 %v1192_v0, %v1066_v1  ;;  %v1190_v6 = vld [vmem:[%s1375_s11 + $0xb4] sm:$0xf] }
  0x45   : > { %707 = vmatpush.bf16.msra.mxu2 %v1105_v21  ;;  %v1133_v5 = vor.u32 %v1208_v2, %v1130_v3  ;;  %v1058_v7 = vld [vmem:[%s1375_s11 + $0xb8] sm:$0xf0]  ;;  %v1206_v8 = vld [vmem:[%s1375_s11 + $0x134] sm:$0xf]  ;;  %v1188_v12 = vld [vmem:[%s1375_s11 + $0xa4] sm:$0xf] }
  0x46   : > { %720 = vmatpush.bf16.msra.mxu3 %v989_v33  ;;  %v1122_v9 = vld [vmem:[%s1375_s11 + $0x138] sm:$0xf0]  ;;  %v1061_v10 = vor.u32 %v1190_v6, %v1058_v7  ;;  %v1050_v13 = vld [vmem:[%s1375_s11 + $0xa8] sm:$0xf0]  ;;  %v1204_v14 = vld [vmem:[%s1375_s11 + $0x124] sm:$0xf] }
  0x47   : > { %680 = vmatpush.bf16.msra.mxu0 %v969_v31  ;;  %v1125_v11 = vor.u32 %v1206_v8, %v1122_v9  ;;  %v1114_v15 = vld [vmem:[%s1375_s11 + $0x128] sm:$0xf0]  ;;  %v1053_v16 = vor.u32 %v1188_v12, %v1050_v13  ;;  %v1186_v18 = vld [vmem:[%s1375_s11 + $0x94] sm:$0xf]  ;;  %v1042_v19 = vld [vmem:[%s1375_s11 + $0x98] sm:$0xf0] }
  0x48   : > { %694 = vmatpush.bf16.msra.mxu1 %v1033_v36  ;;  %v1117_v17 = vor.u32 %v1204_v14, %v1114_v15  ;;  %v1202_v20 = vld [vmem:[%s1375_s11 + $0x114] sm:$0xf]  ;;  %v1106_v21 = vld [vmem:[%s1375_s11 + $0x118] sm:$0xf0]  ;;  %v1045_v22 = vor.u32 %v1186_v18, %v1042_v19  ;;  %v1184_v24 = vld [vmem:[%s1375_s11 + $0x84] sm:$0xf] }
  0x49   : > { %708 = vmatpush.bf16.msra.mxu2 %v1097_v37  ;;  %v1109_v23 = vor.u32 %v1202_v20, %v1106_v21  ;;  %v1034_v25 = vld [vmem:[%s1375_s11 + $0x88] sm:$0xf0]  ;;  %v1200_v26 = vld [vmem:[%s1375_s11 + $0x104] sm:$0xf]  ;;  %v361_v33 = vld [vmem:[#allocation2 + $0x10] sm:$0xff]  ;;  %p1158_p11 = scmp.ne.s32.totalorder %s1289_s17, 2 }
  0x4a   : > { %681 = vmatmul.bf16.vlgmr.msra.gmra.mxu0 %v957_v49  ;;  %721 = vmatpush.bf16.msra.mxu3 %v981_v52  ;;  %v1098_v27 = vld [vmem:[%s1375_s11 + $0x108] sm:$0xf0]  ;;  %v1037_v28 = vor.u32 %v1184_v24, %v1034_v25  ;;  %v363_v40 = vld [vmem:[#allocation2 + $0x18] sm:$0xff]  ;;  %v362_v48 = vld [vmem:[#allocation2] sm:$0xff] }
  0x4b   : > { %729 = vmatpush.bf16.msrb.mxu0 %v1093_v41  ;;  %695 = vmatmul.bf16.vlgmr.msra.gmra.mxu1 %v1458_v51  ;;  %v1101_v29 = vor.u32 %v1200_v26, %v1098_v27 }
  0x4c   : > { %743 = vmatpush.bf16.msrb.mxu1 %v1157_v42  ;;  %709 = vmatmul.bf16.vlgmr.msra.gmra.mxu2 %v1456_v50 }
  0x4e   : > { %722 = vmatpush.bf16.msra.mxu3 %v973_v61 }
  0x4f   : > { %730 = vmatpush.bf16.msrb.mxu0 %v1085_v53 }
  0x50   : > { %744 = vmatpush.bf16.msrb.mxu1 %v1149_v54  ;;  %v364_v54 = vld [vmem:[#allocation2 + $0x8] sm:$0xff] }
  0x51   : > { %723 = vmatmul.bf16.vlgmr.msra.gmra.mxu3 %v957_v49 }
  0x53   : > { %731 = vmatpush.bf16.msrb.mxu0 %v1077_v62 }
  0x54   : > { %745 = vmatpush.bf16.msrb.mxu1 %v1141_v63 }
  0x57   : > { %732 = vmatpush.bf16.msrb.mxu0 %v1069_v4 }
  0x58   : > { %746 = vmatpush.bf16.msrb.mxu1 %v1133_v5 }
  0x5b   : > { %733 = vmatpush.bf16.msrb.mxu0 %v1061_v10 }
  0x5c   : > { %747 = vmatpush.bf16.msrb.mxu1 %v1125_v11 }
  0x5f   : > { %734 = vmatpush.bf16.msrb.mxu0 %v1053_v16 }
  0x60   : > { %748 = vmatpush.bf16.msrb.mxu1 %v1117_v17 }
  0x63   : > { %735 = vmatpush.bf16.msrb.mxu0 %v1045_v22 }
  0x64   : > { %749 = vmatpush.bf16.msrb.mxu1 %v1109_v23 }
  0x67   : > { %736 = vmatpush.bf16.msrb.mxu0 %v1037_v28 }
  0x68   : > { %750 = vmatpush.bf16.msrb.mxu1 %v1101_v29 }
  0x6a   : > { %737 = vmatmul.bf16.vlgmr.msrb.gmra.mxu0 %v1458_v51 }
  0x6b   : > { %751 = vmatmul.bf16.vlgmr.msrb.gmra.mxu1 %v1456_v50 }
  0xc7   : > { %v682_v30 = vpop.f32.mrf.mxu0 }
  0xc8   : > { %v696_v31 = vpop.f32.mrf.mxu1 }
  0xc9   : > { %v697_v32 = vadd.f32 %v696_v31, %v682_v30 }
  0xcf   : > { %v710_v34 = vpop.f32.mrf.mxu2  ;;  %v684_v36 = vpop.f32.mrf.mxu0 }
  0xd0   : > { %v711_v35 = vadd.f32 %v710_v34, %v697_v32  ;;  %v698_v37 = vpop.f32.mrf.mxu1 }
  0xd1   : > { %v699_v39 = vadd.f32 %v698_v37, %v684_v36 }
  0xd2   : > { %v757_v38 = vadd.f32 %v711_v35, %v361_v33 }
  0xd4   : > { %761 = vst [vmem:[#allocation2 + $0x10] sm:$0xff] %v757_v38  ;;  %v724_v44 = vpop.f32.mrf.mxu3 }
  0xd7   : > { %v712_v41 = vpop.f32.mrf.mxu2 }
  0xd8   : > { %v713_v42 = vadd.f32 %v712_v41, %v699_v39 }
  0xda   : > { %v759_v43 = vadd.f32 %v713_v42, %v363_v40 }
  0xdc   : > { %763 = vst [vmem:[#allocation2 + $0x18] sm:$0xff] %v759_v43  ;;  %v726_v51 = vpop.f32.mrf.mxu3 }
  0xe7   : > { %v738_v45 = vpop.f32.mrf.mxu0 }
  0xe8   : > { %v752_v46 = vpop.f32.mrf.mxu1  ;;  %v739_v47 = vadd.f32 %v738_v45, %v724_v44 }
  0xea   : > { %v753_v49 = vadd.f32 %v752_v46, %v739_v47 }
  0xec   : > { %v758_v50 = vadd.f32 %v753_v49, %v362_v48 }
  0xee   : > { %762 = vst [vmem:[#allocation2] sm:$0xff] %v758_v50 }
  0xef   : > { %v740_v52 = vpop.f32.mrf.mxu0 }
  0xf0   : > { %v741_v53 = vadd.f32 %v740_v52, %v726_v51  ;;  %v754_v55 = vpop.f32.mrf.mxu1 }
  0xf2   : > { %v755_v56 = vadd.f32 %v754_v55, %v741_v53  ;;  %768 = sbr.rel (%p1158_p11) target bundleno = 263 (0x107), region = 70 }
  0xf4   : > { %v760_v57 = vadd.f32 %v755_v56, %v364_v54 }
  0xf6   : > { %764 = vst [vmem:[#allocation2 + $0x8] sm:$0xff] %v760_v57 }
  0xf7   : > { %v769_v58 = vld [vmem:[#allocation2 + $0x10] sm:$0xff]  ;;  %v770_v59 = vld [vmem:[#allocation2] sm:$0xff]  ;;  %v771_v0 = vld [vmem:[#allocation2 + $0x18] sm:$0xff] }
  0xf8   : > { %v773_v60 = vld [vmem:[%s1520_s2] sm:$0x3] }
  0xf9   : > { %v775_v61 = vperm.slane %v773_v60, 0  ;;  %v776_v62 = vperm.slane %v773_v60, 1  ;;  %v783_v63 = vld [vmem:[%s1521_s3] sm:$0x3] }
  0xfa   : > { %v785_v2 = vperm.slane %v783_v63, 0  ;;  %v786_v3 = vperm.slane %v783_v63, 1 }
  0xfb   : > { %v779_v4 = vmul.f32 %v775_v61, %v769_v58  ;;  %v780_v5 = vmul.f32 %v776_v62, %v770_v59  ;;  %v781_v6 = vmul.f32 %v775_v61, %v771_v0 }
  0xfd   : > { %v772_v1 = vld [vmem:[#allocation2 + $0x8] sm:$0xff]  ;;  %v789_v8 = vadd.f32 %v785_v2, %v779_v4  ;;  %v790_v9 = vadd.f32 %v786_v3, %v780_v5  ;;  %v791_v10 = vadd.f32 %v785_v2, %v781_v6 }
  0xfe   : > { %v782_v7 = vmul.f32 %v776_v62, %v772_v1 }
  0xff   : > { %v793_v12 = vmax.f32 %v789_v8, 0.0  ;;  %v794_v13 = vmax.f32 %v790_v9, 0.0  ;;  %v795_v14 = vmax.f32 %v791_v10, 0.0 }
 0x100   : > { %v792_v11 = vadd.f32 %v786_v3, %v782_v7 }
 0x101   : > { %v797_v16 = vpack.c.bf16 %v794_v13, %v793_v12 }
 0x102   : > { %v796_v15 = vmax.f32 %v792_v11, 0.0 }
 0x103   : > { %799 = vst [vmem:[%s1522_s4] sm:$0xff] %v797_v16 }
 0x104   : > { %v798_v17 = vpack.c.bf16 %v796_v15, %v795_v14 }
 0x106   : > { %800 = vst [vmem:[%s1522_s4 + $0x8] sm:$0xff] %v798_v17 }
 0x107 PF: > { %s14_s19 = sadd.s32 1, %s1297_s19   ;;  %s1523_s15 = smov %s1285_s16 }
 0x108   : > { %p11_p12 = scmp.ge.s32.totalorder %s14_s19, 5   ;;  %s1524_s16 = smov %s1360_s23 }
 0x109   : > { %s1525_s17 = smov %s1293_s18  ;;  %s1526_s18 = smov %s1528_s20 }
 0x10a   :  { %13 = sbr.rel (!%p11_p12) target bundleno = 3 (0x3), region = 120 }

// kernel: _lambda_.20
= control target key start
LH: loop header
LB: loop body
LE: loop exit
PB: predicated region body
PF: predicated region fallthrough
CT: control target
= control target key end

     0   :  { %s425_s1 = inlined_call_operand.vmem [shape: bf16[128,256], index: 1, kind: input, shape index: {}]   ;;  %s426_s0 = inlined_call_operand.vmem [shape: bf16[16,128], index: 0, kind: input, shape index: {}]   ;;  %s427_s2 = inlined_call_operand.vmem [shape: f32[1,256], index: 2, kind: input, shape index: {}]   ;;  %s428_s3 = inlined_call_operand.vmem [shape: f32[1,256], index: 3, kind: input, shape index: {}]   ;;  %s429_s4 = inlined_call_operand.vmem [shape: bf16[16,256], index: 4, kind: output, shape index: {}]  }
   0x1   :  { %v266_v0 = vld [vmem:[%s425_s1 + $0x70] sm:$0xf]  ;;  %v288_v1 = vld [vmem:[%s425_s1 + $0x74] sm:$0xf0]  ;;  %v287_v2 = vld [vmem:[%s425_s1 + $0x74] sm:$0xf] }
   0x2   :  { %v267_v3 = vor.u32 %v288_v1, %v266_v0  ;;  %v268_v4 = vld [vmem:[%s425_s1 + $0x78] sm:$0xf0]  ;;  %v258_v5 = vld [vmem:[%s425_s1 + $0x60] sm:$0xf]  ;;  %v286_v6 = vld [vmem:[%s425_s1 + $0x64] sm:$0xf0] }
   0x3   :  { %v271_v7 = vor.u32 %v287_v2, %v268_v4  ;;  %v285_v8 = vld [vmem:[%s425_s1 + $0x64] sm:$0xf]  ;;  %v260_v9 = vld [vmem:[%s425_s1 + $0x68] sm:$0xf0]  ;;  %v259_v10 = vor.u32 %v286_v6, %v258_v5  ;;  %v250_v12 = vld [vmem:[%s425_s1 + $0x50] sm:$0xf] }
   0x4   :  { %133 = vmatpush.bf16.msra.mxu0 %v267_v3  ;;  %v263_v11 = vor.u32 %v285_v8, %v260_v9  ;;  %v284_v13 = vld [vmem:[%s425_s1 + $0x54] sm:$0xf0]  ;;  %v283_v14 = vld [vmem:[%s425_s1 + $0x54] sm:$0xf]  ;;  %v252_v15 = vld [vmem:[%s425_s1 + $0x58] sm:$0xf0] }
   0x5   :  { %147 = vmatpush.bf16.msra.mxu1 %v271_v7  ;;  %v251_v16 = vor.u32 %v284_v13, %v250_v12  ;;  %v255_v17 = vor.u32 %v283_v14, %v252_v15  ;;  %v242_v18 = vld [vmem:[%s425_s1 + $0x40] sm:$0xf]  ;;  %v282_v19 = vld [vmem:[%s425_s1 + $0x44] sm:$0xf0]  ;;  %v281_v20 = vld [vmem:[%s425_s1 + $0x44] sm:$0xf] }
   0x6   :  { %v244_v21 = vld [vmem:[%s425_s1 + $0x48] sm:$0xf0]  ;;  %v243_v22 = vor.u32 %v282_v19, %v242_v18  ;;  %v234_v24 = vld [vmem:[%s425_s1 + $0x30] sm:$0xf]  ;;  %v280_v25 = vld [vmem:[%s425_s1 + $0x34] sm:$0xf0] }
   0x7   :  { %v247_v23 = vor.u32 %v281_v20, %v244_v21  ;;  %v279_v26 = vld [vmem:[%s425_s1 + $0x34] sm:$0xf]  ;;  %v236_v27 = vld [vmem:[%s425_s1 + $0x38] sm:$0xf0]  ;;  %v235_v28 = vor.u32 %v280_v25, %v234_v24  ;;  %v226_v30 = vld [vmem:[%s425_s1 + $0x20] sm:$0xf] }
   0x8   :  { %134 = vmatpush.bf16.msra.mxu0 %v259_v10  ;;  %v239_v29 = vor.u32 %v279_v26, %v236_v27  ;;  %v278_v31 = vld [vmem:[%s425_s1 + $0x24] sm:$0xf0]  ;;  %v277_v32 = vld [vmem:[%s425_s1 + $0x24] sm:$0xf]  ;;  %v228_v33 = vld [vmem:[%s425_s1 + $0x28] sm:$0xf0] }
   0x9   :  { %148 = vmatpush.bf16.msra.mxu1 %v263_v11  ;;  %v227_v34 = vor.u32 %v278_v31, %v226_v30  ;;  %v231_v35 = vor.u32 %v277_v32, %v228_v33  ;;  %v218_v36 = vld [vmem:[%s425_s1 + $0x10] sm:$0xf]  ;;  %v276_v37 = vld [vmem:[%s425_s1 + $0x14] sm:$0xf0]  ;;  %v275_v38 = vld [vmem:[%s425_s1 + $0x14] sm:$0xf] }
   0xa   :  { %v220_v39 = vld [vmem:[%s425_s1 + $0x18] sm:$0xf0]  ;;  %v219_v40 = vor.u32 %v276_v37, %v218_v36  ;;  %v210_v42 = vld [vmem:[%s425_s1] sm:$0xf]  ;;  %v274_v43 = vld [vmem:[%s425_s1 + $0x4] sm:$0xf0] }
   0xb   :  { %v223_v41 = vor.u32 %v275_v38, %v220_v39  ;;  %v273_v44 = vld [vmem:[%s425_s1 + $0x4] sm:$0xf]  ;;  %v212_v45 = vld [vmem:[%s425_s1 + $0x8] sm:$0xf0]  ;;  %v211_v46 = vor.u32 %v274_v43, %v210_v42  ;;  %v176_v49 = vld [vmem:[%s427_s2] sm:$0x3] }
   0xc   :  { %135 = vmatpush.bf16.msra.mxu0 %v251_v16  ;;  %v215_v47 = vor.u32 %v273_v44, %v212_v45  ;;  %v272_v48 = vld [vmem:[%s426_s0] sm:$0xff]  ;;  %v178_v51 = vperm.slane %v176_v49, 0  ;;  %v179_v52 = vperm.slane %v176_v49, 1 }
   0xd   :  { %149 = vmatpush.bf16.msra.mxu1 %v255_v17  ;;  %v186_v50 = vld [vmem:[%s428_s3] sm:$0x3] }
   0xe   :  { %v188_v53 = vperm.slane %v186_v50, 0  ;;  %v189_v55 = vperm.slane %v186_v50, 1 }
  0x10   :  { %136 = vmatpush.bf16.msra.mxu0 %v243_v22 }
  0x11   :  { %150 = vmatpush.bf16.msra.mxu1 %v247_v23 }
  0x14   :  { %137 = vmatpush.bf16.msra.mxu0 %v235_v28 }
  0x15   :  { %151 = vmatpush.bf16.msra.mxu1 %v239_v29 }
  0x18   :  { %138 = vmatpush.bf16.msra.mxu0 %v227_v34 }
  0x19   :  { %152 = vmatpush.bf16.msra.mxu1 %v231_v35 }
  0x1c   :  { %139 = vmatpush.bf16.msra.mxu0 %v219_v40 }
  0x1d   :  { %153 = vmatpush.bf16.msra.mxu1 %v223_v41 }
  0x20   :  { %140 = vmatpush.bf16.msra.mxu0 %v211_v46 }
  0x21   :  { %154 = vmatpush.bf16.msra.mxu1 %v215_v47 }
  0x23   :  { %141 = vmatmul.bf16.vlgmr.msra.gmra.mxu0 %v272_v48 }
  0x24   :  { %155 = vmatmul.bf16.vlgmr.msra.gmra.mxu1 %v272_v48 }
  0xa0   :  { %v142_v54 = vpop.f32.mrf.mxu0 }
  0xa1   :  { %v182_v56 = vmul.f32 %v178_v51, %v142_v54  ;;  %v156_v57 = vpop.f32.mrf.mxu1 }
  0xa2   :  { %v183_v58 = vmul.f32 %v179_v52, %v156_v57 }
  0xa3   :  { %v192_v59 = vadd.f32 %v188_v53, %v182_v56 }
  0xa4   :  { %v193_v60 = vadd.f32 %v189_v55, %v183_v58 }
  0xa6   :  { %v196_v61 = vpack.c.bf16 %v193_v60, %v192_v59 }
  0xa8   :  { %198 = vst [vmem:[%s429_s4] sm:$0xff] %v196_v61  ;;  %v144_v62 = vpop.f32.mrf.mxu0 }
  0xa9   :  { %v184_v63 = vmul.f32 %v178_v51, %v144_v62  ;;  %v158_v0 = vpop.f32.mrf.mxu1 }
  0xaa   :  { %v185_v1 = vmul.f32 %v179_v52, %v158_v0 }
  0xab   :  { %v194_v2 = vadd.f32 %v188_v53, %v184_v63 }
  0xac   :  { %v195_v3 = vadd.f32 %v189_v55, %v185_v1 }
  0xae   :  { %v197_v4 = vpack.c.bf16 %v195_v3, %v194_v2 }
  0xb0   :  { %199 = vst [vmem:[%s429_s4 + $0x8] sm:$0xff] %v197_v4 }

// kernel: _lambda_.21
= control target key start
LH: loop header
LB: loop body
LE: loop exit
PB: predicated region body
PF: predicated region fallthrough
CT: control target
= control target key end

     0   :  { %s1430_s18 = smov 0   ;;  %s1432_s19 = smov 0   ;;  %s1629_s0 = inlined_call_operand.vmem [shape: bf16[16,2304], index: 0, kind: input, shape index: {}]   ;;  %s1630_s1 = inlined_call_operand.vmem [shape: bf16[2304,256], index: 1, kind: input, shape index: {}]   ;;  %s1631_s2 = inlined_call_operand.vmem [shape: f32[1,256], index: 2, kind: input, shape index: {}]   ;;  %s1632_s3 = inlined_call_operand.vmem [shape: f32[1,256], index: 3, kind: input, shape index: {}]   ;;  %s1633_s4 = inlined_call_operand.vmem [shape: bf16[16,256], index: 4, kind: input, shape index: {}]   ;;  %s1634_s5 = inlined_call_operand.vmem [shape: bf16[16,256], index: 5, kind: output, shape index: {}]  }
   0x1   :  { %s1434_s20 = smov 0   ;;  %s1436_s21 = smov 0  }
   0x2   :  { %s1438_s22 = smov 0  }
   0x3 LB: > { %s27_s23 = sadd.s32 1, %s1393_s21  ;;  %p50_p1 = scmp.ne.s32.totalorder %s1385_s19, %s1381_s18  ;;  %s1397_s22 = sphi %s1438_s22, %s15_s22   ;;  %s1393_s21 = sphi %s1436_s21, %s1638_s21   ;;  %s1389_s20 = sphi %s1434_s20, %s1637_s20   ;;  %s1385_s19 = sphi %s1432_s19, %s1636_s19   ;;  %s1381_s18 = sphi %s1430_s18, %s1635_s18  }
   0x4   : > { %p28_p0 = scmp.ge.s32.totalorder %s27_s23, 6  ;;  %p51_p2 = scmp.eq.s32.totalorder %s1397_s22, 0 }
   0x5   : > { %s43_s25 = sadd.s32 1, %s1385_s19  ;;  %p1044_p5 = scmp.ge.s32.totalorder %s1397_s22, 6 }
   0x6   : > { %s1640_s23 = smov (%p28_p0, %s27_s23), 0  ;;  %p52_p3 = por %p51_p2, %p50_p1 }
   0x7   : > { %s39_s24 = ssub.s32 %s1393_s21, %s1640_s23  ;;  %243 = sbr.rel (%p1044_p5) target bundleno = 21 (0x15), region = 28 }
   0x8   : > { %p41_p4 = scmp.eq.s32.totalorder %s39_s24, 0 }
   0xa   : > { %s1465_s26 = scalar_select %p41_p4, %s1385_s19, %s43_s25  }
   0xc   : > { %246 = sbr.rel (!%p52_p3) target bundleno = 21 (0x15), region = 32  ;;  %s248_s27 = sand.u32 (%p52_p3), 1, %s1385_s19  }
   0xd   : > { %s1263_s28 = smul.u32 (%p52_p3), 12, %s1393_s21 }
   0xe   : > { %s1316_s29 = smul.u32 (%p52_p3), 24, %s248_s27 }
   0xf   : > { %s256_s7 = scalar_lea.vmem (%p52_p3), %s1629_s0, %s1263_s28 }
  0x10   : > { %v271_v0 = vld [vmem:[%s256_s7] sm:$0xff] (%p52_p3)  ;;  %v273_v1 = vld [vmem:[%s256_s7 + $0x48] sm:$0xff] (%p52_p3)  ;;  %s250_s8 = scalar_lea.vmem (%p52_p3), [#allocation3], %s1316_s29  ;;  %v1048_v3 = vld [vmem:[%s256_s7 + $0x50] sm:$0xf] (%p52_p3) }
  0x11   : > { %v1046_v2 = vld [vmem:[%s256_s7 + $0x8] sm:$0xf]  ;;  %272 = vst [vmem:[%s250_s8] sm:$0xff] %v271_v0 }
  0x12   : > { %274 = vst [vmem:[%s250_s8 + $0xc] sm:$0xff] %v273_v1 }
  0x13   : > { %1047 = vst [vmem:[%s250_s8 + $0x8] sm:$0xf] %v1046_v2 }
  0x14   : > { %1049 = vst [vmem:[%s250_s8 + $0x14] sm:$0xf] %v1048_v3 }
  0x15 PF: > { %p1050_p6 = scmp.ge.s32.totalorder %s1397_s22, 1  ;;  %p306_p7 = scmp.lt.s32.totalorder %s1397_s22, 7 }
  0x17   : > { %p307_p8 = pnand %p1050_p6, %p306_p7 }
  0x18   : > { %s313_s9 = sand.u32 (!%p307_p8), 1, %s1381_s18   ;;  %s375_s10 = smul.u32 (!%p307_p8), 48, %s1389_s20 }
  0x19   : > { %310 = sbr.rel (%p307_p8) target bundleno = 265 (0x109), region = 62  ;;  %p1053_p10 = scmp.ne.s32.totalorder (!%p307_p8), %s1389_s20, 0 }
  0x1a   : > { %s1317_s11 = smul.u32 (!%p307_p8), 24, %s313_s9  ;;  %p377_p9 = scmp.lt.s32.totalorder (!%p307_p8), %s375_s10, 287 }
  0x1c   : > { %s1482_s16 = scalar_lea.vmem (!%p307_p8), [#allocation3], %s1317_s11 }
  0x1e   : > { %s1642_s10 = smov (!%p377_p9, %s375_s10), 287  ;;  %424 = sbr.rel (%p1053_p10) target bundleno = 40 (0x28), region = 70 }
  0x1f   : > { %s1264_s12 = sshll.u32 %s1642_s10, 3 }
  0x20   : > { %s1480_s15 = scalar_lea.vmem %s1630_s1, %s1264_s12 }
  0x23   : > { %v1399_v4 = vmov 0.0  }
  0x24   : > { %425 = vst [vmem:[#allocation2 + $0x10] sm:$0xff] %v1399_v4 }
  0x25   : > { %426 = vst [vmem:[#allocation2] sm:$0xff] %v1399_v4 }
  0x26   : > { %427 = vst [vmem:[#allocation2 + $0x18] sm:$0xff] %v1399_v4 }
  0x27   : > { %428 = vst [vmem:[#allocation2 + $0x8] sm:$0xff] %v1399_v4 }
  0x28 PF: > { %v1124_v5 = vld [vmem:[%s1480_s15 + $0x70] sm:$0xf]  ;;  %v1283_v6 = vld [vmem:[%s1480_s15 + $0x74] sm:$0xf0]  ;;  %v1116_v14 = vld [vmem:[%s1480_s15 + $0x60] sm:$0xf] }
  0x29   : > { %v1188_v7 = vld [vmem:[%s1480_s15 + $0xf0] sm:$0xf]  ;;  %v1125_v8 = vor.u32 %v1283_v6, %v1124_v5  ;;  %v1299_v9 = vld [vmem:[%s1480_s15 + $0xf4] sm:$0xf0]  ;;  %v1281_v15 = vld [vmem:[%s1480_s15 + $0x64] sm:$0xf0] }
  0x2a   : > { %v1252_v10 = vld [vmem:[%s1480_s15 + $0x170] sm:$0xf]  ;;  %v1315_v11 = vld [vmem:[%s1480_s15 + $0x174] sm:$0xf0]  ;;  %v1189_v12 = vor.u32 %v1299_v9, %v1188_v7  ;;  %v1180_v16 = vld [vmem:[%s1480_s15 + $0xe0] sm:$0xf]  ;;  %v1117_v17 = vor.u32 %v1281_v15, %v1116_v14 }
  0x2b   : > { %v1253_v13 = vor.u32 %v1315_v11, %v1252_v10  ;;  %741 = vmatpush.bf16.msra.mxu0 %v1125_v8  ;;  %v1297_v18 = vld [vmem:[%s1480_s15 + $0xe4] sm:$0xf0]  ;;  %v1244_v19 = vld [vmem:[%s1480_s15 + $0x160] sm:$0xf]  ;;  %v1108_v23 = vld [vmem:[%s1480_s15 + $0x50] sm:$0xf] }
  0x2c   : > { %v1313_v20 = vld [vmem:[%s1480_s15 + $0x164] sm:$0xf0]  ;;  %755 = vmatpush.bf16.msra.mxu1 %v1189_v12  ;;  %v1181_v21 = vor.u32 %v1297_v18, %v1180_v16  ;;  %v1279_v24 = vld [vmem:[%s1480_s15 + $0x54] sm:$0xf0]  ;;  %v1172_v25 = vld [vmem:[%s1480_s15 + $0xd0] sm:$0xf] }
  0x2d   : > { %769 = vmatpush.bf16.msra.mxu2 %v1253_v13  ;;  %v1245_v22 = vor.u32 %v1313_v20, %v1244_v19  ;;  %v1295_v26 = vld [vmem:[%s1480_s15 + $0xd4] sm:$0xf0]  ;;  %v1236_v27 = vld [vmem:[%s1480_s15 + $0x150] sm:$0xf]  ;;  %v1109_v29 = vor.u32 %v1279_v24, %v1108_v23  ;;  %v1100_v30 = vld [vmem:[%s1480_s15 + $0x40] sm:$0xf] }
  0x2e   : > { %v1311_v28 = vld [vmem:[%s1480_s15 + $0x154] sm:$0xf0]  ;;  %v1277_v31 = vld [vmem:[%s1480_s15 + $0x44] sm:$0xf0]  ;;  %v1173_v32 = vor.u32 %v1295_v26, %v1172_v25  ;;  %v1164_v34 = vld [vmem:[%s1480_s15 + $0xc0] sm:$0xf] }
  0x2f   : > { %742 = vmatpush.bf16.msra.mxu0 %v1117_v17  ;;  %v1237_v33 = vor.u32 %v1311_v28, %v1236_v27  ;;  %v1282_v35 = vld [vmem:[%s1480_s15 + $0x74] sm:$0xf]  ;;  %v1126_v36 = vld [vmem:[%s1480_s15 + $0x78] sm:$0xf0]  ;;  %v1293_v37 = vld [vmem:[%s1480_s15 + $0xc4] sm:$0xf0]  ;;  %v1101_v42 = vor.u32 %v1277_v31, %v1100_v30 }
  0x30   : > { %756 = vmatpush.bf16.msra.mxu1 %v1181_v21  ;;  %v1228_v38 = vld [vmem:[%s1480_s15 + $0x140] sm:$0xf]  ;;  %v1309_v39 = vld [vmem:[%s1480_s15 + $0x144] sm:$0xf0]  ;;  %v1129_v40 = vor.u32 %v1282_v35, %v1126_v36  ;;  %v1280_v41 = vld [vmem:[%s1480_s15 + $0x64] sm:$0xf]  ;;  %v1165_v46 = vor.u32 %v1293_v37, %v1164_v34 }
  0x31   : > { %770 = vmatpush.bf16.msra.mxu2 %v1245_v22  ;;  %v1092_v43 = vld [vmem:[%s1480_s15 + $0x30] sm:$0xf]  ;;  %v1275_v44 = vld [vmem:[%s1480_s15 + $0x34] sm:$0xf0]  ;;  %v1118_v45 = vld [vmem:[%s1480_s15 + $0x68] sm:$0xf0]  ;;  %v1229_v47 = vor.u32 %v1309_v39, %v1228_v38 }
  0x32   : > { %783 = vmatpush.bf16.msra.mxu3 %v1129_v40  ;;  %v1156_v48 = vld [vmem:[%s1480_s15 + $0xb0] sm:$0xf]  ;;  %v1291_v49 = vld [vmem:[%s1480_s15 + $0xb4] sm:$0xf0]  ;;  %v1121_v51 = vor.u32 %v1280_v41, %v1118_v45  ;;  %v1278_v53 = vld [vmem:[%s1480_s15 + $0x54] sm:$0xf]  ;;  %v1093_v55 = vor.u32 %v1275_v44, %v1092_v43 }
  0x33   : > { %743 = vmatpush.bf16.msra.mxu0 %v1109_v29  ;;  %v1220_v50 = vld [vmem:[%s1480_s15 + $0x130] sm:$0xf]  ;;  %v1307_v52 = vld [vmem:[%s1480_s15 + $0x134] sm:$0xf0]  ;;  %v1110_v54 = vld [vmem:[%s1480_s15 + $0x58] sm:$0xf0]  ;;  %v1157_v59 = vor.u32 %v1291_v49, %v1156_v48 }
  0x34   : > { %757 = vmatpush.bf16.msra.mxu1 %v1173_v32  ;;  %v1084_v56 = vld [vmem:[%s1480_s15 + $0x20] sm:$0xf]  ;;  %v1273_v57 = vld [vmem:[%s1480_s15 + $0x24] sm:$0xf0]  ;;  %v1113_v58 = vor.u32 %v1278_v53, %v1110_v54  ;;  %v1221_v60 = vor.u32 %v1307_v52, %v1220_v50  ;;  %v1276_v62 = vld [vmem:[%s1480_s15 + $0x44] sm:$0xf] }
  0x35   : > { %771 = vmatpush.bf16.msra.mxu2 %v1237_v33  ;;  %v1148_v61 = vld [vmem:[%s1480_s15 + $0xa0] sm:$0xf]  ;;  %v1102_v63 = vld [vmem:[%s1480_s15 + $0x48] sm:$0xf0]  ;;  %v1289_v0 = vld [vmem:[%s1480_s15 + $0xa4] sm:$0xf0]  ;;  %v1085_v3 = vor.u32 %v1273_v57, %v1084_v56 }
  0x36   : > { %784 = vmatpush.bf16.msra.mxu3 %v1121_v51  ;;  %v1212_v1 = vld [vmem:[%s1480_s15 + $0x120] sm:$0xf]  ;;  %v1305_v2 = vld [vmem:[%s1480_s15 + $0x124] sm:$0xf0]  ;;  %v1076_v4 = vld [vmem:[%s1480_s15 + $0x10] sm:$0xf]  ;;  %v1105_v6 = vor.u32 %v1276_v62, %v1102_v63  ;;  %v1149_v7 = vor.u32 %v1289_v0, %v1148_v61 }
  0x37   : > { %744 = vmatpush.bf16.msra.mxu0 %v1101_v42  ;;  %v1271_v5 = vld [vmem:[%s1480_s15 + $0x14] sm:$0xf0]  ;;  %v1213_v8 = vor.u32 %v1305_v2, %v1212_v1  ;;  %v1140_v9 = vld [vmem:[%s1480_s15 + $0x90] sm:$0xf]  ;;  %v1274_v10 = vld [vmem:[%s1480_s15 + $0x34] sm:$0xf] }
  0x38   : > { %758 = vmatpush.bf16.msra.mxu1 %v1165_v46  ;;  %v1094_v11 = vld [vmem:[%s1480_s15 + $0x38] sm:$0xf0]  ;;  %v1287_v12 = vld [vmem:[%s1480_s15 + $0x94] sm:$0xf0]  ;;  %v1204_v13 = vld [vmem:[%s1480_s15 + $0x110] sm:$0xf]  ;;  %v1077_v15 = vor.u32 %v1271_v5, %v1076_v4 }
  0x39   : > { %772 = vmatpush.bf16.msra.mxu2 %v1229_v47  ;;  %v1303_v14 = vld [vmem:[%s1480_s15 + $0x114] sm:$0xf0]  ;;  %v1068_v16 = vld [vmem:[%s1480_s15] sm:$0xf]  ;;  %v1269_v17 = vld [vmem:[%s1480_s15 + $0x4] sm:$0xf0]  ;;  %v1097_v19 = vor.u32 %v1274_v10, %v1094_v11  ;;  %v1141_v20 = vor.u32 %v1287_v12, %v1140_v9 }
  0x3a   : > { %785 = vmatpush.bf16.msra.mxu3 %v1113_v58  ;;  %v1132_v18 = vld [vmem:[%s1480_s15 + $0x80] sm:$0xf]  ;;  %v1205_v21 = vor.u32 %v1303_v14, %v1204_v13  ;;  %v1285_v22 = vld [vmem:[%s1480_s15 + $0x84] sm:$0xf0]  ;;  %v1272_v23 = vld [vmem:[%s1480_s15 + $0x24] sm:$0xf]  ;;  %v1069_v31 = vor.u32 %v1269_v17, %v1068_v16 }
  0x3b   : > { %745 = vmatpush.bf16.msra.mxu0 %v1093_v55  ;;  %v1086_v24 = vld [vmem:[%s1480_s15 + $0x28] sm:$0xf0]  ;;  %v1196_v25 = vld [vmem:[%s1480_s15 + $0x100] sm:$0xf]  ;;  %v1301_v26 = vld [vmem:[%s1480_s15 + $0x104] sm:$0xf0]  ;;  %v1133_v36 = vor.u32 %v1285_v22, %v1132_v18 }
  0x3c   : > { %759 = vmatpush.bf16.msra.mxu1 %v1157_v59  ;;  %v1298_v27 = vld [vmem:[%s1480_s15 + $0xf4] sm:$0xf]  ;;  %v1190_v28 = vld [vmem:[%s1480_s15 + $0xf8] sm:$0xf0]  ;;  %v1064_v32 = vld [vmem:[%s1482_s16 + $0x8] sm:$0xf]  ;;  %v1089_v33 = vor.u32 %v1272_v23, %v1086_v24  ;;  %v1197_v37 = vor.u32 %v1301_v26, %v1196_v25 }
  0x3d   : > { %773 = vmatpush.bf16.msra.mxu2 %v1221_v60  ;;  %v1314_v29 = vld [vmem:[%s1480_s15 + $0x174] sm:$0xf]  ;;  %v1254_v30 = vld [vmem:[%s1480_s15 + $0x178] sm:$0xf0]  ;;  %v1056_v34 = vld [vmem:[%s1482_s16] sm:$0xf]  ;;  %v1193_v41 = vor.u32 %v1298_v27, %v1190_v28 }
  0x3e   : > { %786 = vmatpush.bf16.msra.mxu3 %v1105_v6  ;;  %v1266_v35 = vld [vmem:[%s1482_s16 + $0x8] sm:$0xf0]  ;;  %v1267_v38 = vld [vmem:[%s1482_s16 + $0x10] sm:$0xf0]  ;;  %v1265_v39 = vld [vmem:[%s1482_s16 + $0x4] sm:$0xf]  ;;  %v1257_v42 = vor.u32 %v1314_v29, %v1254_v30 }
  0x3f   : > { %746 = vmatpush.bf16.msra.mxu0 %v1085_v3  ;;  %v1058_v40 = vld [vmem:[%s1482_s16 + $0xc] sm:$0xf0]  ;;  %v1296_v43 = vld [vmem:[%s1480_s15 + $0xe4] sm:$0xf]  ;;  %v1270_v44 = vld [vmem:[%s1480_s15 + $0x14] sm:$0xf]  ;;  %v1057_v49 = vor.u32 %v1266_v35, %v1056_v34  ;;  %v1561_v50 = vor.u32 %v1267_v38, %v1064_v32 }
  0x40   : > { %760 = vmatpush.bf16.msra.mxu1 %v1149_v7  ;;  %v1078_v45 = vld [vmem:[%s1480_s15 + $0x18] sm:$0xf0]  ;;  %v1182_v46 = vld [vmem:[%s1480_s15 + $0xe8] sm:$0xf0]  ;;  %v1312_v47 = vld [vmem:[%s1480_s15 + $0x164] sm:$0xf]  ;;  %v1563_v51 = vor.u32 %v1265_v39, %v1058_v40 }
  0x41   : > { %774 = vmatpush.bf16.msra.mxu2 %v1213_v8  ;;  %v1246_v48 = vld [vmem:[%s1480_s15 + $0x168] sm:$0xf0]  ;;  %v1081_v52 = vor.u32 %v1270_v44, %v1078_v45  ;;  %v1185_v53 = vor.u32 %v1296_v43, %v1182_v46  ;;  %v1294_v55 = vld [vmem:[%s1480_s15 + $0xd4] sm:$0xf]  ;;  %v1268_v56 = vld [vmem:[%s1480_s15 + $0x4] sm:$0xf] }
  0x42   : > { %787 = vmatpush.bf16.msra.mxu3 %v1097_v19  ;;  %v1249_v54 = vor.u32 %v1312_v47, %v1246_v48  ;;  %v1070_v57 = vld [vmem:[%s1480_s15 + $0x8] sm:$0xf0]  ;;  %v1174_v58 = vld [vmem:[%s1480_s15 + $0xd8] sm:$0xf0]  ;;  %v1310_v59 = vld [vmem:[%s1480_s15 + $0x154] sm:$0xf] }
  0x43   : > { %747 = vmatpush.bf16.msra.mxu0 %v1077_v15  ;;  %v1238_v60 = vld [vmem:[%s1480_s15 + $0x158] sm:$0xf0]  ;;  %v1073_v61 = vor.u32 %v1268_v56, %v1070_v57  ;;  %v1177_v62 = vor.u32 %v1294_v55, %v1174_v58  ;;  %v1292_v0 = vld [vmem:[%s1480_s15 + $0xc4] sm:$0xf]  ;;  %v1166_v1 = vld [vmem:[%s1480_s15 + $0xc8] sm:$0xf0] }
  0x44   : > { %761 = vmatpush.bf16.msra.mxu1 %v1141_v20  ;;  %v1241_v63 = vor.u32 %v1310_v59, %v1238_v60  ;;  %v1308_v2 = vld [vmem:[%s1480_s15 + $0x144] sm:$0xf]  ;;  %v1230_v3 = vld [vmem:[%s1480_s15 + $0x148] sm:$0xf0]  ;;  %v1169_v4 = vor.u32 %v1292_v0, %v1166_v1  ;;  %v1290_v6 = vld [vmem:[%s1480_s15 + $0xb4] sm:$0xf] }
  0x45   : > { %775 = vmatpush.bf16.msra.mxu2 %v1205_v21  ;;  %v1233_v5 = vor.u32 %v1308_v2, %v1230_v3  ;;  %v1158_v7 = vld [vmem:[%s1480_s15 + $0xb8] sm:$0xf0]  ;;  %v1306_v8 = vld [vmem:[%s1480_s15 + $0x134] sm:$0xf]  ;;  %v1288_v12 = vld [vmem:[%s1480_s15 + $0xa4] sm:$0xf] }
  0x46   : > { %788 = vmatpush.bf16.msra.mxu3 %v1089_v33  ;;  %v1222_v9 = vld [vmem:[%s1480_s15 + $0x138] sm:$0xf0]  ;;  %v1161_v10 = vor.u32 %v1290_v6, %v1158_v7  ;;  %v1150_v13 = vld [vmem:[%s1480_s15 + $0xa8] sm:$0xf0]  ;;  %v1304_v14 = vld [vmem:[%s1480_s15 + $0x124] sm:$0xf] }
  0x47   : > { %748 = vmatpush.bf16.msra.mxu0 %v1069_v31  ;;  %v1225_v11 = vor.u32 %v1306_v8, %v1222_v9  ;;  %v1214_v15 = vld [vmem:[%s1480_s15 + $0x128] sm:$0xf0]  ;;  %v1153_v16 = vor.u32 %v1288_v12, %v1150_v13  ;;  %v1286_v18 = vld [vmem:[%s1480_s15 + $0x94] sm:$0xf]  ;;  %v1142_v19 = vld [vmem:[%s1480_s15 + $0x98] sm:$0xf0] }
  0x48   : > { %762 = vmatpush.bf16.msra.mxu1 %v1133_v36  ;;  %v1217_v17 = vor.u32 %v1304_v14, %v1214_v15  ;;  %v1302_v20 = vld [vmem:[%s1480_s15 + $0x114] sm:$0xf]  ;;  %v1206_v21 = vld [vmem:[%s1480_s15 + $0x118] sm:$0xf0]  ;;  %v1145_v22 = vor.u32 %v1286_v18, %v1142_v19  ;;  %v1284_v24 = vld [vmem:[%s1480_s15 + $0x84] sm:$0xf] }
  0x49   : > { %776 = vmatpush.bf16.msra.mxu2 %v1197_v37  ;;  %v1209_v23 = vor.u32 %v1302_v20, %v1206_v21  ;;  %v1134_v25 = vld [vmem:[%s1480_s15 + $0x88] sm:$0xf0]  ;;  %v1300_v26 = vld [vmem:[%s1480_s15 + $0x104] sm:$0xf]  ;;  %v429_v33 = vld [vmem:[#allocation2 + $0x10] sm:$0xff]  ;;  %p1258_p11 = scmp.ne.s32.totalorder %s1389_s20, 5 }
  0x4a   : > { %749 = vmatmul.bf16.vlgmr.msra.gmra.mxu0 %v1057_v49  ;;  %789 = vmatpush.bf16.msra.mxu3 %v1081_v52  ;;  %v1198_v27 = vld [vmem:[%s1480_s15 + $0x108] sm:$0xf0]  ;;  %v1137_v28 = vor.u32 %v1284_v24, %v1134_v25  ;;  %v431_v40 = vld [vmem:[#allocation2 + $0x18] sm:$0xff]  ;;  %v430_v48 = vld [vmem:[#allocation2] sm:$0xff] }
  0x4b   : > { %797 = vmatpush.bf16.msrb.mxu0 %v1193_v41  ;;  %763 = vmatmul.bf16.vlgmr.msra.gmra.mxu1 %v1563_v51  ;;  %v1201_v29 = vor.u32 %v1300_v26, %v1198_v27 }
  0x4c   : > { %811 = vmatpush.bf16.msrb.mxu1 %v1257_v42  ;;  %777 = vmatmul.bf16.vlgmr.msra.gmra.mxu2 %v1561_v50 }
  0x4e   : > { %790 = vmatpush.bf16.msra.mxu3 %v1073_v61 }
  0x4f   : > { %798 = vmatpush.bf16.msrb.mxu0 %v1185_v53 }
  0x50   : > { %812 = vmatpush.bf16.msrb.mxu1 %v1249_v54  ;;  %v432_v54 = vld [vmem:[#allocation2 + $0x8] sm:$0xff] }
  0x51   : > { %791 = vmatmul.bf16.vlgmr.msra.gmra.mxu3 %v1057_v49 }
  0x53   : > { %799 = vmatpush.bf16.msrb.mxu0 %v1177_v62 }
  0x54   : > { %813 = vmatpush.bf16.msrb.mxu1 %v1241_v63 }
  0x57   : > { %800 = vmatpush.bf16.msrb.mxu0 %v1169_v4 }
  0x58   : > { %814 = vmatpush.bf16.msrb.mxu1 %v1233_v5 }
  0x5b   : > { %801 = vmatpush.bf16.msrb.mxu0 %v1161_v10 }
  0x5c   : > { %815 = vmatpush.bf16.msrb.mxu1 %v1225_v11 }
  0x5f   : > { %802 = vmatpush.bf16.msrb.mxu0 %v1153_v16 }
  0x60   : > { %816 = vmatpush.bf16.msrb.mxu1 %v1217_v17 }
  0x63   : > { %803 = vmatpush.bf16.msrb.mxu0 %v1145_v22 }
  0x64   : > { %817 = vmatpush.bf16.msrb.mxu1 %v1209_v23 }
  0x67   : > { %804 = vmatpush.bf16.msrb.mxu0 %v1137_v28 }
  0x68   : > { %818 = vmatpush.bf16.msrb.mxu1 %v1201_v29 }
  0x6a   : > { %805 = vmatmul.bf16.vlgmr.msrb.gmra.mxu0 %v1563_v51 }
  0x6b   : > { %819 = vmatmul.bf16.vlgmr.msrb.gmra.mxu1 %v1561_v50 }
  0xc7   : > { %v750_v30 = vpop.f32.mrf.mxu0 }
  0xc8   : > { %v764_v31 = vpop.f32.mrf.mxu1 }
  0xc9   : > { %v765_v32 = vadd.f32 %v764_v31, %v750_v30 }
  0xcf   : > { %v778_v34 = vpop.f32.mrf.mxu2  ;;  %v752_v36 = vpop.f32.mrf.mxu0 }
  0xd0   : > { %v779_v35 = vadd.f32 %v778_v34, %v765_v32  ;;  %v766_v37 = vpop.f32.mrf.mxu1 }
  0xd1   : > { %v767_v39 = vadd.f32 %v766_v37, %v752_v36 }
  0xd2   : > { %v825_v38 = vadd.f32 %v779_v35, %v429_v33 }
  0xd4   : > { %829 = vst [vmem:[#allocation2 + $0x10] sm:$0xff] %v825_v38  ;;  %v792_v44 = vpop.f32.mrf.mxu3 }
  0xd7   : > { %v780_v41 = vpop.f32.mrf.mxu2 }
  0xd8   : > { %v781_v42 = vadd.f32 %v780_v41, %v767_v39 }
  0xda   : > { %v827_v43 = vadd.f32 %v781_v42, %v431_v40 }
  0xdc   : > { %831 = vst [vmem:[#allocation2 + $0x18] sm:$0xff] %v827_v43  ;;  %v794_v51 = vpop.f32.mrf.mxu3 }
  0xe7   : > { %v806_v45 = vpop.f32.mrf.mxu0 }
  0xe8   : > { %v820_v46 = vpop.f32.mrf.mxu1  ;;  %v807_v47 = vadd.f32 %v806_v45, %v792_v44 }
  0xea   : > { %v821_v49 = vadd.f32 %v820_v46, %v807_v47 }
  0xec   : > { %v826_v50 = vadd.f32 %v821_v49, %v430_v48 }
  0xee   : > { %830 = vst [vmem:[#allocation2] sm:$0xff] %v826_v50 }
  0xef   : > { %v808_v52 = vpop.f32.mrf.mxu0 }
  0xf0   : > { %v809_v53 = vadd.f32 %v808_v52, %v794_v51  ;;  %v822_v55 = vpop.f32.mrf.mxu1 }
  0xf2   : > { %v823_v56 = vadd.f32 %v822_v55, %v809_v53  ;;  %836 = sbr.rel (%p1258_p11) target bundleno = 265 (0x109), region = 74 }
  0xf4   : > { %v828_v57 = vadd.f32 %v823_v56, %v432_v54 }
  0xf6   : > { %832 = vst [vmem:[#allocation2 + $0x8] sm:$0xff] %v828_v57 }
  0xf7   : > { %v837_v58 = vld [vmem:[#allocation2 + $0x10] sm:$0xff]  ;;  %v838_v59 = vld [vmem:[#allocation2] sm:$0xff]  ;;  %v839_v1 = vld [vmem:[#allocation2 + $0x18] sm:$0xff] }
  0xf8   : > { %v841_v60 = vld [vmem:[%s1631_s2] sm:$0x3]  ;;  %v862_v7 = vld [vmem:[%s1633_s4 + $0x8] sm:$0xff] }
  0xf9   : > { %v843_v61 = vperm.slane %v841_v60, 0  ;;  %v844_v62 = vperm.slane %v841_v60, 1  ;;  %v851_v63 = vld [vmem:[%s1632_s3] sm:$0x3]  ;;  %v865_v12 = vunpack.c.l.bf16 %v862_v7  ;;  %v866_v13 = vunpack.c.h.bf16 %v862_v7 }
  0xfa   : > { %v861_v0 = vld [vmem:[%s1633_s4] sm:$0xff]  ;;  %v853_v2 = vperm.slane %v851_v63, 0  ;;  %v854_v3 = vperm.slane %v851_v63, 1 }
  0xfb   : > { %v863_v4 = vunpack.c.l.bf16 %v861_v0  ;;  %v864_v5 = vunpack.c.h.bf16 %v861_v0  ;;  %v847_v8 = vmul.f32 %v843_v61, %v837_v58  ;;  %v848_v9 = vmul.f32 %v844_v62, %v838_v59 }
  0xfc   : > { %v849_v10 = vmul.f32 %v843_v61, %v839_v1 }
  0xfd   : > { %v840_v6 = vld [vmem:[#allocation2 + $0x8] sm:$0xff]  ;;  %v857_v14 = vadd.f32 %v853_v2, %v847_v8  ;;  %v858_v15 = vadd.f32 %v854_v3, %v848_v9 }
  0xfe   : > { %v850_v11 = vmul.f32 %v844_v62, %v840_v6  ;;  %v859_v16 = vadd.f32 %v853_v2, %v849_v10 }
  0xff   : > { %v867_v18 = vadd.f32 %v863_v4, %v857_v14  ;;  %v868_v19 = vadd.f32 %v864_v5, %v858_v15 }
 0x100   : > { %v860_v17 = vadd.f32 %v854_v3, %v850_v11  ;;  %v869_v20 = vadd.f32 %v865_v12, %v859_v16 }
 0x101   : > { %v871_v22 = vmax.f32 %v867_v18, 0.0  ;;  %v872_v23 = vmax.f32 %v868_v19, 0.0 }
 0x102   : > { %v870_v21 = vadd.f32 %v866_v13, %v860_v17  ;;  %v873_v24 = vmax.f32 %v869_v20, 0.0 }
 0x103   : > { %v875_v26 = vpack.c.bf16 %v872_v23, %v871_v22 }
 0x104   : > { %v874_v25 = vmax.f32 %v870_v21, 0.0 }
 0x105   : > { %877 = vst [vmem:[%s1634_s5] sm:$0xff] %v875_v26 }
 0x106   : > { %v876_v27 = vpack.c.bf16 %v874_v25, %v873_v24 }
 0x108   : > { %878 = vst [vmem:[%s1634_s5 + $0x8] sm:$0xff] %v876_v27 }
 0x109 PF: > { %s15_s22 = sadd.s32 1, %s1397_s22   ;;  %s1635_s18 = smov %s1385_s19 }
 0x10a   : > { %p12_p12 = scmp.ge.s32.totalorder %s15_s22, 8   ;;  %s1636_s19 = smov %s1465_s26 }
 0x10b   : > { %s1637_s20 = smov %s1393_s21  ;;  %s1638_s21 = smov %s1640_s23 }
 0x10c   :  { %14 = sbr.rel (!%p12_p12) target bundleno = 3 (0x3), region = 127 }

// kernel: _lambda_.22
= control target key start
LH: loop header
LB: loop body
LE: loop exit
PB: predicated region body
PF: predicated region fallthrough
CT: control target
= control target key end

     0   :  { %s2054_s0 = inlined_call_operand.vmem [shape: bf16[16,2304], index: 0, kind: input, shape index: {}]   ;;  %s2055_s1 = inlined_call_operand.vmem [shape: bf16[2304,512], index: 1, kind: input, shape index: {}]   ;;  %s2056_s2 = inlined_call_operand.vmem [shape: f32[1,512], index: 2, kind: input, shape index: {}]   ;;  %s2057_s3 = inlined_call_operand.vmem [shape: f32[1,512], index: 3, kind: input, shape index: {}]   ;;  %s2058_s4 = inlined_call_operand.vmem [shape: bf16[16,512], index: 4, kind: output, shape index: {}]  }
   0x1   :  { %2061 = sst [smem:[#allocation8_spill]] %s2054_s0 }
   0x2   :  { %2062 = sst [smem:[#allocation9_spill]] %s2055_s1 }
   0x3   :  { %s1653_s15 = smov 0   ;;  %s1655_s16 = smov 0  }
   0x4   :  { %s1657_s17 = smov 0   ;;  %s1659_s18 = smov 0  }
   0x5   :  { %s1661_s19 = smov 0   ;;  %s1663_s20 = smov 0  }
   0x6   :  { %s1665_s21 = smov 0   ;;  %s1667_s22 = smov 0  }
   0x7   :  { %s1669_s23 = smov 0   ;;  %s1671_s24 = smov 0  }
   0x8   :  { %s1673_s25 = smov 0  }
   0x9 LB: > { %s1165_s26 = sadd.s32 4294967295, %s1625_s25   ;;  %s26_s27 = sadd.s32 1, %s1617_s23  ;;  %s1625_s25 = sphi %s1673_s25, %s14_s25   ;;  %s1621_s24 = sphi %s1671_s24, %s2081_s24   ;;  %s1617_s23 = sphi %s1669_s23, %s2080_s23   ;;  %s1613_s22 = sphi %s1667_s22, %s2079_s22   ;;  %s1609_s21 = sphi %s1665_s21, %s2078_s21   ;;  %s1605_s20 = sphi %s1663_s20, %s2077_s20   ;;  %s1601_s19 = sphi %s1661_s19, %s2076_s19   ;;  %s1597_s18 = sphi %s1659_s18, %s2075_s18   ;;  %s1593_s17 = sphi %s1657_s17, %s2074_s17   ;;  %s1589_s16 = sphi %s1655_s16, %s2073_s16   ;;  %s1585_s15 = sphi %s1653_s15, %s2072_s15  }
   0xa   : > { %p27_p0 = scmp.ge.s32.totalorder %s26_s27, 6  ;;  %s29_s28 = sadd.s32 1, %s1621_s24 }
   0xb   : > { %s42_s29 = sadd.s32 1, %s1605_s20  ;;  %p49_p1 = scmp.ne.s32.totalorder %s1605_s20, %s1601_s19 }
   0xc   : > { %s2083_s27 = smov (%p27_p0, %s26_s27), 0  ;;  %s2085_s28 = smov (!%p27_p0, %s29_s28), %s1621_s24 }
   0xd   : > { %2063 = sst [smem:[#allocation6_spill]] %s2083_s27  ;;  %s38_s30 = ssub.s32 %s1617_s23, %s2083_s27 }
   0xe   : > { %p50_p2 = scmp.eq.s32.totalorder %s1625_s25, 0  ;;  %p31_p3 = scmp.ge.s32.totalorder %s2085_s28, 2 }
   0xf   : > { %p40_p4 = scmp.eq.s32.totalorder %s38_s30, 0  ;;  %s70_s6 = sadd.s32 1, %s1597_s18 }
  0x10   : > { %p1720_p5 = por %p50_p2, %p49_p1  ;;  %s2087_s28 = smov (%p31_p3, %s2085_s28), 0 }
  0x11   : > { %2065 = sst [smem:[#allocation7_spill]] %s2087_s28  ;;  %s66_s8 = ssub.s32 %s1621_s24, %s2087_s28 }
  0x12   : > { %s1728_s7 = scalar_select %p40_p4, %s1605_s20, %s42_s29  }
  0x13   : > { %p77_p6 = scmp.ne.s32.totalorder %s1597_s18, %s1593_s17  ;;  %s67_s9 = sor.u32 %s66_s8, %s38_s30 }
  0x14   : > { %p148_p7 = scmp.eq.s32.totalorder %s66_s8, 0  ;;  %p68_p8 = scmp.eq.s32.totalorder %s67_s9, 0 }
  0x15   : > { %p1734_p9 = por %p77_p6, %p50_p2  ;;  %s150_s11 = sadd.s32 1, %s1589_s16 }
  0x16   : > { %p160_p10 = scmp.ne.s32.totalorder %s1589_s16, %s1585_s15  ;;  %p161_p11 = scmp.eq.s32.totalorder %s1165_s26, 11 }
  0x17   : > { %s1742_s12 = scalar_select %p68_p8, %s1597_s18, %s70_s6  }
  0x18   : > { %s1745_s13 = scalar_select %p148_p7, %s1589_s16, %s150_s11  }
  0x19   : > { %p1747_p12 = por %p161_p11, %p160_p10  ;;  %p1168_p13 = scmp.ge.s32.totalorder %s1625_s25, 12 }
  0x1b   : > { %183 = sbr.rel (%p1168_p13) target bundleno = 103 (0x67), region = 16 }
  0x20   : > { %186 = sbr.rel (!%p1720_p5) target bundleno = 45 (0x2d), region = 20  ;;  %s188_s29 = sand.u32 (%p1720_p5), 1, %s1605_s20  }
  0x21   : > { %s1392_s30 = smul.u32 (%p1720_p5), 12, %s1617_s23  ;;  %s2068_s0 = sld [smem:[#allocation8_spill]] (%p1720_p5) }
  0x22   : > { %s1446_s8 = smul.u32 (%p1720_p5), 24, %s188_s29 }
  0x24   : > { %s190_s26 = scalar_lea.vmem (%p1720_p5), [#allocation3], %s1446_s8 }
  0x27   : > { %s196_s11 = scalar_lea.vmem %s2068_s0, %s1392_s30 }
  0x28   : > { %v211_v0 = vld [vmem:[%s196_s11] sm:$0xff]  ;;  %v213_v1 = vld [vmem:[%s196_s11 + $0x48] sm:$0xff]  ;;  %v1172_v3 = vld [vmem:[%s196_s11 + $0x50] sm:$0xf] }
  0x29   : > { %v1170_v2 = vld [vmem:[%s196_s11 + $0x8] sm:$0xf]  ;;  %212 = vst [vmem:[%s190_s26] sm:$0xff] %v211_v0 }
  0x2a   : > { %214 = vst [vmem:[%s190_s26 + $0xc] sm:$0xff] %v213_v1 }
  0x2b   : > { %1171 = vst [vmem:[%s190_s26 + $0x8] sm:$0xf] %v1170_v2 }
  0x2c   : > { %1173 = vst [vmem:[%s190_s26 + $0x14] sm:$0xf] %v1172_v3 }
  0x2d PF: > { %232 = sbr.rel (!%p1734_p9) target bundleno = 103 (0x67), region = 46  ;;  %s234_s5 = sand.u32 (%p1734_p9), 1, %s1597_s18  }
  0x2e   : > { %s1447_s29 = smul.u32 (%p1734_p9), 384, %s234_s5  ;;  %s1174_s6 = sshll.u32 (%p1734_p9), %s1621_s24, 1 }
  0x2f   : > { %s1393_s30 = smul.u32 (%p1734_p9), 192, %s1617_s23  ;;  %s2069_s1 = sld [smem:[#allocation9_spill]] (%p1734_p9) }
  0x30   : > { %s1772_s10 = scalar_lea.vmem (%p1734_p9), [#allocation4], %s1447_s29 }
  0x31   : > { %s240_s9 = sadd.s32 (%p1734_p9), %s1393_s30, %s1174_s6 }
  0x32   : > { %s1176_s0 = sshll.u32 %s240_s9, 2 }
  0x35   : > { %s1767_s11 = scalar_lea.vmem %s2069_s1, %s1176_s0 }
  0x36   : > { %v365_v4 = vld [vmem:[%s1767_s11] sm:$0xff]  ;;  %v367_v5 = vld [vmem:[%s1767_s11 + $0x10] sm:$0xff] }
  0x37   : > { %v369_v6 = vld [vmem:[%s1767_s11 + $0x20] sm:$0xff]  ;;  %366 = vst [vmem:[%s1772_s10] sm:$0xff] %v365_v4  ;;  %v371_v7 = vld [vmem:[%s1767_s11 + $0x30] sm:$0xff] }
  0x38   : > { %368 = vst [vmem:[%s1772_s10 + $0x8] sm:$0xff] %v367_v5  ;;  %v373_v8 = vld [vmem:[%s1767_s11 + $0x40] sm:$0xff]  ;;  %v375_v9 = vld [vmem:[%s1767_s11 + $0x50] sm:$0xff] }
  0x39   : > { %370 = vst [vmem:[%s1772_s10 + $0x10] sm:$0xff] %v369_v6  ;;  %v377_v10 = vld [vmem:[%s1767_s11 + $0x60] sm:$0xff]  ;;  %v379_v11 = vld [vmem:[%s1767_s11 + $0x70] sm:$0xff] }
  0x3a   : > { %372 = vst [vmem:[%s1772_s10 + $0x18] sm:$0xff] %v371_v7  ;;  %v381_v12 = vld [vmem:[%s1767_s11 + $0x80] sm:$0xff]  ;;  %v383_v13 = vld [vmem:[%s1767_s11 + $0x90] sm:$0xff] }
  0x3b   : > { %374 = vst [vmem:[%s1772_s10 + $0x20] sm:$0xff] %v373_v8  ;;  %v385_v14 = vld [vmem:[%s1767_s11 + $0xa0] sm:$0xff]  ;;  %v387_v15 = vld [vmem:[%s1767_s11 + $0xb0] sm:$0xff] }
  0x3c   : > { %376 = vst [vmem:[%s1772_s10 + $0x28] sm:$0xff] %v375_v9  ;;  %v389_v16 = vld [vmem:[%s1767_s11 + $0xc0] sm:$0xff]  ;;  %v391_v17 = vld [vmem:[%s1767_s11 + $0xd0] sm:$0xff] }
  0x3d   : > { %378 = vst [vmem:[%s1772_s10 + $0x30] sm:$0xff] %v377_v10  ;;  %v393_v18 = vld [vmem:[%s1767_s11 + $0xe0] sm:$0xff]  ;;  %v395_v19 = vld [vmem:[%s1767_s11 + $0xf0] sm:$0xff] }
  0x3e   : > { %380 = vst [vmem:[%s1772_s10 + $0x38] sm:$0xff] %v379_v11  ;;  %v397_v20 = vld [vmem:[%s1767_s11 + $0x100] sm:$0xff]  ;;  %v399_v21 = vld [vmem:[%s1767_s11 + $0x110] sm:$0xff] }
  0x3f   : > { %382 = vst [vmem:[%s1772_s10 + $0x40] sm:$0xff] %v381_v12  ;;  %v401_v22 = vld [vmem:[%s1767_s11 + $0x120] sm:$0xff]  ;;  %v403_v23 = vld [vmem:[%s1767_s11 + $0x130] sm:$0xff] }
  0x40   : > { %384 = vst [vmem:[%s1772_s10 + $0x48] sm:$0xff] %v383_v13  ;;  %v405_v24 = vld [vmem:[%s1767_s11 + $0x140] sm:$0xff]  ;;  %v407_v25 = vld [vmem:[%s1767_s11 + $0x150] sm:$0xff] }
  0x41   : > { %386 = vst [vmem:[%s1772_s10 + $0x50] sm:$0xff] %v385_v14  ;;  %v409_v26 = vld [vmem:[%s1767_s11 + $0x160] sm:$0xff]  ;;  %v411_v27 = vld [vmem:[%s1767_s11 + $0x170] sm:$0xff] }
  0x42   : > { %388 = vst [vmem:[%s1772_s10 + $0x58] sm:$0xff] %v387_v15  ;;  %v413_v28 = vld [vmem:[%s1767_s11 + $0x180] sm:$0xff]  ;;  %v415_v29 = vld [vmem:[%s1767_s11 + $0x190] sm:$0xff] }
  0x43   : > { %390 = vst [vmem:[%s1772_s10 + $0x60] sm:$0xff] %v389_v16  ;;  %v417_v30 = vld [vmem:[%s1767_s11 + $0x1a0] sm:$0xff]  ;;  %v419_v31 = vld [vmem:[%s1767_s11 + $0x1b0] sm:$0xff] }
  0x44   : > { %392 = vst [vmem:[%s1772_s10 + $0x68] sm:$0xff] %v391_v17  ;;  %v421_v32 = vld [vmem:[%s1767_s11 + $0x1c0] sm:$0xff]  ;;  %v423_v33 = vld [vmem:[%s1767_s11 + $0x1d0] sm:$0xff] }
  0x45   : > { %394 = vst [vmem:[%s1772_s10 + $0x70] sm:$0xff] %v393_v18  ;;  %v425_v34 = vld [vmem:[%s1767_s11 + $0x1e0] sm:$0xff]  ;;  %v427_v35 = vld [vmem:[%s1767_s11 + $0x1f0] sm:$0xff] }
  0x46   : > { %396 = vst [vmem:[%s1772_s10 + $0x78] sm:$0xff] %v395_v19  ;;  %v429_v36 = vld [vmem:[%s1767_s11 + $0x200] sm:$0xff]  ;;  %v431_v37 = vld [vmem:[%s1767_s11 + $0x210] sm:$0xff] }
  0x47   : > { %398 = vst [vmem:[%s1772_s10 + $0x80] sm:$0xff] %v397_v20  ;;  %v433_v38 = vld [vmem:[%s1767_s11 + $0x220] sm:$0xff]  ;;  %v435_v39 = vld [vmem:[%s1767_s11 + $0x230] sm:$0xff] }
  0x48   : > { %400 = vst [vmem:[%s1772_s10 + $0x88] sm:$0xff] %v399_v21  ;;  %v437_v40 = vld [vmem:[%s1767_s11 + $0x240] sm:$0xff]  ;;  %v439_v41 = vld [vmem:[%s1767_s11 + $0x250] sm:$0xff] }
  0x49   : > { %402 = vst [vmem:[%s1772_s10 + $0x90] sm:$0xff] %v401_v22  ;;  %v441_v42 = vld [vmem:[%s1767_s11 + $0x260] sm:$0xff]  ;;  %v443_v43 = vld [vmem:[%s1767_s11 + $0x270] sm:$0xff] }
  0x4a   : > { %404 = vst [vmem:[%s1772_s10 + $0x98] sm:$0xff] %v403_v23  ;;  %v445_v44 = vld [vmem:[%s1767_s11 + $0x280] sm:$0xff]  ;;  %v447_v45 = vld [vmem:[%s1767_s11 + $0x290] sm:$0xff] }
  0x4b   : > { %406 = vst [vmem:[%s1772_s10 + $0xa0] sm:$0xff] %v405_v24  ;;  %v449_v46 = vld [vmem:[%s1767_s11 + $0x2a0] sm:$0xff]  ;;  %v451_v47 = vld [vmem:[%s1767_s11 + $0x2b0] sm:$0xff] }
  0x4c   : > { %408 = vst [vmem:[%s1772_s10 + $0xa8] sm:$0xff] %v407_v25  ;;  %v453_v48 = vld [vmem:[%s1767_s11 + $0x2c0] sm:$0xff]  ;;  %v455_v49 = vld [vmem:[%s1767_s11 + $0x2d0] sm:$0xff] }
  0x4d   : > { %410 = vst [vmem:[%s1772_s10 + $0xb0] sm:$0xff] %v409_v26  ;;  %v457_v50 = vld [vmem:[%s1767_s11 + $0x2e0] sm:$0xff]  ;;  %v459_v51 = vld [vmem:[%s1767_s11 + $0x2f0] sm:$0xff] }
  0x4e   : > { %412 = vst [vmem:[%s1772_s10 + $0xb8] sm:$0xff] %v411_v27 }
  0x4f   : > { %414 = vst [vmem:[%s1772_s10 + $0xc0] sm:$0xff] %v413_v28 }
  0x50   : > { %416 = vst [vmem:[%s1772_s10 + $0xc8] sm:$0xff] %v415_v29 }
  0x51   : > { %418 = vst [vmem:[%s1772_s10 + $0xd0] sm:$0xff] %v417_v30 }
  0x52   : > { %420 = vst [vmem:[%s1772_s10 + $0xd8] sm:$0xff] %v419_v31 }
  0x53   : > { %422 = vst [vmem:[%s1772_s10 + $0xe0] sm:$0xff] %v421_v32 }
  0x54   : > { %424 = vst [vmem:[%s1772_s10 + $0xe8] sm:$0xff] %v423_v33 }
  0x55   : > { %426 = vst [vmem:[%s1772_s10 + $0xf0] sm:$0xff] %v425_v34 }
  0x56   : > { %428 = vst [vmem:[%s1772_s10 + $0xf8] sm:$0xff] %v427_v35 }
  0x57   : > { %430 = vst [vmem:[%s1772_s10 + $0x100] sm:$0xff] %v429_v36 }
  0x58   : > { %432 = vst [vmem:[%s1772_s10 + $0x108] sm:$0xff] %v431_v37 }
  0x59   : > { %434 = vst [vmem:[%s1772_s10 + $0x110] sm:$0xff] %v433_v38 }
  0x5a   : > { %436 = vst [vmem:[%s1772_s10 + $0x118] sm:$0xff] %v435_v39 }
  0x5b   : > { %438 = vst [vmem:[%s1772_s10 + $0x120] sm:$0xff] %v437_v40 }
  0x5c   : > { %440 = vst [vmem:[%s1772_s10 + $0x128] sm:$0xff] %v439_v41 }
  0x5d   : > { %442 = vst [vmem:[%s1772_s10 + $0x130] sm:$0xff] %v441_v42 }
  0x5e   : > { %444 = vst [vmem:[%s1772_s10 + $0x138] sm:$0xff] %v443_v43 }
  0x5f   : > { %446 = vst [vmem:[%s1772_s10 + $0x140] sm:$0xff] %v445_v44 }
  0x60   : > { %448 = vst [vmem:[%s1772_s10 + $0x148] sm:$0xff] %v447_v45 }
  0x61   : > { %450 = vst [vmem:[%s1772_s10 + $0x150] sm:$0xff] %v449_v46 }
  0x62   : > { %452 = vst [vmem:[%s1772_s10 + $0x158] sm:$0xff] %v451_v47 }
  0x63   : > { %454 = vst [vmem:[%s1772_s10 + $0x160] sm:$0xff] %v453_v48 }
  0x64   : > { %456 = vst [vmem:[%s1772_s10 + $0x168] sm:$0xff] %v455_v49 }
  0x65   : > { %458 = vst [vmem:[%s1772_s10 + $0x170] sm:$0xff] %v457_v50 }
  0x66   : > { %460 = vst [vmem:[%s1772_s10 + $0x178] sm:$0xff] %v459_v51 }
  0x67 PF: > { %p1177_p0 = scmp.ge.s32.totalorder %s1625_s25, 1  ;;  %p481_p1 = scmp.lt.s32.totalorder %s1625_s25, 13 }
  0x69   : > { %p482_p2 = pnand %p1177_p0, %p481_p1 }
  0x6a   : > { %s488_s0 = sand.u32 (!%p482_p2), 1, %s1601_s19   ;;  %s495_s28 = sand.u32 (!%p482_p2), 1, %s1593_s17  }
  0x6b   : > { %485 = sbr.rel (%p482_p2) target bundleno = 355 (0x163), region = 92  ;;  %s528_s5 = sand.u32 (!%p482_p2), 1, %s1585_s15  }
  0x6c   : > { %s1448_s26 = smul.u32 (!%p482_p2), 24, %s488_s0  ;;  %s1178_s6 = sshll.u32 (!%p482_p2), %s528_s5, 4 }
  0x6d   : > { %s1449_s29 = smul.u32 (!%p482_p2), 384, %s495_s28  ;;  %s1179_s30 = sshll.u32 (!%p482_p2), %s1613_s22, 1 }
  0x6e   : > { %p536_p3 = scmp.lt.s32.totalorder (!%p482_p2), %s1179_s30, 3  ;;  %s1883_s19 = scalar_lea.vmem (!%p482_p2), [#allocation3], %s1448_s26 }
  0x6f   : > { %s1885_s17 = scalar_lea.vmem (!%p482_p2), [#allocation4], %s1449_s29  ;;  %s1887_s15 = scalar_lea.vmem (!%p482_p2), [#allocation5], %s1178_s6 }
  0x70   : > { %s2089_s30 = smov (!%p536_p3, %s1179_s30), 3  ;;  %p1181_p4 = scmp.ne.s32.totalorder %s1609_s21, 0 }
  0x71   : > { %s538_s11 = scalar_lea.vmem %s2056_s2, %s2089_s30  ;;  %s543_s27 = scalar_lea.vmem %s2057_s3, %s2089_s30 }
  0x72   : > { %550 = sbr.rel (%p1181_p4) target bundleno = 124 (0x7c), region = 104 }
  0x77   : > { %v1627_v52 = vmov 0.0  }
  0x78   : > { %551 = vst [vmem:[#allocation2 + $0x10] sm:$0xff] %v1627_v52 }
  0x79   : > { %552 = vst [vmem:[#allocation2] sm:$0xff] %v1627_v52 }
  0x7a   : > { %553 = vst [vmem:[#allocation2 + $0x18] sm:$0xff] %v1627_v52 }
  0x7b   : > { %554 = vst [vmem:[#allocation2 + $0x8] sm:$0xff] %v1627_v52 }
  0x7c PF: > { %v1252_v53 = vld [vmem:[%s1885_s17 + $0x70] sm:$0xf]  ;;  %v1412_v54 = vld [vmem:[%s1885_s17 + $0x74] sm:$0xf0]  ;;  %v1244_v62 = vld [vmem:[%s1885_s17 + $0x60] sm:$0xf] }
  0x7d   : > { %v1316_v55 = vld [vmem:[%s1885_s17 + $0xf0] sm:$0xf]  ;;  %v1253_v56 = vor.u32 %v1412_v54, %v1252_v53  ;;  %v1428_v57 = vld [vmem:[%s1885_s17 + $0xf4] sm:$0xf0]  ;;  %v1410_v63 = vld [vmem:[%s1885_s17 + $0x64] sm:$0xf0] }
  0x7e   : > { %v1380_v58 = vld [vmem:[%s1885_s17 + $0x170] sm:$0xf]  ;;  %v1444_v59 = vld [vmem:[%s1885_s17 + $0x174] sm:$0xf0]  ;;  %v1317_v60 = vor.u32 %v1428_v57, %v1316_v55  ;;  %v1308_v0 = vld [vmem:[%s1885_s17 + $0xe0] sm:$0xf]  ;;  %v1245_v1 = vor.u32 %v1410_v63, %v1244_v62 }
  0x7f   : > { %v1381_v61 = vor.u32 %v1444_v59, %v1380_v58  ;;  %867 = vmatpush.bf16.msra.mxu0 %v1253_v56  ;;  %v1426_v2 = vld [vmem:[%s1885_s17 + $0xe4] sm:$0xf0]  ;;  %v1372_v3 = vld [vmem:[%s1885_s17 + $0x160] sm:$0xf]  ;;  %v1236_v7 = vld [vmem:[%s1885_s17 + $0x50] sm:$0xf] }
  0x80   : > { %v1442_v4 = vld [vmem:[%s1885_s17 + $0x164] sm:$0xf0]  ;;  %881 = vmatpush.bf16.msra.mxu1 %v1317_v60  ;;  %v1309_v5 = vor.u32 %v1426_v2, %v1308_v0  ;;  %v1408_v8 = vld [vmem:[%s1885_s17 + $0x54] sm:$0xf0]  ;;  %v1300_v9 = vld [vmem:[%s1885_s17 + $0xd0] sm:$0xf] }
  0x81   : > { %895 = vmatpush.bf16.msra.mxu2 %v1381_v61  ;;  %v1373_v6 = vor.u32 %v1442_v4, %v1372_v3  ;;  %v1424_v10 = vld [vmem:[%s1885_s17 + $0xd4] sm:$0xf0]  ;;  %v1364_v11 = vld [vmem:[%s1885_s17 + $0x150] sm:$0xf]  ;;  %v1237_v13 = vor.u32 %v1408_v8, %v1236_v7  ;;  %v1228_v14 = vld [vmem:[%s1885_s17 + $0x40] sm:$0xf] }
  0x82   : > { %v1440_v12 = vld [vmem:[%s1885_s17 + $0x154] sm:$0xf0]  ;;  %v1406_v15 = vld [vmem:[%s1885_s17 + $0x44] sm:$0xf0]  ;;  %v1301_v16 = vor.u32 %v1424_v10, %v1300_v9  ;;  %v1292_v18 = vld [vmem:[%s1885_s17 + $0xc0] sm:$0xf] }
  0x83   : > { %868 = vmatpush.bf16.msra.mxu0 %v1245_v1  ;;  %v1365_v17 = vor.u32 %v1440_v12, %v1364_v11  ;;  %v1411_v19 = vld [vmem:[%s1885_s17 + $0x74] sm:$0xf]  ;;  %v1254_v20 = vld [vmem:[%s1885_s17 + $0x78] sm:$0xf0]  ;;  %v1422_v21 = vld [vmem:[%s1885_s17 + $0xc4] sm:$0xf0]  ;;  %v1229_v26 = vor.u32 %v1406_v15, %v1228_v14 }
  0x84   : > { %882 = vmatpush.bf16.msra.mxu1 %v1309_v5  ;;  %v1356_v22 = vld [vmem:[%s1885_s17 + $0x140] sm:$0xf]  ;;  %v1438_v23 = vld [vmem:[%s1885_s17 + $0x144] sm:$0xf0]  ;;  %v1257_v24 = vor.u32 %v1411_v19, %v1254_v20  ;;  %v1409_v25 = vld [vmem:[%s1885_s17 + $0x64] sm:$0xf]  ;;  %v1293_v30 = vor.u32 %v1422_v21, %v1292_v18 }
  0x85   : > { %896 = vmatpush.bf16.msra.mxu2 %v1373_v6  ;;  %v1220_v27 = vld [vmem:[%s1885_s17 + $0x30] sm:$0xf]  ;;  %v1404_v28 = vld [vmem:[%s1885_s17 + $0x34] sm:$0xf0]  ;;  %v1246_v29 = vld [vmem:[%s1885_s17 + $0x68] sm:$0xf0]  ;;  %v1357_v31 = vor.u32 %v1438_v23, %v1356_v22 }
  0x86   : > { %909 = vmatpush.bf16.msra.mxu3 %v1257_v24  ;;  %v1284_v32 = vld [vmem:[%s1885_s17 + $0xb0] sm:$0xf]  ;;  %v1420_v33 = vld [vmem:[%s1885_s17 + $0xb4] sm:$0xf0]  ;;  %v1249_v35 = vor.u32 %v1409_v25, %v1246_v29  ;;  %v1407_v37 = vld [vmem:[%s1885_s17 + $0x54] sm:$0xf]  ;;  %v1221_v39 = vor.u32 %v1404_v28, %v1220_v27 }
  0x87   : > { %869 = vmatpush.bf16.msra.mxu0 %v1237_v13  ;;  %v1348_v34 = vld [vmem:[%s1885_s17 + $0x130] sm:$0xf]  ;;  %v1436_v36 = vld [vmem:[%s1885_s17 + $0x134] sm:$0xf0]  ;;  %v1238_v38 = vld [vmem:[%s1885_s17 + $0x58] sm:$0xf0]  ;;  %v1285_v43 = vor.u32 %v1420_v33, %v1284_v32 }
  0x88   : > { %883 = vmatpush.bf16.msra.mxu1 %v1301_v16  ;;  %v1212_v40 = vld [vmem:[%s1885_s17 + $0x20] sm:$0xf]  ;;  %v1402_v41 = vld [vmem:[%s1885_s17 + $0x24] sm:$0xf0]  ;;  %v1241_v42 = vor.u32 %v1407_v37, %v1238_v38  ;;  %v1349_v44 = vor.u32 %v1436_v36, %v1348_v34  ;;  %v1405_v46 = vld [vmem:[%s1885_s17 + $0x44] sm:$0xf] }
  0x89   : > { %897 = vmatpush.bf16.msra.mxu2 %v1365_v17  ;;  %v1276_v45 = vld [vmem:[%s1885_s17 + $0xa0] sm:$0xf]  ;;  %v1230_v47 = vld [vmem:[%s1885_s17 + $0x48] sm:$0xf0]  ;;  %v1418_v48 = vld [vmem:[%s1885_s17 + $0xa4] sm:$0xf0]  ;;  %v1213_v51 = vor.u32 %v1402_v41, %v1212_v40 }
  0x8a   : > { %910 = vmatpush.bf16.msra.mxu3 %v1249_v35  ;;  %v1340_v49 = vld [vmem:[%s1885_s17 + $0x120] sm:$0xf]  ;;  %v1434_v50 = vld [vmem:[%s1885_s17 + $0x124] sm:$0xf0]  ;;  %v1204_v52 = vld [vmem:[%s1885_s17 + $0x10] sm:$0xf]  ;;  %v1233_v54 = vor.u32 %v1405_v46, %v1230_v47  ;;  %v1277_v55 = vor.u32 %v1418_v48, %v1276_v45 }
  0x8b   : > { %870 = vmatpush.bf16.msra.mxu0 %v1229_v26  ;;  %v1400_v53 = vld [vmem:[%s1885_s17 + $0x14] sm:$0xf0]  ;;  %v1341_v56 = vor.u32 %v1434_v50, %v1340_v49  ;;  %v1268_v57 = vld [vmem:[%s1885_s17 + $0x90] sm:$0xf]  ;;  %v1403_v58 = vld [vmem:[%s1885_s17 + $0x34] sm:$0xf] }
  0x8c   : > { %884 = vmatpush.bf16.msra.mxu1 %v1293_v30  ;;  %v1222_v59 = vld [vmem:[%s1885_s17 + $0x38] sm:$0xf0]  ;;  %v1416_v60 = vld [vmem:[%s1885_s17 + $0x94] sm:$0xf0]  ;;  %v1332_v61 = vld [vmem:[%s1885_s17 + $0x110] sm:$0xf]  ;;  %v1205_v63 = vor.u32 %v1400_v53, %v1204_v52 }
  0x8d   : > { %898 = vmatpush.bf16.msra.mxu2 %v1357_v31  ;;  %v1432_v62 = vld [vmem:[%s1885_s17 + $0x114] sm:$0xf0]  ;;  %v1196_v0 = vld [vmem:[%s1885_s17] sm:$0xf]  ;;  %v1398_v1 = vld [vmem:[%s1885_s17 + $0x4] sm:$0xf0]  ;;  %v1225_v3 = vor.u32 %v1403_v58, %v1222_v59  ;;  %v1269_v4 = vor.u32 %v1416_v60, %v1268_v57 }
  0x8e   : > { %911 = vmatpush.bf16.msra.mxu3 %v1241_v42  ;;  %v1260_v2 = vld [vmem:[%s1885_s17 + $0x80] sm:$0xf]  ;;  %v1333_v5 = vor.u32 %v1432_v62, %v1332_v61  ;;  %v1414_v6 = vld [vmem:[%s1885_s17 + $0x84] sm:$0xf0]  ;;  %v1401_v7 = vld [vmem:[%s1885_s17 + $0x24] sm:$0xf]  ;;  %v1197_v15 = vor.u32 %v1398_v1, %v1196_v0 }
  0x8f   : > { %871 = vmatpush.bf16.msra.mxu0 %v1221_v39  ;;  %v1214_v8 = vld [vmem:[%s1885_s17 + $0x28] sm:$0xf0]  ;;  %v1324_v9 = vld [vmem:[%s1885_s17 + $0x100] sm:$0xf]  ;;  %v1430_v10 = vld [vmem:[%s1885_s17 + $0x104] sm:$0xf0]  ;;  %v1261_v20 = vor.u32 %v1414_v6, %v1260_v2 }
  0x90   : > { %885 = vmatpush.bf16.msra.mxu1 %v1285_v43  ;;  %v1427_v11 = vld [vmem:[%s1885_s17 + $0xf4] sm:$0xf]  ;;  %v1318_v12 = vld [vmem:[%s1885_s17 + $0xf8] sm:$0xf0]  ;;  %v1192_v16 = vld [vmem:[%s1883_s19 + $0x8] sm:$0xf]  ;;  %v1217_v17 = vor.u32 %v1401_v7, %v1214_v8  ;;  %v1325_v21 = vor.u32 %v1430_v10, %v1324_v9 }
  0x91   : > { %899 = vmatpush.bf16.msra.mxu2 %v1349_v44  ;;  %v1443_v13 = vld [vmem:[%s1885_s17 + $0x174] sm:$0xf]  ;;  %v1382_v14 = vld [vmem:[%s1885_s17 + $0x178] sm:$0xf0]  ;;  %v1184_v18 = vld [vmem:[%s1883_s19] sm:$0xf]  ;;  %v1321_v25 = vor.u32 %v1427_v11, %v1318_v12 }
  0x92   : > { %912 = vmatpush.bf16.msra.mxu3 %v1233_v54  ;;  %v1395_v19 = vld [vmem:[%s1883_s19 + $0x8] sm:$0xf0]  ;;  %v1396_v22 = vld [vmem:[%s1883_s19 + $0x10] sm:$0xf0]  ;;  %v1394_v23 = vld [vmem:[%s1883_s19 + $0x4] sm:$0xf]  ;;  %v1385_v26 = vor.u32 %v1443_v13, %v1382_v14 }
  0x93   : > { %872 = vmatpush.bf16.msra.mxu0 %v1213_v51  ;;  %v1186_v24 = vld [vmem:[%s1883_s19 + $0xc] sm:$0xf0]  ;;  %v1425_v27 = vld [vmem:[%s1885_s17 + $0xe4] sm:$0xf]  ;;  %v1399_v28 = vld [vmem:[%s1885_s17 + $0x14] sm:$0xf]  ;;  %v1185_v33 = vor.u32 %v1395_v19, %v1184_v18  ;;  %v1966_v34 = vor.u32 %v1396_v22, %v1192_v16 }
  0x94   : > { %886 = vmatpush.bf16.msra.mxu1 %v1277_v55  ;;  %v1206_v29 = vld [vmem:[%s1885_s17 + $0x18] sm:$0xf0]  ;;  %v1310_v30 = vld [vmem:[%s1885_s17 + $0xe8] sm:$0xf0]  ;;  %v1441_v31 = vld [vmem:[%s1885_s17 + $0x164] sm:$0xf]  ;;  %v1968_v35 = vor.u32 %v1394_v23, %v1186_v24 }
  0x95   : > { %900 = vmatpush.bf16.msra.mxu2 %v1341_v56  ;;  %v1374_v32 = vld [vmem:[%s1885_s17 + $0x168] sm:$0xf0]  ;;  %v1209_v36 = vor.u32 %v1399_v28, %v1206_v29  ;;  %v1313_v37 = vor.u32 %v1425_v27, %v1310_v30  ;;  %v1423_v39 = vld [vmem:[%s1885_s17 + $0xd4] sm:$0xf]  ;;  %v1397_v40 = vld [vmem:[%s1885_s17 + $0x4] sm:$0xf] }
  0x96   : > { %913 = vmatpush.bf16.msra.mxu3 %v1225_v3  ;;  %v1377_v38 = vor.u32 %v1441_v31, %v1374_v32  ;;  %v1198_v41 = vld [vmem:[%s1885_s17 + $0x8] sm:$0xf0]  ;;  %v1302_v42 = vld [vmem:[%s1885_s17 + $0xd8] sm:$0xf0]  ;;  %v1439_v43 = vld [vmem:[%s1885_s17 + $0x154] sm:$0xf] }
  0x97   : > { %873 = vmatpush.bf16.msra.mxu0 %v1205_v63  ;;  %v1366_v44 = vld [vmem:[%s1885_s17 + $0x158] sm:$0xf0]  ;;  %v1201_v45 = vor.u32 %v1397_v40, %v1198_v41  ;;  %v1305_v46 = vor.u32 %v1423_v39, %v1302_v42  ;;  %v1421_v48 = vld [vmem:[%s1885_s17 + $0xc4] sm:$0xf]  ;;  %v1294_v49 = vld [vmem:[%s1885_s17 + $0xc8] sm:$0xf0] }
  0x98   : > { %887 = vmatpush.bf16.msra.mxu1 %v1269_v4  ;;  %v1369_v47 = vor.u32 %v1439_v43, %v1366_v44  ;;  %v1437_v50 = vld [vmem:[%s1885_s17 + $0x144] sm:$0xf]  ;;  %v1358_v51 = vld [vmem:[%s1885_s17 + $0x148] sm:$0xf0]  ;;  %v1297_v52 = vor.u32 %v1421_v48, %v1294_v49  ;;  %v1419_v54 = vld [vmem:[%s1885_s17 + $0xb4] sm:$0xf] }
  0x99   : > { %901 = vmatpush.bf16.msra.mxu2 %v1333_v5  ;;  %v1361_v53 = vor.u32 %v1437_v50, %v1358_v51  ;;  %v1286_v55 = vld [vmem:[%s1885_s17 + $0xb8] sm:$0xf0]  ;;  %v1435_v56 = vld [vmem:[%s1885_s17 + $0x134] sm:$0xf]  ;;  %v1417_v60 = vld [vmem:[%s1885_s17 + $0xa4] sm:$0xf] }
  0x9a   : > { %914 = vmatpush.bf16.msra.mxu3 %v1217_v17  ;;  %v1350_v57 = vld [vmem:[%s1885_s17 + $0x138] sm:$0xf0]  ;;  %v1289_v58 = vor.u32 %v1419_v54, %v1286_v55  ;;  %v1278_v61 = vld [vmem:[%s1885_s17 + $0xa8] sm:$0xf0]  ;;  %v1433_v62 = vld [vmem:[%s1885_s17 + $0x124] sm:$0xf] }
  0x9b   : > { %874 = vmatpush.bf16.msra.mxu0 %v1197_v15  ;;  %v1353_v59 = vor.u32 %v1435_v56, %v1350_v57  ;;  %v1342_v63 = vld [vmem:[%s1885_s17 + $0x128] sm:$0xf0]  ;;  %v1281_v0 = vor.u32 %v1417_v60, %v1278_v61  ;;  %v1415_v2 = vld [vmem:[%s1885_s17 + $0x94] sm:$0xf]  ;;  %v1270_v3 = vld [vmem:[%s1885_s17 + $0x98] sm:$0xf0] }
  0x9c   : > { %888 = vmatpush.bf16.msra.mxu1 %v1261_v20  ;;  %v1345_v1 = vor.u32 %v1433_v62, %v1342_v63  ;;  %v1431_v4 = vld [vmem:[%s1885_s17 + $0x114] sm:$0xf]  ;;  %v1334_v5 = vld [vmem:[%s1885_s17 + $0x118] sm:$0xf0]  ;;  %v1273_v6 = vor.u32 %v1415_v2, %v1270_v3  ;;  %v1413_v8 = vld [vmem:[%s1885_s17 + $0x84] sm:$0xf] }
  0x9d   : > { %902 = vmatpush.bf16.msra.mxu2 %v1325_v21  ;;  %v1337_v7 = vor.u32 %v1431_v4, %v1334_v5  ;;  %v1262_v9 = vld [vmem:[%s1885_s17 + $0x88] sm:$0xf0]  ;;  %v1429_v10 = vld [vmem:[%s1885_s17 + $0x104] sm:$0xf]  ;;  %v556_v32 = vld [vmem:[#allocation2] sm:$0xff]  ;;  %p1386_p5 = scmp.ne.s32.totalorder %s1609_s21, 5 }
  0x9e   : > { %875 = vmatmul.bf16.vlgmr.msra.gmra.mxu0 %v1185_v33  ;;  %915 = vmatpush.bf16.msra.mxu3 %v1209_v36  ;;  %v1326_v11 = vld [vmem:[%s1885_s17 + $0x108] sm:$0xf0]  ;;  %v1265_v12 = vor.u32 %v1413_v8, %v1262_v9  ;;  %v555_v17 = vld [vmem:[#allocation2 + $0x10] sm:$0xff] }
  0x9f   : > { %923 = vmatpush.bf16.msrb.mxu0 %v1321_v25  ;;  %889 = vmatmul.bf16.vlgmr.msra.gmra.mxu1 %v1968_v35  ;;  %v1329_v13 = vor.u32 %v1429_v10, %v1326_v11  ;;  %v557_v24 = vld [vmem:[#allocation2 + $0x18] sm:$0xff] }
  0xa0   : > { %937 = vmatpush.bf16.msrb.mxu1 %v1385_v26  ;;  %903 = vmatmul.bf16.vlgmr.msra.gmra.mxu2 %v1966_v34 }
  0xa2   : > { %916 = vmatpush.bf16.msra.mxu3 %v1201_v45 }
  0xa3   : > { %924 = vmatpush.bf16.msrb.mxu0 %v1313_v37 }
  0xa4   : > { %938 = vmatpush.bf16.msrb.mxu1 %v1377_v38  ;;  %v558_v38 = vld [vmem:[#allocation2 + $0x8] sm:$0xff] }
  0xa5   : > { %917 = vmatmul.bf16.vlgmr.msra.gmra.mxu3 %v1185_v33 }
  0xa7   : > { %925 = vmatpush.bf16.msrb.mxu0 %v1305_v46 }
  0xa8   : > { %939 = vmatpush.bf16.msrb.mxu1 %v1369_v47 }
  0xab   : > { %926 = vmatpush.bf16.msrb.mxu0 %v1297_v52 }
  0xac   : > { %940 = vmatpush.bf16.msrb.mxu1 %v1361_v53 }
  0xaf   : > { %927 = vmatpush.bf16.msrb.mxu0 %v1289_v58 }
  0xb0   : > { %941 = vmatpush.bf16.msrb.mxu1 %v1353_v59 }
  0xb3   : > { %928 = vmatpush.bf16.msrb.mxu0 %v1281_v0 }
  0xb4   : > { %942 = vmatpush.bf16.msrb.mxu1 %v1345_v1 }
  0xb7   : > { %929 = vmatpush.bf16.msrb.mxu0 %v1273_v6 }
  0xb8   : > { %943 = vmatpush.bf16.msrb.mxu1 %v1337_v7 }
  0xbb   : > { %930 = vmatpush.bf16.msrb.mxu0 %v1265_v12 }
  0xbc   : > { %944 = vmatpush.bf16.msrb.mxu1 %v1329_v13 }
  0xbe   : > { %931 = vmatmul.bf16.vlgmr.msrb.gmra.mxu0 %v1968_v35 }
  0xbf   : > { %945 = vmatmul.bf16.vlgmr.msrb.gmra.mxu1 %v1966_v34 }
 0x11b   : > { %v876_v14 = vpop.f32.mrf.mxu0 }
 0x11c   : > { %v890_v15 = vpop.f32.mrf.mxu1 }
 0x11d   : > { %v891_v16 = vadd.f32 %v890_v15, %v876_v14 }
 0x123   : > { %v904_v18 = vpop.f32.mrf.mxu2  ;;  %v878_v20 = vpop.f32.mrf.mxu0 }
 0x124   : > { %v905_v19 = vadd.f32 %v904_v18, %v891_v16  ;;  %v892_v21 = vpop.f32.mrf.mxu1 }
 0x125   : > { %v893_v23 = vadd.f32 %v892_v21, %v878_v20 }
 0x126   : > { %v951_v22 = vadd.f32 %v905_v19, %v555_v17 }
 0x128   : > { %955 = vst [vmem:[#allocation2 + $0x10] sm:$0xff] %v951_v22  ;;  %v918_v28 = vpop.f32.mrf.mxu3 }
 0x12b   : > { %v906_v25 = vpop.f32.mrf.mxu2 }
 0x12c   : > { %v907_v26 = vadd.f32 %v906_v25, %v893_v23 }
 0x12e   : > { %v953_v27 = vadd.f32 %v907_v26, %v557_v24 }
 0x130   : > { %957 = vst [vmem:[#allocation2 + $0x18] sm:$0xff] %v953_v27  ;;  %v920_v35 = vpop.f32.mrf.mxu3 }
 0x13b   : > { %v932_v29 = vpop.f32.mrf.mxu0 }
 0x13c   : > { %v946_v30 = vpop.f32.mrf.mxu1  ;;  %v933_v31 = vadd.f32 %v932_v29, %v918_v28 }
 0x13e   : > { %v947_v33 = vadd.f32 %v946_v30, %v933_v31 }
 0x140   : > { %v952_v34 = vadd.f32 %v947_v33, %v556_v32 }
 0x142   : > { %956 = vst [vmem:[#allocation2] sm:$0xff] %v952_v34 }
 0x143   : > { %v934_v36 = vpop.f32.mrf.mxu0 }
 0x144   : > { %v935_v37 = vadd.f32 %v934_v36, %v920_v35  ;;  %v948_v39 = vpop.f32.mrf.mxu1 }
 0x146   : > { %v949_v40 = vadd.f32 %v948_v39, %v935_v37  ;;  %962 = sbr.rel (%p1386_p5) target bundleno = 347 (0x15b), region = 108 }
 0x148   : > { %v954_v41 = vadd.f32 %v949_v40, %v558_v38 }
 0x14a   : > { %958 = vst [vmem:[#allocation2 + $0x8] sm:$0xff] %v954_v41 }
 0x14b   : > { %v963_v42 = vld [vmem:[#allocation2 + $0x10] sm:$0xff]  ;;  %v964_v43 = vld [vmem:[#allocation2] sm:$0xff]  ;;  %v965_v48 = vld [vmem:[#allocation2 + $0x18] sm:$0xff] }
 0x14c   : > { %v967_v44 = vld [vmem:[%s538_s11] sm:$0x3] }
 0x14d   : > { %v969_v45 = vperm.slane %v967_v44, 0  ;;  %v970_v46 = vperm.slane %v967_v44, 1  ;;  %v977_v47 = vld [vmem:[%s543_s27] sm:$0x3] }
 0x14e   : > { %v979_v50 = vperm.slane %v977_v47, 0  ;;  %v980_v51 = vperm.slane %v977_v47, 1 }
 0x14f   : > { %v973_v52 = vmul.f32 %v969_v45, %v963_v42  ;;  %v974_v53 = vmul.f32 %v970_v46, %v964_v43  ;;  %v975_v54 = vmul.f32 %v969_v45, %v965_v48 }
 0x151   : > { %v966_v49 = vld [vmem:[#allocation2 + $0x8] sm:$0xff]  ;;  %v983_v56 = vadd.f32 %v979_v50, %v973_v52  ;;  %v984_v57 = vadd.f32 %v980_v51, %v974_v53  ;;  %v985_v58 = vadd.f32 %v979_v50, %v975_v54 }
 0x152   : > { %v976_v55 = vmul.f32 %v970_v46, %v966_v49 }
 0x153   : > { %v987_v60 = vmax.f32 %v983_v56, 0.0  ;;  %v988_v61 = vmax.f32 %v984_v57, 0.0  ;;  %v989_v62 = vmax.f32 %v985_v58, 0.0 }
 0x154   : > { %v986_v59 = vadd.f32 %v980_v51, %v976_v55 }
 0x155   : > { %v991_v0 = vpack.c.bf16 %v988_v61, %v987_v60 }
 0x156   : > { %v990_v63 = vmax.f32 %v986_v59, 0.0 }
 0x157   : > { %993 = vst [vmem:[%s1887_s15] sm:$0xff] %v991_v0 }
 0x158   : > { %v992_v1 = vpack.c.bf16 %v990_v63, %v989_v62 }
 0x15a   : > { %994 = vst [vmem:[%s1887_s15 + $0x8] sm:$0xff] %v992_v1 }
 0x15b PF: > { %1001 = sbr.rel (!%p1747_p12) target bundleno = 355 (0x163), region = 112  ;;  %s1445_s21 = sshll.u32 (%p1747_p12), %s1613_s22, 3 }
 0x15c   : > { %s1007_s29 = scalar_lea.vmem (%p1747_p12), %s2058_s4, %s1445_s21 }
 0x15e   : > { %v1038_v2 = vld [vmem:[%s1887_s15] sm:$0xff] (%p1747_p12) }
 0x15f   : > { %1039 = vst [vmem:[%s1007_s29] sm:$0xff] (%p1747_p12), %v1038_v2 }
 0x161   : > { %v1040_v3 = vld [vmem:[%s1887_s15 + $0x8] sm:$0xff] }
 0x162   : > { %1041 = vst [vmem:[%s1007_s29 + $0x10] sm:$0xff] %v1040_v3 }
 0x163 PF: > { %s14_s25 = sadd.s32 1, %s1625_s25   ;;  %s2070_s14 = sld [smem:[#allocation6_spill]] }
 0x164   : > { %p11_p6 = scmp.ge.s32.totalorder %s14_s25, 14   ;;  %s2071_s6 = sld [smem:[#allocation7_spill]] }
 0x165   : > { %s2072_s15 = smov %s1589_s16  ;;  %s2073_s16 = smov %s1745_s13 }
 0x166   : > { %s2074_s17 = smov %s1597_s18  ;;  %s2075_s18 = smov %s1742_s12 }
 0x167   : > { %s2076_s19 = smov %s1605_s20  ;;  %s2077_s20 = smov %s1728_s7 }
 0x168   : > { %s2078_s21 = smov %s1617_s23  ;;  %s2079_s22 = smov %s1621_s24 }
 0x169   : > { %s2080_s23 = smov %s2070_s14  ;;  %13 = sbr.rel (!%p11_p6) target bundleno = 9 (0x9), region = 201 }
 0x16a   : > { %s2081_s24 = smov %s2071_s6 }

// kernel: _lambda_.23
= control target key start
LH: loop header
LB: loop body
LE: loop exit
PB: predicated region body
PF: predicated region fallthrough
CT: control target
= control target key end

     0   :  { %s1230_s15 = smov 0   ;;  %s1232_s16 = smov 0   ;;  %s1459_s0 = inlined_call_operand.vmem [shape: bf16[16,256], index: 0, kind: input, shape index: {}]   ;;  %s1460_s1 = inlined_call_operand.vmem [shape: bf16[256,512], index: 1, kind: input, shape index: {}]   ;;  %s1461_s2 = inlined_call_operand.vmem [shape: f32[1,512], index: 2, kind: input, shape index: {}]   ;;  %s1462_s3 = inlined_call_operand.vmem [shape: f32[1,512], index: 3, kind: input, shape index: {}]   ;;  %s1463_s4 = inlined_call_operand.vmem [shape: bf16[16,512], index: 4, kind: output, shape index: {}]  }
   0x1   :  { %s1234_s17 = smov 0   ;;  %s1236_s18 = smov 0  }
   0x2   :  { %s1238_s19 = smov 0  }
   0x3 LB: > { %s29_s20 = sadd.s32 1, %s1199_s18  ;;  %s935_s21 = sadd.s32 4294967295, %s1203_s19   ;;  %s1203_s19 = sphi %s1238_s19, %s14_s19   ;;  %s1199_s18 = sphi %s1236_s18, %s1468_s18   ;;  %s1195_s17 = sphi %s1234_s17, %s1467_s17   ;;  %s1191_s16 = sphi %s1232_s16, %s1466_s16   ;;  %s1187_s15 = sphi %s1230_s15, %s1465_s15  }
   0x4   : > { %p31_p0 = scmp.ge.s32.totalorder %s29_s20, 2  ;;  %p77_p1 = scmp.ne.s32.totalorder %s1191_s16, %s1187_s15 }
   0x5   : > { %p78_p2 = scmp.eq.s32.totalorder %s1203_s19, 0  ;;  %p161_p4 = scmp.eq.s32.totalorder %s935_s21, 1 }
   0x6   : > { %s1470_s20 = smov (%p31_p0, %s29_s20), 0  ;;  %s70_s23 = sadd.s32 1, %s1191_s16 }
   0x7   : > { %p79_p3 = por %p78_p2, %p77_p1  ;;  %s66_s22 = ssub.s32 %s1199_s18, %s1470_s20 }
   0x8   : > { %p68_p5 = scmp.eq.s32.totalorder %s66_s22, 0  ;;  %p1265_p6 = por %p161_p4, %p77_p1 }
   0x9   : > { %p939_p7 = scmp.ge.s32.totalorder %s1203_s19, 2 }
   0xa   : > { %s1270_s25 = scalar_select %p68_p5, %s1191_s16, %s70_s23  }
   0xb   : > { %198 = sbr.rel (%p939_p7) target bundleno = 52 (0x34), region = 20 }
  0x10   : > { %201 = sbr.rel (!%p79_p3) target bundleno = 52 (0x34), region = 24  ;;  %s203_s26 = sand.u32 (%p79_p3), 1, %s1191_s16  }
  0x11   : > { %s1089_s27 = sshll.u32 (%p79_p3), %s1199_s18, 3  ;;  %s940_s28 = sshll.u32 (%p79_p3), %s203_s26, 8 }
  0x12   : > { %s1278_s5 = scalar_lea.vmem (%p79_p3), %s1460_s1, %s1089_s27  ;;  %s1283_s6 = scalar_lea.vmem (%p79_p3), [#allocation3], %s940_s28 }
  0x13   : > { %v302_v0 = vld [vmem:[%s1278_s5] sm:$0xff] (%p79_p3)  ;;  %v304_v1 = vld [vmem:[%s1278_s5 + $0x10] sm:$0xff] (%p79_p3) }
  0x14   : > { %v306_v2 = vld [vmem:[%s1278_s5 + $0x20] sm:$0xff] (%p79_p3)  ;;  %303 = vst [vmem:[%s1283_s6] sm:$0xff] (%p79_p3), %v302_v0  ;;  %v308_v3 = vld [vmem:[%s1278_s5 + $0x30] sm:$0xff] (%p79_p3) }
  0x15   : > { %305 = vst [vmem:[%s1283_s6 + $0x8] sm:$0xff] %v304_v1  ;;  %v310_v4 = vld [vmem:[%s1278_s5 + $0x40] sm:$0xff]  ;;  %v312_v5 = vld [vmem:[%s1278_s5 + $0x50] sm:$0xff] }
  0x16   : > { %307 = vst [vmem:[%s1283_s6 + $0x10] sm:$0xff] %v306_v2  ;;  %v314_v6 = vld [vmem:[%s1278_s5 + $0x60] sm:$0xff]  ;;  %v316_v7 = vld [vmem:[%s1278_s5 + $0x70] sm:$0xff] }
  0x17   : > { %309 = vst [vmem:[%s1283_s6 + $0x18] sm:$0xff] %v308_v3  ;;  %v318_v8 = vld [vmem:[%s1278_s5 + $0x80] sm:$0xff]  ;;  %v320_v9 = vld [vmem:[%s1278_s5 + $0x90] sm:$0xff] }
  0x18   : > { %311 = vst [vmem:[%s1283_s6 + $0x20] sm:$0xff] %v310_v4  ;;  %v322_v10 = vld [vmem:[%s1278_s5 + $0xa0] sm:$0xff]  ;;  %v324_v11 = vld [vmem:[%s1278_s5 + $0xb0] sm:$0xff] }
  0x19   : > { %313 = vst [vmem:[%s1283_s6 + $0x28] sm:$0xff] %v312_v5  ;;  %v326_v12 = vld [vmem:[%s1278_s5 + $0xc0] sm:$0xff]  ;;  %v328_v13 = vld [vmem:[%s1278_s5 + $0xd0] sm:$0xff] }
  0x1a   : > { %315 = vst [vmem:[%s1283_s6 + $0x30] sm:$0xff] %v314_v6  ;;  %v330_v14 = vld [vmem:[%s1278_s5 + $0xe0] sm:$0xff]  ;;  %v332_v15 = vld [vmem:[%s1278_s5 + $0xf0] sm:$0xff] }
  0x1b   : > { %317 = vst [vmem:[%s1283_s6 + $0x38] sm:$0xff] %v316_v7  ;;  %v334_v16 = vld [vmem:[%s1278_s5 + $0x100] sm:$0xff]  ;;  %v336_v17 = vld [vmem:[%s1278_s5 + $0x110] sm:$0xff] }
  0x1c   : > { %319 = vst [vmem:[%s1283_s6 + $0x40] sm:$0xff] %v318_v8  ;;  %v338_v18 = vld [vmem:[%s1278_s5 + $0x120] sm:$0xff]  ;;  %v340_v19 = vld [vmem:[%s1278_s5 + $0x130] sm:$0xff] }
  0x1d   : > { %321 = vst [vmem:[%s1283_s6 + $0x48] sm:$0xff] %v320_v9  ;;  %v342_v20 = vld [vmem:[%s1278_s5 + $0x140] sm:$0xff]  ;;  %v344_v21 = vld [vmem:[%s1278_s5 + $0x150] sm:$0xff] }
  0x1e   : > { %323 = vst [vmem:[%s1283_s6 + $0x50] sm:$0xff] %v322_v10  ;;  %v346_v22 = vld [vmem:[%s1278_s5 + $0x160] sm:$0xff]  ;;  %v348_v23 = vld [vmem:[%s1278_s5 + $0x170] sm:$0xff] }
  0x1f   : > { %325 = vst [vmem:[%s1283_s6 + $0x58] sm:$0xff] %v324_v11  ;;  %v350_v24 = vld [vmem:[%s1278_s5 + $0x180] sm:$0xff]  ;;  %v352_v25 = vld [vmem:[%s1278_s5 + $0x190] sm:$0xff] }
  0x20   : > { %327 = vst [vmem:[%s1283_s6 + $0x60] sm:$0xff] %v326_v12  ;;  %v354_v26 = vld [vmem:[%s1278_s5 + $0x1a0] sm:$0xff]  ;;  %v356_v27 = vld [vmem:[%s1278_s5 + $0x1b0] sm:$0xff] }
  0x21   : > { %329 = vst [vmem:[%s1283_s6 + $0x68] sm:$0xff] %v328_v13  ;;  %v358_v28 = vld [vmem:[%s1278_s5 + $0x1c0] sm:$0xff]  ;;  %v360_v29 = vld [vmem:[%s1278_s5 + $0x1d0] sm:$0xff] }
  0x22   : > { %331 = vst [vmem:[%s1283_s6 + $0x70] sm:$0xff] %v330_v14  ;;  %v362_v30 = vld [vmem:[%s1278_s5 + $0x1e0] sm:$0xff]  ;;  %v364_v31 = vld [vmem:[%s1278_s5 + $0x1f0] sm:$0xff] }
  0x23   : > { %333 = vst [vmem:[%s1283_s6 + $0x78] sm:$0xff] %v332_v15 }
  0x24   : > { %335 = vst [vmem:[%s1283_s6 + $0x80] sm:$0xff] %v334_v16 }
  0x25   : > { %337 = vst [vmem:[%s1283_s6 + $0x88] sm:$0xff] %v336_v17 }
  0x26   : > { %339 = vst [vmem:[%s1283_s6 + $0x90] sm:$0xff] %v338_v18 }
  0x27   : > { %341 = vst [vmem:[%s1283_s6 + $0x98] sm:$0xff] %v340_v19 }
  0x28   : > { %343 = vst [vmem:[%s1283_s6 + $0xa0] sm:$0xff] %v342_v20 }
  0x29   : > { %345 = vst [vmem:[%s1283_s6 + $0xa8] sm:$0xff] %v344_v21 }
  0x2a   : > { %347 = vst [vmem:[%s1283_s6 + $0xb0] sm:$0xff] %v346_v22 }
  0x2b   : > { %349 = vst [vmem:[%s1283_s6 + $0xb8] sm:$0xff] %v348_v23 }
  0x2c   : > { %351 = vst [vmem:[%s1283_s6 + $0xc0] sm:$0xff] %v350_v24 }
  0x2d   : > { %353 = vst [vmem:[%s1283_s6 + $0xc8] sm:$0xff] %v352_v25 }
  0x2e   : > { %355 = vst [vmem:[%s1283_s6 + $0xd0] sm:$0xff] %v354_v26 }
  0x2f   : > { %357 = vst [vmem:[%s1283_s6 + $0xd8] sm:$0xff] %v356_v27 }
  0x30   : > { %359 = vst [vmem:[%s1283_s6 + $0xe0] sm:$0xff] %v358_v28 }
  0x31   : > { %361 = vst [vmem:[%s1283_s6 + $0xe8] sm:$0xff] %v360_v29 }
  0x32   : > { %363 = vst [vmem:[%s1283_s6 + $0xf0] sm:$0xff] %v362_v30 }
  0x33   : > { %365 = vst [vmem:[%s1283_s6 + $0xf8] sm:$0xff] %v364_v31 }
  0x34 PF: > { %p943_p8 = scmp.ge.s32.totalorder %s1203_s19, 1  ;;  %p386_p9 = scmp.lt.s32.totalorder %s1203_s19, 3 }
  0x36   : > { %p387_p10 = pnand %p943_p8, %p386_p9 }
  0x37   : > { %s393_s7 = sand.u32 (!%p387_p10), 1, %s1187_s15   ;;  %s946_s26 = sshll.u32 (!%p387_p10), %s1195_s17, 1 }
  0x38   : > { %390 = sbr.rel (%p387_p10) target bundleno = 254 (0xfe), region = 70  ;;  %s944_s8 = sshll.u32 (!%p387_p10), %s393_s7, 8 }
  0x39   : > { %s1351_s9 = scalar_lea.vmem (!%p387_p10), [#allocation3], %s944_s8  ;;  %p450_p11 = scmp.lt.s32.totalorder (!%p387_p10), %s946_s26, 3 }
  0x3a   : > { %s945_s8 = sshll.u32 (!%p387_p10), %s393_s7, 4 }
  0x3d   : > { %v1014_v32 = vld [vmem:[%s1351_s9 + $0x70] sm:$0xf]  ;;  %v1107_v33 = vld [vmem:[%s1351_s9 + $0x74] sm:$0xf0]  ;;  %v1106_v37 = vld [vmem:[%s1351_s9 + $0x74] sm:$0xf] }
  0x3e   : > { %v1078_v34 = vld [vmem:[%s1351_s9 + $0xf0] sm:$0xf]  ;;  %v1015_v35 = vor.u32 %v1107_v33, %v1014_v32  ;;  %v1123_v36 = vld [vmem:[%s1351_s9 + $0xf4] sm:$0xf0]  ;;  %v1016_v38 = vld [vmem:[%s1351_s9 + $0x78] sm:$0xf0] }
  0x3f   : > { %v1079_v39 = vor.u32 %v1123_v36, %v1078_v34  ;;  %v1019_v40 = vor.u32 %v1106_v37, %v1016_v38  ;;  %v1122_v41 = vld [vmem:[%s1351_s9 + $0xf4] sm:$0xf]  ;;  %v1080_v42 = vld [vmem:[%s1351_s9 + $0xf8] sm:$0xf0]  ;;  %v1006_v43 = vld [vmem:[%s1351_s9 + $0x60] sm:$0xf] }
  0x40   : > { %677 = vmatpush.bf16.msra.mxu0 %v1015_v35  ;;  %v1083_v44 = vor.u32 %v1122_v41, %v1080_v42  ;;  %v1105_v45 = vld [vmem:[%s1351_s9 + $0x64] sm:$0xf0]  ;;  %v1070_v46 = vld [vmem:[%s1351_s9 + $0xe0] sm:$0xf]  ;;  %v1104_v50 = vld [vmem:[%s1351_s9 + $0x64] sm:$0xf] }
  0x41   : > { %v1121_v47 = vld [vmem:[%s1351_s9 + $0xe4] sm:$0xf0]  ;;  %691 = vmatpush.bf16.msra.mxu1 %v1079_v39  ;;  %705 = vmatpush.bf16.msra.mxu2 %v1019_v40  ;;  %v1007_v48 = vor.u32 %v1105_v45, %v1006_v43  ;;  %v1008_v51 = vld [vmem:[%s1351_s9 + $0x68] sm:$0xf0]  ;;  %v1120_v52 = vld [vmem:[%s1351_s9 + $0xe4] sm:$0xf] }
  0x42   : > { %v1071_v49 = vor.u32 %v1121_v47, %v1070_v46  ;;  %719 = vmatpush.bf16.msra.mxu3 %v1083_v44  ;;  %v1011_v53 = vor.u32 %v1104_v50, %v1008_v51  ;;  %v1072_v54 = vld [vmem:[%s1351_s9 + $0xe8] sm:$0xf0]  ;;  %v998_v55 = vld [vmem:[%s1351_s9 + $0x50] sm:$0xf]  ;;  %v1103_v56 = vld [vmem:[%s1351_s9 + $0x54] sm:$0xf0] }
  0x43   : > { %v1075_v57 = vor.u32 %v1120_v52, %v1072_v54  ;;  %v1062_v58 = vld [vmem:[%s1351_s9 + $0xd0] sm:$0xf]  ;;  %v1119_v59 = vld [vmem:[%s1351_s9 + $0xd4] sm:$0xf0]  ;;  %v1102_v60 = vld [vmem:[%s1351_s9 + $0x54] sm:$0xf]  ;;  %v999_v61 = vor.u32 %v1103_v56, %v998_v55 }
  0x44   : > { %678 = vmatpush.bf16.msra.mxu0 %v1007_v48  ;;  %v1000_v62 = vld [vmem:[%s1351_s9 + $0x58] sm:$0xf0]  ;;  %v1118_v63 = vld [vmem:[%s1351_s9 + $0xd4] sm:$0xf]  ;;  %v1063_v1 = vor.u32 %v1119_v59, %v1062_v58  ;;  %v990_v3 = vld [vmem:[%s1351_s9 + $0x40] sm:$0xf] }
  0x45   : > { %v1064_v0 = vld [vmem:[%s1351_s9 + $0xd8] sm:$0xf0]  ;;  %692 = vmatpush.bf16.msra.mxu1 %v1071_v49  ;;  %706 = vmatpush.bf16.msra.mxu2 %v1011_v53  ;;  %v1003_v2 = vor.u32 %v1102_v60, %v1000_v62  ;;  %v1101_v4 = vld [vmem:[%s1351_s9 + $0x44] sm:$0xf0]  ;;  %v1054_v5 = vld [vmem:[%s1351_s9 + $0xc0] sm:$0xf] }
  0x46   : > { %720 = vmatpush.bf16.msra.mxu3 %v1075_v57  ;;  %v1067_v6 = vor.u32 %v1118_v63, %v1064_v0  ;;  %v1117_v7 = vld [vmem:[%s1351_s9 + $0xc4] sm:$0xf0]  ;;  %v1100_v8 = vld [vmem:[%s1351_s9 + $0x44] sm:$0xf]  ;;  %v992_v9 = vld [vmem:[%s1351_s9 + $0x48] sm:$0xf0]  ;;  %v991_v12 = vor.u32 %v1101_v4, %v990_v3 }
  0x47   : > { %v1116_v10 = vld [vmem:[%s1351_s9 + $0xc4] sm:$0xf]  ;;  %v1056_v11 = vld [vmem:[%s1351_s9 + $0xc8] sm:$0xf0]  ;;  %v1055_v13 = vor.u32 %v1117_v7, %v1054_v5  ;;  %v995_v14 = vor.u32 %v1100_v8, %v992_v9  ;;  %v982_v15 = vld [vmem:[%s1351_s9 + $0x30] sm:$0xf] }
  0x48   : > { %679 = vmatpush.bf16.msra.mxu0 %v999_v61  ;;  %v1099_v16 = vld [vmem:[%s1351_s9 + $0x34] sm:$0xf0]  ;;  %v1046_v17 = vld [vmem:[%s1351_s9 + $0xb0] sm:$0xf]  ;;  %v1059_v18 = vor.u32 %v1116_v10, %v1056_v11  ;;  %v1098_v20 = vld [vmem:[%s1351_s9 + $0x34] sm:$0xf] }
  0x49   : > { %693 = vmatpush.bf16.msra.mxu1 %v1063_v1  ;;  %707 = vmatpush.bf16.msra.mxu2 %v1003_v2  ;;  %v1115_v19 = vld [vmem:[%s1351_s9 + $0xb4] sm:$0xf0]  ;;  %v984_v21 = vld [vmem:[%s1351_s9 + $0x38] sm:$0xf0]  ;;  %v1114_v22 = vld [vmem:[%s1351_s9 + $0xb4] sm:$0xf]  ;;  %v983_v24 = vor.u32 %v1099_v16, %v982_v15 }
  0x4a   : > { %721 = vmatpush.bf16.msra.mxu3 %v1067_v6  ;;  %v1048_v23 = vld [vmem:[%s1351_s9 + $0xb8] sm:$0xf0]  ;;  %v1047_v25 = vor.u32 %v1115_v19, %v1046_v17  ;;  %v987_v26 = vor.u32 %v1098_v20, %v984_v21  ;;  %v974_v27 = vld [vmem:[%s1351_s9 + $0x20] sm:$0xf]  ;;  %v1097_v28 = vld [vmem:[%s1351_s9 + $0x24] sm:$0xf0] }
  0x4b   : > { %v1038_v29 = vld [vmem:[%s1351_s9 + $0xa0] sm:$0xf]  ;;  %v1051_v30 = vor.u32 %v1114_v22, %v1048_v23  ;;  %v1113_v31 = vld [vmem:[%s1351_s9 + $0xa4] sm:$0xf0]  ;;  %v1096_v32 = vld [vmem:[%s1351_s9 + $0x24] sm:$0xf]  ;;  %v975_v36 = vor.u32 %v1097_v28, %v974_v27 }
  0x4c   : > { %680 = vmatpush.bf16.msra.mxu0 %v991_v12  ;;  %v976_v33 = vld [vmem:[%s1351_s9 + $0x28] sm:$0xf0]  ;;  %v1112_v34 = vld [vmem:[%s1351_s9 + $0xa4] sm:$0xf]  ;;  %v1039_v37 = vor.u32 %v1113_v31, %v1038_v29  ;;  %v966_v39 = vld [vmem:[%s1351_s9 + $0x10] sm:$0xf] }
  0x4d   : > { %694 = vmatpush.bf16.msra.mxu1 %v1055_v13  ;;  %708 = vmatpush.bf16.msra.mxu2 %v995_v14  ;;  %v1040_v35 = vld [vmem:[%s1351_s9 + $0xa8] sm:$0xf0]  ;;  %v979_v38 = vor.u32 %v1096_v32, %v976_v33  ;;  %v1095_v40 = vld [vmem:[%s1351_s9 + $0x14] sm:$0xf0]  ;;  %v1030_v41 = vld [vmem:[%s1351_s9 + $0x90] sm:$0xf] }
  0x4e   : > { %722 = vmatpush.bf16.msra.mxu3 %v1059_v18  ;;  %v1043_v42 = vor.u32 %v1112_v34, %v1040_v35  ;;  %v1111_v43 = vld [vmem:[%s1351_s9 + $0x94] sm:$0xf0]  ;;  %v1094_v44 = vld [vmem:[%s1351_s9 + $0x14] sm:$0xf]  ;;  %v968_v45 = vld [vmem:[%s1351_s9 + $0x18] sm:$0xf0]  ;;  %v967_v48 = vor.u32 %v1095_v40, %v966_v39 }
  0x4f   : > { %v1110_v46 = vld [vmem:[%s1351_s9 + $0x94] sm:$0xf]  ;;  %v1032_v47 = vld [vmem:[%s1351_s9 + $0x98] sm:$0xf0]  ;;  %v1031_v49 = vor.u32 %v1111_v43, %v1030_v41  ;;  %v971_v50 = vor.u32 %v1094_v44, %v968_v45  ;;  %v958_v51 = vld [vmem:[%s1351_s9] sm:$0xf] }
  0x50   : > { %681 = vmatpush.bf16.msra.mxu0 %v983_v24  ;;  %v1093_v52 = vld [vmem:[%s1351_s9 + $0x4] sm:$0xf0]  ;;  %v1022_v53 = vld [vmem:[%s1351_s9 + $0x80] sm:$0xf]  ;;  %v1035_v54 = vor.u32 %v1110_v46, %v1032_v47  ;;  %v1092_v56 = vld [vmem:[%s1351_s9 + $0x4] sm:$0xf] }
  0x51   : > { %695 = vmatpush.bf16.msra.mxu1 %v1047_v25  ;;  %709 = vmatpush.bf16.msra.mxu2 %v987_v26  ;;  %v1109_v55 = vld [vmem:[%s1351_s9 + $0x84] sm:$0xf0]  ;;  %v960_v57 = vld [vmem:[%s1351_s9 + $0x8] sm:$0xf0]  ;;  %v1108_v58 = vld [vmem:[%s1351_s9 + $0x84] sm:$0xf]  ;;  %v959_v60 = vor.u32 %v1093_v52, %v958_v51 }
  0x52   : > { %723 = vmatpush.bf16.msra.mxu3 %v1051_v30  ;;  %v1024_v59 = vld [vmem:[%s1351_s9 + $0x88] sm:$0xf0]  ;;  %v950_v61 = vld [vmem:[%s1459_s0] sm:$0xf]  ;;  %v1091_v62 = vld [vmem:[%s1459_s0 + $0x4] sm:$0xf0]  ;;  %v1023_v63 = vor.u32 %v1109_v55, %v1022_v53  ;;  %v963_v0 = vor.u32 %v1092_v56, %v960_v57 }
  0x53   : > { %v1090_v1 = vld [vmem:[%s1459_s0 + $0x4] sm:$0xf]  ;;  %v952_v2 = vld [vmem:[%s1459_s0 + $0x8] sm:$0xf0]  ;;  %v1027_v3 = vor.u32 %v1108_v58, %v1024_v59  ;;  %v951_v4 = vor.u32 %v1091_v62, %v950_v61  ;;  %s1472_s26 = smov (!%p450_p11, %s946_s26), 3  ;;  %s434_s9 = scalar_lea.vmem [#allocation4], %s945_s8 }
  0x54   : > { %682 = vmatpush.bf16.msra.mxu0 %v975_v36  ;;  %v955_v5 = vor.u32 %v1090_v1, %v952_v2  ;;  %s452_s29 = scalar_lea.vmem %s1461_s2, %s1472_s26  ;;  %s457_s6 = scalar_lea.vmem %s1462_s3, %s1472_s26 }
  0x55   : > { %696 = vmatpush.bf16.msra.mxu1 %v1039_v37  ;;  %710 = vmatpush.bf16.msra.mxu2 %v979_v38  ;;  %v748_v7 = vld [vmem:[%s452_s29] sm:$0x3]  ;;  %s1124_s15 = sshll.u32 (%p1265_p6), %s1195_s17, 3 }
  0x56   : > { %724 = vmatpush.bf16.msra.mxu3 %v1043_v42  ;;  %v750_v10 = vperm.slane %v748_v7, 0  ;;  %v758_v11 = vld [vmem:[%s457_s6] sm:$0x3]  ;;  %v751_v15 = vperm.slane %v748_v7, 1  ;;  %s784_s11 = scalar_lea.vmem (%p1265_p6), %s1463_s4, %s1124_s15 }
  0x57   : > { %v760_v13 = vperm.slane %v758_v11, 0  ;;  %v761_v18 = vperm.slane %v758_v11, 1 }
  0x58   : > { %683 = vmatpush.bf16.msra.mxu0 %v967_v48 }
  0x59   : > { %697 = vmatpush.bf16.msra.mxu1 %v1031_v49  ;;  %711 = vmatpush.bf16.msra.mxu2 %v971_v50 }
  0x5a   : > { %725 = vmatpush.bf16.msra.mxu3 %v1035_v54 }
  0x5c   : > { %684 = vmatpush.bf16.msra.mxu0 %v959_v60 }
  0x5d   : > { %698 = vmatpush.bf16.msra.mxu1 %v1023_v63  ;;  %712 = vmatpush.bf16.msra.mxu2 %v963_v0 }
  0x5e   : > { %726 = vmatpush.bf16.msra.mxu3 %v1027_v3 }
  0x5f   : > { %685 = vmatmul.bf16.vlgmr.msra.gmra.mxu0 %v951_v4 }
  0x60   : > { %699 = vmatmul.bf16.vlgmr.msra.gmra.mxu1 %v955_v5  ;;  %713 = vmatmul.bf16.vlgmr.msra.gmra.mxu2 %v951_v4 }
  0x61   : > { %727 = vmatmul.bf16.vlgmr.msra.gmra.mxu3 %v955_v5 }
  0xdc   : > { %v686_v6 = vpop.f32.mrf.mxu0 }
  0xdd   : > { %v700_v8 = vpop.f32.mrf.mxu1 }
  0xde   : > { %v701_v9 = vadd.f32 %v700_v8, %v686_v6 }
  0xe0   : > { %v754_v12 = vmul.f32 %v750_v10, %v701_v9 }
  0xe2   : > { %v764_v21 = vadd.f32 %v760_v13, %v754_v12 }
  0xe3   : > { %v714_v14 = vpop.f32.mrf.mxu2 }
  0xe4   : > { %v728_v16 = vpop.f32.mrf.mxu3  ;;  %v688_v19 = vpop.f32.mrf.mxu0 }
  0xe5   : > { %v729_v17 = vadd.f32 %v728_v16, %v714_v14  ;;  %v702_v20 = vpop.f32.mrf.mxu1 }
  0xe6   : > { %v703_v24 = vadd.f32 %v702_v20, %v688_v19 }
  0xe7   : > { %v755_v22 = vmul.f32 %v751_v15, %v729_v17 }
  0xe8   : > { %v756_v28 = vmul.f32 %v750_v10, %v703_v24 }
  0xe9   : > { %v765_v23 = vadd.f32 %v761_v18, %v755_v22 }
  0xea   : > { %v766_v31 = vadd.f32 %v760_v13, %v756_v28 }
  0xeb   : > { %v768_v25 = vpack.c.bf16 %v765_v23, %v764_v21  ;;  %v716_v26 = vpop.f32.mrf.mxu2 }
  0xec   : > { %v730_v27 = vpop.f32.mrf.mxu3 }
  0xed   : > { %770 = vst [vmem:[%s434_s9] sm:$0xff] %v768_v25  ;;  %v731_v29 = vadd.f32 %v730_v27, %v716_v26 }
  0xef   : > { %v757_v30 = vmul.f32 %v751_v15, %v731_v29 }
  0xf1   : > { %v767_v32 = vadd.f32 %v761_v18, %v757_v30  ;;  %778 = sbr.rel (!%p1265_p6) target bundleno = 254 (0xfe), region = 86 }
  0xf3   : > { %v769_v33 = vpack.c.bf16 %v767_v32, %v766_v31 }
  0xf4   : > { %v815_v34 = vld [vmem:[%s434_s9] sm:$0xff] (%p1265_p6) }
  0xf5   : > { %771 = vst [vmem:[%s434_s9 + $0x8] sm:$0xff] %v769_v33 }
  0xf6   : > { %816 = vst [vmem:[%s784_s11] sm:$0xff] %v815_v34 }
  0xfc   : > { %v817_v35 = vld [vmem:[%s434_s9 + $0x8] sm:$0xff] }
  0xfd   : > { %818 = vst [vmem:[%s784_s11 + $0x10] sm:$0xff] %v817_v35 }
  0xfe PF: > { %s14_s19 = sadd.s32 1, %s1203_s19   ;;  %s1465_s15 = smov %s1191_s16 }
  0xff   : > { %p11_p12 = scmp.ge.s32.totalorder %s14_s19, 4   ;;  %s1466_s16 = smov %s1270_s25 }
 0x100   : > { %s1467_s17 = smov %s1199_s18  ;;  %s1468_s18 = smov %s1470_s20 }
 0x101   :  { %13 = sbr.rel (!%p11_p12) target bundleno = 3 (0x3), region = 164 }

// kernel: _lambda_.25
= control target key start
LH: loop header
LB: loop body
LE: loop exit
PB: predicated region body
PF: predicated region fallthrough
CT: control target
= control target key end

     0   :  { %s463_s0 = inlined_call_operand.vmem [shape: bf16[2,1,512], index: 0, kind: input, shape index: {}]   ;;  %s464_s1 = inlined_call_operand.vmem [shape: f32[512,128], index: 1, kind: input, shape index: {}]   ;;  %s465_s2 = inlined_call_operand.vmem [shape: f32[1,128], index: 2, kind: input, shape index: {}]   ;;  %s466_s3 = inlined_call_operand.hbm [shape: f32[2,128], index: 3, kind: output, shape index: {}]  }
   0x1   :  { %v68_v0 = vld [vmem:[%s464_s1 + $0x178] sm:$0xff]  ;;  %v67_v2 = vld [vmem:[%s464_s1 + $0x170] sm:$0xff]  ;;  %v66_v6 = vld [vmem:[%s464_s1 + $0x168] sm:$0xff] }
   0x2   :  { %v36_v1 = vld [vmem:[%s464_s1 + $0x78] sm:$0xff]  ;;  %148 = vmatpush.msra.mxu2 %v68_v0  ;;  %v35_v4 = vld [vmem:[%s464_s1 + $0x70] sm:$0xff]  ;;  %v34_v8 = vld [vmem:[%s464_s1 + $0x68] sm:$0xff] }
   0x3   :  { %108 = vmatpush.msra.mxu0 %v36_v1  ;;  %v84_v3 = vld [vmem:[%s464_s1 + $0x1f8] sm:$0xff]  ;;  %v83_v7 = vld [vmem:[%s464_s1 + $0x1f0] sm:$0xff]  ;;  %v82_v10 = vld [vmem:[%s464_s1 + $0x1e8] sm:$0xff] }
   0x4   :  { %v52_v5 = vld [vmem:[%s464_s1 + $0xf8] sm:$0xff]  ;;  %168 = vmatpush.msra.mxu3 %v84_v3  ;;  %149 = vmatpush.msra.mxu2 %v67_v2  ;;  %v51_v9 = vld [vmem:[%s464_s1 + $0xf0] sm:$0xff]  ;;  %v65_v11 = vld [vmem:[%s464_s1 + $0x160] sm:$0xff] }
   0x5   :  { %128 = vmatpush.msra.mxu1 %v52_v5  ;;  %109 = vmatpush.msra.mxu0 %v35_v4  ;;  %v33_v12 = vld [vmem:[%s464_s1 + $0x60] sm:$0xff]  ;;  %v50_v13 = vld [vmem:[%s464_s1 + $0xe8] sm:$0xff]  ;;  %v64_v16 = vld [vmem:[%s464_s1 + $0x158] sm:$0xff] }
   0x6   :  { %169 = vmatpush.msra.mxu3 %v83_v7  ;;  %150 = vmatpush.msra.mxu2 %v66_v6  ;;  %v81_v14 = vld [vmem:[%s464_s1 + $0x1e0] sm:$0xff]  ;;  %v32_v17 = vld [vmem:[%s464_s1 + $0x58] sm:$0xff]  ;;  %v63_v20 = vld [vmem:[%s464_s1 + $0x150] sm:$0xff] }
   0x7   :  { %129 = vmatpush.msra.mxu1 %v51_v9  ;;  %110 = vmatpush.msra.mxu0 %v34_v8  ;;  %v49_v15 = vld [vmem:[%s464_s1 + $0xe0] sm:$0xff]  ;;  %v80_v18 = vld [vmem:[%s464_s1 + $0x1d8] sm:$0xff]  ;;  %v31_v21 = vld [vmem:[%s464_s1 + $0x50] sm:$0xff] }
   0x8   :  { %170 = vmatpush.msra.mxu3 %v82_v10  ;;  %151 = vmatpush.msra.mxu2 %v65_v11  ;;  %v48_v19 = vld [vmem:[%s464_s1 + $0xd8] sm:$0xff]  ;;  %v79_v22 = vld [vmem:[%s464_s1 + $0x1d0] sm:$0xff]  ;;  %v62_v24 = vld [vmem:[%s464_s1 + $0x148] sm:$0xff] }
   0x9   :  { %130 = vmatpush.msra.mxu1 %v50_v13  ;;  %111 = vmatpush.msra.mxu0 %v33_v12  ;;  %v47_v23 = vld [vmem:[%s464_s1 + $0xd0] sm:$0xff]  ;;  %v30_v25 = vld [vmem:[%s464_s1 + $0x48] sm:$0xff]  ;;  %v61_v28 = vld [vmem:[%s464_s1 + $0x140] sm:$0xff] }
   0xa   :  { %171 = vmatpush.msra.mxu3 %v81_v14  ;;  %152 = vmatpush.msra.mxu2 %v64_v16  ;;  %v78_v26 = vld [vmem:[%s464_s1 + $0x1c8] sm:$0xff]  ;;  %v29_v29 = vld [vmem:[%s464_s1 + $0x40] sm:$0xff]  ;;  %v60_v32 = vld [vmem:[%s464_s1 + $0x138] sm:$0xff] }
   0xb   :  { %131 = vmatpush.msra.mxu1 %v49_v15  ;;  %112 = vmatpush.msra.mxu0 %v32_v17  ;;  %v46_v27 = vld [vmem:[%s464_s1 + $0xc8] sm:$0xff]  ;;  %v77_v30 = vld [vmem:[%s464_s1 + $0x1c0] sm:$0xff]  ;;  %v28_v33 = vld [vmem:[%s464_s1 + $0x38] sm:$0xff] }
   0xc   :  { %172 = vmatpush.msra.mxu3 %v80_v18  ;;  %153 = vmatpush.msra.mxu2 %v63_v20  ;;  %v45_v31 = vld [vmem:[%s464_s1 + $0xc0] sm:$0xff]  ;;  %v76_v34 = vld [vmem:[%s464_s1 + $0x1b8] sm:$0xff]  ;;  %v59_v36 = vld [vmem:[%s464_s1 + $0x130] sm:$0xff] }
   0xd   :  { %132 = vmatpush.msra.mxu1 %v48_v19  ;;  %113 = vmatpush.msra.mxu0 %v31_v21  ;;  %v44_v35 = vld [vmem:[%s464_s1 + $0xb8] sm:$0xff]  ;;  %v27_v37 = vld [vmem:[%s464_s1 + $0x30] sm:$0xff]  ;;  %v58_v40 = vld [vmem:[%s464_s1 + $0x128] sm:$0xff] }
   0xe   :  { %173 = vmatpush.msra.mxu3 %v79_v22  ;;  %154 = vmatpush.msra.mxu2 %v62_v24  ;;  %v75_v38 = vld [vmem:[%s464_s1 + $0x1b0] sm:$0xff]  ;;  %v26_v41 = vld [vmem:[%s464_s1 + $0x28] sm:$0xff]  ;;  %v57_v44 = vld [vmem:[%s464_s1 + $0x120] sm:$0xff] }
   0xf   :  { %133 = vmatpush.msra.mxu1 %v47_v23  ;;  %114 = vmatpush.msra.mxu0 %v30_v25  ;;  %v43_v39 = vld [vmem:[%s464_s1 + $0xb0] sm:$0xff]  ;;  %v74_v42 = vld [vmem:[%s464_s1 + $0x1a8] sm:$0xff]  ;;  %v25_v45 = vld [vmem:[%s464_s1 + $0x20] sm:$0xff] }
  0x10   :  { %174 = vmatpush.msra.mxu3 %v78_v26  ;;  %155 = vmatpush.msra.mxu2 %v61_v28  ;;  %v42_v43 = vld [vmem:[%s464_s1 + $0xa8] sm:$0xff]  ;;  %v206_v46 = vld [vmem:[%s463_s0] sm:$0xff]   ;;  %v56_v51 = vld [vmem:[%s464_s1 + $0x118] sm:$0xff] }
  0x11   :  { %134 = vmatpush.msra.mxu1 %v46_v27  ;;  %115 = vmatpush.msra.mxu0 %v29_v29  ;;  %v73_v47 = vld [vmem:[%s464_s1 + $0x1a0] sm:$0xff]  ;;  %v207_v49 = vunpack.c.l.bf16 %v206_v46  ;;  %v208_v50 = vunpack.c.h.bf16 %v206_v46  ;;  %v24_v52 = vld [vmem:[%s464_s1 + $0x18] sm:$0xff] }
  0x12   :  { %175 = vmatpush.msra.mxu3 %v77_v30  ;;  %156 = vmatpush.msra.mxu2 %v60_v32  ;;  %v41_v48 = vld [vmem:[%s464_s1 + $0xa0] sm:$0xff] }
  0x13   :  { %135 = vmatpush.msra.mxu1 %v45_v31  ;;  %116 = vmatpush.msra.mxu0 %v28_v33 }
  0x14   :  { %176 = vmatpush.msra.mxu3 %v76_v34  ;;  %157 = vmatpush.msra.mxu2 %v59_v36 }
  0x15   :  { %136 = vmatpush.msra.mxu1 %v44_v35  ;;  %117 = vmatpush.msra.mxu0 %v27_v37 }
  0x16   :  { %177 = vmatpush.msra.mxu3 %v75_v38  ;;  %158 = vmatpush.msra.mxu2 %v58_v40 }
  0x17   :  { %137 = vmatpush.msra.mxu1 %v43_v39  ;;  %118 = vmatpush.msra.mxu0 %v26_v41 }
  0x18   :  { %178 = vmatpush.msra.mxu3 %v74_v42 }
  0x19   :  { %138 = vmatpush.msra.mxu1 %v42_v43 }
  0x1a   :  { %8 = vsyncpa [#allocation3], 0  ;;  %159 = vmatpush.msra.mxu2 %v57_v44  ;;  %119 = vmatpush.msra.mxu0 %v25_v45  ;;  %v72_v53 = vld [vmem:[%s464_s1 + $0x198] sm:$0xff]  ;;  %v55_v55 = vld [vmem:[%s464_s1 + $0x110] sm:$0xff]  ;;  %v93_v59 = vperm.slane %v207_v49, 4  ;;  %v97_v60 = vperm.slane %v208_v50, 4 }
  0x1b   :  { %v40_v54 = vld [vmem:[%s464_s1 + $0x98] sm:$0xff]  ;;  %179 = vmatpush.msra.mxu3 %v73_v47  ;;  %139 = vmatpush.msra.mxu1 %v41_v48  ;;  %v23_v56 = vld [vmem:[%s464_s1 + $0x10] sm:$0xff]  ;;  %vm99_vm0 = vcmask 1041409   ;;  %v54_v61 = vld [vmem:[%s464_s1 + $0x108] sm:$0xff]  ;;  %v91_v63 = vperm.slane %v207_v49, 0  ;;  %v95_v0 = vperm.slane %v208_v50, 0 }
  0x1c   :  { %160 = vmatpush.msra.mxu2 %v56_v51  ;;  %120 = vmatpush.msra.mxu0 %v24_v52  ;;  %v71_v57 = vld [vmem:[%s464_s1 + $0x190] sm:$0xff]  ;;  %v22_v62 = vld [vmem:[%s464_s1 + $0x8] sm:$0xff]  ;;  %v94_v1 = vperm.slane %v207_v49, 6  ;;  %v98_v2 = vperm.slane %v208_v50, 6  ;;  %v53_v5 = vld [vmem:[%s464_s1 + $0x100] sm:$0xff]  ;;  %v92_v7 = vperm.slane %v207_v49, 2  ;;  %v102_v9 = vsel %vm99_vm0, %v97_v60, %v93_v59 }
  0x1d   :  { %v39_v58 = vld [vmem:[%s464_s1 + $0x90] sm:$0xff]  ;;  %180 = vmatpush.msra.mxu3 %v72_v53  ;;  %140 = vmatpush.msra.mxu1 %v40_v54  ;;  %v70_v3 = vld [vmem:[%s464_s1 + $0x188] sm:$0xff]  ;;  %v21_v6 = vld [vmem:[%s464_s1] sm:$0xff]  ;;  %v96_v8 = vperm.slane %v208_v50, 2  ;;  %v100_v11 = vsel %vm99_vm0, %v95_v0, %v91_v63  ;;  %s237_s7 = smov [#allocation2]   ;;  %s196_s10 = sshll.u32 %s466_s3, 4  ;;  %s197_s10 = int_to_ptr.hbm [resolvable:$true] %s196_s10 }
  0x1e   :  { %161 = vmatpush.msra.mxu2 %v55_v55  ;;  %121 = vmatpush.msra.mxu0 %v23_v56  ;;  %v38_v4 = vld [vmem:[%s464_s1 + $0x88] sm:$0xff]  ;;  %v69_v10 = vld [vmem:[%s464_s1 + $0x180] sm:$0xff]  ;;  %v103_v12 = vsel %vm99_vm0, %v98_v2, %v94_v1  ;;  %s194_s8 = sshll.u32 %s237_s7, 4  ;;  %s195_s8 = int_to_ptr.vmem [resolvable:$true] %s194_s8 }
  0x1f   :  { %181 = vmatpush.msra.mxu3 %v71_v57  ;;  %141 = vmatpush.msra.mxu1 %v39_v58  ;;  %v37_v13 = vld [vmem:[%s464_s1 + $0x80] sm:$0xff]  ;;  %v101_v14 = vsel %vm99_vm0, %v96_v8, %v92_v7 }
  0x20   :  { %162 = vmatpush.msra.mxu2 %v54_v61  ;;  %122 = vmatpush.msra.mxu0 %v22_v62  ;;  %v210_v15 = vld [vmem:[%s465_s2] ss:$0 sm:$0xff] }
  0x21   :  { %182 = vmatpush.msra.mxu3 %v70_v3  ;;  %142 = vmatpush.msra.mxu1 %v38_v4 }
  0x22   :  { %163 = vmatpush.msra.mxu2 %v53_v5  ;;  %123 = vmatpush.msra.mxu0 %v21_v6 }
  0x23   :  { %164 = vmatmul.f32.vlgmr.msra.gmra.mxu2 %v102_v9  ;;  %183 = vmatpush.msra.mxu3 %v69_v10 }
  0x24   :  { %124 = vmatmul.f32.vlgmr.msra.gmra.mxu0 %v100_v11  ;;  %184 = vmatmul.f32.vlgmr.msra.gmra.mxu3 %v103_v12 }
  0x25   :  { %143 = vmatpush.msra.mxu1 %v37_v13 }
  0x26   :  { %144 = vmatmul.f32.vlgmr.msra.gmra.mxu1 %v101_v14 }
  0xa1   :  { %v125_v16 = vpop.f32.mrf.mxu0 }
  0xa2   :  { %v126_v17 = vadd.f32 %v210_v15, %v125_v16 }
  0xa3   :  { %v145_v18 = vpop.f32.mrf.mxu1 }
  0xa4   :  { %v146_v19 = vadd.f32 %v145_v18, %v126_v17 }
  0xa6   :  { %v165_v20 = vpop.f32.mrf.mxu2 }
  0xa7   :  { %v166_v21 = vadd.f32 %v165_v20, %v146_v19  ;;  %v185_v22 = vpop.f32.mrf.mxu3 }
  0xa9   :  { %v186_v23 = vadd.f32 %v185_v22, %v166_v21 }
  0xab   :  { %188 = vst [vmem:[#allocation2] sm:$0x3] %v186_v23 }
  0xac   :  { %199 = dma.vmem_to_hbm [thread:$0]  %s195_s8, 32, %s197_s10, [#allocation3]  }
  0xad   :  { %235 = dma.done.wait [#allocation3], 32  }
  0xae   :  { %236 = vsyncadd [#allocation3], 4294967264 }
  0xaf   :  { %204 = vsyncpa [#allocation3], 1 }

// kernel: _lambda_.24
= control target key start
LH: loop header
LB: loop body
LE: loop exit
PB: predicated region body
PF: predicated region fallthrough
CT: control target
= control target key end

     0   :  { %s2549_s0 = inlined_call_operand.vmem [shape: bf16[16,4608], index: 0, kind: input, shape index: {}]   ;;  %s2550_s1 = inlined_call_operand.vmem [shape: bf16[4608,512], index: 1, kind: input, shape index: {}]   ;;  %s2551_s2 = inlined_call_operand.vmem [shape: f32[1,512], index: 2, kind: input, shape index: {}]   ;;  %s2552_s3 = inlined_call_operand.vmem [shape: f32[1,512], index: 3, kind: input, shape index: {}]   ;;  %s2553_s4 = inlined_call_operand.vmem [shape: bf16[16,512], index: 4, kind: input, shape index: {}]   ;;  %s2554_s5 = inlined_call_operand.vmem [shape: bf16[16,512], index: 5, kind: output, shape index: {}]  }
   0x1   :  { %2557 = sst [smem:[#allocation10_spill]] %s2549_s0 }
   0x2   :  { %s2049_s18 = smov 0   ;;  %s2051_s19 = smov 0  }
   0x3   :  { %s2053_s20 = smov 0   ;;  %s2055_s21 = smov 0  }
   0x4   :  { %s2057_s22 = smov 0   ;;  %s2059_s23 = smov 0  }
   0x5   :  { %s2061_s24 = smov 0   ;;  %s2063_s25 = smov 0  }
   0x6   :  { %s2065_s26 = smov 0   ;;  %s2067_s27 = smov 0  }
   0x7   :  { %s2069_s28 = smov 0  }
   0x8 LB: > { %s1468_s29 = sadd.s32 4294967295, %s2016_s28   ;;  %s27_s30 = sadd.s32 1, %s2008_s26  ;;  %s2016_s28 = sphi %s2069_s28, %s15_s28   ;;  %s2012_s27 = sphi %s2067_s27, %s2578_s27   ;;  %s2008_s26 = sphi %s2065_s26, %s2577_s26   ;;  %s2004_s25 = sphi %s2063_s25, %s2576_s25   ;;  %s2000_s24 = sphi %s2061_s24, %s2575_s24   ;;  %s1996_s23 = sphi %s2059_s23, %s2574_s23   ;;  %s1992_s22 = sphi %s2057_s22, %s2573_s22   ;;  %s1988_s21 = sphi %s2055_s21, %s2572_s21   ;;  %s1984_s20 = sphi %s2053_s20, %s2571_s20   ;;  %s1980_s19 = sphi %s2051_s19, %s2570_s19   ;;  %s1976_s18 = sphi %s2049_s18, %s2569_s18  }
   0x9   : > { %p28_p0 = scmp.ge.s32.totalorder %s27_s30, 9  ;;  %s30_s6 = sadd.s32 1, %s2012_s27 }
   0xa   : > { %s43_s7 = sadd.s32 1, %s1996_s23  ;;  %p50_p1 = scmp.ne.s32.totalorder %s1996_s23, %s1992_s22 }
   0xb   : > { %s2580_s30 = smov (%p28_p0, %s27_s30), 0  ;;  %s2582_s6 = smov (!%p28_p0, %s30_s6), %s2012_s27 }
   0xc   : > { %2558 = sst [smem:[#allocation7_spill]] %s2580_s30  ;;  %s39_s8 = ssub.s32 %s2008_s26, %s2580_s30 }
   0xd   : > { %p51_p2 = scmp.eq.s32.totalorder %s2016_s28, 0  ;;  %p32_p3 = scmp.ge.s32.totalorder %s2582_s6, 2 }
   0xe   : > { %p41_p4 = scmp.eq.s32.totalorder %s39_s8, 0  ;;  %s71_s10 = sadd.s32 1, %s1988_s21 }
   0xf   : > { %p2118_p5 = por %p51_p2, %p50_p1  ;;  %s2584_s6 = smov (%p32_p3, %s2582_s6), 0 }
  0x10   : > { %2560 = sst [smem:[#allocation8_spill]] %s2584_s6  ;;  %s67_s12 = ssub.s32 %s2012_s27, %s2584_s6 }
  0x11   : > { %s2126_s11 = scalar_select %p41_p4, %s1996_s23, %s43_s7  }
  0x12   : > { %p78_p6 = scmp.ne.s32.totalorder %s1988_s21, %s1984_s20  ;;  %s68_s13 = sor.u32 %s67_s12, %s39_s8 }
  0x13   : > { %2561 = sst [smem:[#allocation9_spill]] %s2126_s11  ;;  %p149_p7 = scmp.eq.s32.totalorder %s67_s12, 0 }
  0x14   : > { %p69_p8 = scmp.eq.s32.totalorder %s68_s13, 0  ;;  %p2134_p9 = por %p78_p6, %p51_p2 }
  0x15   : > { %s151_s15 = sadd.s32 1, %s1980_s19  ;;  %p158_p10 = scmp.ne.s32.totalorder %s1980_s19, %s1976_s18 }
  0x16   : > { %s2142_s16 = scalar_select %p69_p8, %s1988_s21, %s71_s10  }
  0x17   : > { %s2145_s17 = scalar_select %p149_p7, %s1980_s19, %s151_s15  }
  0x18   : > { %p2149_p11 = por %p158_p10, %p51_p2  ;;  %p190_p12 = scmp.eq.s32.totalorder %s1468_s29, 17 }
  0x19   : > { %p1471_p0 = scmp.ge.s32.totalorder %s2016_s28, 18 }
  0x1a   : > { %p2153_p13 = por %p190_p12, %p158_p10 }
  0x1b   : > { %212 = sbr.rel (%p1471_p0) target bundleno = 123 (0x7b), region = 16 }
  0x20   : > { %215 = sbr.rel (!%p2118_p5) target bundleno = 46 (0x2e), region = 20  ;;  %s217_s10 = sand.u32 (%p2118_p5), 1, %s1996_s23  }
  0x21   : > { %s1769_s12 = sshll.u32 (%p2118_p5), %s2008_s26, 4  ;;  %s1472_s13 = sshll.u32 (%p2118_p5), %s217_s10, 5 }
  0x22   : > { %s2565_s0 = sld [smem:[#allocation10_spill]] (%p2118_p5)  ;;  %s219_s29 = scalar_lea.vmem (%p2118_p5), [#allocation3], %s1472_s13 }
  0x28   : > { %s225_s30 = scalar_lea.vmem %s2565_s0, %s1769_s12 }
  0x29   : > { %v238_v0 = vld [vmem:[%s225_s30] sm:$0xff]  ;;  %v240_v1 = vld [vmem:[%s225_s30 + $0x8] sm:$0xff]  ;;  %v242_v2 = vld [vmem:[%s225_s30 + $0x90] sm:$0xff] }
  0x2a   : > { %239 = vst [vmem:[%s219_s29] sm:$0xff] %v238_v0  ;;  %v244_v3 = vld [vmem:[%s225_s30 + $0x98] sm:$0xff] }
  0x2b   : > { %241 = vst [vmem:[%s219_s29 + $0x8] sm:$0xff] %v240_v1 }
  0x2c   : > { %243 = vst [vmem:[%s219_s29 + $0x10] sm:$0xff] %v242_v2 }
  0x2d   : > { %245 = vst [vmem:[%s219_s29 + $0x18] sm:$0xff] %v244_v3 }
  0x2e PF: > { %251 = sbr.rel (!%p2134_p9) target bundleno = 117 (0x75), region = 43  ;;  %s253_s9 = sand.u32 (%p2134_p9), 1, %s1988_s21  }
  0x2f   : > { %s1477_s10 = sshll.u32 (%p2134_p9), %s2012_s27, 1  ;;  %s1475_s6 = sshll.u32 (%p2134_p9), %s253_s9, 9 }
  0x30   : > { %s1770_s12 = sshll.u32 (%p2134_p9), %s2008_s26, 8  ;;  %s2178_s14 = scalar_lea.vmem (%p2134_p9), [#allocation4], %s1475_s6 }
  0x31   : > { %s259_s15 = sadd.s32 (%p2134_p9), %s1770_s12, %s1477_s10 }
  0x32   : > { %s1479_s0 = sshll.u32 (%p2134_p9), %s259_s15, 2 }
  0x33   : > { %s2173_s30 = scalar_lea.vmem %s2550_s1, %s1479_s0 }
  0x34   : > { %v416_v4 = vld [vmem:[%s2173_s30] sm:$0xff]  ;;  %v418_v5 = vld [vmem:[%s2173_s30 + $0x10] sm:$0xff] }
  0x35   : > { %v420_v6 = vld [vmem:[%s2173_s30 + $0x20] sm:$0xff]  ;;  %417 = vst [vmem:[%s2178_s14] sm:$0xff] %v416_v4  ;;  %v422_v7 = vld [vmem:[%s2173_s30 + $0x30] sm:$0xff] }
  0x36   : > { %419 = vst [vmem:[%s2178_s14 + $0x8] sm:$0xff] %v418_v5  ;;  %v424_v8 = vld [vmem:[%s2173_s30 + $0x40] sm:$0xff]  ;;  %v426_v9 = vld [vmem:[%s2173_s30 + $0x50] sm:$0xff] }
  0x37   : > { %421 = vst [vmem:[%s2178_s14 + $0x10] sm:$0xff] %v420_v6  ;;  %v428_v10 = vld [vmem:[%s2173_s30 + $0x60] sm:$0xff]  ;;  %v430_v11 = vld [vmem:[%s2173_s30 + $0x70] sm:$0xff] }
  0x38   : > { %423 = vst [vmem:[%s2178_s14 + $0x18] sm:$0xff] %v422_v7  ;;  %v432_v12 = vld [vmem:[%s2173_s30 + $0x80] sm:$0xff]  ;;  %v434_v13 = vld [vmem:[%s2173_s30 + $0x90] sm:$0xff] }
  0x39   : > { %425 = vst [vmem:[%s2178_s14 + $0x20] sm:$0xff] %v424_v8  ;;  %v436_v14 = vld [vmem:[%s2173_s30 + $0xa0] sm:$0xff]  ;;  %v438_v15 = vld [vmem:[%s2173_s30 + $0xb0] sm:$0xff] }
  0x3a   : > { %427 = vst [vmem:[%s2178_s14 + $0x28] sm:$0xff] %v426_v9  ;;  %v440_v16 = vld [vmem:[%s2173_s30 + $0xc0] sm:$0xff]  ;;  %v442_v17 = vld [vmem:[%s2173_s30 + $0xd0] sm:$0xff] }
  0x3b   : > { %429 = vst [vmem:[%s2178_s14 + $0x30] sm:$0xff] %v428_v10  ;;  %v444_v18 = vld [vmem:[%s2173_s30 + $0xe0] sm:$0xff]  ;;  %v446_v19 = vld [vmem:[%s2173_s30 + $0xf0] sm:$0xff] }
  0x3c   : > { %431 = vst [vmem:[%s2178_s14 + $0x38] sm:$0xff] %v430_v11  ;;  %v448_v20 = vld [vmem:[%s2173_s30 + $0x100] sm:$0xff]  ;;  %v450_v21 = vld [vmem:[%s2173_s30 + $0x110] sm:$0xff] }
  0x3d   : > { %433 = vst [vmem:[%s2178_s14 + $0x40] sm:$0xff] %v432_v12  ;;  %v452_v22 = vld [vmem:[%s2173_s30 + $0x120] sm:$0xff]  ;;  %v454_v23 = vld [vmem:[%s2173_s30 + $0x130] sm:$0xff] }
  0x3e   : > { %435 = vst [vmem:[%s2178_s14 + $0x48] sm:$0xff] %v434_v13  ;;  %v456_v24 = vld [vmem:[%s2173_s30 + $0x140] sm:$0xff]  ;;  %v458_v25 = vld [vmem:[%s2173_s30 + $0x150] sm:$0xff] }
  0x3f   : > { %437 = vst [vmem:[%s2178_s14 + $0x50] sm:$0xff] %v436_v14  ;;  %v460_v26 = vld [vmem:[%s2173_s30 + $0x160] sm:$0xff]  ;;  %v462_v27 = vld [vmem:[%s2173_s30 + $0x170] sm:$0xff] }
  0x40   : > { %439 = vst [vmem:[%s2178_s14 + $0x58] sm:$0xff] %v438_v15  ;;  %v464_v28 = vld [vmem:[%s2173_s30 + $0x180] sm:$0xff]  ;;  %v466_v29 = vld [vmem:[%s2173_s30 + $0x190] sm:$0xff] }
  0x41   : > { %441 = vst [vmem:[%s2178_s14 + $0x60] sm:$0xff] %v440_v16  ;;  %v468_v30 = vld [vmem:[%s2173_s30 + $0x1a0] sm:$0xff]  ;;  %v470_v31 = vld [vmem:[%s2173_s30 + $0x1b0] sm:$0xff] }
  0x42   : > { %443 = vst [vmem:[%s2178_s14 + $0x68] sm:$0xff] %v442_v17  ;;  %v472_v32 = vld [vmem:[%s2173_s30 + $0x1c0] sm:$0xff]  ;;  %v474_v33 = vld [vmem:[%s2173_s30 + $0x1d0] sm:$0xff] }
  0x43   : > { %445 = vst [vmem:[%s2178_s14 + $0x70] sm:$0xff] %v444_v18  ;;  %v476_v34 = vld [vmem:[%s2173_s30 + $0x1e0] sm:$0xff]  ;;  %v478_v35 = vld [vmem:[%s2173_s30 + $0x1f0] sm:$0xff] }
  0x44   : > { %447 = vst [vmem:[%s2178_s14 + $0x78] sm:$0xff] %v446_v19  ;;  %v480_v36 = vld [vmem:[%s2173_s30 + $0x200] sm:$0xff]  ;;  %v482_v37 = vld [vmem:[%s2173_s30 + $0x210] sm:$0xff] }
  0x45   : > { %449 = vst [vmem:[%s2178_s14 + $0x80] sm:$0xff] %v448_v20  ;;  %v484_v38 = vld [vmem:[%s2173_s30 + $0x220] sm:$0xff]  ;;  %v486_v39 = vld [vmem:[%s2173_s30 + $0x230] sm:$0xff] }
  0x46   : > { %451 = vst [vmem:[%s2178_s14 + $0x88] sm:$0xff] %v450_v21  ;;  %v488_v40 = vld [vmem:[%s2173_s30 + $0x240] sm:$0xff]  ;;  %v490_v41 = vld [vmem:[%s2173_s30 + $0x250] sm:$0xff] }
  0x47   : > { %453 = vst [vmem:[%s2178_s14 + $0x90] sm:$0xff] %v452_v22  ;;  %v492_v42 = vld [vmem:[%s2173_s30 + $0x260] sm:$0xff]  ;;  %v494_v43 = vld [vmem:[%s2173_s30 + $0x270] sm:$0xff] }
  0x48   : > { %455 = vst [vmem:[%s2178_s14 + $0x98] sm:$0xff] %v454_v23  ;;  %v496_v44 = vld [vmem:[%s2173_s30 + $0x280] sm:$0xff]  ;;  %v498_v45 = vld [vmem:[%s2173_s30 + $0x290] sm:$0xff] }
  0x49   : > { %457 = vst [vmem:[%s2178_s14 + $0xa0] sm:$0xff] %v456_v24  ;;  %v500_v46 = vld [vmem:[%s2173_s30 + $0x2a0] sm:$0xff]  ;;  %v502_v47 = vld [vmem:[%s2173_s30 + $0x2b0] sm:$0xff] }
  0x4a   : > { %459 = vst [vmem:[%s2178_s14 + $0xa8] sm:$0xff] %v458_v25  ;;  %v504_v48 = vld [vmem:[%s2173_s30 + $0x2c0] sm:$0xff]  ;;  %v506_v49 = vld [vmem:[%s2173_s30 + $0x2d0] sm:$0xff] }
  0x4b   : > { %461 = vst [vmem:[%s2178_s14 + $0xb0] sm:$0xff] %v460_v26  ;;  %v508_v50 = vld [vmem:[%s2173_s30 + $0x2e0] sm:$0xff]  ;;  %v510_v51 = vld [vmem:[%s2173_s30 + $0x2f0] sm:$0xff] }
  0x4c   : > { %463 = vst [vmem:[%s2178_s14 + $0xb8] sm:$0xff] %v462_v27  ;;  %v512_v52 = vld [vmem:[%s2173_s30 + $0x300] sm:$0xff]  ;;  %v514_v53 = vld [vmem:[%s2173_s30 + $0x310] sm:$0xff] }
  0x4d   : > { %465 = vst [vmem:[%s2178_s14 + $0xc0] sm:$0xff] %v464_v28  ;;  %v516_v54 = vld [vmem:[%s2173_s30 + $0x320] sm:$0xff]  ;;  %v518_v55 = vld [vmem:[%s2173_s30 + $0x330] sm:$0xff] }
  0x4e   : > { %467 = vst [vmem:[%s2178_s14 + $0xc8] sm:$0xff] %v466_v29  ;;  %v520_v56 = vld [vmem:[%s2173_s30 + $0x340] sm:$0xff]  ;;  %v522_v57 = vld [vmem:[%s2173_s30 + $0x350] sm:$0xff] }
  0x4f   : > { %469 = vst [vmem:[%s2178_s14 + $0xd0] sm:$0xff] %v468_v30  ;;  %v524_v58 = vld [vmem:[%s2173_s30 + $0x360] sm:$0xff]  ;;  %v526_v59 = vld [vmem:[%s2173_s30 + $0x370] sm:$0xff] }
  0x50   : > { %471 = vst [vmem:[%s2178_s14 + $0xd8] sm:$0xff] %v470_v31  ;;  %v528_v60 = vld [vmem:[%s2173_s30 + $0x380] sm:$0xff]  ;;  %v530_v61 = vld [vmem:[%s2173_s30 + $0x390] sm:$0xff] }
  0x51   : > { %473 = vst [vmem:[%s2178_s14 + $0xe0] sm:$0xff] %v472_v32  ;;  %v532_v62 = vld [vmem:[%s2173_s30 + $0x3a0] sm:$0xff]  ;;  %v534_v63 = vld [vmem:[%s2173_s30 + $0x3b0] sm:$0xff] }
  0x52   : > { %475 = vst [vmem:[%s2178_s14 + $0xe8] sm:$0xff] %v474_v33  ;;  %v536_v0 = vld [vmem:[%s2173_s30 + $0x3c0] sm:$0xff]  ;;  %v538_v1 = vld [vmem:[%s2173_s30 + $0x3d0] sm:$0xff] }
  0x53   : > { %477 = vst [vmem:[%s2178_s14 + $0xf0] sm:$0xff] %v476_v34  ;;  %v540_v2 = vld [vmem:[%s2173_s30 + $0x3e0] sm:$0xff]  ;;  %v542_v3 = vld [vmem:[%s2173_s30 + $0x3f0] sm:$0xff] }
  0x54   : > { %479 = vst [vmem:[%s2178_s14 + $0xf8] sm:$0xff] %v478_v35 }
  0x55   : > { %481 = vst [vmem:[%s2178_s14 + $0x100] sm:$0xff] %v480_v36 }
  0x56   : > { %483 = vst [vmem:[%s2178_s14 + $0x108] sm:$0xff] %v482_v37 }
  0x57   : > { %485 = vst [vmem:[%s2178_s14 + $0x110] sm:$0xff] %v484_v38 }
  0x58   : > { %487 = vst [vmem:[%s2178_s14 + $0x118] sm:$0xff] %v486_v39 }
  0x59   : > { %489 = vst [vmem:[%s2178_s14 + $0x120] sm:$0xff] %v488_v40 }
  0x5a   : > { %491 = vst [vmem:[%s2178_s14 + $0x128] sm:$0xff] %v490_v41 }
  0x5b   : > { %493 = vst [vmem:[%s2178_s14 + $0x130] sm:$0xff] %v492_v42 }
  0x5c   : > { %495 = vst [vmem:[%s2178_s14 + $0x138] sm:$0xff] %v494_v43 }
  0x5d   : > { %497 = vst [vmem:[%s2178_s14 + $0x140] sm:$0xff] %v496_v44 }
  0x5e   : > { %499 = vst [vmem:[%s2178_s14 + $0x148] sm:$0xff] %v498_v45 }
  0x5f   : > { %501 = vst [vmem:[%s2178_s14 + $0x150] sm:$0xff] %v500_v46 }
  0x60   : > { %503 = vst [vmem:[%s2178_s14 + $0x158] sm:$0xff] %v502_v47 }
  0x61   : > { %505 = vst [vmem:[%s2178_s14 + $0x160] sm:$0xff] %v504_v48 }
  0x62   : > { %507 = vst [vmem:[%s2178_s14 + $0x168] sm:$0xff] %v506_v49 }
  0x63   : > { %509 = vst [vmem:[%s2178_s14 + $0x170] sm:$0xff] %v508_v50 }
  0x64   : > { %511 = vst [vmem:[%s2178_s14 + $0x178] sm:$0xff] %v510_v51 }
  0x65   : > { %513 = vst [vmem:[%s2178_s14 + $0x180] sm:$0xff] %v512_v52 }
  0x66   : > { %515 = vst [vmem:[%s2178_s14 + $0x188] sm:$0xff] %v514_v53 }
  0x67   : > { %517 = vst [vmem:[%s2178_s14 + $0x190] sm:$0xff] %v516_v54 }
  0x68   : > { %519 = vst [vmem:[%s2178_s14 + $0x198] sm:$0xff] %v518_v55 }
  0x69   : > { %521 = vst [vmem:[%s2178_s14 + $0x1a0] sm:$0xff] %v520_v56 }
  0x6a   : > { %523 = vst [vmem:[%s2178_s14 + $0x1a8] sm:$0xff] %v522_v57 }
  0x6b   : > { %525 = vst [vmem:[%s2178_s14 + $0x1b0] sm:$0xff] %v524_v58 }
  0x6c   : > { %527 = vst [vmem:[%s2178_s14 + $0x1b8] sm:$0xff] %v526_v59 }
  0x6d   : > { %529 = vst [vmem:[%s2178_s14 + $0x1c0] sm:$0xff] %v528_v60 }
  0x6e   : > { %531 = vst [vmem:[%s2178_s14 + $0x1c8] sm:$0xff] %v530_v61 }
  0x6f   : > { %533 = vst [vmem:[%s2178_s14 + $0x1d0] sm:$0xff] %v532_v62 }
  0x70   : > { %535 = vst [vmem:[%s2178_s14 + $0x1d8] sm:$0xff] %v534_v63 }
  0x71   : > { %537 = vst [vmem:[%s2178_s14 + $0x1e0] sm:$0xff] %v536_v0 }
  0x72   : > { %539 = vst [vmem:[%s2178_s14 + $0x1e8] sm:$0xff] %v538_v1 }
  0x73   : > { %541 = vst [vmem:[%s2178_s14 + $0x1f0] sm:$0xff] %v540_v2 }
  0x74   : > { %543 = vst [vmem:[%s2178_s14 + $0x1f8] sm:$0xff] %v542_v3 }
  0x75 PF: > { %565 = sbr.rel (!%p2149_p11) target bundleno = 123 (0x7b), region = 89  ;;  %s567_s0 = sand.u32 (%p2149_p11), 1, %s1980_s19  }
  0x76   : > { %s1771_s11 = sshll.u32 (%p2149_p11), %s2012_s27, 3  ;;  %s1480_s29 = sshll.u32 (%p2149_p11), %s567_s0, 4 }
  0x77   : > { %s575_s6 = scalar_lea.vmem (%p2149_p11), %s2553_s4, %s1771_s11  ;;  %s569_s12 = scalar_lea.vmem (%p2149_p11), [#allocation5], %s1480_s29 }
  0x78   : > { %v606_v4 = vld [vmem:[%s575_s6] sm:$0xff] (%p2149_p11)  ;;  %v608_v5 = vld [vmem:[%s575_s6 + $0x10] sm:$0xff] (%p2149_p11) }
  0x79   : > { %607 = vst [vmem:[%s569_s12] sm:$0xff] (%p2149_p11), %v606_v4 }
  0x7a   : > { %609 = vst [vmem:[%s569_s12 + $0x8] sm:$0xff] %v608_v5 }
  0x7b PF: > { %p1483_p1 = scmp.ge.s32.totalorder %s2016_s28, 1  ;;  %p614_p2 = scmp.lt.s32.totalorder %s2016_s28, 19 }
  0x7d   : > { %p615_p3 = pnand %p1483_p1, %p614_p2 }
  0x7e   : > { %s621_s7 = sand.u32 (!%p615_p3), 1, %s1992_s22   ;;  %s628_s15 = sand.u32 (!%p615_p3), 1, %s1984_s20  }
  0x7f   : > { %618 = sbr.rel (%p615_p3) target bundleno = 387 (0x183), region = 127  ;;  %s1484_s13 = sshll.u32 (!%p615_p3), %s621_s7, 5 }
  0x80   : > { %s1485_s30 = sshll.u32 (!%p615_p3), %s628_s15, 9  ;;  %s635_s14 = sand.u32 (!%p615_p3), 1, %s1976_s18  }
  0x81   : > { %s1488_s0 = sshll.u32 (!%p615_p3), %s2004_s25, 1  ;;  %s2318_s11 = sshll.u32 (!%p615_p3), %s635_s14, 4 }
  0x82   : > { %p682_p4 = scmp.lt.s32.totalorder (!%p615_p3), %s1488_s0, 3  ;;  %s2330_s12 = scalar_lea.vmem (!%p615_p3), [#allocation3], %s1484_s13 }
  0x83   : > { %s2332_s18 = scalar_lea.vmem (!%p615_p3), [#allocation4], %s1485_s30  ;;  %s637_s7 = scalar_lea.vmem (!%p615_p3), [#allocation5], %s2318_s11 }
  0x84   : > { %s2586_s0 = smov (!%p682_p4, %s1488_s0), 3  ;;  %s2336_s15 = scalar_lea.vmem [#allocation6], %s2318_s11 }
  0x85   : > { %s684_s10 = scalar_lea.vmem %s2551_s2, %s2586_s0  ;;  %s689_s20 = scalar_lea.vmem %s2552_s3, %s2586_s0 }
  0x86   : > { %p1490_p5 = scmp.ne.s32.totalorder %s2000_s24, 0 }
  0x88   : > { %698 = sbr.rel (%p1490_p5) target bundleno = 146 (0x92), region = 143 }
  0x8d   : > { %v2018_v6 = vmov 0.0  }
  0x8e   : > { %699 = vst [vmem:[#allocation2 + $0x10] sm:$0xff] %v2018_v6 }
  0x8f   : > { %700 = vst [vmem:[#allocation2] sm:$0xff] %v2018_v6 }
  0x90   : > { %701 = vst [vmem:[#allocation2 + $0x18] sm:$0xff] %v2018_v6 }
  0x91   : > { %702 = vst [vmem:[#allocation2 + $0x8] sm:$0xff] %v2018_v6 }
  0x92 PF: > { %v1565_v7 = vld [vmem:[%s2332_s18 + $0x70] sm:$0xf]  ;;  %v1791_v8 = vld [vmem:[%s2332_s18 + $0x74] sm:$0xf0]  ;;  %v1557_v18 = vld [vmem:[%s2332_s18 + $0x60] sm:$0xf] }
  0x93   : > { %v1629_v9 = vld [vmem:[%s2332_s18 + $0xf0] sm:$0xf]  ;;  %v1566_v10 = vor.u32 %v1791_v8, %v1565_v7  ;;  %v1807_v11 = vld [vmem:[%s2332_s18 + $0xf4] sm:$0xf0]  ;;  %v1789_v20 = vld [vmem:[%s2332_s18 + $0x64] sm:$0xf0] }
  0x94   : > { %v1693_v12 = vld [vmem:[%s2332_s18 + $0x170] sm:$0xf]  ;;  %v1823_v13 = vld [vmem:[%s2332_s18 + $0x174] sm:$0xf0]  ;;  %v1630_v14 = vor.u32 %v1807_v11, %v1629_v9  ;;  %v1621_v21 = vld [vmem:[%s2332_s18 + $0xe0] sm:$0xf]  ;;  %v1558_v23 = vor.u32 %v1789_v20, %v1557_v18 }
  0x95   : > { %v1694_v15 = vor.u32 %v1823_v13, %v1693_v12  ;;  %v1757_v16 = vld [vmem:[%s2332_s18 + $0x1f0] sm:$0xf]  ;;  %v1839_v17 = vld [vmem:[%s2332_s18 + $0x1f4] sm:$0xf0]  ;;  %1115 = vmatpush.bf16.msra.mxu0 %v1566_v10  ;;  %v1805_v22 = vld [vmem:[%s2332_s18 + $0xe4] sm:$0xf0] }
  0x96   : > { %v1758_v19 = vor.u32 %v1839_v17, %v1757_v16  ;;  %1129 = vmatpush.bf16.msra.mxu1 %v1630_v14  ;;  %v1622_v24 = vor.u32 %v1805_v22, %v1621_v21  ;;  %v1685_v25 = vld [vmem:[%s2332_s18 + $0x160] sm:$0xf]  ;;  %v1821_v26 = vld [vmem:[%s2332_s18 + $0x164] sm:$0xf0]  ;;  %v1549_v30 = vld [vmem:[%s2332_s18 + $0x50] sm:$0xf] }
  0x97   : > { %1143 = vmatpush.bf16.msra.mxu2 %v1694_v15  ;;  %v1749_v27 = vld [vmem:[%s2332_s18 + $0x1e0] sm:$0xf]  ;;  %v1686_v28 = vor.u32 %v1821_v26, %v1685_v25  ;;  %v1837_v29 = vld [vmem:[%s2332_s18 + $0x1e4] sm:$0xf0]  ;;  %v1787_v31 = vld [vmem:[%s2332_s18 + $0x54] sm:$0xf0] }
  0x98   : > { %1157 = vmatpush.bf16.msra.mxu3 %v1758_v19  ;;  %v1750_v32 = vor.u32 %v1837_v29, %v1749_v27  ;;  %v1613_v33 = vld [vmem:[%s2332_s18 + $0xd0] sm:$0xf]  ;;  %v1803_v34 = vld [vmem:[%s2332_s18 + $0xd4] sm:$0xf0]  ;;  %v1550_v36 = vor.u32 %v1787_v31, %v1549_v30  ;;  %v1541_v42 = vld [vmem:[%s2332_s18 + $0x40] sm:$0xf] }
  0x99   : > { %v1677_v35 = vld [vmem:[%s2332_s18 + $0x150] sm:$0xf]  ;;  %1116 = vmatpush.bf16.msra.mxu0 %v1558_v23  ;;  %v1819_v37 = vld [vmem:[%s2332_s18 + $0x154] sm:$0xf0]  ;;  %v1614_v40 = vor.u32 %v1803_v34, %v1613_v33  ;;  %v1785_v43 = vld [vmem:[%s2332_s18 + $0x44] sm:$0xf0] }
  0x9a   : > { %v1741_v38 = vld [vmem:[%s2332_s18 + $0x1d0] sm:$0xf]  ;;  %v1835_v39 = vld [vmem:[%s2332_s18 + $0x1d4] sm:$0xf0]  ;;  %1130 = vmatpush.bf16.msra.mxu1 %v1622_v24  ;;  %v1678_v41 = vor.u32 %v1819_v37, %v1677_v35  ;;  %v1605_v44 = vld [vmem:[%s2332_s18 + $0xc0] sm:$0xf]  ;;  %v1542_v51 = vor.u32 %v1785_v43, %v1541_v42 }
  0x9b   : > { %1144 = vmatpush.bf16.msra.mxu2 %v1686_v28  ;;  %v1742_v45 = vor.u32 %v1835_v39, %v1741_v38  ;;  %v1801_v46 = vld [vmem:[%s2332_s18 + $0xc4] sm:$0xf0]  ;;  %v1669_v47 = vld [vmem:[%s2332_s18 + $0x140] sm:$0xf]  ;;  %v1533_v54 = vld [vmem:[%s2332_s18 + $0x30] sm:$0xf] }
  0x9c   : > { %1158 = vmatpush.bf16.msra.mxu3 %v1750_v32  ;;  %v1817_v48 = vld [vmem:[%s2332_s18 + $0x144] sm:$0xf0]  ;;  %v1733_v49 = vld [vmem:[%s2332_s18 + $0x1c0] sm:$0xf]  ;;  %v1606_v52 = vor.u32 %v1801_v46, %v1605_v44  ;;  %v1783_v55 = vld [vmem:[%s2332_s18 + $0x34] sm:$0xf0] }
  0x9d   : > { %v1833_v50 = vld [vmem:[%s2332_s18 + $0x1c4] sm:$0xf0]  ;;  %1117 = vmatpush.bf16.msra.mxu0 %v1550_v36  ;;  %v1670_v53 = vor.u32 %v1817_v48, %v1669_v47  ;;  %v1597_v56 = vld [vmem:[%s2332_s18 + $0xb0] sm:$0xf]  ;;  %v1799_v58 = vld [vmem:[%s2332_s18 + $0xb4] sm:$0xf0]  ;;  %v1534_v63 = vor.u32 %v1783_v55, %v1533_v54 }
  0x9e   : > { %1131 = vmatpush.bf16.msra.mxu1 %v1614_v40  ;;  %v1734_v57 = vor.u32 %v1833_v50, %v1733_v49  ;;  %v1661_v59 = vld [vmem:[%s2332_s18 + $0x130] sm:$0xf]  ;;  %v1815_v60 = vld [vmem:[%s2332_s18 + $0x134] sm:$0xf0]  ;;  %v1598_v0 = vor.u32 %v1799_v58, %v1597_v56  ;;  %v1525_v2 = vld [vmem:[%s2332_s18 + $0x20] sm:$0xf] }
  0x9f   : > { %1145 = vmatpush.bf16.msra.mxu2 %v1678_v41  ;;  %v1725_v61 = vld [vmem:[%s2332_s18 + $0x1b0] sm:$0xf]  ;;  %v1831_v62 = vld [vmem:[%s2332_s18 + $0x1b4] sm:$0xf0]  ;;  %v1662_v1 = vor.u32 %v1815_v60, %v1661_v59  ;;  %v1781_v3 = vld [vmem:[%s2332_s18 + $0x24] sm:$0xf0] }
  0xa0   : > { %1159 = vmatpush.bf16.msra.mxu3 %v1742_v45  ;;  %v1589_v4 = vld [vmem:[%s2332_s18 + $0xa0] sm:$0xf]  ;;  %v1726_v5 = vor.u32 %v1831_v62, %v1725_v61  ;;  %v1797_v6 = vld [vmem:[%s2332_s18 + $0xa4] sm:$0xf0]  ;;  %v1526_v11 = vor.u32 %v1781_v3, %v1525_v2  ;;  %v1517_v14 = vld [vmem:[%s2332_s18 + $0x10] sm:$0xf] }
  0xa1   : > { %1118 = vmatpush.bf16.msra.mxu0 %v1542_v51  ;;  %v1653_v7 = vld [vmem:[%s2332_s18 + $0x120] sm:$0xf]  ;;  %v1813_v8 = vld [vmem:[%s2332_s18 + $0x124] sm:$0xf0]  ;;  %v1590_v12 = vor.u32 %v1797_v6, %v1589_v4  ;;  %v1779_v15 = vld [vmem:[%s2332_s18 + $0x14] sm:$0xf0] }
  0xa2   : > { %1132 = vmatpush.bf16.msra.mxu1 %v1606_v52  ;;  %v1717_v9 = vld [vmem:[%s2332_s18 + $0x1a0] sm:$0xf]  ;;  %v1829_v10 = vld [vmem:[%s2332_s18 + $0x1a4] sm:$0xf0]  ;;  %v1654_v13 = vor.u32 %v1813_v8, %v1653_v7  ;;  %v1581_v16 = vld [vmem:[%s2332_s18 + $0x90] sm:$0xf]  ;;  %v1518_v24 = vor.u32 %v1779_v15, %v1517_v14 }
  0xa3   : > { %1146 = vmatpush.bf16.msra.mxu2 %v1670_v53  ;;  %v1718_v17 = vor.u32 %v1829_v10, %v1717_v9  ;;  %v1795_v18 = vld [vmem:[%s2332_s18 + $0x94] sm:$0xf0]  ;;  %v1645_v19 = vld [vmem:[%s2332_s18 + $0x110] sm:$0xf]  ;;  %v1509_v23 = vld [vmem:[%s2332_s18] sm:$0xf] }
  0xa4   : > { %1160 = vmatpush.bf16.msra.mxu3 %v1734_v57  ;;  %v1811_v20 = vld [vmem:[%s2332_s18 + $0x114] sm:$0xf0]  ;;  %v1709_v21 = vld [vmem:[%s2332_s18 + $0x190] sm:$0xf]  ;;  %v1777_v25 = vld [vmem:[%s2332_s18 + $0x4] sm:$0xf0]  ;;  %v1582_v28 = vor.u32 %v1795_v18, %v1581_v16 }
  0xa5   : > { %1119 = vmatpush.bf16.msra.mxu0 %v1534_v63  ;;  %v1827_v22 = vld [vmem:[%s2332_s18 + $0x194] sm:$0xf0]  ;;  %v1573_v26 = vld [vmem:[%s2332_s18 + $0x80] sm:$0xf]  ;;  %v1793_v27 = vld [vmem:[%s2332_s18 + $0x84] sm:$0xf0]  ;;  %v1646_v29 = vor.u32 %v1811_v20, %v1645_v19  ;;  %v1510_v40 = vor.u32 %v1777_v25, %v1509_v23 }
  0xa6   : > { %1133 = vmatpush.bf16.msra.mxu1 %v1598_v0  ;;  %v1637_v30 = vld [vmem:[%s2332_s18 + $0x100] sm:$0xf]  ;;  %v1809_v31 = vld [vmem:[%s2332_s18 + $0x104] sm:$0xf0]  ;;  %v1710_v33 = vor.u32 %v1827_v22, %v1709_v21  ;;  %v1790_v35 = vld [vmem:[%s2332_s18 + $0x74] sm:$0xf]  ;;  %v1574_v44 = vor.u32 %v1793_v27, %v1573_v26 }
  0xa7   : > { %1147 = vmatpush.bf16.msra.mxu2 %v1662_v1  ;;  %v1701_v32 = vld [vmem:[%s2332_s18 + $0x180] sm:$0xf]  ;;  %v1825_v34 = vld [vmem:[%s2332_s18 + $0x184] sm:$0xf0]  ;;  %v1567_v36 = vld [vmem:[%s2332_s18 + $0x78] sm:$0xf0]  ;;  %v1638_v45 = vor.u32 %v1809_v31, %v1637_v30 }
  0xa8   : > { %1161 = vmatpush.bf16.msra.mxu3 %v1726_v5  ;;  %v1806_v37 = vld [vmem:[%s2332_s18 + $0xf4] sm:$0xf]  ;;  %v1631_v38 = vld [vmem:[%s2332_s18 + $0xf8] sm:$0xf0]  ;;  %v1788_v46 = vld [vmem:[%s2332_s18 + $0x64] sm:$0xf]  ;;  %v1702_v50 = vor.u32 %v1825_v34, %v1701_v32  ;;  %v1570_v51 = vor.u32 %v1790_v35, %v1567_v36 }
  0xa9   : > { %1120 = vmatpush.bf16.msra.mxu0 %v1526_v11  ;;  %v1822_v39 = vld [vmem:[%s2332_s18 + $0x174] sm:$0xf]  ;;  %v1695_v41 = vld [vmem:[%s2332_s18 + $0x178] sm:$0xf0]  ;;  %v1559_v47 = vld [vmem:[%s2332_s18 + $0x68] sm:$0xf0]  ;;  %v1634_v56 = vor.u32 %v1806_v37, %v1631_v38 }
  0xaa   : > { %1134 = vmatpush.bf16.msra.mxu1 %v1590_v12  ;;  %v1838_v42 = vld [vmem:[%s2332_s18 + $0x1f4] sm:$0xf]  ;;  %v1759_v43 = vld [vmem:[%s2332_s18 + $0x1f8] sm:$0xf0]  ;;  %v1501_v48 = vld [vmem:[%s2330_s12 + $0x8] sm:$0xf]  ;;  %v1698_v57 = vor.u32 %v1822_v39, %v1695_v41  ;;  %v1562_v6 = vor.u32 %v1788_v46, %v1559_v47 }
  0xab   : > { %1148 = vmatpush.bf16.msra.mxu2 %v1654_v13  ;;  %v1775_v49 = vld [vmem:[%s2330_s12 + $0x14] sm:$0xf0]  ;;  %v1804_v52 = vld [vmem:[%s2332_s18 + $0xe4] sm:$0xf]  ;;  %v1623_v53 = vld [vmem:[%s2332_s18 + $0xe8] sm:$0xf0]  ;;  %v1762_v61 = vor.u32 %v1838_v42, %v1759_v43 }
  0xac   : > { %1162 = vmatpush.bf16.msra.mxu3 %v1718_v17  ;;  %v1820_v54 = vld [vmem:[%s2332_s18 + $0x164] sm:$0xf]  ;;  %v1687_v55 = vld [vmem:[%s2332_s18 + $0x168] sm:$0xf0]  ;;  %v1503_v59 = vld [vmem:[%s2330_s12 + $0x18] sm:$0xf0]  ;;  %v2422_v62 = vor.u32 %v1775_v49, %v1501_v48  ;;  %v1626_v8 = vor.u32 %v1804_v52, %v1623_v53 }
  0xad   : > { %1121 = vmatpush.bf16.msra.mxu0 %v1518_v24  ;;  %v1773_v58 = vld [vmem:[%s2330_s12 + $0xc] sm:$0xf]  ;;  %v1493_v60 = vld [vmem:[%s2330_s12] sm:$0xf]  ;;  %v1774_v63 = vld [vmem:[%s2330_s12 + $0xc] sm:$0xf0]  ;;  %v1690_v9 = vor.u32 %v1820_v54, %v1687_v55 }
  0xae   : > { %1135 = vmatpush.bf16.msra.mxu1 %v1582_v28  ;;  %v1772_v0 = vld [vmem:[%s2330_s12 + $0x4] sm:$0xf]  ;;  %v1495_v1 = vld [vmem:[%s2330_s12 + $0x10] sm:$0xf0]  ;;  %v1751_v3 = vld [vmem:[%s2332_s18 + $0x1e8] sm:$0xf0]  ;;  %v2429_v4 = vor.u32 %v1773_v58, %v1503_v59  ;;  %v2431_v5 = vor.u32 %v1774_v63, %v1493_v60 }
  0xaf   : > { %1149 = vmatpush.bf16.msra.mxu2 %v1646_v29  ;;  %v1836_v2 = vld [vmem:[%s2332_s18 + $0x1e4] sm:$0xf]  ;;  %v2433_v7 = vor.u32 %v1772_v0, %v1495_v1  ;;  %v1786_v10 = vld [vmem:[%s2332_s18 + $0x54] sm:$0xf]  ;;  %v1551_v11 = vld [vmem:[%s2332_s18 + $0x58] sm:$0xf0] }
  0xb0   : > { %1163 = vmatpush.bf16.msra.mxu3 %v1710_v33  ;;  %v1802_v12 = vld [vmem:[%s2332_s18 + $0xd4] sm:$0xf]  ;;  %v1754_v13 = vor.u32 %v1836_v2, %v1751_v3  ;;  %v1615_v14 = vld [vmem:[%s2332_s18 + $0xd8] sm:$0xf0]  ;;  %v1554_v19 = vor.u32 %v1786_v10, %v1551_v11  ;;  %v1784_v22 = vld [vmem:[%s2332_s18 + $0x44] sm:$0xf] }
  0xb1   : > { %1122 = vmatpush.bf16.msra.mxu0 %v1510_v40  ;;  %v1818_v15 = vld [vmem:[%s2332_s18 + $0x154] sm:$0xf]  ;;  %v1679_v16 = vld [vmem:[%s2332_s18 + $0x158] sm:$0xf0]  ;;  %v1618_v20 = vor.u32 %v1802_v12, %v1615_v14  ;;  %v1543_v23 = vld [vmem:[%s2332_s18 + $0x48] sm:$0xf0] }
  0xb2   : > { %1136 = vmatpush.bf16.msra.mxu1 %v1574_v44  ;;  %v1834_v17 = vld [vmem:[%s2332_s18 + $0x1d4] sm:$0xf]  ;;  %v1743_v18 = vld [vmem:[%s2332_s18 + $0x1d8] sm:$0xf0]  ;;  %v1682_v21 = vor.u32 %v1818_v15, %v1679_v16  ;;  %v1800_v24 = vld [vmem:[%s2332_s18 + $0xc4] sm:$0xf]  ;;  %v1546_v31 = vor.u32 %v1784_v22, %v1543_v23 }
  0xb3   : > { %1150 = vmatpush.bf16.msra.mxu2 %v1638_v45  ;;  %v1746_v25 = vor.u32 %v1834_v17, %v1743_v18  ;;  %v1607_v26 = vld [vmem:[%s2332_s18 + $0xc8] sm:$0xf0]  ;;  %v1816_v27 = vld [vmem:[%s2332_s18 + $0x144] sm:$0xf]  ;;  %v1782_v34 = vld [vmem:[%s2332_s18 + $0x34] sm:$0xf] }
  0xb4   : > { %1164 = vmatpush.bf16.msra.mxu3 %v1702_v50  ;;  %1123 = vmatmul.bf16.vlgmr.msra.gmra.mxu0 %v2431_v5  ;;  %v1671_v28 = vld [vmem:[%s2332_s18 + $0x148] sm:$0xf0]  ;;  %v1832_v29 = vld [vmem:[%s2332_s18 + $0x1c4] sm:$0xf]  ;;  %v1610_v32 = vor.u32 %v1800_v24, %v1607_v26  ;;  %v1535_v35 = vld [vmem:[%s2332_s18 + $0x38] sm:$0xf0] }
  0xb5   : > { %1171 = vmatpush.bf16.msrb.mxu0 %v1570_v51  ;;  %1137 = vmatmul.bf16.vlgmr.msra.gmra.mxu1 %v2433_v7  ;;  %v1735_v30 = vld [vmem:[%s2332_s18 + $0x1c8] sm:$0xf0]  ;;  %v1674_v33 = vor.u32 %v1816_v27, %v1671_v28  ;;  %v1798_v36 = vld [vmem:[%s2332_s18 + $0xb4] sm:$0xf]  ;;  %v1599_v38 = vld [vmem:[%s2332_s18 + $0xb8] sm:$0xf0]  ;;  %v1538_v43 = vor.u32 %v1782_v34, %v1535_v35 }
  0xb6   : > { %1185 = vmatpush.bf16.msrb.mxu1 %v1634_v56  ;;  %1151 = vmatmul.bf16.vlgmr.msra.gmra.mxu2 %v2422_v62  ;;  %v1738_v37 = vor.u32 %v1832_v29, %v1735_v30  ;;  %v1814_v39 = vld [vmem:[%s2332_s18 + $0x134] sm:$0xf]  ;;  %v1663_v40 = vld [vmem:[%s2332_s18 + $0x138] sm:$0xf0]  ;;  %v1602_v44 = vor.u32 %v1798_v36, %v1599_v38  ;;  %v1780_v46 = vld [vmem:[%s2332_s18 + $0x24] sm:$0xf] }
  0xb7   : > { %1199 = vmatpush.bf16.msrb.mxu2 %v1698_v57  ;;  %1165 = vmatmul.bf16.vlgmr.msra.gmra.mxu3 %v2429_v4  ;;  %v1830_v41 = vld [vmem:[%s2332_s18 + $0x1b4] sm:$0xf]  ;;  %v1727_v42 = vld [vmem:[%s2332_s18 + $0x1b8] sm:$0xf0]  ;;  %v1666_v45 = vor.u32 %v1814_v39, %v1663_v40  ;;  %v1527_v47 = vld [vmem:[%s2332_s18 + $0x28] sm:$0xf0] }
  0xb8   : > { %1213 = vmatpush.bf16.msrb.mxu3 %v1762_v61  ;;  %v1796_v48 = vld [vmem:[%s2332_s18 + $0xa4] sm:$0xf]  ;;  %v1730_v49 = vor.u32 %v1830_v41, %v1727_v42  ;;  %v1591_v50 = vld [vmem:[%s2332_s18 + $0xa8] sm:$0xf0]  ;;  %v1530_v55 = vor.u32 %v1780_v46, %v1527_v47  ;;  %v1778_v58 = vld [vmem:[%s2332_s18 + $0x14] sm:$0xf] }
  0xb9   : > { %1172 = vmatpush.bf16.msrb.mxu0 %v1562_v6  ;;  %v1812_v51 = vld [vmem:[%s2332_s18 + $0x124] sm:$0xf]  ;;  %v1655_v52 = vld [vmem:[%s2332_s18 + $0x128] sm:$0xf0]  ;;  %v1594_v56 = vor.u32 %v1796_v48, %v1591_v50  ;;  %v1519_v59 = vld [vmem:[%s2332_s18 + $0x18] sm:$0xf0] }
  0xba   : > { %1186 = vmatpush.bf16.msrb.mxu1 %v1626_v8  ;;  %v1828_v53 = vld [vmem:[%s2332_s18 + $0x1a4] sm:$0xf]  ;;  %v1719_v54 = vld [vmem:[%s2332_s18 + $0x1a8] sm:$0xf0]  ;;  %v1658_v57 = vor.u32 %v1812_v51, %v1655_v52  ;;  %v1794_v60 = vld [vmem:[%s2332_s18 + $0x94] sm:$0xf]  ;;  %v1522_v6 = vor.u32 %v1778_v58, %v1519_v59 }
  0xbb   : > { %1200 = vmatpush.bf16.msrb.mxu2 %v1690_v9  ;;  %v1722_v61 = vor.u32 %v1828_v53, %v1719_v54  ;;  %v1583_v63 = vld [vmem:[%s2332_s18 + $0x98] sm:$0xf0]  ;;  %v1810_v0 = vld [vmem:[%s2332_s18 + $0x114] sm:$0xf]  ;;  %v1776_v10 = vld [vmem:[%s2332_s18 + $0x4] sm:$0xf] }
  0xbc   : > { %1214 = vmatpush.bf16.msrb.mxu3 %v1754_v13  ;;  %v1647_v1 = vld [vmem:[%s2332_s18 + $0x118] sm:$0xf0]  ;;  %v1826_v2 = vld [vmem:[%s2332_s18 + $0x194] sm:$0xf]  ;;  %v1586_v8 = vor.u32 %v1794_v60, %v1583_v63  ;;  %v1511_v11 = vld [vmem:[%s2332_s18 + $0x8] sm:$0xf0] }
  0xbd   : > { %1173 = vmatpush.bf16.msrb.mxu0 %v1554_v19  ;;  %v1711_v3 = vld [vmem:[%s2332_s18 + $0x198] sm:$0xf0]  ;;  %v1650_v9 = vor.u32 %v1810_v0, %v1647_v1  ;;  %v1792_v12 = vld [vmem:[%s2332_s18 + $0x84] sm:$0xf]  ;;  %v1575_v14 = vld [vmem:[%s2332_s18 + $0x88] sm:$0xf0]  ;;  %v1514_v19 = vor.u32 %v1776_v10, %v1511_v11 }
  0xbe   : > { %1187 = vmatpush.bf16.msrb.mxu1 %v1618_v20  ;;  %v1714_v13 = vor.u32 %v1826_v2, %v1711_v3  ;;  %v1808_v15 = vld [vmem:[%s2332_s18 + $0x104] sm:$0xf]  ;;  %v1639_v16 = vld [vmem:[%s2332_s18 + $0x108] sm:$0xf0]  ;;  %v1578_v20 = vor.u32 %v1792_v12, %v1575_v14  ;;  %v703_v29 = vld [vmem:[#allocation2 + $0x10] sm:$0xff]  ;;  %p1763_p6 = scmp.ne.s32.totalorder %s2000_s24, 8 }
  0xbf   : > { %1201 = vmatpush.bf16.msrb.mxu2 %v1682_v21  ;;  %v1824_v17 = vld [vmem:[%s2332_s18 + $0x184] sm:$0xf]  ;;  %v1703_v18 = vld [vmem:[%s2332_s18 + $0x188] sm:$0xf0]  ;;  %v1642_v21 = vor.u32 %v1808_v15, %v1639_v16  ;;  %v705_v36 = vld [vmem:[#allocation2 + $0x18] sm:$0xff] }
  0xc0   : > { %1215 = vmatpush.bf16.msrb.mxu3 %v1746_v25  ;;  %v1706_v22 = vor.u32 %v1824_v17, %v1703_v18  ;;  %v706_v51 = vld [vmem:[#allocation2 + $0x8] sm:$0xff] }
  0xc1   : > { %1174 = vmatpush.bf16.msrb.mxu0 %v1546_v31 }
  0xc2   : > { %1188 = vmatpush.bf16.msrb.mxu1 %v1610_v32 }
  0xc3   : > { %1202 = vmatpush.bf16.msrb.mxu2 %v1674_v33 }
  0xc4   : > { %1216 = vmatpush.bf16.msrb.mxu3 %v1738_v37 }
  0xc5   : > { %1175 = vmatpush.bf16.msrb.mxu0 %v1538_v43  ;;  %v704_v43 = vld [vmem:[#allocation2] sm:$0xff] }
  0xc6   : > { %1189 = vmatpush.bf16.msrb.mxu1 %v1602_v44 }
  0xc7   : > { %1203 = vmatpush.bf16.msrb.mxu2 %v1666_v45 }
  0xc8   : > { %1217 = vmatpush.bf16.msrb.mxu3 %v1730_v49 }
  0xc9   : > { %1176 = vmatpush.bf16.msrb.mxu0 %v1530_v55 }
  0xca   : > { %1190 = vmatpush.bf16.msrb.mxu1 %v1594_v56 }
  0xcb   : > { %1204 = vmatpush.bf16.msrb.mxu2 %v1658_v57 }
  0xcc   : > { %1218 = vmatpush.bf16.msrb.mxu3 %v1722_v61 }
  0xcd   : > { %1177 = vmatpush.bf16.msrb.mxu0 %v1522_v6 }
  0xce   : > { %1191 = vmatpush.bf16.msrb.mxu1 %v1586_v8 }
  0xcf   : > { %1205 = vmatpush.bf16.msrb.mxu2 %v1650_v9 }
  0xd0   : > { %1219 = vmatpush.bf16.msrb.mxu3 %v1714_v13 }
  0xd1   : > { %1178 = vmatpush.bf16.msrb.mxu0 %v1514_v19 }
  0xd2   : > { %1192 = vmatpush.bf16.msrb.mxu1 %v1578_v20 }
  0xd3   : > { %1206 = vmatpush.bf16.msrb.mxu2 %v1642_v21 }
  0xd4   : > { %1220 = vmatpush.bf16.msrb.mxu3 %v1706_v22  ;;  %1179 = vmatmul.bf16.vlgmr.msrb.gmra.mxu0 %v2431_v5 }
  0xd5   : > { %1193 = vmatmul.bf16.vlgmr.msrb.gmra.mxu1 %v2433_v7 }
  0xd6   : > { %1207 = vmatmul.bf16.vlgmr.msrb.gmra.mxu2 %v2422_v62 }
  0xd7   : > { %1221 = vmatmul.bf16.vlgmr.msrb.gmra.mxu3 %v2429_v4 }
 0x131   : > { %v1124_v23 = vpop.f32.mrf.mxu0 }
 0x132   : > { %v1138_v24 = vpop.f32.mrf.mxu1 }
 0x133   : > { %v1139_v25 = vadd.f32 %v1138_v24, %v1124_v23 }
 0x139   : > { %v1152_v26 = vpop.f32.mrf.mxu2  ;;  %v1126_v31 = vpop.f32.mrf.mxu0 }
 0x13a   : > { %v1153_v27 = vadd.f32 %v1152_v26, %v1139_v25  ;;  %v1166_v28 = vpop.f32.mrf.mxu3  ;;  %v1140_v32 = vpop.f32.mrf.mxu1 }
 0x13b   : > { %v1141_v34 = vadd.f32 %v1140_v32, %v1126_v31 }
 0x13c   : > { %v1167_v30 = vadd.f32 %v1166_v28, %v1153_v27 }
 0x13e   : > { %v1227_v33 = vadd.f32 %v1167_v30, %v703_v29 }
 0x140   : > { %1231 = vst [vmem:[#allocation2 + $0x10] sm:$0xff] %v1227_v33 }
 0x141   : > { %v1154_v5 = vpop.f32.mrf.mxu2 }
 0x142   : > { %v1155_v35 = vadd.f32 %v1154_v5, %v1141_v34  ;;  %v1168_v7 = vpop.f32.mrf.mxu3 }
 0x144   : > { %v1169_v62 = vadd.f32 %v1168_v7, %v1155_v35 }
 0x146   : > { %v1229_v37 = vadd.f32 %v1169_v62, %v705_v36 }
 0x148   : > { %1233 = vst [vmem:[#allocation2 + $0x18] sm:$0xff] %v1229_v37 }
 0x151   : > { %v1180_v4 = vpop.f32.mrf.mxu0 }
 0x152   : > { %v1194_v38 = vpop.f32.mrf.mxu1 }
 0x153   : > { %v1195_v39 = vadd.f32 %v1194_v38, %v1180_v4 }
 0x159   : > { %v1208_v40 = vpop.f32.mrf.mxu2  ;;  %v1182_v45 = vpop.f32.mrf.mxu0 }
 0x15a   : > { %v1209_v41 = vadd.f32 %v1208_v40, %v1195_v39  ;;  %v1222_v42 = vpop.f32.mrf.mxu3  ;;  %v1196_v46 = vpop.f32.mrf.mxu1 }
 0x15b   : > { %v1197_v48 = vadd.f32 %v1196_v46, %v1182_v45 }
 0x15c   : > { %v1223_v44 = vadd.f32 %v1222_v42, %v1209_v41 }
 0x15e   : > { %v1228_v47 = vadd.f32 %v1223_v44, %v704_v43 }
 0x160   : > { %1232 = vst [vmem:[#allocation2] sm:$0xff] %v1228_v47 }
 0x161   : > { %v1210_v49 = vpop.f32.mrf.mxu2 }
 0x162   : > { %v1211_v50 = vadd.f32 %v1210_v49, %v1197_v48  ;;  %v1224_v52 = vpop.f32.mrf.mxu3 }
 0x164   : > { %v1225_v53 = vadd.f32 %v1224_v52, %v1211_v50  ;;  %1238 = sbr.rel (%p1763_p6) target bundleno = 379 (0x17b), region = 147 }
 0x166   : > { %v1230_v54 = vadd.f32 %v1225_v53, %v706_v51 }
 0x168   : > { %1234 = vst [vmem:[#allocation2 + $0x8] sm:$0xff] %v1230_v54 }
 0x169   : > { %v1239_v55 = vld [vmem:[#allocation2 + $0x10] sm:$0xff]  ;;  %v1240_v56 = vld [vmem:[#allocation2] sm:$0xff]  ;;  %v1241_v63 = vld [vmem:[#allocation2 + $0x18] sm:$0xff] }
 0x16a   : > { %v1243_v57 = vld [vmem:[%s684_s10] sm:$0x3]  ;;  %v1264_v8 = vld [vmem:[%s637_s7 + $0x8] sm:$0xff] }
 0x16b   : > { %v1245_v58 = vperm.slane %v1243_v57, 0  ;;  %v1246_v59 = vperm.slane %v1243_v57, 1  ;;  %v1253_v60 = vld [vmem:[%s689_s20] sm:$0x3]  ;;  %v1267_v13 = vunpack.c.l.bf16 %v1264_v8  ;;  %v1268_v14 = vunpack.c.h.bf16 %v1264_v8 }
 0x16c   : > { %v1263_v61 = vld [vmem:[%s637_s7] sm:$0xff]  ;;  %v1255_v0 = vperm.slane %v1253_v60, 0  ;;  %v1256_v1 = vperm.slane %v1253_v60, 1 }
 0x16d   : > { %v1265_v2 = vunpack.c.l.bf16 %v1263_v61  ;;  %v1266_v3 = vunpack.c.h.bf16 %v1263_v61  ;;  %v1249_v9 = vmul.f32 %v1245_v58, %v1239_v55  ;;  %v1250_v10 = vmul.f32 %v1246_v59, %v1240_v56 }
 0x16e   : > { %v1251_v11 = vmul.f32 %v1245_v58, %v1241_v63 }
 0x16f   : > { %v1242_v6 = vld [vmem:[#allocation2 + $0x8] sm:$0xff]  ;;  %v1259_v15 = vadd.f32 %v1255_v0, %v1249_v9  ;;  %v1260_v16 = vadd.f32 %v1256_v1, %v1250_v10 }
 0x170   : > { %v1252_v12 = vmul.f32 %v1246_v59, %v1242_v6  ;;  %v1261_v17 = vadd.f32 %v1255_v0, %v1251_v11 }
 0x171   : > { %v1269_v19 = vadd.f32 %v1265_v2, %v1259_v15  ;;  %v1270_v20 = vadd.f32 %v1266_v3, %v1260_v16 }
 0x172   : > { %v1262_v18 = vadd.f32 %v1256_v1, %v1252_v12  ;;  %v1271_v21 = vadd.f32 %v1267_v13, %v1261_v17 }
 0x173   : > { %v1273_v23 = vmax.f32 %v1269_v19, 0.0  ;;  %v1274_v24 = vmax.f32 %v1270_v20, 0.0 }
 0x174   : > { %v1272_v22 = vadd.f32 %v1268_v14, %v1262_v18  ;;  %v1275_v25 = vmax.f32 %v1271_v21, 0.0 }
 0x175   : > { %v1277_v27 = vpack.c.bf16 %v1274_v24, %v1273_v23 }
 0x176   : > { %v1276_v26 = vmax.f32 %v1272_v22, 0.0 }
 0x177   : > { %1279 = vst [vmem:[%s2336_s15] sm:$0xff] %v1277_v27 }
 0x178   : > { %v1278_v28 = vpack.c.bf16 %v1276_v26, %v1275_v25 }
 0x17a   : > { %1280 = vst [vmem:[%s2336_s15 + $0x8] sm:$0xff] %v1278_v28 }
 0x17b PF: > { %1287 = sbr.rel (!%p2153_p13) target bundleno = 387 (0x183), region = 151  ;;  %s1840_s24 = sshll.u32 (%p2153_p13), %s2004_s25, 3 }
 0x17c   : > { %s1293_s9 = scalar_lea.vmem (%p2153_p13), %s2554_s5, %s1840_s24 }
 0x17e   : > { %v1324_v29 = vld [vmem:[%s2336_s15] sm:$0xff] (%p2153_p13) }
 0x17f   : > { %1325 = vst [vmem:[%s1293_s9] sm:$0xff] (%p2153_p13), %v1324_v29 }
 0x181   : > { %v1326_v30 = vld [vmem:[%s2336_s15 + $0x8] sm:$0xff] }
 0x182   : > { %1327 = vst [vmem:[%s1293_s9 + $0x10] sm:$0xff] %v1326_v30 }
 0x183 PF: > { %s15_s28 = sadd.s32 1, %s2016_s28   ;;  %s2566_s8 = sld [smem:[#allocation9_spill]] }
 0x184   : > { %p12_p7 = scmp.ge.s32.totalorder %s15_s28, 20   ;;  %s2567_s10 = sld [smem:[#allocation7_spill]] }
 0x185   : > { %s2568_s6 = sld [smem:[#allocation8_spill]]  ;;  %s2569_s18 = smov %s1980_s19 }
 0x186   : > { %s2570_s19 = smov %s2145_s17  ;;  %s2571_s20 = smov %s1988_s21 }
 0x187   : > { %s2572_s21 = smov %s2142_s16  ;;  %s2573_s22 = smov %s1996_s23 }
 0x188   : > { %s2575_s24 = smov %s2008_s26  ;;  %s2576_s25 = smov %s2012_s27 }
 0x189   : > { %s2574_s23 = smov %s2566_s8  ;;  %14 = sbr.rel (!%p12_p7) target bundleno = 8 (0x8), region = 242 }
 0x18a   : > { %s2577_s26 = smov %s2567_s10 }
 0x18b   : > { %s2578_s27 = smov %s2568_s6 }

</bundles_post_ra>
